<compile_context>
chip_gen: v7x
topology: tpu7x:2x2x1
jax: 0.10.0
libtpu: 0.0.40
codegen_flags: <defaults>
</compile_context>

<pallas_src>
import numpy as np
import jax
import jax.numpy as jnp
from jax.experimental import pallas as pl
from jax.experimental.pallas import tpu as pltpu


# ----------------------------- index / matrix helpers -----------------------


def _nearest_indices(out_size: int, in_size: int) -> np.ndarray:
    """PyTorch 'nearest' source indices with exact integer math: (dst*in)//out."""
    dst = np.arange(out_size, dtype=np.int64)
    src = (dst * in_size) // out_size
    return np.minimum(src, in_size - 1).astype(np.int32)


def _selection_matrix(h_in, w_in, h_out, w_out, dtype) -> jnp.ndarray:
    """(H_in*W_in, H_out*W_out) one-hot so that x_flat @ S is the nearest gather."""
    h_idx = _nearest_indices(h_out, h_in)                    # (H_out,)
    w_idx = _nearest_indices(w_out, w_in)                    # (W_out,)
    h_sel = np.arange(h_in)[:, None] == h_idx[None, :]       # (H_in, H_out)
    w_sel = np.arange(w_in)[:, None] == w_idx[None, :]       # (W_in, W_out)
    sel = h_sel[:, None, :, None] & w_sel[None, :, None, :]  # (H_in,W_in,H_out,W_out)
    sel = sel.reshape(h_in * w_in, h_out * w_out)
    return jnp.asarray(sel, dtype=dtype)


# ----------------------------- tile sizing -----------------------------------


def _round_up(x, m):
    return (x + m - 1) // m * m


def _sublane(dtype) -> int:
    bits = jnp.dtype(dtype).itemsize * 8
    return max(8, 256 // bits)                # f32 -> 8, bf16 -> 16, int8 -> 32


def _tpu_budgets():
    """(per-step block budget bytes, vmem_limit_bytes) per TPU generation."""
    try:
        kind = jax.devices()[0].device_kind.lower()
    except Exception:
        kind = ""
    mib = 1024 * 1024
    if "v7" in kind:                          # 64 MiB physical VMEM, 3.2 TB/s HBM
        return 40 * mib, 48 * mib
    if "v6" in kind:                          # 128 MiB physical VMEM
        return 80 * mib, 96 * mib
    if "v5e" in kind or "v5 lite" in kind:    # 128 MiB VMEM, lowest HBM BW
        return 56 * mib, 64 * mib
    return 28 * mib, 32 * mib                 # conservative default (v4 / unknown)


def _choose_c_tile(N, C, hw_in, hw_out, dtype, budget_bytes):
    """Largest channel tile whose padded, double-buffered footprint fits budget."""
    it = jnp.dtype(dtype).itemsize
    sub = _sublane(dtype)
    hw_in_p = _round_up(hw_in, 128)
    hw_out_p = _round_up(hw_out, 128)
    # Selection matrix is double-buffered (constant block; Pallas won't re-DMA it,
    # but we budget 2x.  pl.Buffered(1) would halve this; omitted for portability).
    sel_bytes = 2 * _round_up(hw_in, sub) * hw_out_p * it
    per_c = (2 * hw_in_p * it          # double-buffered input plane rows
             + 2 * hw_out_p * it       # double-buffered output plane rows
             + hw_out_p * 4)           # f32 matmul accumulator
    tc = max(1, (budget_bytes - sel_bytes) // per_c)
    tc = int(min(C, tc))
    if tc < C:
        # keep the (8,128) block constraint: sublane-granule multiple (full-C is
        # always legal).
        tc = min(C, max(sub, (tc // sub) * sub))
    # keep >= 2 parallel grid steps when possible (megacore / v7x dual TC)
    if N * pl.cdiv(C, tc) < 2 and C > sub:
        half = min(C, _round_up(pl.cdiv(C, 2), sub))
        if half < C:
            tc = half
    return tc


# ----------------------------- kernel ----------------------------------------


def _interp_kernel(x_ref, sel_ref, o_ref):
    # x_ref   : (tc, H_in*W_in)            flattened source planes (lane-dense)
    # sel_ref : (H_in*W_in, H_out*W_out)   one-hot nearest-selection matrix
    # o_ref   : (tc, H_out*W_out)          flattened output planes (lane-dense)
    o_ref[...] = jnp.dot(
        x_ref[...], sel_ref[...],
        preferred_element_type=jnp.float32,
        precision=jax.lax.Precision.HIGHEST,   # one-hot selection stays bit-exact
    ).astype(o_ref.dtype)


def interpolate_nearest(x: jnp.ndarray, size) -> jnp.ndarray:
    """Pallas equivalent of nn.functional.interpolate(x, size=size, mode='nearest')."""
    if isinstance(size, int):
        size = (size, size)
    N, C, H_in, W_in = x.shape
    H_out, W_out = int(size[0]), int(size[1])

    if (H_out, W_out) == (H_in, W_in):
        return x

    if not jnp.issubdtype(x.dtype, jnp.floating):
        # TODO(synk): integer/bool dtypes use a plain-JAX gather; the one-hot MXU
        # matmul is inexact for large ints and v7x has no integer MXU path.
        h_idx = _nearest_indices(H_out, H_in)
        w_idx = _nearest_indices(W_out, W_in)
        return x[:, :, h_idx, :][:, :, :, w_idx]

    hw_in = H_in * W_in
    hw_out = H_out * W_out
    sel = _selection_matrix(H_in, W_in, H_out, W_out, x.dtype)

    budget, vmem_limit = _tpu_budgets()
    tc = _choose_c_tile(N, C, hw_in, hw_out, x.dtype, budget)
    grid = (N, pl.cdiv(C, tc))

    itemsize = jnp.dtype(x.dtype).itemsize
    cost = pl.CostEstimate(
        flops=2 * N * C * hw_in * hw_out,
        transcendentals=0,
        bytes_accessed=(N * C * hw_in            # each source plane read once
                        + N * C * hw_out         # output writes
                        + hw_in * hw_out) * itemsize,   # selection matrix
    )

    x_flat = x.reshape(N, C, hw_in)              # lane-dense flattened input

    out_flat = pl.pallas_call(
        _interp_kernel,
        out_shape=jax.ShapeDtypeStruct((N, C, hw_out), x.dtype),
        grid=grid,
        in_specs=[
            pl.BlockSpec((pl.Squeezed(), tc, hw_in), lambda n, c: (n, c, 0)),
            # constant block: same index every step, so it is DMA'd only once
            pl.BlockSpec((hw_in, hw_out), lambda n, c: (0, 0)),
        ],
        out_specs=pl.BlockSpec((pl.Squeezed(), tc, hw_out), lambda n, c: (n, c, 0)),
        compiler_params=pltpu.CompilerParams(
            dimension_semantics=("parallel", "parallel"),
            vmem_limit_bytes=vmem_limit,
        ),
        cost_estimate=cost,
    )(x_flat, sel)

    return out_flat.reshape(N, C, H_out, W_out)


class Interpolate:
    """Mirror of the PyTorch module (forward only); mode='nearest' only."""

    def __init__(self, size, mode="nearest"):
        assert mode == "nearest", "only 'nearest' mode implemented"
        # TODO(synk): 'bilinear'/'bicubic' modes not implemented in the kernel.
        self.size = size
        self.mode = mode

    def __call__(self, x):
        return interpolate_nearest(x, self.size)


# ----------------------------- self test -------------------------------------


def _reference_nearest(x, size):
    if isinstance(size, int):
        size = (size, size)
    _, _, H_in, W_in = x.shape
    H_out, W_out = size
    h_idx = _nearest_indices(H_out, H_in)
    w_idx = _nearest_indices(W_out, W_in)
    return x[:, :, h_idx, :][:, :, :, w_idx]


if __name__ == "__main__":
    key = jax.random.PRNGKey(0)
    N, C, H, W = 2, 4, 16, 16
    out_size = (32, 32)

    x = jax.random.normal(key, (N, C, H, W), dtype=jnp.float32)

    model = Interpolate(size=out_size, mode="nearest")
    y = jax.block_until_ready(model(x))

    y_ref = _reference_nearest(x, out_size)
    assert y.shape == (N, C, out_size[0], out_size[1])
    assert jnp.allclose(y, y_ref, atol=1e-6, rtol=1e-6)

    print("KERNEL_OK")
</pallas_src>

<mosaic_0001>
module attributes {stable_mosaic.version = 11 : i64} {
  func.func @_interp_kernel(%arg0: i32, %arg1: i32, %arg2: memref<1x4x256xf32, #tpu.memory_space<vmem>>, %arg3: memref<256x1024xf32, #tpu.memory_space<vmem>>, %arg4: memref<1x4x1024xf32, #tpu.memory_space<vmem>>) attributes {dimension_semantics = [#tpu.dimension_semantics<parallel>, #tpu.dimension_semantics<parallel>], iteration_bounds = array<i64: 2, 1>, scalar_prefetch = 0 : i64, scratch_operands = 0 : i64, tpu.core_type = #tpu.core_type<tc>, window_params = [{transform_indices = @transform_0, window_bounds = array<i64: 1, 4, 256>}, {pipeline_mode = #tpu.pipeline_mode<synchronous>, transform_indices = @transform_1, window_bounds = array<i64: 256, 1024>}, {transform_indices = @transform_2, window_bounds = array<i64: 1, 4, 1024>}]} {
    %c0 = arith.constant 0 : index
    %c0_0 = arith.constant 0 : index
    %c0_1 = arith.constant 0 : index
    %0 = vector.load %arg2[%c0, %c0_0, %c0_1] : memref<1x4x256xf32, #tpu.memory_space<vmem>>, vector<1x4x256xf32>
    %1 = vector.shape_cast %0 : vector<1x4x256xf32> to vector<4x256xf32>
    %c0_2 = arith.constant 0 : index
    %c0_3 = arith.constant 0 : index
    %2 = vector.load %arg3[%c0_2, %c0_3] : memref<256x1024xf32, #tpu.memory_space<vmem>>, vector<256x1024xf32>
    %cst = arith.constant dense<0.000000e+00> : vector<4x1024xf32>
    %3 = tpu.matmul %1, %2, %cst {dimension_numbers = #tpu.dot_dimension_numbers<[1], [0], [0], [1], [0, 0, 1, 1], [], []>, precision = #tpu.contract_precision<fp32>} : vector<4x256xf32>, vector<256x1024xf32>, vector<4x1024xf32> -> vector<4x1024xf32>
    %c0_4 = arith.constant 0 : index
    %c0_5 = arith.constant 0 : index
    %c0_6 = arith.constant 0 : index
    %4 = vector.load %arg4[%c0_4, %c0_5, %c0_6] : memref<1x4x1024xf32, #tpu.memory_space<vmem>>, vector<1x4x1024xf32>
    %5 = vector.shape_cast %4 : vector<1x4x1024xf32> to vector<4x1024xf32>
    %6 = vector.shape_cast %3 : vector<4x1024xf32> to vector<1x4x1024xf32>
    tpu.vector_store %arg4[%c0_4, %c0_5, %c0_6], %6 {strides = array<i32>} : memref<1x4x1024xf32, #tpu.memory_space<vmem>>, vector<1x4x1024xf32>,
    return
  }
  func.func @transform_0(%arg0: i32, %arg1: i32) -> (i32, i32, i32) {
    %c0_i32 = arith.constant 0 : i32
    %c0_i32_0 = arith.constant 0 : i32
    return %arg0, %arg1, %c0_i32 : i32, i32, i32
  }
  func.func @transform_1(%arg0: i32, %arg1: i32) -> (i32, i32) {
    %c0_i32 = arith.constant 0 : i32
    %c0_i32_0 = arith.constant 0 : i32
    %c0_i32_1 = arith.constant 0 : i32
    return %c0_i32, %c0_i32_0 : i32, i32
  }
  func.func @transform_2(%arg0: i32, %arg1: i32) -> (i32, i32, i32) {
    %c0_i32 = arith.constant 0 : i32
    %c0_i32_0 = arith.constant 0 : i32
    return %arg0, %arg1, %c0_i32 : i32, i32, i32
  }
}

</mosaic_0001>

<bundles_post_ra>
// kernel: tpu_custom_call.1
= control target key start
LH: loop header
LB: loop body
LE: loop exit
PB: predicated region body
PF: predicated region fallthrough
CT: control target
= control target key end

     0   :  { %7 = vsyncpa [#allocation3], 0  ;;  %s11289_s0 = inlined_call_operand.hbm [shape: f32[2,4,256], index: 0, kind: input, shape index: {}]   ;;  %s11290_s1 = inlined_call_operand.hbm [shape: f32[256,1024], index: 1, kind: input, shape index: {}]   ;;  %s11291_s2 = inlined_call_operand.hbm [shape: f32[2,4,1024], index: 2, kind: output, shape index: {}]  }
   0x1   :  { %9 = vsyncpa [#allocation3 + $0x1], 0 }
   0x2   :  { %10 = vsyncpa [#allocation6], 0 }
   0x3   :  { %11 = vsyncpa [#allocation4], 0 }
   0x4   :  { %13 = vsyncpa [#allocation4 + $0x1], 0  ;;  %s7557_s9 = smov 0   ;;  %s7559_s10 = smov 0  }
   0x5   :  { %s7561_s11 = smov 0   ;;  %s7563_s12 = smov 0  }
   0x6   :  { %s7565_s13 = smov 0   ;;  %s7567_s14 = smov 0  }
   0x7 LB: > { %s5720_s15 = sadd.s32 4294967295, %s7535_s14   ;;  %s5721_s16 = sadd.s32 4294967294, %s7535_s14   ;;  %s7535_s14 = sphi %s7567_s14, %s19_s14   ;;  %s7531_s13 = sphi %s7565_s13, %s13905_s13   ;;  %s7527_s12 = sphi %s7563_s12, %s13904_s12   ;;  %s7523_s11 = sphi %s7561_s11, %s13903_s11   ;;  %s7519_s10 = sphi %s7559_s10, %s13902_s10   ;;  %s7515_s9 = sphi %s7557_s9, %s13901_s9  }
   0x8   : > { %p53_p0 = scmp.ne.s32.totalorder %s7519_s10, %s7515_s9  ;;  %p7591_p1 = scmp.eq.s32.totalorder %s5720_s15, 0 }
   0x9   : > { %p7595_p2 = scmp.eq.s32.totalorder %s5720_s15, 1  ;;  %p106_p3 = scmp.eq.s32.totalorder %s5721_s16, 1 }
   0xa   : > { %s12172_s17 = scalar_select %p7591_p1, 1, 0 }
   0xb   : > { %s12173_s18 = scalar_select %p7595_p2, 1, 0 }
   0xc   : > { %p7601_p4 = por %p7591_p1, %p53_p0  ;;  %p5722_p5 = scmp.ge.s32.totalorder %s7535_s14, 1 }
   0xd   : > { %p7606_p6 = por %p106_p3, %p53_p0  ;;  %p113_p7 = scmp.lt.s32.totalorder %s7535_s14, 3 }
   0xe   : > { %s12174_s19 = scalar_select %p7601_p4, 1, 0 }
   0xf   : > { %s12175_s20 = scalar_select %p7606_p6, 1, 0 }
  0x10   : > { %p7611_p8 = pnand %p5722_p5, %p113_p7  ;;  %s7537_s22 = smov [#allocation5]  }
  0x11   : > { %s125_s23 = sshll.u32 %s7537_s22, 4  ;;  %s31_s25 = sadd.s32 1, %s7531_s13  ;;  %s126_s23 = int_to_ptr.vmem [resolvable:$true] %s125_s23 }
  0x12   : > { %s12176_s21 = scalar_select %p7611_p8, 1, 0 }
  0x13   : > { %p7323_p9 = pneg %p7611_p8  ;;  %s7391_s28 = scalar_lea.hbm %s11290_s1, 32768 }
  0x14   : > { %p7392_p12 = scmp.ne.s32.totalorder %s11290_s1, %s7391_s28  ;;  %p7398_p5 = scmp.lt.u32.totalorder %s7391_s28, %s11290_s1 }
  0x15   : > { %p7620_p11 = pnand %p7323_p9, %p7591_p1 }
  0x17   : > { %p7393_p13 = pneg %p7620_p11 }
  0x19   : > { %p7394_p0 = pnand %p7393_p13, %p7392_p12 }
  0x1b   : > { %p7395_p3 = pneg %p7394_p0 }
  0x1d   : > { %p7400_p7 = pnand %p7398_p5, %p7395_p3 }
  0x1f   : > { %7403 = shalt.err (!%p7400_p7)
}
  0x20   : > { %s7404_s5 = scalar_lea.vmem %s126_s23, 32768  ;;  %p7412_p1 = scmp.lt.s32.totalorder %s126_s23, %s126_s23 }
  0x21   : > { %p7405_p9 = scmp.ne.s32.totalorder %s126_s23, %s7404_s5  ;;  %p7413_p4 = scmp.lt.s32.totalorder %s7404_s5, %s7404_s5 }
  0x23   : > { %p7407_p10 = pnand %p7405_p9, %p7393_p13  ;;  %p7414_p8 = por %p7413_p4, %p7412_p1 }
  0x25   : > { %p7408_p6 = pneg %p7407_p10 }
  0x27   : > { %p7415_p2 = pnand %p7414_p8, %p7408_p6 }
  0x29   : > { %7418 = shalt.err (!%p7415_p2)
}
  0x2a   : > { %s7538_s6 = smov 1024   ;;  %s7539_s7 = smov 64  }
  0x2b   : > { %7326 = dma.hbm_to_vmem [thread:$0]  (!%p7620_p11), %s11290_s1, 32768, %s126_s23, [#allocation6], %s7538_s6, %s7538_s6, %s7539_s7  }
  0x2c   : > { %p33_p1 = scmp.ge.s32.totalorder %s31_s25, 2  ;;  %s40_s16 = sadd.s32 1, %s7523_s11 }
  0x2d   : > { %p47_p2 = scmp.ne.s32.totalorder %s7523_s11, %s7519_s10  ;;  %p48_p4 = scmp.eq.s32.totalorder %s7535_s14, 0 }
  0x2e   : > { %s13907_s25 = smov (%p33_p1, %s31_s25), 0  ;;  %p12179_p8 = scmp.ne.s32.totalorder %s12173_s18, 0 }
  0x2f   : > { %p7647_p6 = por %p48_p4, %p47_p2  ;;  %s35_s24 = ssub.s32 %s7531_s13, %s13907_s25 }
  0x30   : > { %p7653_p10 = por %p12179_p8, %p47_p2  ;;  %p7336_p12 = scmp.lt.s32.totalorder %s7535_s14, 2 }
  0x31   : > { %p38_p11 = scmp.eq.s32.totalorder %s35_s24, 0  ;;  %s139_s23 = sand.u32 1, %s7523_s11  }
  0x32   : > { %s5725_s27 = sshll.u32 %s139_s23, 3  ;;  %s5737_s29 = sshll.u32 %s7531_s13, 7 }
  0x33   : > { %s7662_s28 = scalar_select %p38_p11, %s7523_s11, %s40_s16  }
  0x34   : > { %s7668_s4 = scalar_lea.hbm %s11289_s0, %s5737_s29  ;;  %s143_s18 = scalar_lea.vmem [#allocation2], %s5725_s27 }
  0x35   : > { %s153_s5 = sshll.u32 %s143_s18, 4  ;;  %p7674_p13 = pnand %p7336_p12, %p7647_p6  ;;  %s7670_s5 = int_to_ptr.vmem [resolvable:$true] %s153_s5 }
  0x36   : > { %s140_s7 = scalar_lea.sflag [#allocation3], %s139_s23  ;;  %s7419_s8 = scalar_lea.hbm %s7668_s4, 128 }
  0x37   : > { %p7420_p0 = scmp.ne.s32.totalorder %s7668_s4, %s7419_s8  ;;  %p7421_p3 = pneg %p7674_p13 }
  0x38   : > { %s7424_s24 = scalar_lea.hbm %s11289_s0, 256  ;;  %p7425_p9 = scmp.lt.u32.totalorder %s7668_s4, %s11289_s0 }
  0x39   : > { %p7422_p5 = pnand %p7421_p3, %p7420_p0  ;;  %p7426_p1 = scmp.lt.u32.totalorder %s7424_s24, %s7419_s8 }
  0x3a   : > { %p7428_p4 = scmp.lt.u32.totalorder %s7419_s8, %s7668_s4 }
  0x3b   : > { %p7423_p7 = pneg %p7422_p5  ;;  %p7427_p2 = por %p7426_p1, %p7425_p9 }
  0x3d   : > { %p7429_p6 = por %p7428_p4, %p7427_p2 }
  0x3f   : > { %p7430_p8 = pnand %p7429_p6, %p7423_p7 }
  0x41   : > { %7433 = shalt.err (!%p7430_p8)
}
  0x42   : > { %s7434_s23 = scalar_lea.vmem %s7670_s5, 128  ;;  %s7540_s29 = smov [#allocation2]  }
  0x43   : > { %p7435_p12 = scmp.ne.s32.totalorder %s7670_s5, %s7434_s23  ;;  %s7439_s30 = sshll.u32 %s7540_s29, 4  ;;  %s7440_s30 = int_to_ptr.vmem [resolvable:$false] %s7439_s30 }
  0x44   : > { %s7441_s3 = scalar_lea.vmem %s7440_s30, 256  ;;  %p7442_p5 = scmp.lt.s32.totalorder %s7670_s5, %s7440_s30 }
  0x45   : > { %p7437_p11 = pnand %p7435_p12, %p7421_p3  ;;  %p7443_p9 = scmp.lt.s32.totalorder %s7441_s3, %s7434_s23 }
  0x47   : > { %p7438_p0 = pneg %p7437_p11  ;;  %p7444_p1 = por %p7443_p9, %p7442_p5 }
  0x49   : > { %p7445_p2 = pnand %p7444_p1, %p7438_p0 }
  0x4b   : > { %7448 = shalt.err (!%p7445_p2)
}
  0x4c   : > { %7330 = dma.hbm_to_vmem [thread:$0]  (!%p7674_p13), %s7668_s4, 128, %s7670_s5, %s140_s7  }
  0x4d   : > { %p12182_p7 = scmp.ne.s32.totalorder %s12176_s21, 0 }
  0x4f   : > { %162 = sbr.rel (%p12182_p7) target bundleno = 1199 (0x4af), region = 28 }
  0x56   : > { %s7706_s18 = sand.u32 1, %s7519_s10   ;;  %p12183_p3 = scmp.ne.s32.totalorder %s12174_s19, 0 }
  0x57   : > { %s5729_s8 = sshll.u32 %s7706_s18, 3  ;;  %s165_s15 = scalar_lea.sflag [#allocation3], %s7706_s18 }
  0x58   : > { %s7710_s16 = scalar_lea.vmem [#allocation2], %s5729_s8 }
  0x59   : > { %7502 = dma.done.wait (%p12183_p3), %s165_s15, 128  }
  0x5a   : > { %7504 = vsyncadd (%p12183_p3), %s165_s15, 4294967168  ;;  %p12184_p13 = scmp.ne.s32.totalorder %s12172_s17, 0 }
  0x5c   : > { %7506 = dma.done.wait (%p12184_p13), [#allocation6], 32768  }
  0x5d   : > { %7508 = vsyncadd (%p12184_p13), [#allocation6], 4294934528  ;;  %v195_v0 = vld [vmem:[#allocation5 + $0x8] sm:$0xff]  ;;  %v197_v2 = vld [vmem:[#allocation5 + $0x18] sm:$0xff]  ;;  %s5731_s17 = sshll.u32 %s7706_s18, 5  ;;  %s5738_s21 = sshll.u32 %s7527_s12, 9 }
  0x5e   : > { %v203_v1 = vld [vmem:[#allocation5 + $0x48] sm:$0xff]  ;;  %v453_v3 = vand.u32 4294901760, %v195_v0  ;;  %v205_v5 = vld [vmem:[#allocation5 + $0x58] sm:$0xff]  ;;  %v1737_v6 = vand.u32 4294901760, %v197_v2  ;;  %v194_v7 = vld [vmem:[#allocation5] sm:$0xff]  ;;  %s10859_s19 = scalar_lea.vmem [#allocation7], %s5731_s17  ;;  %s11239_s7 = scalar_lea.hbm %s11291_s2, %s5738_s21 }
  0x5f   : > { %v457_v4 = vand.u32 4294901760, %v203_v1  ;;  %v202_v8 = vld [vmem:[#allocation5 + $0x40] sm:$0xff]  ;;  %v1741_v9 = vand.u32 4294901760, %v205_v5  ;;  %v455_v10 = vand.u32 4294901760, %v194_v7  ;;  %v196_v12 = vld [vmem:[#allocation5 + $0x10] sm:$0xff]  ;;  %v211_v14 = vld [vmem:[#allocation5 + $0x88] sm:$0xff] }
  0x60   : > { %v459_v11 = vand.u32 4294901760, %v202_v8  ;;  %v204_v13 = vld [vmem:[#allocation5 + $0x50] sm:$0xff]  ;;  %v7722_v16 = vsub.f32 %v195_v0, %v453_v3  ;;  %v7726_v18 = vsub.f32 %v197_v2, %v1737_v6  ;;  %v219_v19 = vld [vmem:[#allocation5 + $0xc8] sm:$0xff]  ;;  %v213_v20 = vld [vmem:[#allocation5 + $0x98] sm:$0xff]  ;;  %v1739_v28 = vand.u32 4294901760, %v196_v12  ;;  %s5626_s4 = sshll.u32 %s10859_s19, 4  ;;  %s11241_s4 = int_to_ptr.vmem [resolvable:$true] %s5626_s4 }
  0x61   : > { %v7720_v15 = vpack.c.bf16 %v457_v4, %v453_v3  ;;  %v7724_v17 = vsub.f32 %v203_v1, %v457_v4  ;;  %v221_v21 = vld [vmem:[#allocation5 + $0xd8] sm:$0xff]  ;;  %v7728_v22 = vpack.c.bf16 %v1741_v9, %v1737_v6  ;;  %v7730_v23 = vsub.f32 %v205_v5, %v1741_v9  ;;  %v210_v26 = vld [vmem:[#allocation5 + $0x80] sm:$0xff]  ;;  %v212_v36 = vld [vmem:[#allocation5 + $0x90] sm:$0xff]  ;;  %s5610_s24 = scalar_lea.sflag [#allocation4], %s7706_s18  ;;  %s7449_s22 = scalar_lea.vmem %s11241_s4, 512 }
  0x62   : > { %12186 = vst [vmem:[#allocation12_spill] sm:$0xff] %v7722_v16  ;;  %12188 = vst [vmem:[#allocation14_spill] sm:$0xff] %v7726_v18  ;;  %v7732_v24 = vpack.c.bf16 %v459_v11, %v455_v10  ;;  %v7734_v25 = vsub.f32 %v194_v7, %v455_v10  ;;  %v7737_v27 = vsub.f32 %v202_v8, %v459_v11  ;;  %v1743_v29 = vand.u32 4294901760, %v204_v13  ;;  %v218_v31 = vld [vmem:[#allocation5 + $0xc0] sm:$0xff]  ;;  %v220_v37 = vld [vmem:[#allocation5 + $0xd0] sm:$0xff]  ;;  %p7450_p4 = scmp.ne.s32.totalorder %s11241_s4, %s7449_s22  ;;  %s7541_s12 = smov [#allocation7]  }
  0x63   : > { %12185 = vst [vmem:[#allocation11_spill] sm:$0xff] %v7720_v15  ;;  %12187 = vst [vmem:[#allocation13_spill] sm:$0xff] %v7724_v17  ;;  %5740 = vmatprep.subr.bf16.mxu0 %v7720_v15  ;;  %v461_v30 = vand.u32 4294901760, %v211_v14  ;;  %6124 = vmatprep.subr.bf16.mxu1 %v7728_v22  ;;  %v465_v32 = vand.u32 4294901760, %v219_v19  ;;  %v1745_v33 = vand.u32 4294901760, %v213_v20  ;;  %v1749_v34 = vand.u32 4294901760, %v221_v21 }
  0x64   : > { %12189 = vst [vmem:[#allocation15_spill] sm:$0xff] %v7728_v22  ;;  %12190 = vst [vmem:[#allocation16_spill] sm:$0xff] %v7730_v23  ;;  %5742 = vmatpush1.bf16.msra.mxu0 %v7732_v24  ;;  %v463_v35 = vand.u32 4294901760, %v210_v26  ;;  %v7741_v38 = vpack.c.bf16 %v1743_v29, %v1739_v28  ;;  %v7743_v39 = vsub.f32 %v196_v12, %v1739_v28  ;;  %v227_v42 = vld [vmem:[#allocation5 + $0x108] sm:$0xff]  ;;  %v229_v44 = vld [vmem:[#allocation5 + $0x118] sm:$0xff]  ;;  %v467_v51 = vand.u32 4294901760, %v218_v31  ;;  %p7451_p6 = pnand %p7450_p4, %p7653_p10 }
  0x65   : > { %12191 = vst [vmem:[#allocation17_spill] sm:$0xff] %v7732_v24  ;;  %12192 = vst [vmem:[#allocation18_spill] sm:$0xff] %v7734_v25  ;;  %v7745_v40 = vsub.f32 %v204_v13, %v1743_v29  ;;  %v7747_v41 = vsub.f32 %v211_v14, %v461_v30  ;;  %v235_v43 = vld [vmem:[#allocation5 + $0x148] sm:$0xff]  ;;  %v7749_v45 = vpack.c.bf16 %v465_v32, %v461_v30  ;;  %v237_v49 = vld [vmem:[#allocation5 + $0x158] sm:$0xff]  ;;  %v1747_v53 = vand.u32 4294901760, %v212_v36  ;;  %s7453_s27 = sshll.u32 %s7541_s12, 4  ;;  %s7454_s27 = int_to_ptr.vmem [resolvable:$false] %s7453_s27 }
  0x66   : > { %12193 = vst [vmem:[#allocation19_spill] sm:$0xff] %v7737_v27  ;;  %12194 = vst [vmem:[#allocation20_spill] sm:$0xff] %v7741_v38  ;;  %v7751_v46 = vsub.f32 %v219_v19, %v465_v32  ;;  %v7753_v47 = vpack.c.bf16 %v1749_v34, %v1745_v33  ;;  %v7755_v48 = vsub.f32 %v213_v20, %v1745_v33  ;;  %6126 = vmatpush1.bf16.msra.mxu1 %v7741_v38  ;;  %v226_v58 = vld [vmem:[#allocation5 + $0x100] sm:$0xff]  ;;  %v228_v0 = vld [vmem:[#allocation5 + $0x110] sm:$0xff]  ;;  %p7452_p8 = pneg %p7451_p6  ;;  %s7455_s23 = scalar_lea.vmem %s7454_s27, 1024 }
  0x67   : > { %12195 = vst [vmem:[#allocation21_spill] sm:$0xff] %v7743_v39  ;;  %12196 = vst [vmem:[#allocation22_spill] sm:$0xff] %v7745_v40  ;;  %v7758_v50 = vsub.f32 %v221_v21, %v1749_v34  ;;  %v7760_v52 = vsub.f32 %v210_v26, %v463_v35  ;;  %5744 = vmatprep.subr.bf16.mxu0 %v7749_v45  ;;  %v1751_v54 = vand.u32 4294901760, %v220_v37  ;;  %v469_v55 = vand.u32 4294901760, %v227_v42  ;;  %v234_v59 = vld [vmem:[#allocation5 + $0x140] sm:$0xff]  ;;  %v236_v1 = vld [vmem:[#allocation5 + $0x150] sm:$0xff]  ;;  %p7456_p12 = scmp.lt.s32.totalorder %s11241_s4, %s7454_s27  ;;  %p7457_p11 = scmp.lt.s32.totalorder %s7455_s23, %s7449_s22 }
  0x68   : > { %12197 = vst [vmem:[#allocation23_spill] sm:$0xff] %v7747_v41  ;;  %12198 = vst [vmem:[#allocation24_spill] sm:$0xff] %v7749_v45  ;;  %6128 = vmatprep.subr.bf16.mxu1 %v7753_v47  ;;  %v473_v56 = vand.u32 4294901760, %v235_v43  ;;  %v1753_v57 = vand.u32 4294901760, %v229_v44  ;;  %v7764_v60 = vpack.c.bf16 %v467_v51, %v463_v35  ;;  %v7766_v61 = vsub.f32 %v218_v31, %v467_v51  ;;  %v243_v2 = vld [vmem:[#allocation5 + $0x188] sm:$0xff]  ;;  %v245_v8 = vld [vmem:[#allocation5 + $0x198] sm:$0xff] }
  0x69   : > { %12199 = vst [vmem:[#allocation25_spill] sm:$0xff] %v7751_v46  ;;  %12200 = vst [vmem:[#allocation26_spill] sm:$0xff] %v7753_v47  ;;  %v7768_v62 = vsub.f32 %v212_v36, %v1747_v53  ;;  %v1757_v63 = vand.u32 4294901760, %v237_v49  ;;  %v7770_v3 = vpack.c.bf16 %v1751_v54, %v1747_v53  ;;  %v7772_v4 = vsub.f32 %v220_v37, %v1751_v54  ;;  %v251_v7 = vld [vmem:[#allocation5 + $0x1c8] sm:$0xff]  ;;  %v253_v9 = vld [vmem:[#allocation5 + $0x1d8] sm:$0xff]  ;;  %p7458_p0 = por %p7457_p11, %p7456_p12 }
  0x6a   : > { %12201 = vst [vmem:[#allocation27_spill] sm:$0xff] %v7755_v48  ;;  %12202 = vst [vmem:[#allocation28_spill] sm:$0xff] %v7758_v50  ;;  %v7774_v5 = vpack.c.bf16 %v473_v56, %v469_v55  ;;  %v7776_v6 = vsub.f32 %v227_v42, %v469_v55  ;;  %5746 = vmatpush1.bf16.msra.mxu0 %v7764_v60  ;;  %v7779_v10 = vsub.f32 %v235_v43, %v473_v56  ;;  %v242_v31 = vld [vmem:[#allocation5 + $0x180] sm:$0xff]  ;;  %v244_v37 = vld [vmem:[#allocation5 + $0x190] sm:$0xff] }
  0x6b   : > { %12203 = vst [vmem:[#allocation29_spill] sm:$0xff] %v7760_v52  ;;  %12204 = vst [vmem:[#allocation30_spill] sm:$0xff] %v7764_v60  ;;  %v7781_v11 = vpack.c.bf16 %v1757_v63, %v1753_v57  ;;  %v7783_v12 = vsub.f32 %v229_v44, %v1753_v57  ;;  %v7785_v13 = vsub.f32 %v237_v49, %v1757_v63  ;;  %6130 = vmatpush1.bf16.msra.mxu1 %v7770_v3  ;;  %v250_v36 = vld [vmem:[#allocation5 + $0x1c0] sm:$0xff]  ;;  %v252_v42 = vld [vmem:[#allocation5 + $0x1d0] sm:$0xff]  ;;  %p7459_p5 = pnand %p7458_p0, %p7452_p8 }
  0x6c   : > { %12205 = vst [vmem:[#allocation31_spill] sm:$0xff] %v7766_v61  ;;  %12206 = vst [vmem:[#allocation32_spill] sm:$0xff] %v7768_v62  ;;  %5748 = vmatprep.subr.bf16.mxu0 %v7774_v5  ;;  %v471_v14 = vand.u32 4294901760, %v226_v58  ;;  %v475_v19 = vand.u32 4294901760, %v234_v59  ;;  %v1755_v20 = vand.u32 4294901760, %v228_v0  ;;  %v1759_v21 = vand.u32 4294901760, %v236_v1 }
  0x6d   : > { %12207 = vst [vmem:[#allocation33_spill] sm:$0xff] %v7770_v3  ;;  %12208 = vst [vmem:[#allocation34_spill] sm:$0xff] %v7772_v4  ;;  %6132 = vmatprep.subr.bf16.mxu1 %v7781_v11  ;;  %v477_v26 = vand.u32 4294901760, %v243_v2  ;;  %v481_v28 = vand.u32 4294901760, %v251_v7  ;;  %v1761_v29 = vand.u32 4294901760, %v245_v8  ;;  %v1765_v30 = vand.u32 4294901760, %v253_v9 }
  0x6e   : > { %12209 = vst [vmem:[#allocation35_spill] sm:$0xff] %v7774_v5  ;;  %12210 = vst [vmem:[#allocation36_spill] sm:$0xff] %v7776_v6  ;;  %v7790_v32 = vpack.c.bf16 %v475_v19, %v471_v14  ;;  %v7792_v33 = vsub.f32 %v226_v58, %v471_v14  ;;  %v7794_v34 = vsub.f32 %v234_v59, %v475_v19  ;;  %v259_v53 = vld [vmem:[#allocation5 + $0x208] sm:$0xff]  ;;  %v261_v55 = vld [vmem:[#allocation5 + $0x218] sm:$0xff]  ;;  %v479_v59 = vand.u32 4294901760, %v242_v31 }
  0x6f   : > { %12211 = vst [vmem:[#allocation37_spill] sm:$0xff] %v7779_v10  ;;  %12212 = vst [vmem:[#allocation38_spill] sm:$0xff] %v7781_v11  ;;  %v7796_v35 = vpack.c.bf16 %v1759_v21, %v1755_v20  ;;  %v7798_v43 = vsub.f32 %v228_v0, %v1755_v20  ;;  %v7800_v44 = vsub.f32 %v236_v1, %v1759_v21  ;;  %v267_v54 = vld [vmem:[#allocation5 + $0x248] sm:$0xff]  ;;  %v483_v0 = vand.u32 4294901760, %v250_v36  ;;  %v269_v14 = vld [vmem:[#allocation5 + $0x258] sm:$0xff] }
  0x70   : > { %12213 = vst [vmem:[#allocation39_spill] sm:$0xff] %v7783_v12  ;;  %12214 = vst [vmem:[#allocation40_spill] sm:$0xff] %v7785_v13  ;;  %v7802_v49 = vpack.c.bf16 %v481_v28, %v477_v26  ;;  %v7804_v51 = vsub.f32 %v243_v2, %v477_v26  ;;  %5750 = vmatpush1.bf16.msra.mxu0 %v7790_v32  ;;  %v7808_v56 = vsub.f32 %v251_v7, %v481_v28  ;;  %v258_v26 = vld [vmem:[#allocation5 + $0x200] sm:$0xff]  ;;  %v283_v11 = vld [vmem:[#allocation5 + $0x2c8] sm:$0xff] }
  0x71   : > { %12215 = vst [vmem:[#allocation41_spill] sm:$0xff] %v7790_v32  ;;  %12216 = vst [vmem:[#allocation42_spill] sm:$0xff] %v7792_v33  ;;  %6134 = vmatpush1.bf16.msra.mxu1 %v7796_v35  ;;  %v7810_v57 = vpack.c.bf16 %v1765_v30, %v1761_v29  ;;  %v7812_v58 = vsub.f32 %v245_v8, %v1761_v29  ;;  %v7815_v63 = vsub.f32 %v253_v9, %v1765_v30  ;;  %v266_v28 = vld [vmem:[#allocation5 + $0x240] sm:$0xff]  ;;  %v260_v8 = vld [vmem:[#allocation5 + $0x210] sm:$0xff] }
  0x72   : > { %12217 = vst [vmem:[#allocation43_spill] sm:$0xff] %v7794_v34  ;;  %12218 = vst [vmem:[#allocation44_spill] sm:$0xff] %v7796_v35  ;;  %5752 = vmatprep.subr.bf16.mxu0 %v7802_v49  ;;  %v1763_v1 = vand.u32 4294901760, %v244_v37  ;;  %v1767_v2 = vand.u32 4294901760, %v252_v42  ;;  %v7818_v19 = vsub.f32 %v242_v31, %v479_v59  ;;  %v485_v20 = vand.u32 4294901760, %v259_v53  ;;  %v275_v32 = vld [vmem:[#allocation5 + $0x288] sm:$0xff] }
  0x73   : > { %12219 = vst [vmem:[#allocation45_spill] sm:$0xff] %v7798_v43  ;;  %12220 = vst [vmem:[#allocation46_spill] sm:$0xff] %v7800_v44  ;;  %6136 = vmatprep.subr.bf16.mxu1 %v7810_v57  ;;  %v489_v7 = vand.u32 4294901760, %v267_v54  ;;  %v1769_v21 = vand.u32 4294901760, %v261_v55  ;;  %v7820_v29 = vpack.c.bf16 %v483_v0, %v479_v59  ;;  %v7822_v35 = vsub.f32 %v250_v36, %v483_v0  ;;  %v277_v47 = vld [vmem:[#allocation5 + $0x298] sm:$0xff]  ;;  %v276_v38 = vld [vmem:[#allocation5 + $0x290] sm:$0xff] }
  0x74   : > { %12221 = vst [vmem:[#allocation47_spill] sm:$0xff] %v7802_v49  ;;  %12222 = vst [vmem:[#allocation48_spill] sm:$0xff] %v7804_v51  ;;  %v7824_v9 = vpack.c.bf16 %v1767_v2, %v1763_v1  ;;  %v7826_v30 = vsub.f32 %v244_v37, %v1763_v1  ;;  %v268_v49 = vld [vmem:[#allocation5 + $0x250] sm:$0xff]  ;;  %v7832_v3 = vsub.f32 %v259_v53, %v485_v20  ;;  %v1773_v36 = vand.u32 4294901760, %v269_v14  ;;  %v285_v53 = vld [vmem:[#allocation5 + $0x2d8] sm:$0xff] }
  0x75   : > { %12223 = vst [vmem:[#allocation49_spill] sm:$0xff] %v7808_v56  ;;  %12224 = vst [vmem:[#allocation50_spill] sm:$0xff] %v7810_v57  ;;  %v7828_v57 = vsub.f32 %v252_v42, %v1767_v2  ;;  %v7830_v31 = vpack.c.bf16 %v489_v7, %v485_v20  ;;  %v7834_v5 = vsub.f32 %v267_v54, %v489_v7  ;;  %5754 = vmatpush1.bf16.msra.mxu0 %v7820_v29  ;;  %v284_v15 = vld [vmem:[#allocation5 + $0x2d0] sm:$0xff] }
  0x76   : > { %12225 = vst [vmem:[#allocation51_spill] sm:$0xff] %v7812_v58  ;;  %12226 = vst [vmem:[#allocation52_spill] sm:$0xff] %v7815_v63  ;;  %6138 = vmatpush1.bf16.msra.mxu1 %v7824_v9  ;;  %v7838_v59 = vsub.f32 %v261_v55, %v1769_v21  ;;  %v487_v37 = vand.u32 4294901760, %v258_v26  ;;  %v491_v0 = vand.u32 4294901760, %v266_v28  ;;  %v1771_v1 = vand.u32 4294901760, %v260_v8  ;;  %v274_v55 = vld [vmem:[#allocation5 + $0x280] sm:$0xff] }
  0x77   : > { %12227 = vst [vmem:[#allocation53_spill] sm:$0xff] %v7818_v19  ;;  %12228 = vst [vmem:[#allocation54_spill] sm:$0xff] %v7820_v29  ;;  %5756 = vmatprep.subr.bf16.mxu0 %v7830_v31  ;;  %v1775_v42 = vand.u32 4294901760, %v268_v49  ;;  %v493_v2 = vand.u32 4294901760, %v275_v32  ;;  %v497_v60 = vand.u32 4294901760, %v283_v11  ;;  %v7841_v20 = vpack.c.bf16 %v1773_v36, %v1769_v21  ;;  %v282_v29 = vld [vmem:[#allocation5 + $0x2c0] sm:$0xff] }
  0x78   : > { %12229 = vst [vmem:[#allocation55_spill] sm:$0xff] %v7822_v35  ;;  %12230 = vst [vmem:[#allocation56_spill] sm:$0xff] %v7824_v9  ;;  %v7843_v54 = vsub.f32 %v269_v14, %v1773_v36  ;;  %v7845_v7 = vpack.c.bf16 %v491_v0, %v487_v37  ;;  %v7847_v9 = vsub.f32 %v258_v26, %v487_v37  ;;  %v291_v21 = vld [vmem:[#allocation5 + $0x308] sm:$0xff]  ;;  %v495_v37 = vand.u32 4294901760, %v274_v55 }
  0x79   : > { %12231 = vst [vmem:[#allocation57_spill] sm:$0xff] %v7826_v30  ;;  %12232 = vst [vmem:[#allocation58_spill] sm:$0xff] %v7828_v57  ;;  %v7849_v45 = vsub.f32 %v266_v28, %v491_v0  ;;  %v7853_v24 = vsub.f32 %v260_v8, %v1771_v1  ;;  %v7855_v22 = vsub.f32 %v268_v49, %v1775_v42  ;;  %6140 = vmatprep.subr.bf16.mxu1 %v7841_v20 }
  0x7a   : > { %12233 = vst [vmem:[#allocation59_spill] sm:$0xff] %v7830_v31  ;;  %12234 = vst [vmem:[#allocation60_spill] sm:$0xff] %v7832_v3  ;;  %v7851_v31 = vpack.c.bf16 %v1775_v42, %v1771_v1  ;;  %5758 = vmatpush1.bf16.msra.mxu0 %v7845_v7  ;;  %v7859_v14 = vpack.c.bf16 %v497_v60, %v493_v2  ;;  %v7861_v26 = vsub.f32 %v275_v32, %v493_v2 }
  0x7b   : > { %12235 = vst [vmem:[#allocation61_spill] sm:$0xff] %v7834_v5  ;;  %12236 = vst [vmem:[#allocation62_spill] sm:$0xff] %v7838_v59  ;;  %v299_v59 = vld [vmem:[#allocation5 + $0x348] sm:$0xff]  ;;  %v7863_v36 = vsub.f32 %v283_v11, %v497_v60  ;;  %v1777_v28 = vand.u32 4294901760, %v277_v47  ;;  %v1781_v8 = vand.u32 4294901760, %v285_v53  ;;  %v499_v49 = vand.u32 4294901760, %v282_v29 }
  0x7c   : > { %12237 = vst [vmem:[#allocation63_spill] sm:$0xff] %v7841_v20  ;;  %12238 = vst [vmem:[#allocation64_spill] sm:$0xff] %v7843_v54  ;;  %6142 = vmatpush1.bf16.msra.mxu1 %v7851_v31  ;;  %v1779_v0 = vand.u32 4294901760, %v276_v38  ;;  %5760 = vmatprep.subr.bf16.mxu0 %v7859_v14  ;;  %v1783_v42 = vand.u32 4294901760, %v284_v15  ;;  %v501_v20 = vand.u32 4294901760, %v291_v21  ;;  %v7875_v2 = vsub.f32 %v274_v55, %v495_v37  ;;  %v315_v54 = vld [vmem:[#allocation5 + $0x3c8] sm:$0xff] }
  0x7d   : > { %12239 = vst [vmem:[#allocation65_spill] sm:$0xff] %v7845_v7  ;;  %12240 = vst [vmem:[#allocation66_spill] sm:$0xff] %v7847_v9  ;;  %v7867_v1 = vsub.f32 %v277_v47, %v1777_v28  ;;  %v505_v7 = vand.u32 4294901760, %v299_v59  ;;  %v7869_v32 = vpack.c.bf16 %v1781_v8, %v1777_v28  ;;  %v7871_v60 = vsub.f32 %v285_v53, %v1781_v8  ;;  %v300_v9 = vld [vmem:[#allocation5 + $0x350] sm:$0xff]  ;;  %v307_v28 = vld [vmem:[#allocation5 + $0x388] sm:$0xff] }
  0x7e   : > { %12241 = vst [vmem:[#allocation67_spill] sm:$0xff] %v7849_v45  ;;  %12242 = vst [vmem:[#allocation68_spill] sm:$0xff] %v7851_v31  ;;  %v7873_v11 = vpack.c.bf16 %v499_v49, %v495_v37  ;;  %v290_v31 = vld [vmem:[#allocation5 + $0x300] sm:$0xff]  ;;  %v7877_v45 = vsub.f32 %v282_v29, %v499_v49  ;;  %v7879_v47 = vpack.c.bf16 %v1783_v42, %v1779_v0 }
  0x7f   : > { %12243 = vst [vmem:[#allocation69_spill] sm:$0xff] %v7853_v24  ;;  %12244 = vst [vmem:[#allocation70_spill] sm:$0xff] %v7855_v22  ;;  %v293_v22 = vld [vmem:[#allocation5 + $0x318] sm:$0xff]  ;;  %6144 = vmatprep.subr.bf16.mxu1 %v7869_v32  ;;  %v7887_v53 = vpack.c.bf16 %v505_v7, %v501_v20  ;;  %v7889_v55 = vsub.f32 %v291_v21, %v501_v20  ;;  %v7891_v8 = vsub.f32 %v299_v59, %v505_v7 }
  0x80   : > { %12245 = vst [vmem:[#allocation71_spill] sm:$0xff] %v7859_v14  ;;  %12246 = vst [vmem:[#allocation72_spill] sm:$0xff] %v7861_v26  ;;  %v301_v24 = vld [vmem:[#allocation5 + $0x358] sm:$0xff]  ;;  %v292_v26 = vld [vmem:[#allocation5 + $0x310] sm:$0xff]  ;;  %v7881_v14 = vsub.f32 %v276_v38, %v1779_v0  ;;  %5762 = vmatpush1.bf16.msra.mxu0 %v7873_v11  ;;  %v1785_v29 = vand.u32 4294901760, %v293_v22  ;;  %6146 = vmatpush1.bf16.msra.mxu1 %v7879_v47  ;;  %v503_v37 = vand.u32 4294901760, %v290_v31 }
  0x81   : > { %12247 = vst [vmem:[#allocation73_spill] sm:$0xff] %v7863_v36  ;;  %12248 = vst [vmem:[#allocation74_spill] sm:$0xff] %v7867_v1  ;;  %v298_v36 = vld [vmem:[#allocation5 + $0x340] sm:$0xff]  ;;  %v7883_v1 = vsub.f32 %v284_v15, %v1783_v42  ;;  %v1789_v38 = vand.u32 4294901760, %v301_v24  ;;  %v1787_v49 = vand.u32 4294901760, %v292_v26  ;;  %5764 = vmatprep.subr.bf16.mxu0 %v7887_v53  ;;  %v1791_v42 = vand.u32 4294901760, %v300_v9 }
  0x82   : > { %12249 = vst [vmem:[#allocation75_spill] sm:$0xff] %v7869_v32  ;;  %12250 = vst [vmem:[#allocation76_spill] sm:$0xff] %v7871_v60  ;;  %v507_v15 = vand.u32 4294901760, %v298_v36  ;;  %v7895_v0 = vsub.f32 %v293_v22, %v1785_v29  ;;  %v509_v32 = vand.u32 4294901760, %v307_v28  ;;  %v7903_v21 = vsub.f32 %v290_v31, %v503_v37  ;;  %v331_v60 = vld [vmem:[#allocation5 + $0x448] sm:$0xff] }
  0x83   : > { %12251 = vst [vmem:[#allocation77_spill] sm:$0xff] %v7873_v11  ;;  %12252 = vst [vmem:[#allocation78_spill] sm:$0xff] %v7875_v2  ;;  %v513_v11 = vand.u32 4294901760, %v315_v54  ;;  %v7897_v20 = vpack.c.bf16 %v1789_v38, %v1785_v29  ;;  %v7899_v59 = vsub.f32 %v301_v24, %v1789_v38  ;;  %v7907_v22 = vpack.c.bf16 %v1791_v42, %v1787_v49  ;;  %v316_v2 = vld [vmem:[#allocation5 + $0x3d0] sm:$0xff]  ;;  %v323_v29 = vld [vmem:[#allocation5 + $0x408] sm:$0xff] }
  0x84   : > { %12253 = vst [vmem:[#allocation79_spill] sm:$0xff] %v7877_v45  ;;  %12254 = vst [vmem:[#allocation80_spill] sm:$0xff] %v7879_v47  ;;  %v7901_v7 = vpack.c.bf16 %v507_v15, %v503_v37  ;;  %v306_v47 = vld [vmem:[#allocation5 + $0x380] sm:$0xff]  ;;  %v7905_v45 = vsub.f32 %v298_v36, %v507_v15  ;;  %v7917_v31 = vsub.f32 %v307_v28, %v509_v32 }
  0x85   : > { %12255 = vst [vmem:[#allocation81_spill] sm:$0xff] %v7881_v14  ;;  %12256 = vst [vmem:[#allocation82_spill] sm:$0xff] %v7883_v1  ;;  %v309_v1 = vld [vmem:[#allocation5 + $0x398] sm:$0xff]  ;;  %6148 = vmatprep.subr.bf16.mxu1 %v7897_v20  ;;  %v7915_v24 = vpack.c.bf16 %v513_v11, %v509_v32  ;;  %v7919_v38 = vsub.f32 %v315_v54, %v513_v11  ;;  %v511_v37 = vand.u32 4294901760, %v306_v47 }
  0x86   : > { %12257 = vst [vmem:[#allocation83_spill] sm:$0xff] %v7887_v53  ;;  %12258 = vst [vmem:[#allocation84_spill] sm:$0xff] %v7889_v55  ;;  %v317_v14 = vld [vmem:[#allocation5 + $0x3d8] sm:$0xff]  ;;  %v308_v55 = vld [vmem:[#allocation5 + $0x390] sm:$0xff]  ;;  %v7909_v53 = vsub.f32 %v292_v26, %v1787_v49  ;;  %5766 = vmatpush1.bf16.msra.mxu0 %v7901_v7  ;;  %v1793_v36 = vand.u32 4294901760, %v309_v1  ;;  %6150 = vmatpush1.bf16.msra.mxu1 %v7907_v22 }
  0x87   : > { %12259 = vst [vmem:[#allocation85_spill] sm:$0xff] %v7891_v8  ;;  %12260 = vst [vmem:[#allocation86_spill] sm:$0xff] %v7895_v0  ;;  %v314_v8 = vld [vmem:[#allocation5 + $0x3c0] sm:$0xff]  ;;  %v7911_v0 = vsub.f32 %v300_v9, %v1791_v42  ;;  %v1797_v26 = vand.u32 4294901760, %v317_v14  ;;  %v1795_v15 = vand.u32 4294901760, %v308_v55  ;;  %5768 = vmatprep.subr.bf16.mxu0 %v7915_v24  ;;  %v1799_v42 = vand.u32 4294901760, %v316_v2 }
  0x88   : > { %12261 = vst [vmem:[#allocation87_spill] sm:$0xff] %v7897_v20  ;;  %12262 = vst [vmem:[#allocation88_spill] sm:$0xff] %v7899_v59  ;;  %v515_v9 = vand.u32 4294901760, %v314_v8  ;;  %v7923_v49 = vsub.f32 %v309_v1, %v1793_v36  ;;  %v517_v20 = vand.u32 4294901760, %v323_v29  ;;  %v7931_v28 = vsub.f32 %v306_v47, %v511_v37  ;;  %v347_v59 = vld [vmem:[#allocation5 + $0x4c8] sm:$0xff] }
  0x89   : > { %12263 = vst [vmem:[#allocation89_spill] sm:$0xff] %v7901_v7  ;;  %12264 = vst [vmem:[#allocation90_spill] sm:$0xff] %v7903_v21  ;;  %v521_v7 = vand.u32 4294901760, %v331_v60  ;;  %v7925_v32 = vpack.c.bf16 %v1797_v26, %v1793_v36  ;;  %v7927_v54 = vsub.f32 %v317_v14, %v1797_v26  ;;  %v7935_v1 = vpack.c.bf16 %v1799_v42, %v1795_v15  ;;  %v332_v21 = vld [vmem:[#allocation5 + $0x450] sm:$0xff]  ;;  %v339_v36 = vld [vmem:[#allocation5 + $0x488] sm:$0xff] }
  0x8a   : > { %12265 = vst [vmem:[#allocation91_spill] sm:$0xff] %v7905_v45  ;;  %12266 = vst [vmem:[#allocation92_spill] sm:$0xff] %v7907_v22  ;;  %v7929_v11 = vpack.c.bf16 %v515_v9, %v511_v37  ;;  %v322_v22 = vld [vmem:[#allocation5 + $0x400] sm:$0xff]  ;;  %v7933_v45 = vsub.f32 %v314_v8, %v515_v9  ;;  %v7945_v47 = vsub.f32 %v323_v29, %v517_v20 }
  0x8b   : > { %12267 = vst [vmem:[#allocation93_spill] sm:$0xff] %v7909_v53  ;;  %12268 = vst [vmem:[#allocation94_spill] sm:$0xff] %v7911_v0  ;;  %v325_v0 = vld [vmem:[#allocation5 + $0x418] sm:$0xff]  ;;  %6152 = vmatprep.subr.bf16.mxu1 %v7925_v32  ;;  %v7943_v14 = vpack.c.bf16 %v521_v7, %v517_v20  ;;  %v7947_v26 = vsub.f32 %v331_v60, %v521_v7  ;;  %v519_v37 = vand.u32 4294901760, %v322_v22 }
  0x8c   : > { %12269 = vst [vmem:[#allocation95_spill] sm:$0xff] %v7915_v24  ;;  %12270 = vst [vmem:[#allocation96_spill] sm:$0xff] %v7917_v31  ;;  %v333_v53 = vld [vmem:[#allocation5 + $0x458] sm:$0xff]  ;;  %v324_v31 = vld [vmem:[#allocation5 + $0x410] sm:$0xff]  ;;  %v7937_v24 = vsub.f32 %v308_v55, %v1795_v15  ;;  %5770 = vmatpush1.bf16.msra.mxu0 %v7929_v11  ;;  %v1801_v8 = vand.u32 4294901760, %v325_v0  ;;  %6154 = vmatpush1.bf16.msra.mxu1 %v7935_v1 }
  0x8d   : > { %12271 = vst [vmem:[#allocation97_spill] sm:$0xff] %v7919_v38  ;;  %12272 = vst [vmem:[#allocation98_spill] sm:$0xff] %v7923_v49  ;;  %v330_v38 = vld [vmem:[#allocation5 + $0x440] sm:$0xff]  ;;  %v7939_v49 = vsub.f32 %v316_v2, %v1799_v42  ;;  %v1805_v55 = vand.u32 4294901760, %v333_v53  ;;  %v1803_v9 = vand.u32 4294901760, %v324_v31  ;;  %5772 = vmatprep.subr.bf16.mxu0 %v7943_v14  ;;  %v1807_v42 = vand.u32 4294901760, %v332_v21 }
  0x8e   : > { %12273 = vst [vmem:[#allocation99_spill] sm:$0xff] %v7925_v32  ;;  %12274 = vst [vmem:[#allocation100_spill] sm:$0xff] %v7927_v54  ;;  %v523_v2 = vand.u32 4294901760, %v330_v38  ;;  %v7951_v15 = vsub.f32 %v325_v0, %v1801_v8  ;;  %v525_v32 = vand.u32 4294901760, %v339_v36  ;;  %v7959_v29 = vsub.f32 %v322_v22, %v519_v37  ;;  %v363_v54 = vld [vmem:[#allocation5 + $0x548] sm:$0xff] }
  0x8f   : > { %12275 = vst [vmem:[#allocation101_spill] sm:$0xff] %v7929_v11  ;;  %12276 = vst [vmem:[#allocation102_spill] sm:$0xff] %v7931_v28  ;;  %v529_v11 = vand.u32 4294901760, %v347_v59  ;;  %v7953_v20 = vpack.c.bf16 %v1805_v55, %v1801_v8  ;;  %v7955_v60 = vsub.f32 %v333_v53, %v1805_v55  ;;  %v7963_v0 = vpack.c.bf16 %v1807_v42, %v1803_v9  ;;  %v348_v28 = vld [vmem:[#allocation5 + $0x4d0] sm:$0xff]  ;;  %v355_v8 = vld [vmem:[#allocation5 + $0x508] sm:$0xff] }
  0x90   : > { %12277 = vst [vmem:[#allocation103_spill] sm:$0xff] %v7933_v45  ;;  %12278 = vst [vmem:[#allocation104_spill] sm:$0xff] %v7935_v1  ;;  %v7957_v7 = vpack.c.bf16 %v523_v2, %v519_v37  ;;  %v338_v1 = vld [vmem:[#allocation5 + $0x480] sm:$0xff]  ;;  %v7961_v45 = vsub.f32 %v330_v38, %v523_v2  ;;  %v7973_v22 = vsub.f32 %v339_v36, %v525_v32 }
  0x91   : > { %12279 = vst [vmem:[#allocation105_spill] sm:$0xff] %v7937_v24  ;;  %12280 = vst [vmem:[#allocation106_spill] sm:$0xff] %v7939_v49  ;;  %v341_v49 = vld [vmem:[#allocation5 + $0x498] sm:$0xff]  ;;  %6156 = vmatprep.subr.bf16.mxu1 %v7953_v20  ;;  %v7971_v53 = vpack.c.bf16 %v529_v11, %v525_v32  ;;  %v7975_v55 = vsub.f32 %v347_v59, %v529_v11  ;;  %v527_v37 = vand.u32 4294901760, %v338_v1 }
  0x92   : > { %12281 = vst [vmem:[#allocation107_spill] sm:$0xff] %v7943_v14  ;;  %12282 = vst [vmem:[#allocation108_spill] sm:$0xff] %v7945_v47  ;;  %v349_v24 = vld [vmem:[#allocation5 + $0x4d8] sm:$0xff]  ;;  %v340_v47 = vld [vmem:[#allocation5 + $0x490] sm:$0xff]  ;;  %v7965_v14 = vsub.f32 %v324_v31, %v1803_v9  ;;  %5774 = vmatpush1.bf16.msra.mxu0 %v7957_v7  ;;  %v1809_v38 = vand.u32 4294901760, %v341_v49  ;;  %6158 = vmatpush1.bf16.msra.mxu1 %v7963_v0 }
  0x93   : > { %12283 = vst [vmem:[#allocation109_spill] sm:$0xff] %v7947_v26  ;;  %12284 = vst [vmem:[#allocation110_spill] sm:$0xff] %v7951_v15  ;;  %v346_v26 = vld [vmem:[#allocation5 + $0x4c0] sm:$0xff]  ;;  %v7967_v15 = vsub.f32 %v332_v21, %v1807_v42  ;;  %v1813_v31 = vand.u32 4294901760, %v349_v24  ;;  %v1811_v2 = vand.u32 4294901760, %v340_v47  ;;  %5776 = vmatprep.subr.bf16.mxu0 %v7971_v53  ;;  %v1815_v42 = vand.u32 4294901760, %v348_v28 }
  0x94   : > { %12285 = vst [vmem:[#allocation111_spill] sm:$0xff] %v7953_v20  ;;  %12286 = vst [vmem:[#allocation112_spill] sm:$0xff] %v7955_v60  ;;  %v531_v21 = vand.u32 4294901760, %v346_v26  ;;  %v7979_v9 = vsub.f32 %v341_v49, %v1809_v38  ;;  %v533_v20 = vand.u32 4294901760, %v355_v8  ;;  %v7987_v36 = vsub.f32 %v338_v1, %v527_v37  ;;  %v379_v60 = vld [vmem:[#allocation5 + $0x5c8] sm:$0xff] }
  0x95   : > { %12287 = vst [vmem:[#allocation113_spill] sm:$0xff] %v7957_v7  ;;  %12288 = vst [vmem:[#allocation114_spill] sm:$0xff] %v7959_v29  ;;  %v537_v7 = vand.u32 4294901760, %v363_v54  ;;  %v7981_v32 = vpack.c.bf16 %v1813_v31, %v1809_v38  ;;  %v7983_v59 = vsub.f32 %v349_v24, %v1813_v31  ;;  %v7991_v49 = vpack.c.bf16 %v1815_v42, %v1811_v2  ;;  %v364_v29 = vld [vmem:[#allocation5 + $0x550] sm:$0xff]  ;;  %v371_v38 = vld [vmem:[#allocation5 + $0x588] sm:$0xff] }
  0x96   : > { %12289 = vst [vmem:[#allocation115_spill] sm:$0xff] %v7961_v45  ;;  %12290 = vst [vmem:[#allocation116_spill] sm:$0xff] %v7963_v0  ;;  %v7985_v11 = vpack.c.bf16 %v531_v21, %v527_v37  ;;  %v354_v0 = vld [vmem:[#allocation5 + $0x500] sm:$0xff]  ;;  %v7989_v45 = vsub.f32 %v346_v26, %v531_v21  ;;  %v8001_v1 = vsub.f32 %v355_v8, %v533_v20 }
  0x97   : > { %12291 = vst [vmem:[#allocation117_spill] sm:$0xff] %v7965_v14  ;;  %12292 = vst [vmem:[#allocation118_spill] sm:$0xff] %v7967_v15  ;;  %v357_v15 = vld [vmem:[#allocation5 + $0x518] sm:$0xff]  ;;  %6160 = vmatprep.subr.bf16.mxu1 %v7981_v32  ;;  %v7999_v24 = vpack.c.bf16 %v537_v7, %v533_v20  ;;  %v8003_v31 = vsub.f32 %v363_v54, %v537_v7  ;;  %v535_v37 = vand.u32 4294901760, %v354_v0 }
  0x98   : > { %12293 = vst [vmem:[#allocation119_spill] sm:$0xff] %v7971_v53  ;;  %12294 = vst [vmem:[#allocation120_spill] sm:$0xff] %v7973_v22  ;;  %v365_v14 = vld [vmem:[#allocation5 + $0x558] sm:$0xff]  ;;  %v356_v22 = vld [vmem:[#allocation5 + $0x510] sm:$0xff]  ;;  %v7993_v53 = vsub.f32 %v340_v47, %v1811_v2  ;;  %5778 = vmatpush1.bf16.msra.mxu0 %v7985_v11  ;;  %v1817_v26 = vand.u32 4294901760, %v357_v15  ;;  %6162 = vmatpush1.bf16.msra.mxu1 %v7991_v49 }
  0x99   : > { %12295 = vst [vmem:[#allocation121_spill] sm:$0xff] %v7975_v55  ;;  %12296 = vst [vmem:[#allocation122_spill] sm:$0xff] %v7979_v9  ;;  %v362_v55 = vld [vmem:[#allocation5 + $0x540] sm:$0xff]  ;;  %v7995_v9 = vsub.f32 %v348_v28, %v1815_v42  ;;  %v1821_v47 = vand.u32 4294901760, %v365_v14  ;;  %v1819_v21 = vand.u32 4294901760, %v356_v22  ;;  %5780 = vmatprep.subr.bf16.mxu0 %v7999_v24  ;;  %v1823_v42 = vand.u32 4294901760, %v364_v29 }
  0x9a   : > { %12297 = vst [vmem:[#allocation123_spill] sm:$0xff] %v7981_v32  ;;  %12298 = vst [vmem:[#allocation124_spill] sm:$0xff] %v7983_v59  ;;  %v539_v28 = vand.u32 4294901760, %v362_v55  ;;  %v8007_v2 = vsub.f32 %v357_v15, %v1817_v26  ;;  %v541_v32 = vand.u32 4294901760, %v371_v38  ;;  %v8015_v8 = vsub.f32 %v354_v0, %v535_v37  ;;  %v395_v59 = vld [vmem:[#allocation5 + $0x648] sm:$0xff] }
  0x9b   : > { %12299 = vst [vmem:[#allocation125_spill] sm:$0xff] %v7985_v11  ;;  %12300 = vst [vmem:[#allocation126_spill] sm:$0xff] %v7987_v36  ;;  %v545_v11 = vand.u32 4294901760, %v379_v60  ;;  %v8009_v20 = vpack.c.bf16 %v1821_v47, %v1817_v26  ;;  %v8011_v54 = vsub.f32 %v365_v14, %v1821_v47  ;;  %v8019_v15 = vpack.c.bf16 %v1823_v42, %v1819_v21  ;;  %v380_v36 = vld [vmem:[#allocation5 + $0x5d0] sm:$0xff]  ;;  %v387_v26 = vld [vmem:[#allocation5 + $0x608] sm:$0xff] }
  0x9c   : > { %12301 = vst [vmem:[#allocation127_spill] sm:$0xff] %v7989_v45  ;;  %12302 = vst [vmem:[#allocation128_spill] sm:$0xff] %v7991_v49  ;;  %v8013_v7 = vpack.c.bf16 %v539_v28, %v535_v37  ;;  %v370_v49 = vld [vmem:[#allocation5 + $0x580] sm:$0xff]  ;;  %v8017_v45 = vsub.f32 %v362_v55, %v539_v28  ;;  %v8029_v0 = vsub.f32 %v371_v38, %v541_v32 }
  0x9d   : > { %12303 = vst [vmem:[#allocation129_spill] sm:$0xff] %v7993_v53  ;;  %12304 = vst [vmem:[#allocation130_spill] sm:$0xff] %v7995_v9  ;;  %v373_v9 = vld [vmem:[#allocation5 + $0x598] sm:$0xff]  ;;  %6164 = vmatprep.subr.bf16.mxu1 %v8009_v20  ;;  %v8027_v14 = vpack.c.bf16 %v545_v11, %v541_v32  ;;  %v8031_v47 = vsub.f32 %v379_v60, %v545_v11  ;;  %v543_v37 = vand.u32 4294901760, %v370_v49 }
  0x9e   : > { %12305 = vst [vmem:[#allocation131_spill] sm:$0xff] %v7999_v24  ;;  %12306 = vst [vmem:[#allocation132_spill] sm:$0xff] %v8001_v1  ;;  %v381_v53 = vld [vmem:[#allocation5 + $0x5d8] sm:$0xff]  ;;  %v372_v1 = vld [vmem:[#allocation5 + $0x590] sm:$0xff]  ;;  %v8021_v24 = vsub.f32 %v356_v22, %v1819_v21  ;;  %5782 = vmatpush1.bf16.msra.mxu0 %v8013_v7  ;;  %v1825_v55 = vand.u32 4294901760, %v373_v9  ;;  %6166 = vmatpush1.bf16.msra.mxu1 %v8019_v15 }
  0x9f   : > { %12307 = vst [vmem:[#allocation133_spill] sm:$0xff] %v8003_v31  ;;  %12308 = vst [vmem:[#allocation134_spill] sm:$0xff] %v8007_v2  ;;  %v378_v31 = vld [vmem:[#allocation5 + $0x5c0] sm:$0xff]  ;;  %v8023_v2 = vsub.f32 %v364_v29, %v1823_v42  ;;  %v1829_v22 = vand.u32 4294901760, %v381_v53  ;;  %v1827_v28 = vand.u32 4294901760, %v372_v1  ;;  %5784 = vmatprep.subr.bf16.mxu0 %v8027_v14  ;;  %v1831_v42 = vand.u32 4294901760, %v380_v36 }
  0xa0   : > { %12309 = vst [vmem:[#allocation135_spill] sm:$0xff] %v8009_v20  ;;  %12310 = vst [vmem:[#allocation136_spill] sm:$0xff] %v8011_v54  ;;  %v547_v29 = vand.u32 4294901760, %v378_v31  ;;  %v8035_v21 = vsub.f32 %v373_v9, %v1825_v55  ;;  %v549_v20 = vand.u32 4294901760, %v387_v26  ;;  %v8043_v38 = vsub.f32 %v370_v49, %v543_v37  ;;  %v411_v54 = vld [vmem:[#allocation5 + $0x6c8] sm:$0xff] }
  0xa1   : > { %12311 = vst [vmem:[#allocation137_spill] sm:$0xff] %v8013_v7  ;;  %12312 = vst [vmem:[#allocation138_spill] sm:$0xff] %v8015_v8  ;;  %v553_v7 = vand.u32 4294901760, %v395_v59  ;;  %v8037_v32 = vpack.c.bf16 %v1829_v22, %v1825_v55  ;;  %v8039_v60 = vsub.f32 %v381_v53, %v1829_v22  ;;  %v8047_v9 = vpack.c.bf16 %v1831_v42, %v1827_v28  ;;  %v396_v8 = vld [vmem:[#allocation5 + $0x650] sm:$0xff]  ;;  %v403_v55 = vld [vmem:[#allocation5 + $0x688] sm:$0xff] }
  0xa2   : > { %12313 = vst [vmem:[#allocation139_spill] sm:$0xff] %v8017_v45  ;;  %12314 = vst [vmem:[#allocation140_spill] sm:$0xff] %v8019_v15  ;;  %v8041_v11 = vpack.c.bf16 %v547_v29, %v543_v37  ;;  %v386_v15 = vld [vmem:[#allocation5 + $0x600] sm:$0xff]  ;;  %v8045_v45 = vsub.f32 %v378_v31, %v547_v29  ;;  %v8057_v49 = vsub.f32 %v387_v26, %v549_v20 }
  0xa3   : > { %12315 = vst [vmem:[#allocation141_spill] sm:$0xff] %v8021_v24  ;;  %12316 = vst [vmem:[#allocation142_spill] sm:$0xff] %v8023_v2  ;;  %v389_v2 = vld [vmem:[#allocation5 + $0x618] sm:$0xff]  ;;  %6168 = vmatprep.subr.bf16.mxu1 %v8037_v32  ;;  %v8055_v53 = vpack.c.bf16 %v553_v7, %v549_v20  ;;  %v8059_v22 = vsub.f32 %v395_v59, %v553_v7  ;;  %v551_v37 = vand.u32 4294901760, %v386_v15 }
  0xa4   : > { %12317 = vst [vmem:[#allocation143_spill] sm:$0xff] %v8027_v14  ;;  %12318 = vst [vmem:[#allocation144_spill] sm:$0xff] %v8029_v0  ;;  %v397_v24 = vld [vmem:[#allocation5 + $0x658] sm:$0xff]  ;;  %v388_v0 = vld [vmem:[#allocation5 + $0x610] sm:$0xff]  ;;  %v8049_v14 = vsub.f32 %v372_v1, %v1827_v28  ;;  %5786 = vmatpush1.bf16.msra.mxu0 %v8041_v11  ;;  %v1833_v31 = vand.u32 4294901760, %v389_v2  ;;  %6170 = vmatpush1.bf16.msra.mxu1 %v8047_v9 }
  0xa5   : > { %12319 = vst [vmem:[#allocation145_spill] sm:$0xff] %v8031_v47  ;;  %12320 = vst [vmem:[#allocation146_spill] sm:$0xff] %v8035_v21  ;;  %v394_v47 = vld [vmem:[#allocation5 + $0x640] sm:$0xff]  ;;  %v8051_v21 = vsub.f32 %v380_v36, %v1831_v42  ;;  %v1837_v1 = vand.u32 4294901760, %v397_v24  ;;  %v1835_v29 = vand.u32 4294901760, %v388_v0  ;;  %5788 = vmatprep.subr.bf16.mxu0 %v8055_v53  ;;  %v1839_v42 = vand.u32 4294901760, %v396_v8 }
  0xa6   : > { %12321 = vst [vmem:[#allocation147_spill] sm:$0xff] %v8037_v32  ;;  %12322 = vst [vmem:[#allocation148_spill] sm:$0xff] %v8039_v60  ;;  %v555_v36 = vand.u32 4294901760, %v394_v47  ;;  %v8063_v28 = vsub.f32 %v389_v2, %v1833_v31  ;;  %v557_v32 = vand.u32 4294901760, %v403_v55  ;;  %v8071_v26 = vsub.f32 %v386_v15, %v551_v37  ;;  %v427_v60 = vld [vmem:[#allocation5 + $0x748] sm:$0xff] }
  0xa7   : > { %12323 = vst [vmem:[#allocation149_spill] sm:$0xff] %v8041_v11  ;;  %12324 = vst [vmem:[#allocation150_spill] sm:$0xff] %v8043_v38  ;;  %v561_v11 = vand.u32 4294901760, %v411_v54  ;;  %v8065_v20 = vpack.c.bf16 %v1837_v1, %v1833_v31  ;;  %v8067_v59 = vsub.f32 %v397_v24, %v1837_v1  ;;  %v8075_v2 = vpack.c.bf16 %v1839_v42, %v1835_v29  ;;  %v412_v38 = vld [vmem:[#allocation5 + $0x6d0] sm:$0xff]  ;;  %v419_v31 = vld [vmem:[#allocation5 + $0x708] sm:$0xff] }
  0xa8   : > { %12325 = vst [vmem:[#allocation151_spill] sm:$0xff] %v8045_v45  ;;  %12326 = vst [vmem:[#allocation152_spill] sm:$0xff] %v8047_v9  ;;  %v8069_v7 = vpack.c.bf16 %v555_v36, %v551_v37  ;;  %v402_v9 = vld [vmem:[#allocation5 + $0x680] sm:$0xff]  ;;  %v8073_v45 = vsub.f32 %v394_v47, %v555_v36  ;;  %v8085_v15 = vsub.f32 %v403_v55, %v557_v32 }
  0xa9   : > { %12327 = vst [vmem:[#allocation153_spill] sm:$0xff] %v8049_v14  ;;  %12328 = vst [vmem:[#allocation154_spill] sm:$0xff] %v8051_v21  ;;  %v405_v21 = vld [vmem:[#allocation5 + $0x698] sm:$0xff]  ;;  %6172 = vmatprep.subr.bf16.mxu1 %v8065_v20  ;;  %v8083_v24 = vpack.c.bf16 %v561_v11, %v557_v32  ;;  %v8087_v1 = vsub.f32 %v411_v54, %v561_v11  ;;  %v559_v37 = vand.u32 4294901760, %v402_v9 }
  0xaa   : > { %12329 = vst [vmem:[#allocation155_spill] sm:$0xff] %v8055_v53  ;;  %12330 = vst [vmem:[#allocation156_spill] sm:$0xff] %v8057_v49  ;;  %v413_v14 = vld [vmem:[#allocation5 + $0x6d8] sm:$0xff]  ;;  %v404_v49 = vld [vmem:[#allocation5 + $0x690] sm:$0xff]  ;;  %v8077_v53 = vsub.f32 %v388_v0, %v1835_v29  ;;  %5790 = vmatpush1.bf16.msra.mxu0 %v8069_v7  ;;  %v1841_v47 = vand.u32 4294901760, %v405_v21  ;;  %6174 = vmatpush1.bf16.msra.mxu1 %v8075_v2 }
  0xab   : > { %12331 = vst [vmem:[#allocation157_spill] sm:$0xff] %v8059_v22  ;;  %12332 = vst [vmem:[#allocation158_spill] sm:$0xff] %v8063_v28  ;;  %v410_v22 = vld [vmem:[#allocation5 + $0x6c0] sm:$0xff]  ;;  %v8079_v28 = vsub.f32 %v396_v8, %v1839_v42  ;;  %v1845_v0 = vand.u32 4294901760, %v413_v14  ;;  %v1843_v36 = vand.u32 4294901760, %v404_v49  ;;  %5792 = vmatprep.subr.bf16.mxu0 %v8083_v24  ;;  %v1847_v42 = vand.u32 4294901760, %v412_v38 }
  0xac   : > { %12333 = vst [vmem:[#allocation159_spill] sm:$0xff] %v8065_v20  ;;  %12334 = vst [vmem:[#allocation160_spill] sm:$0xff] %v8067_v59  ;;  %v563_v8 = vand.u32 4294901760, %v410_v22  ;;  %v8091_v29 = vsub.f32 %v405_v21, %v1841_v47  ;;  %v565_v20 = vand.u32 4294901760, %v419_v31  ;;  %v8099_v55 = vsub.f32 %v402_v9, %v559_v37  ;;  %v443_v59 = vld [vmem:[#allocation5 + $0x7c8] sm:$0xff] }
  0xad   : > { %12335 = vst [vmem:[#allocation161_spill] sm:$0xff] %v8069_v7  ;;  %12336 = vst [vmem:[#allocation162_spill] sm:$0xff] %v8071_v26  ;;  %v569_v7 = vand.u32 4294901760, %v427_v60  ;;  %v8093_v32 = vpack.c.bf16 %v1845_v0, %v1841_v47  ;;  %v8095_v54 = vsub.f32 %v413_v14, %v1845_v0  ;;  %v8103_v21 = vpack.c.bf16 %v1847_v42, %v1843_v36  ;;  %v428_v26 = vld [vmem:[#allocation5 + $0x750] sm:$0xff]  ;;  %v435_v47 = vld [vmem:[#allocation5 + $0x788] sm:$0xff] }
  0xae   : > { %12337 = vst [vmem:[#allocation163_spill] sm:$0xff] %v8073_v45  ;;  %12338 = vst [vmem:[#allocation164_spill] sm:$0xff] %v8075_v2  ;;  %v8097_v11 = vpack.c.bf16 %v563_v8, %v559_v37  ;;  %v418_v2 = vld [vmem:[#allocation5 + $0x700] sm:$0xff]  ;;  %v8101_v45 = vsub.f32 %v410_v22, %v563_v8  ;;  %v8113_v9 = vsub.f32 %v419_v31, %v565_v20 }
  0xaf   : > { %12339 = vst [vmem:[#allocation165_spill] sm:$0xff] %v8077_v53  ;;  %12340 = vst [vmem:[#allocation166_spill] sm:$0xff] %v8079_v28  ;;  %v421_v28 = vld [vmem:[#allocation5 + $0x718] sm:$0xff]  ;;  %6176 = vmatprep.subr.bf16.mxu1 %v8093_v32  ;;  %v8111_v14 = vpack.c.bf16 %v569_v7, %v565_v20  ;;  %v8115_v0 = vsub.f32 %v427_v60, %v569_v7  ;;  %v567_v37 = vand.u32 4294901760, %v418_v2 }
  0xb0   : > { %12341 = vst [vmem:[#allocation167_spill] sm:$0xff] %v8083_v24  ;;  %12342 = vst [vmem:[#allocation168_spill] sm:$0xff] %v8085_v15  ;;  %v429_v53 = vld [vmem:[#allocation5 + $0x758] sm:$0xff]  ;;  %v420_v15 = vld [vmem:[#allocation5 + $0x710] sm:$0xff]  ;;  %v8105_v24 = vsub.f32 %v404_v49, %v1843_v36  ;;  %5794 = vmatpush1.bf16.msra.mxu0 %v8097_v11  ;;  %v1849_v22 = vand.u32 4294901760, %v421_v28  ;;  %6178 = vmatpush1.bf16.msra.mxu1 %v8103_v21 }
  0xb1   : > { %12343 = vst [vmem:[#allocation169_spill] sm:$0xff] %v8087_v1  ;;  %12344 = vst [vmem:[#allocation170_spill] sm:$0xff] %v8091_v29  ;;  %v426_v1 = vld [vmem:[#allocation5 + $0x740] sm:$0xff]  ;;  %v8107_v29 = vsub.f32 %v412_v38, %v1847_v42  ;;  %v1853_v49 = vand.u32 4294901760, %v429_v53  ;;  %v1851_v8 = vand.u32 4294901760, %v420_v15  ;;  %5796 = vmatprep.subr.bf16.mxu0 %v8111_v14  ;;  %v1855_v42 = vand.u32 4294901760, %v428_v26 }
  0xb2   : > { %12345 = vst [vmem:[#allocation171_spill] sm:$0xff] %v8093_v32  ;;  %12346 = vst [vmem:[#allocation172_spill] sm:$0xff] %v8095_v54  ;;  %v571_v38 = vand.u32 4294901760, %v426_v1  ;;  %v8119_v36 = vsub.f32 %v421_v28, %v1849_v22  ;;  %v573_v32 = vand.u32 4294901760, %v435_v47  ;;  %v445_v20 = vld [vmem:[#allocation5 + $0x7d8] sm:$0xff] }
  0xb3   : > { %12347 = vst [vmem:[#allocation173_spill] sm:$0xff] %v8097_v11  ;;  %12348 = vst [vmem:[#allocation174_spill] sm:$0xff] %v8099_v55  ;;  %v577_v11 = vand.u32 4294901760, %v443_v59  ;;  %v8121_v31 = vpack.c.bf16 %v1853_v49, %v1849_v22  ;;  %v8123_v60 = vsub.f32 %v429_v53, %v1853_v49  ;;  %v8131_v28 = vpack.c.bf16 %v1855_v42, %v1851_v8  ;;  %v444_v55 = vld [vmem:[#allocation5 + $0x7d0] sm:$0xff] }
  0xb4   : > { %12349 = vst [vmem:[#allocation175_spill] sm:$0xff] %v8101_v45  ;;  %12350 = vst [vmem:[#allocation176_spill] sm:$0xff] %v8103_v21  ;;  %v8125_v7 = vpack.c.bf16 %v571_v38, %v567_v37  ;;  %v8127_v21 = vsub.f32 %v418_v2, %v567_v37  ;;  %v8135_v45 = vsub.f32 %v428_v26, %v1855_v42  ;;  %v193_v22 = vld [vmem:[%s7710_s16] sm:$0xff]  ;;  %v1861_v37 = vand.u32 4294901760, %v445_v20 }
  0xb5   : > { %12351 = vst [vmem:[#allocation177_spill] sm:$0xff] %v8105_v24  ;;  %12352 = vst [vmem:[#allocation178_spill] sm:$0xff] %v8107_v29  ;;  %v437_v29 = vld [vmem:[#allocation5 + $0x798] sm:$0xff]  ;;  %v436_v24 = vld [vmem:[#allocation5 + $0x790] sm:$0xff]  ;;  %6180 = vmatprep.subr.bf16.mxu1 %v8121_v31  ;;  %v8140_v53 = vpack.c.bf16 %v577_v11, %v573_v32  ;;  %v8142_v2 = vsub.f32 %v435_v47, %v573_v32  ;;  %v8144_v49 = vsub.f32 %v443_v59, %v577_v11 }
  0xb6   : > { %12353 = vst [vmem:[#allocation179_spill] sm:$0xff] %v8111_v14  ;;  %12354 = vst [vmem:[#allocation180_spill] sm:$0xff] %v8113_v9  ;;  %v442_v9 = vld [vmem:[#allocation5 + $0x7c0] sm:$0xff]  ;;  %v8129_v14 = vsub.f32 %v426_v1, %v571_v38  ;;  %5798 = vmatpush1.bf16.msra.mxu0 %v8125_v7  ;;  %v1857_v1 = vand.u32 4294901760, %v437_v29  ;;  %6182 = vmatpush1.bf16.msra.mxu1 %v8131_v28  ;;  %v1859_v26 = vand.u32 4294901760, %v436_v24  ;;  %v1863_v42 = vand.u32 4294901760, %v444_v55 }
  0xb7   : > { %12355 = vst [vmem:[#allocation181_spill] sm:$0xff] %v8115_v0  ;;  %12356 = vst [vmem:[#allocation182_spill] sm:$0xff] %v8119_v36  ;;  %v434_v0 = vld [vmem:[#allocation5 + $0x780] sm:$0xff]  ;;  %v8133_v36 = vsub.f32 %v420_v15, %v1851_v8  ;;  %v579_v38 = vand.u32 4294901760, %v442_v9  ;;  %5800 = vmatprep.subr.bf16.mxu0 %v8140_v53  ;;  %v8154_v32 = vsub.f32 %v445_v20, %v1861_v37  ;;  %v11500_v20 = vand.u32 4294901760, %v7722_v16 }
  0xb8   : > { %12357 = vst [vmem:[#allocation183_spill] sm:$0xff] %v8121_v31  ;;  %12358 = vst [vmem:[#allocation184_spill] sm:$0xff] %v8123_v60  ;;  %v575_v15 = vand.u32 4294901760, %v434_v0  ;;  %v8148_v8 = vsub.f32 %v437_v29, %v1857_v1  ;;  %v451_v31 = vcombine.high %v193_v22, %v193_v22  ;;  %v8166_v29 = vsub.f32 %v444_v55, %v1863_v42 }
  0xb9   : > { %12359 = vst [vmem:[#allocation185_spill] sm:$0xff] %v8125_v7  ;;  %12360 = vst [vmem:[#allocation186_spill] sm:$0xff] %v8127_v21  ;;  %v8150_v7 = vand.u32 4294901760, %v193_v22  ;;  %v8160_v47 = vsub.f32 %v442_v9, %v579_v38  ;;  %v11511_v9 = vand.u32 4294901760, %v7730_v23 }
  0xba   : > { %12361 = vst [vmem:[#allocation187_spill] sm:$0xff] %v8129_v14  ;;  %12362 = vst [vmem:[#allocation188_spill] sm:$0xff] %v8131_v28  ;;  %v8156_v59 = vpack.c.bf16 %v579_v38, %v575_v15  ;;  %v8158_v11 = vsub.f32 %v434_v0, %v575_v15  ;;  %v8162_v28 = vpack.c.bf16 %v1863_v42, %v1859_v26  ;;  %v11506_v0 = vand.u32 4294901760, %v7726_v18 }
  0xbb   : > { %12363 = vst [vmem:[#allocation189_spill] sm:$0xff] %v8133_v36  ;;  %12364 = vst [vmem:[#allocation190_spill] sm:$0xff] %v8135_v45  ;;  %v8152_v45 = vpack.c.bf16 %v1861_v37, %v1857_v1  ;;  %v8170_v1 = vand.u32 4294901760, %v451_v31  ;;  %v11503_v37 = vand.u32 4294901760, %v7724_v17  ;;  %v1897_v55 = vsub.f32 %v7730_v23, %v11511_v9 }
  0xbc   : > { %12365 = vst [vmem:[#allocation191_spill] sm:$0xff] %v8140_v53  ;;  %12366 = vst [vmem:[#allocation192_spill] sm:$0xff] %v8142_v2  ;;  %5802 = vmatpush1.bf16.msra.mxu0 %v8156_v59 }
  0xbd   : > { %12367 = vst [vmem:[#allocation193_spill] sm:$0xff] %v8144_v49  ;;  %12368 = vst [vmem:[#allocation194_spill] sm:$0xff] %v8148_v8  ;;  %v8164_v49 = vsub.f32 %v436_v24, %v1859_v26  ;;  %6184 = vmatprep.subr.bf16.mxu1 %v8152_v45  ;;  %v8178_v24 = vsub.f32 %v193_v22, %v8150_v7  ;;  %v8183_v38 = vsub.f32 %v451_v31, %v8170_v1 }
  0xbe   : > { %12369 = vst [vmem:[#allocation195_spill] sm:$0xff] %v8150_v7  ;;  %12370 = vst [vmem:[#allocation196_spill] sm:$0xff] %v8152_v45  ;;  %6186 = vmatpush1.bf16.msra.mxu1 %v8162_v28  ;;  %v601_v26 = vsub.f32 %v7722_v16, %v11500_v20  ;;  %v613_v42 = vsub.f32 %v7724_v17, %v11503_v37  ;;  %v1885_v22 = vsub.f32 %v7726_v18, %v11506_v0 }
  0xbf   : > { %12371 = vst [vmem:[#allocation197_spill] sm:$0xff] %v8154_v32  ;;  %12372 = vst [vmem:[#allocation198_spill] sm:$0xff] %v8156_v59  ;;  %v8198_v15 = vand.u32 4294901760, %v8178_v24  ;;  %v12382_v31 = vand.u32 4294901760, %v7734_v25  ;;  %v12383_v20 = vand.u32 4294901760, %v7737_v27  ;;  %v8207_v37 = vand.u32 4294901760, %v8183_v38 }
  0xc0   : > { %12373 = vst [vmem:[#allocation199_spill] sm:$0xff] %v8158_v11  ;;  %12374 = vst [vmem:[#allocation200_spill] sm:$0xff] %v8160_v47  ;;  %v602_v45 = vand.u32 4294901760, %v601_v26  ;;  %v614_v0 = vand.u32 4294901760, %v613_v42  ;;  %v1886_v53 = vand.u32 4294901760, %v1885_v22  ;;  %v1898_v7 = vand.u32 4294901760, %v1897_v55 }
  0xc1   : > { %12375 = vst [vmem:[#allocation201_spill] sm:$0xff] %v8162_v28  ;;  %12376 = vst [vmem:[#allocation202_spill] sm:$0xff] %v8164_v49  ;;  %v607_v28 = vsub.f32 %v7734_v25, %v12382_v31  ;;  %v619_v59 = vsub.f32 %v7737_v27, %v12383_v20  ;;  %v590_v9 = vsub.f32 %v8178_v24, %v8198_v15  ;;  %v11525_v25 = vand.u32 4294901760, %v7743_v39 }
  0xc2   : > { %12377 = vst [vmem:[#allocation203_spill] sm:$0xff] %v8166_v29  ;;  %12378 = vst [vmem:[#allocation204_spill] sm:$0xff] %v8170_v1  ;;  %v584_v17 = vsub.f32 %v8183_v38, %v8207_v37  ;;  %v5803_v31 = vpack.c.bf16 %v614_v0, %v602_v45  ;;  %v11524_v20 = vand.u32 4294901760, %v7745_v40  ;;  %v6187_v27 = vpack.c.bf16 %v1898_v7, %v1886_v53 }
  0xc3   : > { %12379 = vst [vmem:[#allocation205_spill] sm:$0xff] %v8178_v24  ;;  %12380 = vst [vmem:[#allocation206_spill] sm:$0xff] %v8183_v38  ;;  %v608_v23 = vand.u32 4294901760, %v607_v28  ;;  %v620_v18 = vand.u32 4294901760, %v619_v59  ;;  %v8215_v16 = vand.u32 4294901760, %v590_v9  ;;  %v11528_v42 = vand.u32 4294901760, %v7747_v41 }
  0xc4   : > { %12381 = vst [vmem:[#allocation207_spill] sm:$0xff] %v8198_v15  ;;  %12384 = vst [vmem:[#allocation208_spill] sm:$0xff] %v8207_v37  ;;  %v8218_v55 = vand.u32 4294901760, %v584_v17  ;;  %5804 = vmatprep.subr.bf16.mxu0 %v5803_v31  ;;  %v1891_v28 = vsub.f32 %v7743_v39, %v11525_v25  ;;  %v1903_v45 = vsub.f32 %v7745_v40, %v11524_v20  ;;  %v11526_v59 = vand.u32 4294901760, %v7751_v46  ;;  %v12430_v38 = vld [vmem:[#allocation127_spill] sm:$0xff] }
  0xc5   : > { %12385 = vst [vmem:[#allocation209_spill] sm:$0xff] %v8215_v16  ;;  %v5805_v26 = vpack.c.bf16 %v620_v18, %v608_v23  ;;  %6188 = vmatprep.subr.bf16.mxu1 %v6187_v27  ;;  %v625_v18 = vsub.f32 %v7747_v41, %v11528_v42  ;;  %v11527_v23 = vand.u32 4294901760, %v7755_v48  ;;  %v11531_v17 = vand.u32 4294901760, %v7758_v50 }
  0xc6   : > { %12386 = vst [vmem:[#allocation210_spill] sm:$0xff] %v8218_v55  ;;  %v11532_v7 = vand.u32 4294901760, %v7760_v52  ;;  %586 = vmatprep.mubr.f32.mxu0 %v8218_v55  ;;  %1870 = vmatprep.mubr.f32.mxu1 %v8218_v55  ;;  %v1892_v53 = vand.u32 4294901760, %v1891_v28  ;;  %v1904_v0 = vand.u32 4294901760, %v1903_v45  ;;  %v637_v27 = vsub.f32 %v7751_v46, %v11526_v59 }
  0xc7   : > { %v11533_v9 = vand.u32 4294901760, %v7766_v61  ;;  %592 = vmatmul.mubr.f32.vlgmr.msra.gmra.mrb[0].mxu0 %v8215_v16  ;;  %1876 = vmatmul.mubr.f32.vlgmr.msra.gmra.mrb[0].mxu1 %v8215_v16  ;;  %v626_v22 = vand.u32 4294901760, %v625_v18  ;;  %v1909_v31 = vsub.f32 %v7755_v48, %v11527_v23  ;;  %v1921_v28 = vsub.f32 %v7758_v50, %v11531_v17 }
  0xc8   : > { %v631_v45 = vsub.f32 %v7760_v52, %v11532_v7  ;;  %5806 = vmatpush1.bf16.msra.mxu0 %v5805_v26  ;;  %v6189_v20 = vpack.c.bf16 %v1904_v0, %v1892_v53  ;;  %v638_v25 = vand.u32 4294901760, %v637_v27  ;;  %v11535_v18 = vand.u32 4294901760, %v7768_v62  ;;  %983 = vmatprep.mubr.f32.mxu0 %v8170_v1 }
  0xc9   : > { %v643_v59 = vsub.f32 %v7766_v61, %v11533_v9  ;;  %v1910_v23 = vand.u32 4294901760, %v1909_v31  ;;  %v1922_v42 = vand.u32 4294901760, %v1921_v28  ;;  %v11534_v17 = vand.u32 4294901760, %v7772_v4  ;;  %2267 = vmatprep.mubr.f32.mxu1 %v8170_v1 }
  0xca   : > { %v632_v16 = vand.u32 4294901760, %v631_v45  ;;  %6190 = vmatpush1.bf16.msra.mxu1 %v6189_v20  ;;  %v5807_v7 = vpack.c.bf16 %v638_v25, %v626_v22  ;;  %v1915_v53 = vsub.f32 %v7768_v62, %v11535_v18  ;;  %v11539_v0 = vand.u32 4294901760, %v7776_v6 }
  0xcb   : > { %v644_v26 = vand.u32 4294901760, %v643_v59  ;;  %v6191_v27 = vpack.c.bf16 %v1922_v42, %v1910_v23  ;;  %v1927_v31 = vsub.f32 %v7772_v4, %v11534_v17  ;;  %v11536_v28 = vand.u32 4294901760, %v7779_v10 }
  0xcc   : > { %v11537_v45 = vand.u32 4294901760, %v7783_v12  ;;  %5808 = vmatprep.subr.bf16.mxu0 %v5807_v7  ;;  %v1916_v20 = vand.u32 4294901760, %v1915_v53  ;;  %v649_v25 = vsub.f32 %v7776_v6, %v11539_v0  ;;  %v11538_v59 = vand.u32 4294901760, %v7785_v13 }
  0xcd   : > { %v5809_v9 = vpack.c.bf16 %v644_v26, %v632_v16  ;;  %6192 = vmatprep.subr.bf16.mxu1 %v6191_v27  ;;  %v1928_v22 = vand.u32 4294901760, %v1927_v31  ;;  %v661_v42 = vsub.f32 %v7779_v10, %v11536_v28  ;;  %v11540_v7 = vand.u32 4294901760, %v7792_v33 }
  0xce   : > { %v1933_v23 = vsub.f32 %v7783_v12, %v11537_v45  ;;  %v650_v16 = vand.u32 4294901760, %v649_v25  ;;  %v1945_v26 = vsub.f32 %v7785_v13, %v11538_v59  ;;  %v11541_v53 = vand.u32 4294901760, %v7794_v34 }
  0xcf   : > { %5810 = vmatpush1.bf16.msra.mxu0 %v5809_v9  ;;  %v11542_v27 = vand.u32 4294901760, %v7798_v43  ;;  %v6193_v31 = vpack.c.bf16 %v1928_v22, %v1916_v20  ;;  %v662_v17 = vand.u32 4294901760, %v661_v42  ;;  %v655_v28 = vsub.f32 %v7792_v33, %v11540_v7 }
  0xd0   : > { %v1934_v18 = vand.u32 4294901760, %v1933_v23  ;;  %v1946_v45 = vand.u32 4294901760, %v1945_v26  ;;  %v667_v9 = vsub.f32 %v7794_v34, %v11541_v53  ;;  %v11543_v59 = vand.u32 4294901760, %v7800_v44 }
  0xd1   : > { %v1939_v25 = vsub.f32 %v7798_v43, %v11542_v27  ;;  %6194 = vmatpush1.bf16.msra.mxu1 %v6193_v31  ;;  %v5811_v0 = vpack.c.bf16 %v662_v17, %v650_v16  ;;  %v656_v20 = vand.u32 4294901760, %v655_v28  ;;  %v11545_v22 = vand.u32 4294901760, %v7804_v51 }
  0xd2   : > { %v11544_v42 = vand.u32 4294901760, %v7808_v56  ;;  %v6195_v23 = vpack.c.bf16 %v1946_v45, %v1934_v18  ;;  %v668_v7 = vand.u32 4294901760, %v667_v9  ;;  %v1951_v53 = vsub.f32 %v7800_v44, %v11543_v59 }
  0xd3   : > { %v1940_v26 = vand.u32 4294901760, %v1939_v25  ;;  %5812 = vmatprep.subr.bf16.mxu0 %v5811_v0  ;;  %v673_v27 = vsub.f32 %v7804_v51, %v11545_v22  ;;  %v11546_v28 = vand.u32 4294901760, %v7812_v58  ;;  %v11549_v16 = vand.u32 4294901760, %v7815_v63 }
  0xd4   : > { %v685_v17 = vsub.f32 %v7808_v56, %v11544_v42  ;;  %6196 = vmatprep.subr.bf16.mxu1 %v6195_v23  ;;  %v5813_v18 = vpack.c.bf16 %v668_v7, %v656_v20  ;;  %v1952_v45 = vand.u32 4294901760, %v1951_v53  ;;  %v11552_v31 = vand.u32 4294901760, %v7818_v19 }
  0xd5   : > { %v11550_v9 = vand.u32 4294901760, %v7822_v35  ;;  %v674_v0 = vand.u32 4294901760, %v673_v27  ;;  %v1957_v59 = vsub.f32 %v7812_v58, %v11546_v28  ;;  %v1969_v42 = vsub.f32 %v7815_v63, %v11549_v16 }
  0xd6   : > { %v686_v25 = vand.u32 4294901760, %v685_v17  ;;  %5814 = vmatpush1.bf16.msra.mxu0 %v5813_v18  ;;  %v6197_v22 = vpack.c.bf16 %v1952_v45, %v1940_v26  ;;  %v679_v7 = vsub.f32 %v7818_v19, %v11552_v31  ;;  %v11551_v27 = vand.u32 4294901760, %v7826_v30 }
  0xd7   : > { %v691_v53 = vsub.f32 %v7822_v35, %v11550_v9  ;;  %v1958_v23 = vand.u32 4294901760, %v1957_v59  ;;  %v1970_v17 = vand.u32 4294901760, %v1969_v42  ;;  %v11553_v28 = vand.u32 4294901760, %v7828_v57  ;;  %v12387_v42 = vld [vmem:[#allocation62_spill] sm:$0xff] }
  0xd8   : > { %v5815_v20 = vpack.c.bf16 %v686_v25, %v674_v0  ;;  %6198 = vmatpush1.bf16.msra.mxu1 %v6197_v22  ;;  %v680_v55 = vand.u32 4294901760, %v679_v7  ;;  %v1963_v26 = vsub.f32 %v7826_v30, %v11551_v27  ;;  %v11554_v18 = vand.u32 4294901760, %v7832_v3 }
  0xd9   : > { %v692_v16 = vand.u32 4294901760, %v691_v53  ;;  %v6199_v45 = vpack.c.bf16 %v1970_v17, %v1958_v23  ;;  %v1975_v9 = vsub.f32 %v7828_v57, %v11553_v28  ;;  %v11561_v59 = vand.u32 4294901760, %v7834_v5  ;;  %v12388_v53 = vld [vmem:[#allocation64_spill] sm:$0xff]  ;;  %v12389_v17 = vld [vmem:[#allocation66_spill] sm:$0xff] }
  0xda   : > { %5816 = vmatprep.subr.bf16.mxu0 %v5815_v20  ;;  %v11562_v0 = vand.u32 4294901760, %v12387_v42  ;;  %v1964_v22 = vand.u32 4294901760, %v1963_v26  ;;  %v697_v7 = vsub.f32 %v7832_v3, %v11554_v18  ;;  %v11563_v27 = vand.u32 4294901760, %v12388_v53  ;;  %v12390_v26 = vld [vmem:[#allocation67_spill] sm:$0xff] }
  0xdb   : > { %v5817_v25 = vpack.c.bf16 %v692_v16, %v680_v55  ;;  %6200 = vmatprep.subr.bf16.mxu1 %v6199_v45  ;;  %v1976_v31 = vand.u32 4294901760, %v1975_v9  ;;  %v709_v20 = vsub.f32 %v7834_v5, %v11561_v59  ;;  %v11570_v28 = vand.u32 4294901760, %v12389_v17  ;;  %v12391_v45 = vld [vmem:[#allocation69_spill] sm:$0xff] }
  0xdc   : > { %v1981_v23 = vsub.f32 %v12387_v42, %v11562_v0  ;;  %v698_v55 = vand.u32 4294901760, %v697_v7  ;;  %v1993_v16 = vsub.f32 %v12388_v53, %v11563_v27  ;;  %v11571_v18 = vand.u32 4294901760, %v12390_v26  ;;  %v12392_v27 = vld [vmem:[#allocation70_spill] sm:$0xff] }
  0xdd   : > { %5818 = vmatpush1.bf16.msra.mxu0 %v5817_v25  ;;  %v11572_v9 = vand.u32 4294901760, %v12391_v45  ;;  %v6201_v1 = vpack.c.bf16 %v1976_v31, %v1964_v22  ;;  %v710_v15 = vand.u32 4294901760, %v709_v20  ;;  %v703_v59 = vsub.f32 %v12389_v17, %v11570_v28  ;;  %v12393_v22 = vld [vmem:[#allocation72_spill] sm:$0xff] }
  0xde   : > { %v1982_v37 = vand.u32 4294901760, %v1981_v23  ;;  %v1994_v0 = vand.u32 4294901760, %v1993_v16  ;;  %v715_v25 = vsub.f32 %v12390_v26, %v11571_v18  ;;  %v11575_v24 = vand.u32 4294901760, %v12392_v27  ;;  %v12394_v23 = vld [vmem:[#allocation73_spill] sm:$0xff]  ;;  %v12398_v26 = vld [vmem:[#allocation79_spill] sm:$0xff] }
  0xdf   : > { %v1987_v7 = vsub.f32 %v12391_v45, %v11572_v9  ;;  %6202 = vmatpush1.bf16.msra.mxu1 %v6201_v1  ;;  %v5819_v53 = vpack.c.bf16 %v710_v15, %v698_v55  ;;  %v704_v31 = vand.u32 4294901760, %v703_v59  ;;  %v11577_v20 = vand.u32 4294901760, %v12393_v22  ;;  %v12395_v15 = vld [vmem:[#allocation74_spill] sm:$0xff]  ;;  %v12396_v55 = vld [vmem:[#allocation76_spill] sm:$0xff] }
  0xe0   : > { %v11578_v42 = vand.u32 4294901760, %v12394_v23  ;;  %v6203_v57 = vpack.c.bf16 %v1994_v0, %v1982_v37  ;;  %v716_v28 = vand.u32 4294901760, %v715_v25  ;;  %v1999_v18 = vsub.f32 %v12392_v27, %v11575_v24  ;;  %v12397_v25 = vld [vmem:[#allocation78_spill] sm:$0xff] }
  0xe1   : > { %v1988_v16 = vand.u32 4294901760, %v1987_v7  ;;  %5820 = vmatprep.subr.bf16.mxu0 %v5819_v53  ;;  %v721_v9 = vsub.f32 %v12393_v22, %v11577_v20  ;;  %v11581_v59 = vand.u32 4294901760, %v12395_v15  ;;  %v11584_v45 = vand.u32 4294901760, %v12396_v55 }
  0xe2   : > { %v733_v1 = vsub.f32 %v12394_v23, %v11578_v42  ;;  %6204 = vmatprep.subr.bf16.mxu1 %v6203_v57  ;;  %v5821_v37 = vpack.c.bf16 %v716_v28, %v704_v31  ;;  %v2000_v0 = vand.u32 4294901760, %v1999_v18  ;;  %v11585_v7 = vand.u32 4294901760, %v12397_v25  ;;  %v12399_v18 = vld [vmem:[#allocation81_spill] sm:$0xff] }
  0xe3   : > { %v11586_v24 = vand.u32 4294901760, %v12398_v26  ;;  %v722_v53 = vand.u32 4294901760, %v721_v9  ;;  %v2005_v20 = vsub.f32 %v12395_v15, %v11581_v59  ;;  %v2017_v42 = vsub.f32 %v12396_v55, %v11584_v45  ;;  %v12400_v59 = vld [vmem:[#allocation82_spill] sm:$0xff] }
  0xe4   : > { %v734_v27 = vand.u32 4294901760, %v733_v1  ;;  %5822 = vmatpush1.bf16.msra.mxu0 %v5821_v37  ;;  %v6205_v23 = vpack.c.bf16 %v2000_v0, %v1988_v16  ;;  %v727_v57 = vsub.f32 %v12397_v25, %v11585_v7  ;;  %v11588_v9 = vand.u32 4294901760, %v12399_v18  ;;  %v12401_v37 = vld [vmem:[#allocation84_spill] sm:$0xff] }
  0xe5   : > { %v739_v28 = vsub.f32 %v12398_v26, %v11586_v24  ;;  %v2006_v1 = vand.u32 4294901760, %v2005_v20  ;;  %v2018_v22 = vand.u32 4294901760, %v2017_v42  ;;  %v11590_v15 = vand.u32 4294901760, %v12400_v59  ;;  %v12403_v42 = vld [vmem:[#allocation86_spill] sm:$0xff] }
  0xe6   : > { %v5823_v31 = vpack.c.bf16 %v734_v27, %v722_v53  ;;  %6206 = vmatpush1.bf16.msra.mxu1 %v6205_v23  ;;  %v728_v17 = vand.u32 4294901760, %v727_v57  ;;  %v2011_v16 = vsub.f32 %v12399_v18, %v11588_v9  ;;  %v11591_v0 = vand.u32 4294901760, %v12401_v37  ;;  %v12402_v27 = vld [vmem:[#allocation85_spill] sm:$0xff] }
  0xe7   : > { %v740_v45 = vand.u32 4294901760, %v739_v28  ;;  %v6207_v7 = vpack.c.bf16 %v2018_v22, %v2006_v1  ;;  %v2023_v24 = vsub.f32 %v12400_v59, %v11590_v15  ;;  %v11595_v20 = vand.u32 4294901760, %v12402_v27  ;;  %v12404_v28 = vld [vmem:[#allocation88_spill] sm:$0xff]  ;;  %v12405_v1 = vld [vmem:[#allocation90_spill] sm:$0xff] }
  0xe8   : > { %5824 = vmatprep.subr.bf16.mxu0 %v5823_v31  ;;  %v11596_v53 = vand.u32 4294901760, %v12403_v42  ;;  %v2012_v23 = vand.u32 4294901760, %v2011_v16  ;;  %v745_v57 = vsub.f32 %v12401_v37, %v11591_v0  ;;  %v11597_v9 = vand.u32 4294901760, %v12404_v28  ;;  %v12406_v16 = vld [vmem:[#allocation91_spill] sm:$0xff] }
  0xe9   : > { %v5825_v26 = vpack.c.bf16 %v740_v45, %v728_v17  ;;  %6208 = vmatprep.subr.bf16.mxu1 %v6207_v7  ;;  %v2024_v18 = vand.u32 4294901760, %v2023_v24  ;;  %v757_v22 = vsub.f32 %v12402_v27, %v11595_v20  ;;  %v11602_v15 = vand.u32 4294901760, %v12405_v1  ;;  %v12407_v7 = vld [vmem:[#allocation93_spill] sm:$0xff] }
  0xea   : > { %v2029_v31 = vsub.f32 %v12403_v42, %v11596_v53  ;;  %v746_v17 = vand.u32 4294901760, %v745_v57  ;;  %v2041_v45 = vsub.f32 %v12404_v28, %v11597_v9  ;;  %v11603_v0 = vand.u32 4294901760, %v12406_v16  ;;  %v12408_v9 = vld [vmem:[#allocation94_spill] sm:$0xff] }
  0xeb   : > { %5826 = vmatpush1.bf16.msra.mxu0 %v5825_v26  ;;  %v11604_v24 = vand.u32 4294901760, %v12407_v7  ;;  %v6209_v59 = vpack.c.bf16 %v2024_v18, %v2012_v23  ;;  %v758_v37 = vand.u32 4294901760, %v757_v22  ;;  %v751_v20 = vsub.f32 %v12405_v1, %v11602_v15  ;;  %v12409_v23 = vld [vmem:[#allocation96_spill] sm:$0xff] }
  0xec   : > { %v2030_v25 = vand.u32 4294901760, %v2029_v31  ;;  %v2042_v53 = vand.u32 4294901760, %v2041_v45  ;;  %v763_v26 = vsub.f32 %v12406_v16, %v11603_v0  ;;  %v11607_v28 = vand.u32 4294901760, %v12408_v9  ;;  %v12410_v31 = vld [vmem:[#allocation97_spill] sm:$0xff]  ;;  %v12414_v16 = vld [vmem:[#allocation103_spill] sm:$0xff] }
  0xed   : > { %v2035_v57 = vsub.f32 %v12407_v7, %v11604_v24  ;;  %6210 = vmatpush1.bf16.msra.mxu1 %v6209_v59  ;;  %v5827_v42 = vpack.c.bf16 %v758_v37, %v746_v17  ;;  %v752_v18 = vand.u32 4294901760, %v751_v20  ;;  %v11609_v22 = vand.u32 4294901760, %v12409_v23  ;;  %v12411_v37 = vld [vmem:[#allocation98_spill] sm:$0xff]  ;;  %v12412_v17 = vld [vmem:[#allocation100_spill] sm:$0xff] }
  0xee   : > { %v11610_v27 = vand.u32 4294901760, %v12410_v31  ;;  %v6211_v55 = vpack.c.bf16 %v2042_v53, %v2030_v25  ;;  %v764_v15 = vand.u32 4294901760, %v763_v26  ;;  %v2047_v0 = vsub.f32 %v12408_v9, %v11607_v28  ;;  %v12413_v26 = vld [vmem:[#allocation102_spill] sm:$0xff] }
  0xef   : > { %v2036_v45 = vand.u32 4294901760, %v2035_v57  ;;  %5828 = vmatprep.subr.bf16.mxu0 %v5827_v42  ;;  %v769_v24 = vsub.f32 %v12409_v23, %v11609_v22  ;;  %v11613_v20 = vand.u32 4294901760, %v12411_v37  ;;  %v11616_v7 = vand.u32 4294901760, %v12412_v17 }
  0xf0   : > { %v781_v59 = vsub.f32 %v12410_v31, %v11610_v27  ;;  %6212 = vmatprep.subr.bf16.mxu1 %v6211_v55  ;;  %v5829_v25 = vpack.c.bf16 %v764_v15, %v752_v18  ;;  %v2048_v53 = vand.u32 4294901760, %v2047_v0  ;;  %v11617_v57 = vand.u32 4294901760, %v12413_v26  ;;  %v12415_v0 = vld [vmem:[#allocation105_spill] sm:$0xff] }
  0xf1   : > { %v11618_v28 = vand.u32 4294901760, %v12414_v16  ;;  %v770_v42 = vand.u32 4294901760, %v769_v24  ;;  %v2053_v22 = vsub.f32 %v12411_v37, %v11613_v20  ;;  %v2065_v27 = vsub.f32 %v12412_v17, %v11616_v7  ;;  %v12416_v20 = vld [vmem:[#allocation106_spill] sm:$0xff] }
  0xf2   : > { %v782_v9 = vand.u32 4294901760, %v781_v59  ;;  %5830 = vmatpush1.bf16.msra.mxu0 %v5829_v25  ;;  %v6213_v31 = vpack.c.bf16 %v2048_v53, %v2036_v45  ;;  %v775_v15 = vsub.f32 %v12413_v26, %v11617_v57  ;;  %v11620_v24 = vand.u32 4294901760, %v12415_v0  ;;  %v12417_v25 = vld [vmem:[#allocation108_spill] sm:$0xff] }
  0xf3   : > { %v787_v55 = vsub.f32 %v12414_v16, %v11618_v28  ;;  %v2054_v59 = vand.u32 4294901760, %v2053_v22  ;;  %v2066_v23 = vand.u32 4294901760, %v2065_v27  ;;  %v11622_v37 = vand.u32 4294901760, %v12416_v20  ;;  %v12419_v27 = vld [vmem:[#allocation110_spill] sm:$0xff] }
  0xf4   : > { %v5831_v18 = vpack.c.bf16 %v782_v9, %v770_v42  ;;  %6214 = vmatpush1.bf16.msra.mxu1 %v6213_v31  ;;  %v776_v1 = vand.u32 4294901760, %v775_v15  ;;  %v2059_v45 = vsub.f32 %v12415_v0, %v11620_v24  ;;  %v11623_v53 = vand.u32 4294901760, %v12417_v25  ;;  %v12418_v9 = vld [vmem:[#allocation109_spill] sm:$0xff] }
  0xf5   : > { %v788_v7 = vand.u32 4294901760, %v787_v55  ;;  %v6215_v57 = vpack.c.bf16 %v2066_v23, %v2054_v59  ;;  %v2071_v28 = vsub.f32 %v12416_v20, %v11622_v37  ;;  %v11627_v22 = vand.u32 4294901760, %v12418_v9  ;;  %v12420_v55 = vld [vmem:[#allocation112_spill] sm:$0xff]  ;;  %v12421_v59 = vld [vmem:[#allocation114_spill] sm:$0xff] }
  0xf6   : > { %5832 = vmatprep.subr.bf16.mxu0 %v5831_v18  ;;  %v11628_v42 = vand.u32 4294901760, %v12419_v27  ;;  %v2060_v31 = vand.u32 4294901760, %v2059_v45  ;;  %v793_v15 = vsub.f32 %v12417_v25, %v11623_v53  ;;  %v11629_v24 = vand.u32 4294901760, %v12420_v55  ;;  %v12422_v45 = vld [vmem:[#allocation115_spill] sm:$0xff] }
  0xf7   : > { %v5833_v16 = vpack.c.bf16 %v788_v7, %v776_v1  ;;  %6216 = vmatprep.subr.bf16.mxu1 %v6215_v57  ;;  %v2072_v0 = vand.u32 4294901760, %v2071_v28  ;;  %v805_v23 = vsub.f32 %v12418_v9, %v11627_v22  ;;  %v11634_v37 = vand.u32 4294901760, %v12421_v59  ;;  %v12423_v57 = vld [vmem:[#allocation117_spill] sm:$0xff] }
  0xf8   : > { %v2077_v18 = vsub.f32 %v12419_v27, %v11628_v42  ;;  %v794_v1 = vand.u32 4294901760, %v793_v15  ;;  %v2089_v7 = vsub.f32 %v12420_v55, %v11629_v24  ;;  %v11635_v53 = vand.u32 4294901760, %v12422_v45  ;;  %v12424_v24 = vld [vmem:[#allocation118_spill] sm:$0xff] }
  0xf9   : > { %5834 = vmatpush1.bf16.msra.mxu0 %v5833_v16  ;;  %v11636_v28 = vand.u32 4294901760, %v12423_v57  ;;  %v6217_v20 = vpack.c.bf16 %v2072_v0, %v2060_v31  ;;  %v806_v25 = vand.u32 4294901760, %v805_v23  ;;  %v799_v22 = vsub.f32 %v12421_v59, %v11634_v37  ;;  %v12425_v31 = vld [vmem:[#allocation120_spill] sm:$0xff] }
  0xfa   : > { %v2078_v26 = vand.u32 4294901760, %v2077_v18  ;;  %v2090_v42 = vand.u32 4294901760, %v2089_v7  ;;  %v811_v16 = vsub.f32 %v12422_v45, %v11635_v53  ;;  %v11641_v55 = vand.u32 4294901760, %v12424_v24  ;;  %v12426_v18 = vld [vmem:[#allocation121_spill] sm:$0xff] }
  0xfb   : > { %v2083_v15 = vsub.f32 %v12423_v57, %v11636_v28  ;;  %6218 = vmatpush1.bf16.msra.mxu1 %v6217_v20  ;;  %v5835_v27 = vpack.c.bf16 %v806_v25, %v794_v1  ;;  %v800_v0 = vand.u32 4294901760, %v799_v22  ;;  %v11643_v23 = vand.u32 4294901760, %v12425_v31  ;;  %v12427_v25 = vld [vmem:[#allocation122_spill] sm:$0xff]  ;;  %v12428_v1 = vld [vmem:[#allocation124_spill] sm:$0xff] }
  0xfc   : > { %v11644_v9 = vand.u32 4294901760, %v12426_v18  ;;  %v6219_v17 = vpack.c.bf16 %v2090_v42, %v2078_v26  ;;  %v812_v37 = vand.u32 4294901760, %v811_v16  ;;  %v2095_v53 = vsub.f32 %v12424_v24, %v11641_v55  ;;  %v12429_v16 = vld [vmem:[#allocation126_spill] sm:$0xff] }
  0xfd   : > { %v2084_v7 = vand.u32 4294901760, %v2083_v15  ;;  %5836 = vmatprep.subr.bf16.mxu0 %v5835_v27  ;;  %v817_v28 = vsub.f32 %v12425_v31, %v11643_v23  ;;  %v11647_v22 = vand.u32 4294901760, %v12427_v25  ;;  %v11650_v30 = vand.u32 4294901760, %v12428_v1 }
  0xfe   : > { %v829_v20 = vsub.f32 %v12426_v18, %v11644_v9  ;;  %6220 = vmatprep.subr.bf16.mxu1 %v6219_v17  ;;  %v5837_v26 = vpack.c.bf16 %v812_v37, %v800_v0  ;;  %v2096_v42 = vand.u32 4294901760, %v2095_v53  ;;  %v11651_v15 = vand.u32 4294901760, %v12429_v16  ;;  %v12431_v53 = vld [vmem:[#allocation129_spill] sm:$0xff] }
  0xff   : > { %v11652_v55 = vand.u32 4294901760, %v12430_v38  ;;  %v818_v27 = vand.u32 4294901760, %v817_v28  ;;  %v2101_v23 = vsub.f32 %v12427_v25, %v11647_v22  ;;  %v2113_v9 = vsub.f32 %v12428_v1, %v11650_v30  ;;  %v12432_v22 = vld [vmem:[#allocation130_spill] sm:$0xff] }
 0x100   : > { %v830_v24 = vand.u32 4294901760, %v829_v20  ;;  %5838 = vmatpush1.bf16.msra.mxu0 %v5837_v26  ;;  %v6221_v18 = vpack.c.bf16 %v2096_v42, %v2084_v7  ;;  %v823_v37 = vsub.f32 %v12429_v16, %v11651_v15  ;;  %v11654_v28 = vand.u32 4294901760, %v12431_v53  ;;  %v12433_v26 = vld [vmem:[#allocation132_spill] sm:$0xff] }
 0x101   : > { %v835_v17 = vsub.f32 %v12430_v38, %v11652_v55  ;;  %v2102_v20 = vand.u32 4294901760, %v2101_v23  ;;  %v2114_v31 = vand.u32 4294901760, %v2113_v9  ;;  %v11656_v25 = vand.u32 4294901760, %v12432_v22  ;;  %v12435_v9 = vld [vmem:[#allocation134_spill] sm:$0xff] }
 0x102   : > { %v5839_v0 = vpack.c.bf16 %v830_v24, %v818_v27  ;;  %6222 = vmatpush1.bf16.msra.mxu1 %v6221_v18  ;;  %v824_v57 = vand.u32 4294901760, %v823_v37  ;;  %v2107_v7 = vsub.f32 %v12431_v53, %v11654_v28  ;;  %v11657_v42 = vand.u32 4294901760, %v12433_v26  ;;  %v12434_v24 = vld [vmem:[#allocation133_spill] sm:$0xff] }
 0x103   : > { %v836_v30 = vand.u32 4294901760, %v835_v17  ;;  %v6223_v15 = vpack.c.bf16 %v2114_v31, %v2102_v20  ;;  %v2119_v55 = vsub.f32 %v12432_v22, %v11656_v25  ;;  %v11661_v23 = vand.u32 4294901760, %v12434_v24  ;;  %v12436_v17 = vld [vmem:[#allocation136_spill] sm:$0xff]  ;;  %v12437_v20 = vld [vmem:[#allocation138_spill] sm:$0xff] }
 0x104   : > { %5840 = vmatprep.subr.bf16.mxu0 %v5839_v0  ;;  %v11662_v27 = vand.u32 4294901760, %v12435_v9  ;;  %v2108_v18 = vand.u32 4294901760, %v2107_v7  ;;  %v841_v37 = vsub.f32 %v12433_v26, %v11657_v42  ;;  %v11663_v28 = vand.u32 4294901760, %v12436_v17  ;;  %v12438_v7 = vld [vmem:[#allocation139_spill] sm:$0xff] }
 0x105   : > { %v5841_v38 = vpack.c.bf16 %v836_v30, %v824_v57  ;;  %6224 = vmatprep.subr.bf16.mxu1 %v6223_v15  ;;  %v2120_v53 = vand.u32 4294901760, %v2119_v55  ;;  %v853_v31 = vsub.f32 %v12434_v24, %v11661_v23  ;;  %v11668_v25 = vand.u32 4294901760, %v12437_v20  ;;  %v12439_v15 = vld [vmem:[#allocation141_spill] sm:$0xff] }
 0x106   : > { %v2125_v0 = vsub.f32 %v12435_v9, %v11662_v27  ;;  %v842_v30 = vand.u32 4294901760, %v841_v37  ;;  %v2137_v57 = vsub.f32 %v12436_v17, %v11663_v28  ;;  %v11669_v42 = vand.u32 4294901760, %v12438_v7  ;;  %v12440_v28 = vld [vmem:[#allocation142_spill] sm:$0xff] }
 0x107   : > { %5842 = vmatpush1.bf16.msra.mxu0 %v5841_v38  ;;  %v11670_v55 = vand.u32 4294901760, %v12439_v15  ;;  %v6225_v26 = vpack.c.bf16 %v2120_v53, %v2108_v18  ;;  %v854_v22 = vand.u32 4294901760, %v853_v31  ;;  %v847_v23 = vsub.f32 %v12437_v20, %v11668_v25  ;;  %v12441_v18 = vld [vmem:[#allocation144_spill] sm:$0xff] }
 0x108   : > { %v2126_v16 = vand.u32 4294901760, %v2125_v0  ;;  %v2138_v27 = vand.u32 4294901760, %v2137_v57  ;;  %v859_v38 = vsub.f32 %v12438_v7, %v11669_v42  ;;  %v11673_v17 = vand.u32 4294901760, %v12440_v28  ;;  %v12442_v0 = vld [vmem:[#allocation145_spill] sm:$0xff]  ;;  %v12446_v7 = vld [vmem:[#allocation151_spill] sm:$0xff] }
 0x109   : > { %v2131_v37 = vsub.f32 %v12439_v15, %v11670_v55  ;;  %6226 = vmatpush1.bf16.msra.mxu1 %v6225_v26  ;;  %v5843_v9 = vpack.c.bf16 %v854_v22, %v842_v30  ;;  %v848_v53 = vand.u32 4294901760, %v847_v23  ;;  %v11675_v31 = vand.u32 4294901760, %v12441_v18  ;;  %v12443_v26 = vld [vmem:[#allocation146_spill] sm:$0xff]  ;;  %v12444_v30 = vld [vmem:[#allocation148_spill] sm:$0xff] }
 0x10a   : > { %v11676_v24 = vand.u32 4294901760, %v12442_v0  ;;  %v6227_v1 = vpack.c.bf16 %v2138_v27, %v2126_v16  ;;  %v860_v25 = vand.u32 4294901760, %v859_v38  ;;  %v2143_v42 = vsub.f32 %v12440_v28, %v11673_v17  ;;  %v12445_v38 = vld [vmem:[#allocation150_spill] sm:$0xff] }
 0x10b   : > { %v2132_v57 = vand.u32 4294901760, %v2131_v37  ;;  %5844 = vmatprep.subr.bf16.mxu0 %v5843_v9  ;;  %v865_v55 = vsub.f32 %v12441_v18, %v11675_v31  ;;  %v11679_v23 = vand.u32 4294901760, %v12443_v26  ;;  %v11682_v15 = vand.u32 4294901760, %v12444_v30 }
 0x10c   : > { %v877_v22 = vsub.f32 %v12442_v0, %v11676_v24  ;;  %6228 = vmatprep.subr.bf16.mxu1 %v6227_v1  ;;  %v5845_v16 = vpack.c.bf16 %v860_v25, %v848_v53  ;;  %v2144_v27 = vand.u32 4294901760, %v2143_v42  ;;  %v11683_v37 = vand.u32 4294901760, %v12445_v38  ;;  %v12447_v42 = vld [vmem:[#allocation153_spill] sm:$0xff] }
 0x10d   : > { %v11684_v17 = vand.u32 4294901760, %v12446_v7  ;;  %v866_v9 = vand.u32 4294901760, %v865_v55  ;;  %v2149_v31 = vsub.f32 %v12443_v26, %v11679_v23  ;;  %v2161_v24 = vsub.f32 %v12444_v30, %v11682_v15  ;;  %v12448_v23 = vld [vmem:[#allocation154_spill] sm:$0xff] }
 0x10e   : > { %v878_v28 = vand.u32 4294901760, %v877_v22  ;;  %5846 = vmatpush1.bf16.msra.mxu0 %v5845_v16  ;;  %v6229_v0 = vpack.c.bf16 %v2144_v27, %v2132_v57  ;;  %v871_v25 = vsub.f32 %v12445_v38, %v11683_v37  ;;  %v11686_v55 = vand.u32 4294901760, %v12447_v42  ;;  %v12449_v16 = vld [vmem:[#allocation156_spill] sm:$0xff] }
 0x10f   : > { %v883_v1 = vsub.f32 %v12446_v7, %v11684_v17  ;;  %v2150_v22 = vand.u32 4294901760, %v2149_v31  ;;  %v2162_v18 = vand.u32 4294901760, %v2161_v24  ;;  %v11688_v26 = vand.u32 4294901760, %v12448_v23  ;;  %v12451_v24 = vld [vmem:[#allocation158_spill] sm:$0xff] }
 0x110   : > { %v5847_v53 = vpack.c.bf16 %v878_v28, %v866_v9  ;;  %6230 = vmatpush1.bf16.msra.mxu1 %v6229_v0  ;;  %v872_v20 = vand.u32 4294901760, %v871_v25  ;;  %v2155_v57 = vsub.f32 %v12447_v42, %v11686_v55  ;;  %v11689_v27 = vand.u32 4294901760, %v12449_v16  ;;  %v12450_v28 = vld [vmem:[#allocation157_spill] sm:$0xff] }
 0x111   : > { %v884_v15 = vand.u32 4294901760, %v883_v1  ;;  %v6231_v37 = vpack.c.bf16 %v2162_v18, %v2150_v22  ;;  %v2167_v17 = vsub.f32 %v12448_v23, %v11688_v26  ;;  %v11693_v31 = vand.u32 4294901760, %v12450_v28  ;;  %v12452_v1 = vld [vmem:[#allocation160_spill] sm:$0xff]  ;;  %v12453_v22 = vld [vmem:[#allocation162_spill] sm:$0xff] }
 0x112   : > { %5848 = vmatprep.subr.bf16.mxu0 %v5847_v53  ;;  %v11694_v9 = vand.u32 4294901760, %v12451_v24  ;;  %v2156_v0 = vand.u32 4294901760, %v2155_v57  ;;  %v889_v25 = vsub.f32 %v12449_v16, %v11689_v27  ;;  %v11695_v55 = vand.u32 4294901760, %v12452_v1  ;;  %v12454_v57 = vld [vmem:[#allocation163_spill] sm:$0xff] }
 0x113   : > { %v5849_v7 = vpack.c.bf16 %v884_v15, %v872_v20  ;;  %6232 = vmatprep.subr.bf16.mxu1 %v6231_v37  ;;  %v2168_v42 = vand.u32 4294901760, %v2167_v17  ;;  %v901_v18 = vsub.f32 %v12450_v28, %v11693_v31  ;;  %v11700_v26 = vand.u32 4294901760, %v12453_v22  ;;  %v12455_v37 = vld [vmem:[#allocation165_spill] sm:$0xff] }
 0x114   : > { %v2173_v53 = vsub.f32 %v12451_v24, %v11694_v9  ;;  %v890_v20 = vand.u32 4294901760, %v889_v25  ;;  %v2185_v15 = vsub.f32 %v12452_v1, %v11695_v55  ;;  %v11701_v27 = vand.u32 4294901760, %v12454_v57  ;;  %v12456_v55 = vld [vmem:[#allocation166_spill] sm:$0xff] }
 0x115   : > { %5850 = vmatpush1.bf16.msra.mxu0 %v5849_v7  ;;  %v11702_v17 = vand.u32 4294901760, %v12455_v37  ;;  %v6233_v16 = vpack.c.bf16 %v2168_v42, %v2156_v0  ;;  %v902_v23 = vand.u32 4294901760, %v901_v18  ;;  %v895_v31 = vsub.f32 %v12453_v22, %v11700_v26  ;;  %v12457_v0 = vld [vmem:[#allocation168_spill] sm:$0xff]  ;;  %v12520_v22 = vld [vmem:[#allocation57_spill] sm:$0xff] }
 0x116   : > { %v2174_v38 = vand.u32 4294901760, %v2173_v53  ;;  %v2186_v9 = vand.u32 4294901760, %v2185_v15  ;;  %v907_v7 = vsub.f32 %v12454_v57, %v11701_v27  ;;  %v11704_v1 = vand.u32 4294901760, %v12456_v55  ;;  %v12458_v53 = vld [vmem:[#allocation169_spill] sm:$0xff] }
 0x117   : > { %v2179_v25 = vsub.f32 %v12455_v37, %v11702_v17  ;;  %6234 = vmatpush1.bf16.msra.mxu1 %v6233_v16  ;;  %v5851_v24 = vpack.c.bf16 %v902_v23, %v890_v20  ;;  %v896_v42 = vand.u32 4294901760, %v895_v31  ;;  %v11706_v18 = vand.u32 4294901760, %v12457_v0  ;;  %v12459_v16 = vld [vmem:[#allocation170_spill] sm:$0xff]  ;;  %v12461_v37 = vld [vmem:[#allocation175_spill] sm:$0xff] }
 0x118   : > { %v11707_v28 = vand.u32 4294901760, %v12458_v53  ;;  %v6235_v30 = vpack.c.bf16 %v2186_v9, %v2174_v38  ;;  %v908_v26 = vand.u32 4294901760, %v907_v7  ;;  %v2191_v27 = vsub.f32 %v12456_v55, %v11704_v1  ;;  %v12460_v7 = vld [vmem:[#allocation174_spill] sm:$0xff] }
 0x119   : > { %v2180_v15 = vand.u32 4294901760, %v2179_v25  ;;  %5852 = vmatprep.subr.bf16.mxu0 %v5851_v24  ;;  %v913_v17 = vsub.f32 %v12457_v0, %v11706_v18  ;;  %v11710_v31 = vand.u32 4294901760, %v12459_v16  ;;  %v11713_v20 = vand.u32 4294901760, %v8095_v54 }
 0x11a   : > { %v925_v23 = vsub.f32 %v12458_v53, %v11707_v28  ;;  %6236 = vmatprep.subr.bf16.mxu1 %v6235_v30  ;;  %v5853_v38 = vpack.c.bf16 %v908_v26, %v896_v42  ;;  %v2192_v9 = vand.u32 4294901760, %v2191_v27  ;;  %v11714_v25 = vand.u32 4294901760, %v12460_v7  ;;  %v12462_v27 = vld [vmem:[#allocation177_spill] sm:$0xff] }
 0x11b   : > { %v11715_v1 = vand.u32 4294901760, %v12461_v37  ;;  %v914_v24 = vand.u32 4294901760, %v913_v17  ;;  %v2197_v18 = vsub.f32 %v12459_v16, %v11710_v31  ;;  %v2209_v28 = vsub.f32 %v8095_v54, %v11713_v20  ;;  %v12463_v31 = vld [vmem:[#allocation178_spill] sm:$0xff] }
 0x11c   : > { %v926_v55 = vand.u32 4294901760, %v925_v23  ;;  %5854 = vmatpush1.bf16.msra.mxu0 %v5853_v38  ;;  %v6237_v53 = vpack.c.bf16 %v2192_v9, %v2180_v15  ;;  %v919_v26 = vsub.f32 %v12460_v7, %v11714_v25  ;;  %v11717_v17 = vand.u32 4294901760, %v12462_v27  ;;  %v12464_v38 = vld [vmem:[#allocation180_spill] sm:$0xff] }
 0x11d   : > { %v931_v30 = vsub.f32 %v12461_v37, %v11715_v1  ;;  %v2198_v23 = vand.u32 4294901760, %v2197_v18  ;;  %v2210_v0 = vand.u32 4294901760, %v2209_v28  ;;  %v11719_v16 = vand.u32 4294901760, %v12463_v31  ;;  %v12466_v28 = vld [vmem:[#allocation182_spill] sm:$0xff] }
 0x11e   : > { %v5855_v42 = vpack.c.bf16 %v926_v55, %v914_v24  ;;  %6238 = vmatpush1.bf16.msra.mxu1 %v6237_v53  ;;  %v920_v57 = vand.u32 4294901760, %v919_v26  ;;  %v2203_v15 = vsub.f32 %v12462_v27, %v11717_v17  ;;  %v11718_v9 = vand.u32 4294901760, %v12464_v38  ;;  %v12465_v55 = vld [vmem:[#allocation181_spill] sm:$0xff] }
 0x11f   : > { %v932_v20 = vand.u32 4294901760, %v931_v30  ;;  %v6239_v25 = vpack.c.bf16 %v2210_v0, %v2198_v23  ;;  %v2215_v1 = vsub.f32 %v12463_v31, %v11719_v16  ;;  %v11720_v18 = vand.u32 4294901760, %v12465_v55  ;;  %v12527_v27 = vld [vmem:[#allocation73_spill] sm:$0xff] }
 0x120   : > { %5856 = vmatprep.subr.bf16.mxu0 %v5855_v42  ;;  %v11721_v24 = vand.u32 4294901760, %v12466_v28  ;;  %v2204_v53 = vand.u32 4294901760, %v2203_v15  ;;  %v937_v26 = vsub.f32 %v12464_v38, %v11718_v9  ;;  %v11722_v30 = vand.u32 4294901760, %v8123_v60 }
 0x121   : > { %v5857_v37 = vpack.c.bf16 %v932_v20, %v920_v57  ;;  %6240 = vmatprep.subr.bf16.mxu1 %v6239_v25  ;;  %v2216_v17 = vand.u32 4294901760, %v2215_v1  ;;  %v949_v0 = vsub.f32 %v12465_v55, %v11720_v18  ;;  %v11727_v23 = vand.u32 4294901760, %v8127_v21 }
 0x122   : > { %v2221_v42 = vsub.f32 %v12466_v28, %v11721_v24  ;;  %v938_v57 = vand.u32 4294901760, %v937_v26  ;;  %v2233_v20 = vsub.f32 %v8123_v60, %v11722_v30  ;;  %v11728_v15 = vand.u32 4294901760, %v8129_v14  ;;  %v12467_v30 = vld [vmem:[#allocation190_spill] sm:$0xff] }
 0x123   : > { %5858 = vmatpush1.bf16.msra.mxu0 %v5857_v37  ;;  %v11729_v1 = vand.u32 4294901760, %v8133_v36  ;;  %v6241_v25 = vpack.c.bf16 %v2216_v17, %v2204_v53  ;;  %v950_v9 = vand.u32 4294901760, %v949_v0  ;;  %v943_v18 = vsub.f32 %v8127_v21, %v11727_v23  ;;  %v12468_v0 = vld [vmem:[#allocation193_spill] sm:$0xff] }
 0x124   : > { %v2222_v16 = vand.u32 4294901760, %v2221_v42  ;;  %v2234_v24 = vand.u32 4294901760, %v2233_v20  ;;  %v955_v37 = vsub.f32 %v8129_v14, %v11728_v15  ;;  %v11732_v60 = vand.u32 4294901760, %v12467_v30 }
 0x125   : > { %v2227_v26 = vsub.f32 %v8133_v36, %v11729_v1  ;;  %6242 = vmatpush1.bf16.msra.mxu1 %v6241_v25  ;;  %v5859_v28 = vpack.c.bf16 %v950_v9, %v938_v57  ;;  %v944_v17 = vand.u32 4294901760, %v943_v18  ;;  %v11730_v53 = vand.u32 4294901760, %v8142_v2  ;;  %v12523_v36 = vld [vmem:[#allocation64_spill] sm:$0xff] }
 0x126   : > { %v11731_v42 = vand.u32 4294901760, %v12468_v0  ;;  %v6243_v55 = vpack.c.bf16 %v2234_v24, %v2222_v16  ;;  %v956_v23 = vand.u32 4294901760, %v955_v37  ;;  %v2239_v15 = vsub.f32 %v12467_v30, %v11732_v60  ;;  %v12524_v30 = vld [vmem:[#allocation66_spill] sm:$0xff] }
 0x127   : > { %v2228_v20 = vand.u32 4294901760, %v2227_v26  ;;  %5860 = vmatprep.subr.bf16.mxu0 %v5859_v28  ;;  %v961_v1 = vsub.f32 %v8142_v2, %v11730_v53  ;;  %v11733_v18 = vand.u32 4294901760, %v8148_v8  ;;  %v11736_v57 = vand.u32 4294901760, %v8154_v32  ;;  %v12525_v2 = vld [vmem:[#allocation67_spill] sm:$0xff] }
 0x128   : > { %v973_v9 = vsub.f32 %v12468_v0, %v11731_v42  ;;  %6244 = vmatprep.subr.bf16.mxu1 %v6243_v55  ;;  %v5861_v16 = vpack.c.bf16 %v956_v23, %v944_v17  ;;  %v2240_v24 = vand.u32 4294901760, %v2239_v15  ;;  %v11738_v25 = vand.u32 4294901760, %v8158_v11 }
 0x129   : > { %v11737_v37 = vand.u32 4294901760, %v8160_v47  ;;  %v962_v28 = vand.u32 4294901760, %v961_v1  ;;  %v2245_v53 = vsub.f32 %v8148_v8, %v11733_v18  ;;  %v2257_v42 = vsub.f32 %v8154_v32, %v11736_v57 }
 0x12a   : > { %v974_v26 = vand.u32 4294901760, %v973_v9  ;;  %5862 = vmatpush1.bf16.msra.mxu0 %v5861_v16  ;;  %v6245_v60 = vpack.c.bf16 %v2240_v24, %v2228_v20  ;;  %v967_v55 = vsub.f32 %v8158_v11, %v11738_v25  ;;  %v11743_v15 = vand.u32 4294901760, %v8164_v49  ;;  %v12470_v25 = vld [vmem:[#allocation13_spill] sm:$0xff]  ;;  %v12474_v11 = vld [vmem:[#allocation19_spill] sm:$0xff] }
 0x12b   : > { %v979_v23 = vsub.f32 %v8160_v47, %v11737_v37  ;;  %v2246_v17 = vand.u32 4294901760, %v2245_v53  ;;  %v2258_v9 = vand.u32 4294901760, %v2257_v42  ;;  %v11744_v18 = vand.u32 4294901760, %v8166_v29  ;;  %v12469_v37 = vld [vmem:[#allocation12_spill] sm:$0xff]  ;;  %v12473_v47 = vld [vmem:[#allocation18_spill] sm:$0xff] }
 0x12c   : > { %v5863_v1 = vpack.c.bf16 %v974_v26, %v962_v28  ;;  %6246 = vmatpush1.bf16.msra.mxu1 %v6245_v60  ;;  %v968_v8 = vand.u32 4294901760, %v967_v55  ;;  %v2251_v20 = vsub.f32 %v8164_v49, %v11743_v15  ;;  %v5867_v28 = vpack.c.bf16 %v12470_v25, %v12469_v37  ;;  %v12471_v60 = vld [vmem:[#allocation14_spill] sm:$0xff]  ;;  %v12472_v55 = vld [vmem:[#allocation16_spill] sm:$0xff]  ;;  %v12508_v37 = vld [vmem:[#allocation165_spill] sm:$0xff] }
 0x12d   : > { %v980_v57 = vand.u32 4294901760, %v979_v23  ;;  %v6247_v16 = vpack.c.bf16 %v2258_v9, %v2246_v17  ;;  %v2263_v24 = vsub.f32 %v8166_v29, %v11744_v18  ;;  %v6251_v23 = vpack.c.bf16 %v12472_v55, %v12471_v60  ;;  %v12475_v9 = vld [vmem:[#allocation195_spill] sm:$0xff]  ;;  %v12476_v18 = vld [vmem:[#allocation117_spill] sm:$0xff]  ;;  %v12505_v55 = vld [vmem:[#allocation158_spill] sm:$0xff] }
 0x12e   : > { %5864 = vmatprep.subr.bf16.mxu0 %v5863_v1  ;;  %v2252_v42 = vand.u32 4294901760, %v2251_v20  ;;  %v5869_v15 = vpack.c.bf16 %v12474_v11, %v12473_v47  ;;  %v5871_v17 = vpack.c.bf16 %v7751_v46, %v7747_v41  ;;  %v5873_v20 = vpack.c.bf16 %v7766_v61, %v7760_v52  ;;  %v12495_v52 = vld [vmem:[#allocation145_spill] sm:$0xff]  ;;  %v12502_v11 = vld [vmem:[#allocation206_spill] sm:$0xff]  ;;  %v12506_v61 = vld [vmem:[#allocation160_spill] sm:$0xff] }
 0x12f   : > { %v5865_v53 = vpack.c.bf16 %v980_v57, %v968_v8  ;;  %6248 = vmatprep.subr.bf16.mxu1 %v6247_v16  ;;  %v2264_v26 = vand.u32 4294901760, %v2263_v24  ;;  %v6253_v8 = vpack.c.bf16 %v7745_v40, %v7743_v39  ;;  %v6255_v57 = vpack.c.bf16 %v7758_v50, %v7755_v48  ;;  %v12497_v48 = vld [vmem:[#allocation148_spill] sm:$0xff]  ;;  %v12509_v40 = vld [vmem:[#allocation166_spill] sm:$0xff]  ;;  %v12514_v25 = vld [vmem:[#allocation181_spill] sm:$0xff] }
 0x130   : > { %v6257_v16 = vpack.c.bf16 %v7772_v4, %v7768_v62  ;;  %v5875_v24 = vpack.c.bf16 %v7779_v10, %v7776_v6  ;;  %v12488_v4 = vld [vmem:[#allocation134_spill] sm:$0xff]  ;;  %v12503_v62 = vld [vmem:[#allocation156_spill] sm:$0xff] }
 0x131   : > { %5866 = vmatpush1.bf16.msra.mxu0 %v5865_v53  ;;  %v6249_v1 = vpack.c.bf16 %v2264_v26, %v2252_v42  ;;  %v5877_v53 = vpack.c.bf16 %v7794_v34, %v7792_v33  ;;  %v5879_v42 = vpack.c.bf16 %v7808_v56, %v7804_v51  ;;  %v6263_v26 = vpack.c.bf16 %v7815_v63, %v7812_v58  ;;  %v12480_v56 = vld [vmem:[#allocation122_spill] sm:$0xff]  ;;  %v12481_v63 = vld [vmem:[#allocation124_spill] sm:$0xff]  ;;  %v12491_v33 = vld [vmem:[#allocation139_spill] sm:$0xff] }
 0x132   : > { %5868 = vmatprep.subr.bf16.mxu0 %v5867_v28  ;;  %v6259_v28 = vpack.c.bf16 %v7785_v13, %v7783_v12  ;;  %v12482_v51 = vld [vmem:[#allocation126_spill] sm:$0xff]  ;;  %v12489_v34 = vld [vmem:[#allocation136_spill] sm:$0xff]  ;;  %v12513_v12 = vld [vmem:[#allocation175_spill] sm:$0xff] }
 0x133   : > { %6250 = vmatpush1.bf16.msra.mxu1 %v6249_v1  ;;  %v5883_v1 = vpack.c.bf16 %v7834_v5, %v7832_v3  ;;  %v12485_v13 = vld [vmem:[#allocation130_spill] sm:$0xff]  ;;  %v12486_v3 = vld [vmem:[#allocation132_spill] sm:$0xff]  ;;  %v12511_v5 = vld [vmem:[#allocation169_spill] sm:$0xff] }
 0x134   : > { %985 = vmatmul.mubr.f32.vlgmr.msra.gmra.mrb[0].mxu0 %v12475_v9  ;;  %6252 = vmatprep.subr.bf16.mxu1 %v6251_v23  ;;  %v5881_v23 = vpack.c.bf16 %v7822_v35, %v7818_v19  ;;  %v12483_v35 = vld [vmem:[#allocation127_spill] sm:$0xff]  ;;  %v12484_v19 = vld [vmem:[#allocation129_spill] sm:$0xff]  ;;  %v12490_v10 = vld [vmem:[#allocation138_spill] sm:$0xff] }
 0x135   : > { %5870 = vmatpush1.bf16.msra.mxu0 %v5869_v15  ;;  %v6261_v15 = vpack.c.bf16 %v7800_v44, %v7798_v43  ;;  %v12478_v44 = vld [vmem:[#allocation120_spill] sm:$0xff]  ;;  %v12479_v43 = vld [vmem:[#allocation121_spill] sm:$0xff]  ;;  %v12493_v6 = vld [vmem:[#allocation142_spill] sm:$0xff]  ;;  %1185 = vmatprep.mubr.f32.mxu0 %v12502_v11 }
 0x136   : > { %5872 = vmatprep.subr.bf16.mxu0 %v5871_v17  ;;  %2269 = vmatmul.mubr.f32.vlgmr.msra.gmra.mrb[0].mxu1 %v12475_v9  ;;  %v12477_v9 = vld [vmem:[#allocation118_spill] sm:$0xff]  ;;  %v12487_v17 = vld [vmem:[#allocation133_spill] sm:$0xff]  ;;  %v12494_v58 = vld [vmem:[#allocation144_spill] sm:$0xff] }
 0x137   : > { %6254 = vmatpush1.bf16.msra.mxu1 %v6253_v8  ;;  %v12510_v39 = vld [vmem:[#allocation168_spill] sm:$0xff]  ;;  %v12512_v46 = vld [vmem:[#allocation170_spill] sm:$0xff]  ;;  %2469 = vmatprep.mubr.f32.mxu1 %v12502_v11 }
 0x138   : > { %6256 = vmatprep.subr.bf16.mxu1 %v6255_v57  ;;  %v12504_v57 = vld [vmem:[#allocation157_spill] sm:$0xff]  ;;  %v12516_v8 = vld [vmem:[#allocation184_spill] sm:$0xff]  ;;  %v12522_v41 = vld [vmem:[#allocation62_spill] sm:$0xff] }
 0x139   : > { %5874 = vmatpush1.bf16.msra.mxu0 %v5873_v20  ;;  %v12492_v20 = vld [vmem:[#allocation141_spill] sm:$0xff]  ;;  %v12526_v47 = vld [vmem:[#allocation72_spill] sm:$0xff]  ;;  %v12529_v11 = vld [vmem:[#allocation70_spill] sm:$0xff] }
 0x13a   : > { %5876 = vmatprep.subr.bf16.mxu0 %v5875_v24  ;;  %v12499_v24 = vld [vmem:[#allocation151_spill] sm:$0xff]  ;;  %v5887_v7 = vpack.c.bf16 %v12527_v27, %v12526_v47 }
 0x13b   : > { %6258 = vmatpush1.bf16.msra.mxu1 %v6257_v16  ;;  %v6267_v16 = vpack.c.bf16 %v12523_v36, %v12522_v41  ;;  %v12534_v36 = vld [vmem:[#allocation84_spill] sm:$0xff]  ;;  %v12535_v41 = vld [vmem:[#allocation85_spill] sm:$0xff] }
 0x13c   : > { %6260 = vmatprep.subr.bf16.mxu1 %v6259_v28  ;;  %v12521_v28 = vld [vmem:[#allocation58_spill] sm:$0xff] }
 0x13d   : > { %5878 = vmatpush1.bf16.msra.mxu0 %v5877_v53  ;;  %v6265_v50 = vpack.c.bf16 %v12521_v28, %v12520_v22  ;;  %v12530_v28 = vld [vmem:[#allocation74_spill] sm:$0xff]  ;;  %v12531_v53 = vld [vmem:[#allocation76_spill] sm:$0xff]  ;;  %v12533_v22 = vld [vmem:[#allocation79_spill] sm:$0xff] }
 0x13e   : > { %5880 = vmatprep.subr.bf16.mxu0 %v5879_v42  ;;  %v5885_v42 = vpack.c.bf16 %v12525_v2, %v12524_v30  ;;  %v5891_v2 = vpack.c.bf16 %v12535_v41, %v12534_v36  ;;  %v12537_v30 = vld [vmem:[#allocation82_spill] sm:$0xff] }
 0x13f   : > { %6262 = vmatpush1.bf16.msra.mxu1 %v6261_v15  ;;  %v12528_v15 = vld [vmem:[#allocation69_spill] sm:$0xff] }
 0x140   : > { %6264 = vmatprep.subr.bf16.mxu1 %v6263_v26  ;;  %v6269_v60 = vpack.c.bf16 %v12529_v11, %v12528_v15  ;;  %v6271_v26 = vpack.c.bf16 %v12531_v53, %v12530_v28  ;;  %v12539_v11 = vld [vmem:[#allocation88_spill] sm:$0xff]  ;;  %v12541_v15 = vld [vmem:[#allocation91_spill] sm:$0xff]  ;;  %v12543_v28 = vld [vmem:[#allocation97_spill] sm:$0xff] }
 0x141   : > { %5882 = vmatpush1.bf16.msra.mxu0 %v5881_v23  ;;  %v12532_v23 = vld [vmem:[#allocation78_spill] sm:$0xff]  ;;  %v12542_v53 = vld [vmem:[#allocation96_spill] sm:$0xff] }
 0x142   : > { %5884 = vmatprep.subr.bf16.mxu0 %v5883_v1  ;;  %v5889_v49 = vpack.c.bf16 %v12533_v22, %v12532_v23  ;;  %v12536_v1 = vld [vmem:[#allocation81_spill] sm:$0xff]  ;;  %v5895_v22 = vpack.c.bf16 %v12543_v28, %v12542_v53  ;;  %v12545_v23 = vld [vmem:[#allocation94_spill] sm:$0xff] }
 0x143   : > { %6266 = vmatpush1.bf16.msra.mxu1 %v6265_v50  ;;  %v6273_v27 = vpack.c.bf16 %v12537_v30, %v12536_v1  ;;  %v12538_v50 = vld [vmem:[#allocation86_spill] sm:$0xff]  ;;  %v12547_v30 = vld [vmem:[#allocation100_spill] sm:$0xff]  ;;  %v12549_v1 = vld [vmem:[#allocation103_spill] sm:$0xff] }
 0x144   : > { %6268 = vmatprep.subr.bf16.mxu1 %v6267_v16  ;;  %v6275_v16 = vpack.c.bf16 %v12539_v11, %v12538_v50  ;;  %v12550_v11 = vld [vmem:[#allocation108_spill] sm:$0xff]  ;;  %v12551_v50 = vld [vmem:[#allocation109_spill] sm:$0xff] }
 0x145   : > { %5886 = vmatpush1.bf16.msra.mxu0 %v5885_v42  ;;  %v12540_v42 = vld [vmem:[#allocation90_spill] sm:$0xff] }
 0x146   : > { %5888 = vmatprep.subr.bf16.mxu0 %v5887_v7  ;;  %v5893_v47 = vpack.c.bf16 %v12541_v15, %v12540_v42  ;;  %v12544_v7 = vld [vmem:[#allocation93_spill] sm:$0xff]  ;;  %v5899_v15 = vpack.c.bf16 %v12551_v50, %v12550_v11  ;;  %v12553_v42 = vld [vmem:[#allocation106_spill] sm:$0xff] }
 0x147   : > { %6270 = vmatpush1.bf16.msra.mxu1 %v6269_v60  ;;  %v6277_v41 = vpack.c.bf16 %v12545_v23, %v12544_v7  ;;  %v12546_v60 = vld [vmem:[#allocation98_spill] sm:$0xff]  ;;  %v12555_v23 = vld [vmem:[#allocation112_spill] sm:$0xff] }
 0x148   : > { %6272 = vmatprep.subr.bf16.mxu1 %v6271_v26  ;;  %v6279_v26 = vpack.c.bf16 %v12547_v30, %v12546_v60 }
 0x149   : > { %5890 = vmatpush1.bf16.msra.mxu0 %v5889_v49  ;;  %v12548_v49 = vld [vmem:[#allocation102_spill] sm:$0xff] }
 0x14a   : > { %5892 = vmatprep.subr.bf16.mxu0 %v5891_v2  ;;  %v5897_v36 = vpack.c.bf16 %v12549_v1, %v12548_v49  ;;  %v12552_v2 = vld [vmem:[#allocation105_spill] sm:$0xff] }
 0x14b   : > { %6274 = vmatpush1.bf16.msra.mxu1 %v6273_v27  ;;  %v6281_v28 = vpack.c.bf16 %v12553_v42, %v12552_v2  ;;  %v12554_v27 = vld [vmem:[#allocation110_spill] sm:$0xff] }
 0x14c   : > { %6276 = vmatprep.subr.bf16.mxu1 %v6275_v16  ;;  %v6283_v16 = vpack.c.bf16 %v12555_v23, %v12554_v27 }
 0x14d   : > { %5894 = vmatpush1.bf16.msra.mxu0 %v5893_v47  ;;  %v12556_v47 = vpack.c.bf16 %v12422_v45, %v12421_v59 }
 0x14e   : > { %5896 = vmatprep.subr.bf16.mxu0 %v5895_v22  ;;  %v12557_v22 = vpack.c.bf16 %v12479_v43, %v12478_v44 }
 0x14f   : > { %6278 = vmatpush1.bf16.msra.mxu1 %v6277_v41  ;;  %v12558_v41 = vpack.c.bf16 %v12477_v9, %v12476_v18 }
 0x150   : > { %6280 = vmatprep.subr.bf16.mxu1 %v6279_v26  ;;  %v12562_v26 = vpack.c.bf16 %v12485_v13, %v12484_v19 }
 0x151   : > { %5898 = vmatpush1.bf16.msra.mxu0 %v5897_v36  ;;  %v12559_v36 = vpack.c.bf16 %v12481_v63, %v12480_v56 }
 0x152   : > { %5900 = vmatprep.subr.bf16.mxu0 %v5899_v15  ;;  %v12561_v15 = vpack.c.bf16 %v12487_v17, %v12486_v3 }
 0x153   : > { %6282 = vmatpush1.bf16.msra.mxu1 %v6281_v28  ;;  %v12560_v28 = vpack.c.bf16 %v12483_v35, %v12482_v51 }
 0x154   : > { %6284 = vmatprep.subr.bf16.mxu1 %v6283_v16  ;;  %v12563_v16 = vpack.c.bf16 %v12489_v34, %v12488_v4 }
 0x155   : > { %5902 = vmatpush1.bf16.msra.mxu0 %v12556_v47  ;;  %v12564_v47 = vpack.c.bf16 %v12491_v33, %v12490_v10  ;;  %v12573_v33 = vld [vmem:[#allocation153_spill] sm:$0xff] }
 0x156   : > { %5904 = vmatprep.subr.bf16.mxu0 %v12557_v22  ;;  %v12565_v22 = vpack.c.bf16 %v12495_v52, %v12494_v58 }
 0x157   : > { %6286 = vmatpush1.bf16.msra.mxu1 %v12558_v41  ;;  %v12566_v41 = vpack.c.bf16 %v12493_v6, %v12492_v20  ;;  %v12577_v6 = vld [vmem:[#allocation162_spill] sm:$0xff] }
 0x158   : > { %6288 = vmatprep.subr.bf16.mxu1 %v12559_v36  ;;  %v12567_v36 = vld [vmem:[#allocation146_spill] sm:$0xff] }
 0x159   : > { %5906 = vmatpush1.bf16.msra.mxu0 %v12560_v28  ;;  %v12568_v28 = vpack.c.bf16 %v12497_v48, %v12567_v36 }
 0x15a   : > { %5908 = vmatprep.subr.bf16.mxu0 %v12561_v15  ;;  %v12569_v15 = vld [vmem:[#allocation150_spill] sm:$0xff] }
 0x15b   : > { %6290 = vmatpush1.bf16.msra.mxu1 %v12562_v26  ;;  %v12570_v26 = vpack.c.bf16 %v12499_v24, %v12569_v15 }
 0x15c   : > { %6292 = vmatprep.subr.bf16.mxu1 %v12563_v16  ;;  %v12571_v16 = vpack.c.bf16 %v12504_v57, %v12503_v62 }
 0x15d   : > { %5910 = vmatpush1.bf16.msra.mxu0 %v12564_v47  ;;  %v12572_v47 = vld [vmem:[#allocation154_spill] sm:$0xff] }
 0x15e   : > { %5912 = vmatprep.subr.bf16.mxu0 %v12565_v22  ;;  %v12574_v52 = vpack.c.bf16 %v12572_v47, %v12573_v33  ;;  %v12575_v22 = vpack.c.bf16 %v12506_v61, %v12505_v55 }
 0x15f   : > { %6294 = vmatpush1.bf16.msra.mxu1 %v12566_v41  ;;  %v12576_v41 = vld [vmem:[#allocation163_spill] sm:$0xff] }
 0x160   : > { %6296 = vmatprep.subr.bf16.mxu1 %v12568_v28  ;;  %v12578_v48 = vpack.c.bf16 %v12576_v41, %v12577_v6  ;;  %v12579_v28 = vpack.c.bf16 %v12511_v5, %v12510_v39 }
 0x161   : > { %5914 = vmatpush1.bf16.msra.mxu0 %v12570_v26  ;;  %v12580_v26 = vpack.c.bf16 %v12509_v40, %v12508_v37  ;;  %v12699_v40 = vld [vmem:[#allocation37_spill] sm:$0xff] }
 0x162   : > { %5916 = vmatprep.subr.bf16.mxu0 %v12571_v16  ;;  %v12581_v16 = vpack.c.bf16 %v8095_v54, %v12512_v46  ;;  %v12687_v54 = vld [vmem:[#allocation22_spill] sm:$0xff] }
 0x163   : > { %6298 = vmatpush1.bf16.msra.mxu1 %v12574_v52  ;;  %v12582_v52 = vld [vmem:[#allocation174_spill] sm:$0xff] }
 0x164   : > { %6300 = vmatprep.subr.bf16.mxu1 %v12575_v22  ;;  %v12583_v61 = vpack.c.bf16 %v12513_v12, %v12582_v52  ;;  %v12584_v22 = vpack.c.bf16 %v12514_v25, %v12464_v38  ;;  %v12593_v52 = vld [vmem:[#allocation189_spill] sm:$0xff] }
 0x165   : > { %5918 = vmatpush1.bf16.msra.mxu0 %v12578_v48  ;;  %v12585_v48 = vld [vmem:[#allocation177_spill] sm:$0xff] }
 0x166   : > { %5920 = vmatprep.subr.bf16.mxu0 %v12579_v28  ;;  %v12586_v5 = vpack.c.bf16 %v12463_v31, %v12585_v48  ;;  %v12587_v28 = vld [vmem:[#allocation182_spill] sm:$0xff]  ;;  %v12598_v31 = vld [vmem:[#allocation199_spill] sm:$0xff]  ;;  %v12683_v48 = vld [vmem:[#allocation201_spill] sm:$0xff] }
 0x167   : > { %6302 = vmatpush1.bf16.msra.mxu1 %v12580_v26  ;;  %v12588_v39 = vpack.c.bf16 %v12516_v8, %v12587_v28  ;;  %v12589_v26 = vpack.c.bf16 %v8129_v14, %v8127_v21  ;;  %v12677_v21 = vld [vmem:[#allocation19_spill] sm:$0xff] }
 0x168   : > { %6304 = vmatprep.subr.bf16.mxu1 %v12581_v16  ;;  %v12590_v16 = vld [vmem:[#allocation192_spill] sm:$0xff] }
 0x169   : > { %5922 = vmatpush1.bf16.msra.mxu0 %v12583_v61  ;;  %v12591_v12 = vpack.c.bf16 %v12468_v0, %v12590_v16  ;;  %v12592_v61 = vld [vmem:[#allocation190_spill] sm:$0xff]  ;;  %v12603_v0 = vld [vmem:[#allocation205_spill] sm:$0xff] }
 0x16a   : > { %5924 = vmatprep.subr.bf16.mxu0 %v12584_v22  ;;  %v12594_v25 = vpack.c.bf16 %v12592_v61, %v12593_v52  ;;  %v12595_v22 = vld [vmem:[#allocation194_spill] sm:$0xff]  ;;  %v12605_v16 = vld [vmem:[#allocation17_spill] sm:$0xff] }
 0x16b   : > { %6306 = vmatpush1.bf16.msra.mxu1 %v12586_v5  ;;  %v12596_v38 = vpack.c.bf16 %v8154_v32, %v12595_v22  ;;  %v12597_v5 = vld [vmem:[#allocation200_spill] sm:$0xff]  ;;  %v12675_v52 = vld [vmem:[#allocation18_spill] sm:$0xff] }
 0x16c   : > { %6308 = vmatprep.subr.bf16.mxu1 %v12588_v39  ;;  %v12599_v8 = vpack.c.bf16 %v12597_v5, %v12598_v31  ;;  %v12600_v39 = vld [vmem:[#allocation11_spill] sm:$0xff]  ;;  %v12607_v32 = vld [vmem:[#allocation208_spill] sm:$0xff]  ;;  %v12666_v5 = vld [vmem:[#allocation13_spill] sm:$0xff] }
 0x16d   : > { %5926 = vmatpush1.bf16.msra.mxu0 %v12589_v26  ;;  %v12601_v26 = vld [vmem:[#allocation202_spill] sm:$0xff] }
 0x16e   : > { %5928 = vmatprep.subr.bf16.mxu0 %v12591_v12  ;;  %v12602_v14 = vpack.c.bf16 %v8166_v29, %v12601_v26  ;;  %v12604_v12 = vld [vmem:[#allocation15_spill] sm:$0xff]  ;;  %v12612_v29 = vld [vmem:[#allocation33_spill] sm:$0xff]  ;;  %v12616_v26 = vld [vmem:[#allocation44_spill] sm:$0xff] }
 0x16f   : > { %6310 = vmatpush1.bf16.msra.mxu1 %v12594_v25  ;;  %v12606_v25 = vld [vmem:[#allocation24_spill] sm:$0xff] }
 0x170   : > { %6312 = vmatprep.subr.bf16.mxu1 %v12596_v38  ;;  %v12608_v38 = vld [vmem:[#allocation20_spill] sm:$0xff] }
 0x171   : > { %5930 = vmatpush1.bf16.msra.mxu0 %v12599_v8  ;;  %v12609_v8 = vld [vmem:[#allocation26_spill] sm:$0xff] }
 0x172   : > { %5932 = vmatprep.subr.bf16.mxu0 %v12600_v39  ;;  %v12610_v39 = vld [vmem:[#allocation30_spill] sm:$0xff] }
 0x173   : > { %6314 = vmatpush1.bf16.msra.mxu1 %v12602_v14  ;;  %v12611_v14 = vld [vmem:[#allocation35_spill] sm:$0xff] }
 0x174   : > { %1188 = vmatmul.mubr.f32.vlgmr.msra.gmra.mrb[0].mxu0 %v12603_v0  ;;  %6316 = vmatprep.subr.bf16.mxu1 %v12604_v12  ;;  %v12613_v12 = vld [vmem:[#allocation38_spill] sm:$0xff] }
 0x175   : > { %5934 = vmatpush1.bf16.msra.mxu0 %v12605_v16  ;;  %1325 = vmatprep.mubr.f32.mxu0 %v12607_v32  ;;  %v12614_v16 = vld [vmem:[#allocation41_spill] sm:$0xff] }
 0x176   : > { %5936 = vmatprep.subr.bf16.mxu0 %v12606_v25  ;;  %2472 = vmatmul.mubr.f32.vlgmr.msra.gmra.mrb[0].mxu1 %v12603_v0  ;;  %v12615_v25 = vld [vmem:[#allocation47_spill] sm:$0xff]  ;;  %v12617_v0 = vld [vmem:[#allocation50_spill] sm:$0xff] }
 0x177   : > { %6318 = vmatpush1.bf16.msra.mxu1 %v12608_v38  ;;  %2609 = vmatprep.mubr.f32.mxu1 %v12607_v32  ;;  %v12618_v38 = vld [vmem:[#allocation54_spill] sm:$0xff]  ;;  %v12619_v32 = vld [vmem:[#allocation59_spill] sm:$0xff] }
 0x178   : > { %6320 = vmatprep.subr.bf16.mxu1 %v12609_v8  ;;  %v12620_v8 = vld [vmem:[#allocation56_spill] sm:$0xff] }
 0x179   : > { %5938 = vmatpush1.bf16.msra.mxu0 %v12610_v39  ;;  %v12621_v39 = vld [vmem:[#allocation63_spill] sm:$0xff] }
 0x17a   : > { %5940 = vmatprep.subr.bf16.mxu0 %v12611_v14  ;;  %v12622_v14 = vld [vmem:[#allocation65_spill] sm:$0xff] }
 0x17b   : > { %6322 = vmatpush1.bf16.msra.mxu1 %v12612_v29  ;;  %v12623_v29 = vld [vmem:[#allocation71_spill] sm:$0xff] }
 0x17c   : > { %6324 = vmatprep.subr.bf16.mxu1 %v12613_v12  ;;  %v12624_v12 = vld [vmem:[#allocation68_spill] sm:$0xff] }
 0x17d   : > { %5942 = vmatpush1.bf16.msra.mxu0 %v12614_v16  ;;  %v12625_v16 = vld [vmem:[#allocation75_spill] sm:$0xff] }
 0x17e   : > { %5944 = vmatprep.subr.bf16.mxu0 %v12615_v25  ;;  %v12626_v25 = vld [vmem:[#allocation77_spill] sm:$0xff] }
 0x17f   : > { %6326 = vmatpush1.bf16.msra.mxu1 %v12616_v26  ;;  %v12627_v26 = vld [vmem:[#allocation83_spill] sm:$0xff] }
 0x180   : > { %6328 = vmatprep.subr.bf16.mxu1 %v12617_v0  ;;  %v12628_v0 = vld [vmem:[#allocation80_spill] sm:$0xff] }
 0x181   : > { %5946 = vmatpush1.bf16.msra.mxu0 %v12618_v38  ;;  %v12629_v38 = vld [vmem:[#allocation87_spill] sm:$0xff] }
 0x182   : > { %5948 = vmatprep.subr.bf16.mxu0 %v12619_v32  ;;  %v12630_v32 = vld [vmem:[#allocation89_spill] sm:$0xff] }
 0x183   : > { %6330 = vmatpush1.bf16.msra.mxu1 %v12620_v8  ;;  %v12631_v8 = vld [vmem:[#allocation95_spill] sm:$0xff] }
 0x184   : > { %6332 = vmatprep.subr.bf16.mxu1 %v12621_v39  ;;  %v12632_v39 = vld [vmem:[#allocation92_spill] sm:$0xff] }
 0x185   : > { %5950 = vmatpush1.bf16.msra.mxu0 %v12622_v14  ;;  %v12633_v14 = vld [vmem:[#allocation99_spill] sm:$0xff] }
 0x186   : > { %5952 = vmatprep.subr.bf16.mxu0 %v12623_v29  ;;  %v12634_v29 = vld [vmem:[#allocation101_spill] sm:$0xff] }
 0x187   : > { %6334 = vmatpush1.bf16.msra.mxu1 %v12624_v12  ;;  %v12635_v12 = vld [vmem:[#allocation107_spill] sm:$0xff] }
 0x188   : > { %6336 = vmatprep.subr.bf16.mxu1 %v12625_v16  ;;  %v12636_v16 = vld [vmem:[#allocation104_spill] sm:$0xff] }
 0x189   : > { %5954 = vmatpush1.bf16.msra.mxu0 %v12626_v25  ;;  %v12637_v25 = vld [vmem:[#allocation111_spill] sm:$0xff] }
 0x18a   : > { %5956 = vmatprep.subr.bf16.mxu0 %v12627_v26  ;;  %v12638_v26 = vld [vmem:[#allocation113_spill] sm:$0xff] }
 0x18b   : > { %6338 = vmatpush1.bf16.msra.mxu1 %v12628_v0  ;;  %v12639_v0 = vld [vmem:[#allocation119_spill] sm:$0xff] }
 0x18c   : > { %6340 = vmatprep.subr.bf16.mxu1 %v12629_v38  ;;  %v12640_v38 = vld [vmem:[#allocation116_spill] sm:$0xff] }
 0x18d   : > { %5958 = vmatpush1.bf16.msra.mxu0 %v12630_v32  ;;  %v12641_v32 = vld [vmem:[#allocation123_spill] sm:$0xff] }
 0x18e   : > { %5960 = vmatprep.subr.bf16.mxu0 %v12631_v8  ;;  %v12642_v8 = vld [vmem:[#allocation125_spill] sm:$0xff] }
 0x18f   : > { %6342 = vmatpush1.bf16.msra.mxu1 %v12632_v39  ;;  %v12643_v39 = vld [vmem:[#allocation131_spill] sm:$0xff] }
 0x190   : > { %6344 = vmatprep.subr.bf16.mxu1 %v12633_v14  ;;  %v12644_v14 = vld [vmem:[#allocation128_spill] sm:$0xff] }
 0x191   : > { %5962 = vmatpush1.bf16.msra.mxu0 %v12634_v29  ;;  %v12645_v29 = vld [vmem:[#allocation135_spill] sm:$0xff] }
 0x192   : > { %5964 = vmatprep.subr.bf16.mxu0 %v12635_v12  ;;  %v12646_v12 = vld [vmem:[#allocation137_spill] sm:$0xff] }
 0x193   : > { %6346 = vmatpush1.bf16.msra.mxu1 %v12636_v16  ;;  %v12647_v16 = vld [vmem:[#allocation143_spill] sm:$0xff] }
 0x194   : > { %6348 = vmatprep.subr.bf16.mxu1 %v12637_v25  ;;  %v12648_v25 = vld [vmem:[#allocation140_spill] sm:$0xff] }
 0x195   : > { %5966 = vmatpush1.bf16.msra.mxu0 %v12638_v26  ;;  %v12649_v26 = vld [vmem:[#allocation147_spill] sm:$0xff] }
 0x196   : > { %5968 = vmatprep.subr.bf16.mxu0 %v12639_v0  ;;  %v12650_v0 = vld [vmem:[#allocation149_spill] sm:$0xff] }
 0x197   : > { %6350 = vmatpush1.bf16.msra.mxu1 %v12640_v38  ;;  %v12651_v38 = vld [vmem:[#allocation155_spill] sm:$0xff] }
 0x198   : > { %6352 = vmatprep.subr.bf16.mxu1 %v12641_v32  ;;  %v12652_v32 = vld [vmem:[#allocation152_spill] sm:$0xff] }
 0x199   : > { %5970 = vmatpush1.bf16.msra.mxu0 %v12642_v8  ;;  %v12653_v8 = vld [vmem:[#allocation159_spill] sm:$0xff] }
 0x19a   : > { %5972 = vmatprep.subr.bf16.mxu0 %v12643_v39  ;;  %v12654_v39 = vld [vmem:[#allocation161_spill] sm:$0xff] }
 0x19b   : > { %6354 = vmatpush1.bf16.msra.mxu1 %v12644_v14  ;;  %v12655_v14 = vld [vmem:[#allocation167_spill] sm:$0xff] }
 0x19c   : > { %6356 = vmatprep.subr.bf16.mxu1 %v12645_v29  ;;  %v12656_v29 = vld [vmem:[#allocation164_spill] sm:$0xff] }
 0x19d   : > { %5974 = vmatpush1.bf16.msra.mxu0 %v12646_v12  ;;  %v12657_v12 = vld [vmem:[#allocation171_spill] sm:$0xff] }
 0x19e   : > { %5976 = vmatprep.subr.bf16.mxu0 %v12647_v16  ;;  %v12658_v16 = vld [vmem:[#allocation173_spill] sm:$0xff] }
 0x19f   : > { %6358 = vmatpush1.bf16.msra.mxu1 %v12648_v25  ;;  %v12659_v25 = vld [vmem:[#allocation179_spill] sm:$0xff] }
 0x1a0   : > { %6360 = vmatprep.subr.bf16.mxu1 %v12649_v26  ;;  %v12660_v26 = vld [vmem:[#allocation176_spill] sm:$0xff] }
 0x1a1   : > { %5978 = vmatpush1.bf16.msra.mxu0 %v12650_v0  ;;  %v12661_v0 = vld [vmem:[#allocation183_spill] sm:$0xff] }
 0x1a2   : > { %5980 = vmatprep.subr.bf16.mxu0 %v12651_v38  ;;  %v12662_v38 = vld [vmem:[#allocation185_spill] sm:$0xff] }
 0x1a3   : > { %6362 = vmatpush1.bf16.msra.mxu1 %v12652_v32  ;;  %v12663_v32 = vld [vmem:[#allocation191_spill] sm:$0xff] }
 0x1a4   : > { %6364 = vmatprep.subr.bf16.mxu1 %v12653_v8  ;;  %v12664_v8 = vld [vmem:[#allocation12_spill] sm:$0xff] }
 0x1a5   : > { %5982 = vmatpush1.bf16.msra.mxu0 %v12654_v39  ;;  %v12665_v39 = vand.u32 4294901760, %v12664_v8  ;;  %v12679_v8 = vld [vmem:[#allocation23_spill] sm:$0xff] }
 0x1a6   : > { %5984 = vmatprep.subr.bf16.mxu0 %v12655_v14  ;;  %v12667_v14 = vand.u32 4294901760, %v12666_v5  ;;  %v12680_v5 = vand.u32 4294901760, %v12679_v8 }
 0x1a7   : > { %6366 = vmatpush1.bf16.msra.mxu1 %v12656_v29  ;;  %v12668_v29 = vld [vmem:[#allocation188_spill] sm:$0xff] }
 0x1a8   : > { %6368 = vmatprep.subr.bf16.mxu1 %v12657_v12  ;;  %v5995_v31 = vpack.c.bf16 %v12667_v14, %v12665_v39  ;;  %v12669_v12 = vld [vmem:[#allocation196_spill] sm:$0xff]  ;;  %v12681_v39 = vld [vmem:[#allocation25_spill] sm:$0xff] }
 0x1a9   : > { %5986 = vmatpush1.bf16.msra.mxu0 %v12658_v16  ;;  %v12670_v16 = vld [vmem:[#allocation198_spill] sm:$0xff]  ;;  %v12682_v14 = vand.u32 4294901760, %v12681_v39  ;;  %v12695_v39 = vld [vmem:[#allocation31_spill] sm:$0xff] }
 0x1aa   : > { %5988 = vmatprep.subr.bf16.mxu0 %v12659_v25  ;;  %v12671_v25 = vld [vmem:[#allocation14_spill] sm:$0xff] }
 0x1ab   : > { %6370 = vmatpush1.bf16.msra.mxu1 %v12660_v26  ;;  %v12672_v22 = vand.u32 4294901760, %v12671_v25  ;;  %v12673_v26 = vld [vmem:[#allocation16_spill] sm:$0xff] }
 0x1ac   : > { %6372 = vmatprep.subr.bf16.mxu1 %v12661_v0  ;;  %v12674_v61 = vand.u32 4294901760, %v12673_v26  ;;  %v12688_v26 = vand.u32 4294901760, %v12687_v54  ;;  %v12701_v54 = vld [vmem:[#allocation204_spill] sm:$0xff] }
 0x1ad   : > { %5990 = vmatpush1.bf16.msra.mxu0 %v12662_v38  ;;  %v12676_v38 = vand.u32 4294901760, %v12675_v52  ;;  %v12689_v52 = vld [vmem:[#allocation27_spill] sm:$0xff] }
 0x1ae   : > { %5992 = vmatprep.subr.bf16.mxu0 %v12663_v32  ;;  %v6379_v0 = vpack.c.bf16 %v12674_v61, %v12672_v22  ;;  %v12678_v32 = vand.u32 4294901760, %v12677_v21  ;;  %v12690_v21 = vand.u32 4294901760, %v12689_v52 }
 0x1af   : > { %6374 = vmatpush1.bf16.msra.mxu1 %v12668_v29  ;;  %v5999_v29 = vpack.c.bf16 %v12682_v14, %v12680_v5  ;;  %v12696_v5 = vand.u32 4294901760, %v12695_v39 }
 0x1b0   : > { %6376 = vmatprep.subr.bf16.mxu1 %v12669_v12  ;;  %v5997_v28 = vpack.c.bf16 %v12678_v32, %v12676_v38  ;;  %v12684_v12 = vld [vmem:[#allocation207_spill] sm:$0xff]  ;;  %v12691_v32 = vld [vmem:[#allocation28_spill] sm:$0xff]  ;;  %v12693_v38 = vld [vmem:[#allocation29_spill] sm:$0xff] }
 0x1b1   : > { %5994 = vmatpush1.bf16.msra.mxu0 %v12670_v16  ;;  %v12685_v16 = vld [vmem:[#allocation21_spill] sm:$0xff]  ;;  %v12694_v8 = vand.u32 4294901760, %v12693_v38  ;;  %v12712_v38 = vld [vmem:[#allocation43_spill] sm:$0xff] }
 0x1b2   : > { %5996 = vmatprep.subr.bf16.mxu0 %v5995_v31  ;;  %v12686_v25 = vand.u32 4294901760, %v12685_v16  ;;  %v12692_v31 = vand.u32 4294901760, %v12691_v32  ;;  %v12700_v16 = vand.u32 4294901760, %v12699_v40 }
 0x1b3   : > { %6378 = vmatpush1.bf16.msra.mxu1 %v12683_v48  ;;  %v6001_v14 = vpack.c.bf16 %v12696_v5, %v12694_v8  ;;  %v12697_v48 = vld [vmem:[#allocation36_spill] sm:$0xff]  ;;  %v12713_v8 = vand.u32 4294901760, %v12712_v38 }
 0x1b4   : > { %1329 = vmatmul.mubr.f32.vlgmr.msra.gmra.mrb[0].mxu0 %v12684_v12  ;;  %v6381_v61 = vpack.c.bf16 %v12688_v26, %v12686_v25  ;;  %6380 = vmatprep.subr.bf16.mxu1 %v6379_v0  ;;  %v6383_v22 = vpack.c.bf16 %v12692_v31, %v12690_v21  ;;  %v12698_v46 = vand.u32 4294901760, %v12697_v48  ;;  %v12702_v0 = vld [vmem:[#allocation32_spill] sm:$0xff]  ;;  %v12704_v25 = vld [vmem:[#allocation34_spill] sm:$0xff] }
 0x1b5   : > { %5998 = vmatpush1.bf16.msra.mxu0 %v5997_v28  ;;  %1592 = vmatprep.mubr.f32.mxu0 %v12701_v54  ;;  %v12703_v28 = vand.u32 4294901760, %v12702_v0  ;;  %v12705_v26 = vand.u32 4294901760, %v12704_v25  ;;  %v12708_v48 = vld [vmem:[#allocation40_spill] sm:$0xff]  ;;  %v12718_v25 = vld [vmem:[#allocation45_spill] sm:$0xff] }
 0x1b6   : > { %6000 = vmatprep.subr.bf16.mxu0 %v5999_v29  ;;  %v6003_v37 = vpack.c.bf16 %v12700_v16, %v12698_v46  ;;  %2613 = vmatmul.mubr.f32.vlgmr.msra.gmra.mrb[0].mxu1 %v12684_v12  ;;  %v12706_v29 = vld [vmem:[#allocation39_spill] sm:$0xff]  ;;  %v12709_v32 = vand.u32 4294901760, %v12708_v48  ;;  %v12710_v46 = vld [vmem:[#allocation42_spill] sm:$0xff]  ;;  %v12716_v16 = vld [vmem:[#allocation49_spill] sm:$0xff] }
 0x1b7   : > { %6382 = vmatpush1.bf16.msra.mxu1 %v6381_v61  ;;  %v6385_v52 = vpack.c.bf16 %v12705_v26, %v12703_v28  ;;  %2876 = vmatprep.mubr.f32.mxu1 %v12701_v54  ;;  %v12707_v21 = vand.u32 4294901760, %v12706_v29  ;;  %v12711_v31 = vand.u32 4294901760, %v12710_v46  ;;  %v12714_v61 = vld [vmem:[#allocation48_spill] sm:$0xff]  ;;  %v12717_v0 = vand.u32 4294901760, %v12716_v16  ;;  %v12732_v16 = vld [vmem:[#allocation61_spill] sm:$0xff] }
 0x1b8   : > { %6384 = vmatprep.subr.bf16.mxu1 %v6383_v22  ;;  %v12715_v5 = vand.u32 4294901760, %v12714_v61  ;;  %v12719_v22 = vand.u32 4294901760, %v12718_v25 }
 0x1b9   : > { %6002 = vmatpush1.bf16.msra.mxu0 %v6001_v14  ;;  %v6387_v40 = vpack.c.bf16 %v12709_v32, %v12707_v21  ;;  %v6005_v39 = vpack.c.bf16 %v12713_v8, %v12711_v31  ;;  %v12720_v14 = vld [vmem:[#allocation46_spill] sm:$0xff]  ;;  %v12722_v21 = vld [vmem:[#allocation51_spill] sm:$0xff]  ;;  %v12724_v32 = vld [vmem:[#allocation52_spill] sm:$0xff] }
 0x1ba   : > { %6004 = vmatprep.subr.bf16.mxu0 %v6003_v37  ;;  %v6007_v28 = vpack.c.bf16 %v12717_v0, %v12715_v5  ;;  %v12721_v26 = vand.u32 4294901760, %v12720_v14  ;;  %v12723_v48 = vand.u32 4294901760, %v12722_v21  ;;  %v12725_v46 = vand.u32 4294901760, %v12724_v32  ;;  %v12726_v31 = vld [vmem:[#allocation53_spill] sm:$0xff]  ;;  %v12728_v8 = vld [vmem:[#allocation55_spill] sm:$0xff]  ;;  %v12730_v5 = vld [vmem:[#allocation60_spill] sm:$0xff] }
 0x1bb   : > { %6386 = vmatpush1.bf16.msra.mxu1 %v6385_v52  ;;  %v12727_v37 = vand.u32 4294901760, %v12726_v31  ;;  %v12729_v61 = vand.u32 4294901760, %v12728_v8  ;;  %v12731_v52 = vand.u32 4294901760, %v12730_v5  ;;  %v12733_v0 = vand.u32 4294901760, %v12732_v16  ;;  %v12738_v21 = vld [vmem:[#allocation62_spill] sm:$0xff]  ;;  %v12740_v32 = vld [vmem:[#allocation64_spill] sm:$0xff] }
 0x1bc   : > { %v6389_v29 = vpack.c.bf16 %v12721_v26, %v12719_v22  ;;  %6388 = vmatprep.subr.bf16.mxu1 %v6387_v40  ;;  %v6391_v38 = vpack.c.bf16 %v12725_v46, %v12723_v48  ;;  %v12734_v22 = vld [vmem:[#allocation57_spill] sm:$0xff]  ;;  %v12739_v48 = vand.u32 4294901760, %v12738_v21  ;;  %v12741_v46 = vand.u32 4294901760, %v12740_v32  ;;  %v12744_v8 = vld [vmem:[#allocation67_spill] sm:$0xff]  ;;  %v12754_v21 = vld [vmem:[#allocation74_spill] sm:$0xff] }
 0x1bd   : > { %6006 = vmatpush1.bf16.msra.mxu0 %v6005_v39  ;;  %v6009_v12 = vpack.c.bf16 %v12729_v61, %v12727_v37  ;;  %v6011_v25 = vpack.c.bf16 %v12733_v0, %v12731_v52  ;;  %v12735_v40 = vand.u32 4294901760, %v12734_v22  ;;  %v12736_v39 = vld [vmem:[#allocation58_spill] sm:$0xff]  ;;  %v12745_v61 = vand.u32 4294901760, %v12744_v8  ;;  %v12746_v52 = vld [vmem:[#allocation72_spill] sm:$0xff]  ;;  %v12748_v16 = vld [vmem:[#allocation73_spill] sm:$0xff] }
 0x1be   : > { %6008 = vmatprep.subr.bf16.mxu0 %v6007_v28  ;;  %v12737_v14 = vand.u32 4294901760, %v12736_v39  ;;  %v6395_v31 = vpack.c.bf16 %v12741_v46, %v12739_v48  ;;  %v12742_v37 = vld [vmem:[#allocation66_spill] sm:$0xff]  ;;  %v12749_v0 = vand.u32 4294901760, %v12748_v16  ;;  %v12755_v48 = vand.u32 4294901760, %v12754_v21  ;;  %v12756_v32 = vld [vmem:[#allocation76_spill] sm:$0xff]  ;;  %v12760_v8 = vld [vmem:[#allocation79_spill] sm:$0xff] }
 0x1bf   : > { %6390 = vmatpush1.bf16.msra.mxu1 %v6389_v29  ;;  %v12743_v28 = vand.u32 4294901760, %v12742_v37  ;;  %v12747_v29 = vand.u32 4294901760, %v12746_v52  ;;  %v12757_v46 = vand.u32 4294901760, %v12756_v32  ;;  %v12764_v16 = vld [vmem:[#allocation85_spill] sm:$0xff]  ;;  %v12770_v21 = vld [vmem:[#allocation86_spill] sm:$0xff]  ;;  %v12772_v32 = vld [vmem:[#allocation88_spill] sm:$0xff] }
 0x1c0   : > { %v6393_v26 = vpack.c.bf16 %v12737_v14, %v12735_v40  ;;  %6392 = vmatprep.subr.bf16.mxu1 %v6391_v38  ;;  %v12750_v40 = vld [vmem:[#allocation69_spill] sm:$0xff] }
 0x1c1   : > { %6010 = vmatpush1.bf16.msra.mxu0 %v6009_v12  ;;  %v6013_v5 = vpack.c.bf16 %v12745_v61, %v12743_v28  ;;  %v6015_v22 = vpack.c.bf16 %v12749_v0, %v12747_v29  ;;  %v12751_v38 = vand.u32 4294901760, %v12750_v40  ;;  %v12752_v12 = vld [vmem:[#allocation70_spill] sm:$0xff]  ;;  %v6399_v37 = vpack.c.bf16 %v12757_v46, %v12755_v48  ;;  %v12762_v29 = vld [vmem:[#allocation84_spill] sm:$0xff] }
 0x1c2   : > { %6012 = vmatprep.subr.bf16.mxu0 %v6011_v25  ;;  %v12753_v39 = vand.u32 4294901760, %v12752_v12  ;;  %v12758_v28 = vld [vmem:[#allocation78_spill] sm:$0xff]  ;;  %v12761_v61 = vand.u32 4294901760, %v12760_v8  ;;  %v12765_v0 = vand.u32 4294901760, %v12764_v16  ;;  %v12771_v48 = vand.u32 4294901760, %v12770_v21  ;;  %v12776_v8 = vld [vmem:[#allocation91_spill] sm:$0xff] }
 0x1c3   : > { %6394 = vmatpush1.bf16.msra.mxu1 %v6393_v26  ;;  %v12759_v25 = vand.u32 4294901760, %v12758_v28  ;;  %v12763_v26 = vand.u32 4294901760, %v12762_v29  ;;  %v12773_v46 = vand.u32 4294901760, %v12772_v32 }
 0x1c4   : > { %v6397_v14 = vpack.c.bf16 %v12753_v39, %v12751_v38  ;;  %6396 = vmatprep.subr.bf16.mxu1 %v6395_v31  ;;  %v12766_v38 = vld [vmem:[#allocation81_spill] sm:$0xff] }
 0x1c5   : > { %6014 = vmatpush1.bf16.msra.mxu0 %v6013_v5  ;;  %v6017_v52 = vpack.c.bf16 %v12761_v61, %v12759_v25  ;;  %v6019_v40 = vpack.c.bf16 %v12765_v0, %v12763_v26  ;;  %v12767_v31 = vand.u32 4294901760, %v12766_v38  ;;  %v12768_v5 = vld [vmem:[#allocation82_spill] sm:$0xff]  ;;  %v6403_v28 = vpack.c.bf16 %v12773_v46, %v12771_v48  ;;  %v12779_v26 = vld [vmem:[#allocation97_spill] sm:$0xff] }
 0x1c6   : > { %6016 = vmatprep.subr.bf16.mxu0 %v6015_v22  ;;  %v12769_v12 = vand.u32 4294901760, %v12768_v5  ;;  %v12774_v25 = vld [vmem:[#allocation90_spill] sm:$0xff]  ;;  %v12777_v61 = vand.u32 4294901760, %v12776_v8  ;;  %v12780_v16 = vand.u32 4294901760, %v12779_v26  ;;  %v12784_v5 = vand.u32 4294901760, %v12546_v60 }
 0x1c7   : > { %6398 = vmatpush1.bf16.msra.mxu1 %v6397_v14  ;;  %v12775_v22 = vand.u32 4294901760, %v12774_v25  ;;  %v12778_v14 = vand.u32 4294901760, %v12542_v53  ;;  %v12787_v53 = vand.u32 4294901760, %v12549_v1  ;;  %v12790_v46 = vand.u32 4294901760, %v12552_v2 }
 0x1c8   : > { %v6401_v39 = vpack.c.bf16 %v12769_v12, %v12767_v31  ;;  %6400 = vmatprep.subr.bf16.mxu1 %v6399_v37  ;;  %v12781_v37 = vand.u32 4294901760, %v12544_v7  ;;  %v12785_v12 = vand.u32 4294901760, %v12547_v30  ;;  %v12789_v7 = vand.u32 4294901760, %v12551_v50 }
 0x1c9   : > { %6018 = vmatpush1.bf16.msra.mxu0 %v6017_v52  ;;  %v6021_v29 = vpack.c.bf16 %v12777_v61, %v12775_v22  ;;  %v6023_v0 = vpack.c.bf16 %v12780_v16, %v12778_v14  ;;  %v12782_v52 = vld [vmem:[#allocation94_spill] sm:$0xff]  ;;  %v12792_v30 = vand.u32 4294901760, %v12554_v27  ;;  %v12794_v25 = vand.u32 4294901760, %v12421_v59 }
 0x1ca   : > { %6020 = vmatprep.subr.bf16.mxu0 %v6019_v40  ;;  %v12783_v38 = vand.u32 4294901760, %v12782_v52  ;;  %v6407_v21 = vpack.c.bf16 %v12785_v12, %v12784_v5  ;;  %v12786_v40 = vand.u32 4294901760, %v12548_v49  ;;  %v12793_v49 = vand.u32 4294901760, %v12555_v23  ;;  %v12817_v5 = vld [vmem:[#allocation142_spill] sm:$0xff] }
 0x1cb   : > { %6402 = vmatpush1.bf16.msra.mxu1 %v6401_v39  ;;  %v12788_v39 = vand.u32 4294901760, %v12550_v11  ;;  %v12795_v11 = vand.u32 4294901760, %v12422_v45  ;;  %v12796_v50 = vand.u32 4294901760, %v12478_v44  ;;  %v12797_v2 = vand.u32 4294901760, %v12479_v43 }
 0x1cc   : > { %v6405_v31 = vpack.c.bf16 %v12783_v38, %v12781_v37  ;;  %6404 = vmatprep.subr.bf16.mxu1 %v6403_v28  ;;  %v6025_v48 = vpack.c.bf16 %v12787_v53, %v12786_v40  ;;  %v12791_v28 = vand.u32 4294901760, %v12553_v42  ;;  %v6411_v1 = vpack.c.bf16 %v12793_v49, %v12792_v30  ;;  %v12811_v37 = vld [vmem:[#allocation139_spill] sm:$0xff]  ;;  %v12814_v38 = vld [vmem:[#allocation145_spill] sm:$0xff]  ;;  %v12829_v49 = vld [vmem:[#allocation160_spill] sm:$0xff] }
 0x1cd   : > { %6022 = vmatpush1.bf16.msra.mxu0 %v6021_v29  ;;  %v6027_v32 = vpack.c.bf16 %v12789_v7, %v12788_v39  ;;  %v6029_v22 = vpack.c.bf16 %v12795_v11, %v12794_v25  ;;  %v6031_v8 = vpack.c.bf16 %v12797_v2, %v12796_v50  ;;  %v12798_v42 = vand.u32 4294901760, %v12476_v18  ;;  %v207_v7 = vld [vmem:[#allocation5 + $0x68] sm:$0xff]  ;;  %v209_v25 = vld [vmem:[#allocation5 + $0x78] sm:$0xff]  ;;  %v198_v11 = vld [vmem:[#allocation5 + $0x20] sm:$0xff] }
 0x1ce   : > { %6024 = vmatprep.subr.bf16.mxu0 %v6023_v0  ;;  %v6409_v60 = vpack.c.bf16 %v12791_v28, %v12790_v46  ;;  %v12799_v61 = vand.u32 4294901760, %v12477_v9  ;;  %v12800_v23 = vand.u32 4294901760, %v12480_v56  ;;  %v12801_v59 = vand.u32 4294901760, %v12481_v63  ;;  %v12833_v2 = vld [vmem:[#allocation165_spill] sm:$0xff] }
 0x1cf   : > { %6406 = vmatpush1.bf16.msra.mxu1 %v6405_v31  ;;  %v12802_v29 = vand.u32 4294901760, %v12482_v51  ;;  %v12803_v44 = vand.u32 4294901760, %v12483_v35  ;;  %v12804_v43 = vand.u32 4294901760, %v12486_v3  ;;  %v12805_v18 = vand.u32 4294901760, %v12487_v17 }
 0x1d0   : > { %6408 = vmatprep.subr.bf16.mxu1 %v6407_v21  ;;  %v6413_v27 = vpack.c.bf16 %v12799_v61, %v12798_v42  ;;  %v6415_v45 = vpack.c.bf16 %v12801_v59, %v12800_v23  ;;  %v12806_v9 = vand.u32 4294901760, %v12484_v19  ;;  %v12807_v16 = vand.u32 4294901760, %v12485_v13  ;;  %v12820_v21 = vld [vmem:[#allocation148_spill] sm:$0xff] }
 0x1d1   : > { %6026 = vmatpush1.bf16.msra.mxu0 %v6025_v48  ;;  %v6033_v14 = vpack.c.bf16 %v12803_v44, %v12802_v29  ;;  %v6035_v26 = vpack.c.bf16 %v12805_v18, %v12804_v43  ;;  %v12808_v63 = vand.u32 4294901760, %v12488_v4  ;;  %v12809_v51 = vand.u32 4294901760, %v12489_v34  ;;  %v12837_v61 = vld [vmem:[#allocation168_spill] sm:$0xff]  ;;  %v12845_v18 = vld [vmem:[#allocation174_spill] sm:$0xff] }
 0x1d2   : > { %6028 = vmatprep.subr.bf16.mxu0 %v6027_v32  ;;  %v6417_v56 = vpack.c.bf16 %v12807_v16, %v12806_v9  ;;  %v12810_v0 = vand.u32 4294901760, %v12490_v10  ;;  %v12812_v3 = vand.u32 4294901760, %v12811_v37  ;;  %v12813_v17 = vand.u32 4294901760, %v12494_v58  ;;  %v199_v58 = vld [vmem:[#allocation5 + $0x28] sm:$0xff]  ;;  %v201_v32 = vld [vmem:[#allocation5 + $0x38] sm:$0xff]  ;;  %v12849_v16 = vld [vmem:[#allocation177_spill] sm:$0xff] }
 0x1d3   : > { %6410 = vmatpush1.bf16.msra.mxu1 %v6409_v60  ;;  %v6419_v35 = vpack.c.bf16 %v12809_v51, %v12808_v63  ;;  %v12815_v19 = vand.u32 4294901760, %v12814_v38  ;;  %v12816_v13 = vand.u32 4294901760, %v12492_v20  ;;  %v12818_v12 = vand.u32 4294901760, %v12817_v5  ;;  %v12843_v44 = vld [vmem:[#allocation172_spill] sm:$0xff]  ;;  %v12851_v63 = vld [vmem:[#allocation178_spill] sm:$0xff] }
 0x1d4   : > { %6412 = vmatprep.subr.bf16.mxu1 %v6411_v1  ;;  %v6037_v52 = vpack.c.bf16 %v12812_v3, %v12810_v0  ;;  %v12819_v34 = vand.u32 4294901760, %v12567_v36  ;;  %v12821_v40 = vand.u32 4294901760, %v12820_v21  ;;  %v12822_v53 = vand.u32 4294901760, %v12569_v15 }
 0x1d5   : > { %6030 = vmatpush1.bf16.msra.mxu0 %v6029_v22  ;;  %v6039_v31 = vpack.c.bf16 %v12815_v19, %v12813_v17  ;;  %v6421_v4 = vpack.c.bf16 %v12818_v12, %v12816_v13  ;;  %v12823_v48 = vand.u32 4294901760, %v12499_v24  ;;  %v12824_v20 = vand.u32 4294901760, %v12573_v33  ;;  %v206_v22 = vld [vmem:[#allocation5 + $0x60] sm:$0xff]  ;;  %v200_v19 = vld [vmem:[#allocation5 + $0x30] sm:$0xff]  ;;  %v12853_v13 = vld [vmem:[#allocation180_spill] sm:$0xff] }
 0x1d6   : > { %6032 = vmatprep.subr.bf16.mxu0 %v6031_v8  ;;  %v6423_v10 = vpack.c.bf16 %v12821_v40, %v12819_v34  ;;  %v12825_v46 = vand.u32 4294901760, %v12572_v47  ;;  %v12826_v36 = vand.u32 4294901760, %v12503_v62  ;;  %v12827_v60 = vand.u32 4294901760, %v12504_v57  ;;  %v12835_v62 = vld [vmem:[#allocation166_spill] sm:$0xff]  ;;  %v12855_v12 = vld [vmem:[#allocation181_spill] sm:$0xff] }
 0x1d7   : > { %6414 = vmatpush1.bf16.msra.mxu1 %v6413_v27  ;;  %v6041_v39 = vpack.c.bf16 %v12823_v48, %v12822_v53  ;;  %v12828_v15 = vand.u32 4294901760, %v12505_v55  ;;  %v12830_v24 = vand.u32 4294901760, %v12829_v49  ;;  %v12831_v50 = vand.u32 4294901760, %v12577_v6  ;;  %v12839_v55 = vld [vmem:[#allocation169_spill] sm:$0xff]  ;;  %v12857_v40 = vld [vmem:[#allocation182_spill] sm:$0xff]  ;;  %v12859_v48 = vld [vmem:[#allocation184_spill] sm:$0xff] }
 0x1d8   : > { %6416 = vmatprep.subr.bf16.mxu1 %v6415_v45  ;;  %v6425_v28 = vpack.c.bf16 %v12825_v46, %v12824_v20  ;;  %v6043_v30 = vpack.c.bf16 %v12827_v60, %v12826_v36  ;;  %v12832_v33 = vand.u32 4294901760, %v12576_v41  ;;  %v12834_v8 = vand.u32 4294901760, %v12833_v2  ;;  %v12841_v45 = vld [vmem:[#allocation170_spill] sm:$0xff]  ;;  %v12863_v60 = vld [vmem:[#allocation187_spill] sm:$0xff]  ;;  %v12869_v2 = vld [vmem:[#allocation192_spill] sm:$0xff] }
 0x1d9   : > { %6034 = vmatpush1.bf16.msra.mxu0 %v6033_v14  ;;  %v6427_v1 = vpack.c.bf16 %v12830_v24, %v12828_v15  ;;  %v12836_v42 = vand.u32 4294901760, %v12835_v62  ;;  %v12838_v27 = vand.u32 4294901760, %v12837_v61  ;;  %v12840_v23 = vand.u32 4294901760, %v12839_v55  ;;  %v12867_v24 = vld [vmem:[#allocation190_spill] sm:$0xff]  ;;  %v12871_v62 = vld [vmem:[#allocation193_spill] sm:$0xff] }
 0x1da   : > { %6036 = vmatprep.subr.bf16.mxu0 %v6035_v26  ;;  %v6045_v47 = vpack.c.bf16 %v12832_v33, %v12831_v50  ;;  %v12842_v29 = vand.u32 4294901760, %v12841_v45  ;;  %v12844_v14 = vand.u32 4294901760, %v12843_v44  ;;  %v12846_v6 = vand.u32 4294901760, %v12845_v18  ;;  %v12847_v26 = vld [vmem:[#allocation175_spill] sm:$0xff] }
 0x1db   : > { %6418 = vmatpush1.bf16.msra.mxu1 %v6417_v56  ;;  %v6429_v57 = vpack.c.bf16 %v12836_v42, %v12834_v8  ;;  %v6047_v59 = vpack.c.bf16 %v12840_v23, %v12838_v27  ;;  %v12848_v41 = vand.u32 4294901760, %v12847_v26  ;;  %v12850_v56 = vand.u32 4294901760, %v12849_v16  ;;  %v12873_v27 = vld [vmem:[#allocation194_spill] sm:$0xff]  ;;  %v12875_v23 = vld [vmem:[#allocation197_spill] sm:$0xff]  ;;  %v12877_v44 = vld [vmem:[#allocation199_spill] sm:$0xff] }
 0x1dc   : > { %6420 = vmatprep.subr.bf16.mxu1 %v6419_v35  ;;  %v6431_v43 = vpack.c.bf16 %v12844_v14, %v12842_v29  ;;  %v12852_v51 = vand.u32 4294901760, %v12851_v63  ;;  %v3021_v0 = vand.u32 4294901760, %v199_v58  ;;  %v3025_v37 = vand.u32 4294901760, %v207_v7  ;;  %v12879_v14 = vld [vmem:[#allocation200_spill] sm:$0xff]  ;;  %v12881_v16 = vld [vmem:[#allocation202_spill] sm:$0xff]  ;;  %v12883_v63 = vld [vmem:[#allocation203_spill] sm:$0xff] }
 0x1dd   : > { %6038 = vmatpush1.bf16.msra.mxu0 %v6037_v52  ;;  %v6049_v9 = vpack.c.bf16 %v12848_v41, %v12846_v6  ;;  %v4305_v3 = vand.u32 4294901760, %v201_v32  ;;  %v4309_v52 = vand.u32 4294901760, %v209_v25  ;;  %v3023_v17 = vand.u32 4294901760, %v198_v11  ;;  %v215_v26 = vld [vmem:[#allocation5 + $0xa8] sm:$0xff] }
 0x1de   : > { %6040 = vmatprep.subr.bf16.mxu0 %v6039_v31  ;;  %v9229_v35 = vpack.c.bf16 %v12852_v51, %v12850_v56  ;;  %v3027_v38 = vand.u32 4294901760, %v206_v22  ;;  %v208_v31 = vld [vmem:[#allocation5 + $0x70] sm:$0xff]  ;;  %v12854_v5 = vand.u32 4294901760, %v12853_v13  ;;  %v12856_v34 = vand.u32 4294901760, %v12855_v12  ;;  %v223_v41 = vld [vmem:[#allocation5 + $0xe8] sm:$0xff] }
 0x1df   : > { %6422 = vmatpush1.bf16.msra.mxu1 %v6421_v4  ;;  %v12858_v53 = vand.u32 4294901760, %v12857_v40  ;;  %v12860_v20 = vand.u32 4294901760, %v12859_v48  ;;  %v12861_v4 = vld [vmem:[#allocation186_spill] sm:$0xff]  ;;  %v12864_v15 = vand.u32 4294901760, %v12863_v60  ;;  %v12868_v50 = vand.u32 4294901760, %v12867_v24  ;;  %v214_v60 = vld [vmem:[#allocation5 + $0xa0] sm:$0xff] }
 0x1e0   : > { %6424 = vmatprep.subr.bf16.mxu1 %v6423_v10  ;;  %v6051_v21 = vpack.c.bf16 %v12856_v34, %v12854_v5  ;;  %v12862_v36 = vand.u32 4294901760, %v12861_v4  ;;  %v12865_v10 = vld [vmem:[#allocation189_spill] sm:$0xff]  ;;  %v12870_v8 = vand.u32 4294901760, %v12869_v2  ;;  %v12872_v42 = vand.u32 4294901760, %v12871_v62  ;;  %v217_v40 = vld [vmem:[#allocation5 + $0xb8] sm:$0xff]  ;;  %v239_v62 = vld [vmem:[#allocation5 + $0x168] sm:$0xff] }
 0x1e1   : > { %6042 = vmatpush1.bf16.msra.mxu0 %v6041_v39  ;;  %v9239_v46 = vpack.c.bf16 %v12860_v20, %v12858_v53  ;;  %v12866_v39 = vand.u32 4294901760, %v12865_v10  ;;  %v12874_v55 = vand.u32 4294901760, %v12873_v27  ;;  %v12876_v45 = vand.u32 4294901760, %v12875_v23  ;;  %v225_v53 = vld [vmem:[#allocation5 + $0xf8] sm:$0xff]  ;;  %v216_v2 = vld [vmem:[#allocation5 + $0xb0] sm:$0xff]  ;;  %v238_v23 = vld [vmem:[#allocation5 + $0x160] sm:$0xff] }
 0x1e2   : > { %v9245_v49 = vpack.c.bf16 %v12864_v15, %v12862_v36  ;;  %6044 = vmatprep.subr.bf16.mxu0 %v6043_v30  ;;  %v9257_v61 = vpack.c.bf16 %v12872_v42, %v12870_v8  ;;  %v12878_v30 = vand.u32 4294901760, %v12877_v44  ;;  %v12880_v18 = vand.u32 4294901760, %v12879_v14  ;;  %v222_v15 = vld [vmem:[#allocation5 + $0xe0] sm:$0xff]  ;;  %v231_v8 = vld [vmem:[#allocation5 + $0x128] sm:$0xff] }
 0x1e3   : > { %v9251_v33 = vpack.c.bf16 %v12868_v50, %v12866_v39  ;;  %v9263_v29 = vpack.c.bf16 %v12876_v45, %v12874_v55  ;;  %v12882_v56 = vand.u32 4294901760, %v12881_v16  ;;  %v12884_v51 = vand.u32 4294901760, %v12883_v63  ;;  %6426 = vmatpush1.bf16.msra.mxu1 %v6425_v28  ;;  %v224_v28 = vld [vmem:[#allocation5 + $0xf0] sm:$0xff]  ;;  %v230_v55 = vld [vmem:[#allocation5 + $0x120] sm:$0xff] }
 0x1e4   : > { %v9269_v6 = vpack.c.bf16 %v12880_v18, %v12878_v30  ;;  %v9277_v5 = vpack.c.bf16 %v3025_v37, %v3021_v0  ;;  %v4307_v12 = vand.u32 4294901760, %v200_v19  ;;  %v4311_v34 = vand.u32 4294901760, %v208_v31  ;;  %6428 = vmatprep.subr.bf16.mxu1 %v6427_v1  ;;  %v232_v18 = vld [vmem:[#allocation5 + $0x130] sm:$0xff] }
 0x1e5   : > { %v9275_v13 = vpack.c.bf16 %v12884_v51, %v12882_v56  ;;  %v9279_v48 = vsub.f32 %v199_v58, %v3021_v0  ;;  %v9281_v20 = vsub.f32 %v207_v7, %v3025_v37  ;;  %v9283_v4 = vpack.c.bf16 %v4309_v52, %v4305_v3  ;;  %6046 = vmatpush1.bf16.msra.mxu0 %v6045_v47  ;;  %v233_v47 = vld [vmem:[#allocation5 + $0x138] sm:$0xff]  ;;  %v255_v51 = vld [vmem:[#allocation5 + $0x1e8] sm:$0xff] }
 0x1e6   : > { %12885 = vst [vmem:[#allocation114_spill] sm:$0xff] %v9277_v5  ;;  %v9285_v36 = vpack.c.bf16 %v3027_v38, %v3023_v17  ;;  %v9287_v10 = vsub.f32 %v201_v32, %v4305_v3  ;;  %v9289_v39 = vsub.f32 %v209_v25, %v4309_v52  ;;  %v3029_v24 = vand.u32 4294901760, %v215_v26  ;;  %6048 = vmatprep.subr.bf16.mxu0 %v6047_v59  ;;  %v241_v3 = vld [vmem:[#allocation5 + $0x178] sm:$0xff] }
 0x1e7   : > { %12886 = vst [vmem:[#allocation115_spill] sm:$0xff] %v9279_v48  ;;  %12887 = vst [vmem:[#allocation117_spill] sm:$0xff] %v9281_v20  ;;  %v3033_v50 = vand.u32 4294901760, %v223_v41  ;;  %v9291_v58 = vsub.f32 %v198_v11, %v3023_v17  ;;  %v9293_v7 = vsub.f32 %v206_v22, %v3027_v38  ;;  %v4313_v0 = vand.u32 4294901760, %v217_v40  ;;  %6430 = vmatpush1.bf16.msra.mxu1 %v6429_v57 }
 0x1e8   : > { %12888 = vst [vmem:[#allocation118_spill] sm:$0xff] %v9283_v4  ;;  %12889 = vst [vmem:[#allocation120_spill] sm:$0xff] %v9285_v36  ;;  %v4317_v37 = vand.u32 4294901760, %v225_v53  ;;  %v9295_v42 = vpack.c.bf16 %v4311_v34, %v4307_v12  ;;  %v9297_v1 = vsub.f32 %v200_v19, %v4307_v12  ;;  %v3031_v32 = vand.u32 4294901760, %v214_v60  ;;  %6432 = vmatprep.subr.bf16.mxu1 %v6431_v43  ;;  %v249_v12 = vld [vmem:[#allocation5 + $0x1b8] sm:$0xff] }
 0x1e9   : > { %12890 = vst [vmem:[#allocation121_spill] sm:$0xff] %v9287_v10  ;;  %12891 = vst [vmem:[#allocation122_spill] sm:$0xff] %v9289_v39  ;;  %v3035_v25 = vand.u32 4294901760, %v222_v15  ;;  %v9299_v52 = vsub.f32 %v208_v31, %v4311_v34  ;;  %v9301_v59 = vsub.f32 %v215_v26, %v3029_v24  ;;  %v4315_v11 = vand.u32 4294901760, %v216_v2  ;;  %6050 = vmatpush1.bf16.msra.mxu0 %v6049_v9  ;;  %v240_v26 = vld [vmem:[#allocation5 + $0x170] sm:$0xff]  ;;  %v257_v34 = vld [vmem:[#allocation5 + $0x1f8] sm:$0xff] }
 0x1ea   : > { %12892 = vst [vmem:[#allocation124_spill] sm:$0xff] %v9291_v58  ;;  %12893 = vst [vmem:[#allocation126_spill] sm:$0xff] %v9293_v7  ;;  %v4319_v22 = vand.u32 4294901760, %v224_v28  ;;  %v9303_v17 = vpack.c.bf16 %v3033_v50, %v3029_v24  ;;  %v9305_v38 = vsub.f32 %v223_v41, %v3033_v50  ;;  %v3037_v27 = vand.u32 4294901760, %v231_v8  ;;  %6052 = vmatprep.subr.bf16.mxu0 %v6051_v21  ;;  %v247_v41 = vld [vmem:[#allocation5 + $0x1a8] sm:$0xff] }
 0x1eb   : > { %12894 = vst [vmem:[#allocation127_spill] sm:$0xff] %v9295_v42  ;;  %12895 = vst [vmem:[#allocation129_spill] sm:$0xff] %v9297_v1  ;;  %v3041_v19 = vand.u32 4294901760, %v239_v62  ;;  %v9307_v45 = vpack.c.bf16 %v4317_v37, %v4313_v0  ;;  %v9309_v57 = vsub.f32 %v217_v40, %v4313_v0  ;;  %v4321_v31 = vand.u32 4294901760, %v233_v47  ;;  %6434 = vmatpush1.bf16.msra.mxu1 %v9229_v35  ;;  %v254_v0 = vld [vmem:[#allocation5 + $0x1e0] sm:$0xff] }
 0x1ec   : > { %12896 = vst [vmem:[#allocation130_spill] sm:$0xff] %v9299_v52  ;;  %12897 = vst [vmem:[#allocation132_spill] sm:$0xff] %v9301_v59  ;;  %v4325_v44 = vand.u32 4294901760, %v241_v3  ;;  %v9311_v30 = vsub.f32 %v225_v53, %v4317_v37  ;;  %v9313_v14 = vpack.c.bf16 %v3035_v25, %v3031_v32  ;;  %v9315_v43 = vsub.f32 %v214_v60, %v3031_v32 }
 0x1ed   : > { %12898 = vst [vmem:[#allocation133_spill] sm:$0xff] %v9303_v17  ;;  %12899 = vst [vmem:[#allocation134_spill] sm:$0xff] %v9305_v38  ;;  %v9317_v9 = vsub.f32 %v222_v15, %v3035_v25  ;;  %v9320_v21 = vpack.c.bf16 %v4319_v22, %v4315_v11  ;;  %v9322_v16 = vsub.f32 %v216_v2, %v4315_v11  ;;  %v3039_v56 = vand.u32 4294901760, %v230_v55  ;;  %v246_v2 = vld [vmem:[#allocation5 + $0x1a0] sm:$0xff]  ;;  %v256_v25 = vld [vmem:[#allocation5 + $0x1f0] sm:$0xff] }
 0x1ee   : > { %12900 = vst [vmem:[#allocation136_spill] sm:$0xff] %v9307_v45  ;;  %12901 = vst [vmem:[#allocation138_spill] sm:$0xff] %v9309_v57  ;;  %v3043_v63 = vand.u32 4294901760, %v238_v23  ;;  %6436 = vmatprep.subr.bf16.mxu1 %v9239_v46  ;;  %6054 = vmatpush1.bf16.msra.mxu0 %v9245_v49  ;;  %v9326_v40 = vsub.f32 %v224_v28, %v4319_v22  ;;  %v9328_v53 = vpack.c.bf16 %v3041_v19, %v3037_v27  ;;  %v248_v28 = vld [vmem:[#allocation5 + $0x1b0] sm:$0xff] }
 0x1ef   : > { %12902 = vst [vmem:[#allocation141_spill] sm:$0xff] %v9311_v30  ;;  %12903 = vst [vmem:[#allocation144_spill] sm:$0xff] %v9313_v14  ;;  %v9330_v60 = vsub.f32 %v231_v8, %v3037_v27  ;;  %6056 = vmatprep.subr.bf16.mxu0 %v9257_v61  ;;  %v9333_v35 = vsub.f32 %v239_v62, %v3041_v19  ;;  %v9335_v15 = vpack.c.bf16 %v4325_v44, %v4321_v31 }
 0x1f0   : > { %12904 = vst [vmem:[#allocation151_spill] sm:$0xff] %v9315_v43  ;;  %12905 = vst [vmem:[#allocation156_spill] sm:$0xff] %v9317_v9  ;;  %v4323_v24 = vand.u32 4294901760, %v232_v18  ;;  %v4327_v50 = vand.u32 4294901760, %v240_v26  ;;  %v3045_v37 = vand.u32 4294901760, %v247_v41  ;;  %v3049_v46 = vand.u32 4294901760, %v255_v51  ;;  %6438 = vmatpush1.bf16.msra.mxu1 %v9251_v33 }
 0x1f1   : > { %12906 = vst [vmem:[#allocation157_spill] sm:$0xff] %v9320_v21  ;;  %12907 = vst [vmem:[#allocation158_spill] sm:$0xff] %v9322_v16  ;;  %v4329_v32 = vand.u32 4294901760, %v249_v12  ;;  %v4333_v49 = vand.u32 4294901760, %v257_v34  ;;  %v9338_v8 = vsub.f32 %v233_v47, %v4321_v31  ;;  %v9340_v11 = vsub.f32 %v241_v3, %v4325_v44  ;;  %6440 = vmatprep.subr.bf16.mxu1 %v9263_v29  ;;  %v271_v33 = vld [vmem:[#allocation5 + $0x268] sm:$0xff]  ;;  %v12919_v47 = vld [vmem:[#allocation11_spill] sm:$0xff] }
 0x1f2   : > { %12908 = vst [vmem:[#allocation96_spill] sm:$0xff] %v9326_v40  ;;  %12909 = vst [vmem:[#allocation93_spill] sm:$0xff] %v9328_v53  ;;  %v9342_v61 = vpack.c.bf16 %v3043_v63, %v3039_v56  ;;  %v9344_v62 = vsub.f32 %v230_v55, %v3039_v56  ;;  %6058 = vmatpush1.bf16.msra.mxu0 %v9269_v6  ;;  %v9348_v22 = vsub.f32 %v238_v23, %v3043_v63  ;;  %v265_v56 = vld [vmem:[#allocation5 + $0x238] sm:$0xff]  ;;  %v262_v63 = vld [vmem:[#allocation5 + $0x220] sm:$0xff] }
 0x1f3   : > { %12910 = vst [vmem:[#allocation98_spill] sm:$0xff] %v9330_v60  ;;  %12911 = vst [vmem:[#allocation100_spill] sm:$0xff] %v9333_v35  ;;  %v9350_v27 = vsub.f32 %v232_v18, %v4323_v24  ;;  %v3047_v19 = vand.u32 4294901760, %v246_v2  ;;  %v263_v35 = vld [vmem:[#allocation5 + $0x228] sm:$0xff]  ;;  %6060 = vmatprep.subr.bf16.mxu0 %v12919_v47  ;;  %v9353_v3 = vpack.c.bf16 %v4327_v50, %v4323_v24  ;;  %v4331_v55 = vand.u32 4294901760, %v248_v28  ;;  %v273_v29 = vld [vmem:[#allocation5 + $0x278] sm:$0xff] }
 0x1f4   : > { %12912 = vst [vmem:[#allocation102_spill] sm:$0xff] %v9335_v15  ;;  %12913 = vst [vmem:[#allocation103_spill] sm:$0xff] %v9338_v8  ;;  %v3051_v15 = vand.u32 4294901760, %v254_v0  ;;  %v9355_v31 = vsub.f32 %v240_v26, %v4327_v50  ;;  %v4335_v44 = vand.u32 4294901760, %v256_v25  ;;  %v9359_v6 = vsub.f32 %v247_v41, %v3045_v37  ;;  %6442 = vmatpush1.bf16.msra.mxu1 %v9275_v13  ;;  %v12926_v24 = vld [vmem:[#allocation195_spill] sm:$0xff] }
 0x1f5   : > { %12914 = vst [vmem:[#allocation108_spill] sm:$0xff] %v9340_v11  ;;  %12915 = vst [vmem:[#allocation109_spill] sm:$0xff] %v9342_v61  ;;  %v9361_v23 = vsub.f32 %v255_v51, %v3049_v46  ;;  %v9363_v18 = vpack.c.bf16 %v4333_v49, %v4329_v32  ;;  %1594 = vmatmul.mubr.f32.vlgmr.msra.gmra.mrb[0].mxu0 %v12926_v24  ;;  %v9367_v26 = vsub.f32 %v249_v12, %v4329_v32  ;;  %v272_v11 = vld [vmem:[#allocation5 + $0x270] sm:$0xff]  ;;  %v12929_v41 = vld [vmem:[#allocation15_spill] sm:$0xff] }
 0x1f6   : > { %12916 = vst [vmem:[#allocation105_spill] sm:$0xff] %v9344_v62  ;;  %12917 = vst [vmem:[#allocation106_spill] sm:$0xff] %v9348_v22  ;;  %v9357_v62 = vpack.c.bf16 %v3049_v46, %v3045_v37  ;;  %v9369_v50 = vsub.f32 %v257_v34, %v4333_v49  ;;  %v3053_v47 = vand.u32 4294901760, %v263_v35  ;;  %v264_v22 = vld [vmem:[#allocation5 + $0x230] sm:$0xff]  ;;  %6444 = vmatprep.subr.bf16.mxu1 %v12929_v41  ;;  %v4341_v13 = vand.u32 4294901760, %v273_v29  ;;  %v287_v41 = vld [vmem:[#allocation5 + $0x2e8] sm:$0xff] }
 0x1f7   : > { %12918 = vst [vmem:[#allocation110_spill] sm:$0xff] %v9350_v27  ;;  %12920 = vst [vmem:[#allocation112_spill] sm:$0xff] %v9353_v3  ;;  %v270_v27 = vld [vmem:[#allocation5 + $0x260] sm:$0xff]  ;;  %v12930_v51 = vld [vmem:[#allocation17_spill] sm:$0xff]  ;;  %v9373_v37 = vpack.c.bf16 %v3051_v15, %v3047_v19  ;;  %v9375_v46 = vsub.f32 %v246_v2, %v3047_v19  ;;  %1729 = vmatprep.mubr.f32.mxu0 %v12701_v54  ;;  %v9379_v12 = vsub.f32 %v254_v0, %v3051_v15 }
 0x1f8   : > { %12921 = vst [vmem:[#allocation146_spill] sm:$0xff] %v9355_v31  ;;  %12922 = vst [vmem:[#allocation150_spill] sm:$0xff] %v9357_v62  ;;  %v3057_v31 = vand.u32 4294901760, %v271_v33  ;;  %6062 = vmatpush1.bf16.msra.mxu0 %v12930_v51  ;;  %v9381_v34 = vpack.c.bf16 %v4335_v44, %v4331_v55  ;;  %v3055_v32 = vand.u32 4294901760, %v262_v63  ;;  %v3059_v49 = vand.u32 4294901760, %v270_v27  ;;  %2878 = vmatmul.mubr.f32.vlgmr.msra.gmra.mrb[0].mxu1 %v12926_v24  ;;  %v12946_v3 = vld [vmem:[#allocation35_spill] sm:$0xff] }
 0x1f9   : > { %12923 = vst [vmem:[#allocation154_spill] sm:$0xff] %v9359_v6  ;;  %12924 = vst [vmem:[#allocation153_spill] sm:$0xff] %v9361_v23  ;;  %v4337_v23 = vand.u32 4294901760, %v265_v56  ;;  %v12933_v6 = vld [vmem:[#allocation24_spill] sm:$0xff]  ;;  %v9384_v51 = vsub.f32 %v248_v28, %v4331_v55  ;;  %v9386_v2 = vsub.f32 %v256_v25, %v4335_v44  ;;  %v4339_v19 = vand.u32 4294901760, %v264_v22  ;;  %3013 = vmatprep.mubr.f32.mxu1 %v12701_v54  ;;  %v12943_v28 = vld [vmem:[#allocation30_spill] sm:$0xff] }
 0x1fa   : > { %12925 = vst [vmem:[#allocation163_spill] sm:$0xff] %v9363_v18  ;;  %12927 = vst [vmem:[#allocation162_spill] sm:$0xff] %v9367_v26  ;;  %6064 = vmatprep.subr.bf16.mxu0 %v12933_v6  ;;  %v281_v26 = vld [vmem:[#allocation5 + $0x2b8] sm:$0xff]  ;;  %v9390_v15 = vpack.c.bf16 %v3057_v31, %v3053_v47  ;;  %v9392_v0 = vsub.f32 %v263_v35, %v3053_v47  ;;  %v288_v54 = vld [vmem:[#allocation5 + $0x2f0] sm:$0xff]  ;;  %v9403_v35 = vsub.f32 %v273_v29, %v4341_v13 }
 0x1fb   : > { %12928 = vst [vmem:[#allocation12_spill] sm:$0xff] %v9369_v50  ;;  %12931 = vst [vmem:[#allocation13_spill] sm:$0xff] %v9373_v37  ;;  %v279_v50 = vld [vmem:[#allocation5 + $0x2a8] sm:$0xff]  ;;  %v289_v6 = vld [vmem:[#allocation5 + $0x2f8] sm:$0xff]  ;;  %v9398_v25 = vpack.c.bf16 %v4341_v13, %v4337_v23  ;;  %v9400_v55 = vsub.f32 %v265_v56, %v4337_v23  ;;  %v9413_v56 = vsub.f32 %v264_v22, %v4339_v19  ;;  %v4351_v13 = vand.u32 4294901760, %v288_v54 }
 0x1fc   : > { %12932 = vst [vmem:[#allocation14_spill] sm:$0xff] %v9375_v46  ;;  %12934 = vst [vmem:[#allocation16_spill] sm:$0xff] %v9379_v12  ;;  %v4343_v46 = vand.u32 4294901760, %v272_v11  ;;  %v12938_v37 = vld [vmem:[#allocation20_spill] sm:$0xff]  ;;  %v9394_v12 = vsub.f32 %v271_v33, %v3057_v31  ;;  %v12942_v18 = vld [vmem:[#allocation26_spill] sm:$0xff]  ;;  %6066 = vmatpush1.bf16.msra.mxu0 %v12943_v28  ;;  %v3061_v44 = vand.u32 4294901760, %v279_v50  ;;  %v9405_v33 = vpack.c.bf16 %v3059_v49, %v3055_v32 }
 0x1fd   : > { %12935 = vst [vmem:[#allocation18_spill] sm:$0xff] %v9381_v34  ;;  %12936 = vst [vmem:[#allocation19_spill] sm:$0xff] %v9384_v51  ;;  %6446 = vmatpush1.bf16.msra.mxu1 %v12938_v37  ;;  %v278_v34 = vld [vmem:[#allocation5 + $0x2a0] sm:$0xff]  ;;  %v280_v51 = vld [vmem:[#allocation5 + $0x2b0] sm:$0xff]  ;;  %6068 = vmatprep.subr.bf16.mxu0 %v12946_v3  ;;  %v4345_v31 = vand.u32 4294901760, %v281_v26  ;;  %v4349_v47 = vand.u32 4294901760, %v289_v6  ;;  %v9409_v28 = vsub.f32 %v270_v27, %v3059_v49 }
 0x1fe   : > { %12937 = vst [vmem:[#allocation23_spill] sm:$0xff] %v9386_v2  ;;  %12939 = vst [vmem:[#allocation25_spill] sm:$0xff] %v9390_v15  ;;  %6448 = vmatprep.subr.bf16.mxu1 %v12942_v18  ;;  %v3065_v2 = vand.u32 4294901760, %v287_v41  ;;  %v286_v37 = vld [vmem:[#allocation5 + $0x2e0] sm:$0xff]  ;;  %v9407_v18 = vsub.f32 %v262_v63, %v3055_v32  ;;  %v295_v23 = vld [vmem:[#allocation5 + $0x328] sm:$0xff]  ;;  %v4347_v29 = vand.u32 4294901760, %v280_v51  ;;  %v9418_v27 = vsub.f32 %v272_v11, %v4343_v46 }
 0x1ff   : > { %12940 = vst [vmem:[#allocation21_spill] sm:$0xff] %v9392_v0  ;;  %12941 = vst [vmem:[#allocation22_spill] sm:$0xff] %v9394_v12  ;;  %v9411_v12 = vpack.c.bf16 %v4343_v46, %v4339_v19  ;;  %v12953_v0 = vld [vmem:[#allocation33_spill] sm:$0xff]  ;;  %v3067_v3 = vand.u32 4294901760, %v286_v37  ;;  %v12954_v15 = vld [vmem:[#allocation38_spill] sm:$0xff]  ;;  %v9422_v22 = vsub.f32 %v279_v50, %v3061_v44  ;;  %v9429_v8 = vsub.f32 %v281_v26, %v4345_v31 }
 0x200   : > { %12944 = vst [vmem:[#allocation27_spill] sm:$0xff] %v9398_v25  ;;  %12945 = vst [vmem:[#allocation28_spill] sm:$0xff] %v9400_v55  ;;  %v303_v55 = vld [vmem:[#allocation5 + $0x368] sm:$0xff]  ;;  %v3063_v25 = vand.u32 4294901760, %v278_v34  ;;  %v12955_v63 = vld [vmem:[#allocation41_spill] sm:$0xff]  ;;  %v9420_v32 = vpack.c.bf16 %v3065_v2, %v3061_v44  ;;  %v9425_v19 = vsub.f32 %v287_v41, %v3065_v2 }
 0x201   : > { %12947 = vst [vmem:[#allocation29_spill] sm:$0xff] %v9403_v35  ;;  %12948 = vst [vmem:[#allocation31_spill] sm:$0xff] %v9405_v33  ;;  %6450 = vmatpush1.bf16.msra.mxu1 %v12953_v0  ;;  %v297_v35 = vld [vmem:[#allocation5 + $0x338] sm:$0xff]  ;;  %6070 = vmatpush1.bf16.msra.mxu0 %v12955_v63  ;;  %v12959_v49 = vld [vmem:[#allocation47_spill] sm:$0xff]  ;;  %v9427_v0 = vpack.c.bf16 %v4349_v47, %v4345_v31  ;;  %v9438_v2 = vsub.f32 %v286_v37, %v3067_v3 }
 0x202   : > { %12949 = vst [vmem:[#allocation36_spill] sm:$0xff] %v9407_v18  ;;  %12950 = vst [vmem:[#allocation37_spill] sm:$0xff] %v9409_v28  ;;  %v305_v33 = vld [vmem:[#allocation5 + $0x378] sm:$0xff]  ;;  %6452 = vmatprep.subr.bf16.mxu1 %v12954_v15  ;;  %6072 = vmatprep.subr.bf16.mxu0 %v12959_v49  ;;  %v3073_v28 = vand.u32 4294901760, %v303_v55  ;;  %v294_v18 = vld [vmem:[#allocation5 + $0x320] sm:$0xff]  ;;  %v9431_v15 = vsub.f32 %v289_v6, %v4349_v47  ;;  %v4353_v11 = vand.u32 4294901760, %v297_v35 }
 0x203   : > { %12951 = vst [vmem:[#allocation32_spill] sm:$0xff] %v9411_v12  ;;  %12952 = vst [vmem:[#allocation34_spill] sm:$0xff] %v9413_v56  ;;  %v3069_v56 = vand.u32 4294901760, %v295_v23  ;;  %v302_v12 = vld [vmem:[#allocation5 + $0x360] sm:$0xff]  ;;  %v4357_v46 = vand.u32 4294901760, %v305_v33  ;;  %v296_v63 = vld [vmem:[#allocation5 + $0x330] sm:$0xff]  ;;  %v9434_v44 = vpack.c.bf16 %v3067_v3, %v3063_v25  ;;  %v9436_v41 = vsub.f32 %v278_v34, %v3063_v25 }
 0x204   : > { %12956 = vst [vmem:[#allocation39_spill] sm:$0xff] %v9418_v27  ;;  %12957 = vst [vmem:[#allocation40_spill] sm:$0xff] %v9420_v32  ;;  %v304_v27 = vld [vmem:[#allocation5 + $0x370] sm:$0xff]  ;;  %v12964_v50 = vld [vmem:[#allocation44_spill] sm:$0xff]  ;;  %v9440_v49 = vpack.c.bf16 %v4351_v13, %v4347_v29  ;;  %v9444_v6 = vsub.f32 %v280_v51, %v4347_v29  ;;  %v9446_v31 = vsub.f32 %v288_v54, %v4351_v13  ;;  %v3071_v47 = vand.u32 4294901760, %v294_v18 }
 0x205   : > { %12958 = vst [vmem:[#allocation42_spill] sm:$0xff] %v9422_v22  ;;  %12960 = vst [vmem:[#allocation43_spill] sm:$0xff] %v9425_v19  ;;  %6454 = vmatpush1.bf16.msra.mxu1 %v12964_v50  ;;  %v311_v19 = vld [vmem:[#allocation5 + $0x3a8] sm:$0xff]  ;;  %v12969_v22 = vld [vmem:[#allocation50_spill] sm:$0xff]  ;;  %v9449_v25 = vpack.c.bf16 %v3073_v28, %v3069_v56  ;;  %v9451_v37 = vsub.f32 %v295_v23, %v3069_v56  ;;  %v4355_v3 = vand.u32 4294901760, %v296_v63 }
 0x206   : > { %12961 = vst [vmem:[#allocation48_spill] sm:$0xff] %v9427_v0  ;;  %12962 = vst [vmem:[#allocation49_spill] sm:$0xff] %v9429_v8  ;;  %6456 = vmatprep.subr.bf16.mxu1 %v12969_v22  ;;  %v12970_v26 = vld [vmem:[#allocation54_spill] sm:$0xff]  ;;  %v319_v50 = vld [vmem:[#allocation5 + $0x3e8] sm:$0xff]  ;;  %v9453_v22 = vsub.f32 %v303_v55, %v3073_v28  ;;  %v9457_v51 = vsub.f32 %v297_v35, %v4353_v11  ;;  %v9459_v54 = vsub.f32 %v305_v33, %v4357_v46 }
 0x207   : > { %12963 = vst [vmem:[#allocation45_spill] sm:$0xff] %v9431_v15  ;;  %12965 = vst [vmem:[#allocation46_spill] sm:$0xff] %v9434_v44  ;;  %6074 = vmatpush1.bf16.msra.mxu0 %v12970_v26  ;;  %v3075_v15 = vand.u32 4294901760, %v302_v12  ;;  %v313_v8 = vld [vmem:[#allocation5 + $0x3b8] sm:$0xff]  ;;  %v12973_v34 = vld [vmem:[#allocation59_spill] sm:$0xff]  ;;  %v9455_v26 = vpack.c.bf16 %v4357_v46, %v4353_v11  ;;  %v9466_v35 = vsub.f32 %v294_v18, %v3071_v47 }
 0x208   : > { %12966 = vst [vmem:[#allocation51_spill] sm:$0xff] %v9436_v41  ;;  %12967 = vst [vmem:[#allocation52_spill] sm:$0xff] %v9438_v2  ;;  %v321_v44 = vld [vmem:[#allocation5 + $0x3f8] sm:$0xff]  ;;  %6076 = vmatprep.subr.bf16.mxu0 %v12973_v34  ;;  %v4359_v2 = vand.u32 4294901760, %v304_v27  ;;  %v310_v29 = vld [vmem:[#allocation5 + $0x3a0] sm:$0xff]  ;;  %v3081_v34 = vand.u32 4294901760, %v319_v50 }
 0x209   : > { %12968 = vst [vmem:[#allocation53_spill] sm:$0xff] %v9440_v49  ;;  %12971 = vst [vmem:[#allocation55_spill] sm:$0xff] %v9444_v6  ;;  %v318_v13 = vld [vmem:[#allocation5 + $0x3e0] sm:$0xff]  ;;  %v3077_v6 = vand.u32 4294901760, %v311_v19  ;;  %v4361_v41 = vand.u32 4294901760, %v313_v8  ;;  %v4365_v49 = vand.u32 4294901760, %v321_v44  ;;  %v9464_v28 = vpack.c.bf16 %v3075_v15, %v3071_v47 }
 0x20a   : > { %12972 = vst [vmem:[#allocation60_spill] sm:$0xff] %v9446_v31  ;;  %12974 = vst [vmem:[#allocation61_spill] sm:$0xff] %v9449_v25  ;;  %v12980_v31 = vld [vmem:[#allocation56_spill] sm:$0xff]  ;;  %v312_v56 = vld [vmem:[#allocation5 + $0x3b0] sm:$0xff]  ;;  %v9468_v33 = vsub.f32 %v302_v12, %v3075_v15  ;;  %v9475_v0 = vsub.f32 %v304_v27, %v4359_v2 }
 0x20b   : > { %12975 = vst [vmem:[#allocation57_spill] sm:$0xff] %v9451_v37  ;;  %12976 = vst [vmem:[#allocation58_spill] sm:$0xff] %v9453_v22  ;;  %6458 = vmatpush1.bf16.msra.mxu1 %v12980_v31  ;;  %v320_v23 = vld [vmem:[#allocation5 + $0x3f0] sm:$0xff]  ;;  %v12981_v37 = vld [vmem:[#allocation63_spill] sm:$0xff]  ;;  %v9471_v31 = vpack.c.bf16 %v4359_v2, %v4355_v3  ;;  %v3083_v22 = vand.u32 4294901760, %v318_v13  ;;  %v4363_v18 = vand.u32 4294901760, %v312_v56  ;;  %v9480_v15 = vpack.c.bf16 %v3081_v34, %v3077_v6 }
 0x20c   : > { %12977 = vst [vmem:[#allocation62_spill] sm:$0xff] %v9455_v26  ;;  %12978 = vst [vmem:[#allocation64_spill] sm:$0xff] %v9457_v51  ;;  %6460 = vmatprep.subr.bf16.mxu1 %v12981_v37  ;;  %v12982_v55 = vld [vmem:[#allocation65_spill] sm:$0xff]  ;;  %v327_v11 = vld [vmem:[#allocation5 + $0x428] sm:$0xff]  ;;  %v3079_v51 = vand.u32 4294901760, %v310_v29  ;;  %v4367_v47 = vand.u32 4294901760, %v320_v23 }
 0x20d   : > { %12979 = vst [vmem:[#allocation66_spill] sm:$0xff] %v9459_v54  ;;  %6078 = vmatpush1.bf16.msra.mxu0 %v12982_v55  ;;  %12983 = vst [vmem:[#allocation67_spill] sm:$0xff] %v9464_v28  ;;  %v12986_v46 = vld [vmem:[#allocation71_spill] sm:$0xff]  ;;  %v9473_v54 = vsub.f32 %v296_v63, %v4355_v3  ;;  %v335_v26 = vld [vmem:[#allocation5 + $0x468] sm:$0xff]  ;;  %v9477_v55 = vsub.f32 %v311_v19, %v3077_v6  ;;  %v9486_v63 = vsub.f32 %v313_v8, %v4361_v41 }
 0x20e   : > { %12984 = vst [vmem:[#allocation72_spill] sm:$0xff] %v9466_v35  ;;  %12985 = vst [vmem:[#allocation73_spill] sm:$0xff] %v9468_v33  ;;  %6080 = vmatprep.subr.bf16.mxu0 %v12986_v46  ;;  %v329_v25 = vld [vmem:[#allocation5 + $0x438] sm:$0xff]  ;;  %v12991_v12 = vld [vmem:[#allocation68_spill] sm:$0xff]  ;;  %v9482_v46 = vsub.f32 %v319_v50, %v3081_v34  ;;  %v9484_v33 = vpack.c.bf16 %v4365_v49, %v4361_v41  ;;  %v3085_v19 = vand.u32 4294901760, %v327_v11  ;;  %v3089_v2 = vand.u32 4294901760, %v335_v26 }
 0x20f   : > { %12987 = vst [vmem:[#allocation69_spill] sm:$0xff] %v9471_v31  ;;  %12988 = vst [vmem:[#allocation70_spill] sm:$0xff] %v9473_v54  ;;  %v337_v37 = vld [vmem:[#allocation5 + $0x478] sm:$0xff]  ;;  %6462 = vmatpush1.bf16.msra.mxu1 %v12991_v12  ;;  %v326_v3 = vld [vmem:[#allocation5 + $0x420] sm:$0xff]  ;;  %v9491_v50 = vsub.f32 %v321_v44, %v4365_v49  ;;  %v9493_v34 = vpack.c.bf16 %v3083_v22, %v3079_v51  ;;  %v9495_v8 = vsub.f32 %v310_v29, %v3079_v51 }
 0x210   : > { %12989 = vst [vmem:[#allocation74_spill] sm:$0xff] %v9475_v0  ;;  %12990 = vst [vmem:[#allocation76_spill] sm:$0xff] %v9477_v55  ;;  %v334_v54 = vld [vmem:[#allocation5 + $0x460] sm:$0xff]  ;;  %v12997_v27 = vld [vmem:[#allocation77_spill] sm:$0xff]  ;;  %v4369_v55 = vand.u32 4294901760, %v329_v25  ;;  %v4373_v0 = vand.u32 4294901760, %v337_v37  ;;  %v9497_v41 = vsub.f32 %v318_v13, %v3083_v22  ;;  %v9504_v44 = vsub.f32 %v320_v23, %v4367_v47 }
 0x211   : > { %12992 = vst [vmem:[#allocation78_spill] sm:$0xff] %v9480_v15  ;;  %12993 = vst [vmem:[#allocation79_spill] sm:$0xff] %v9482_v46  ;;  %v12996_v35 = vld [vmem:[#allocation75_spill] sm:$0xff]  ;;  %6082 = vmatpush1.bf16.msra.mxu0 %v12997_v27  ;;  %v328_v31 = vld [vmem:[#allocation5 + $0x430] sm:$0xff]  ;;  %v9501_v27 = vsub.f32 %v312_v56, %v4363_v18  ;;  %v3087_v46 = vand.u32 4294901760, %v326_v3  ;;  %v9506_v49 = vsub.f32 %v327_v11, %v3085_v19 }
 0x212   : > { %12994 = vst [vmem:[#allocation84_spill] sm:$0xff] %v9484_v33  ;;  %12995 = vst [vmem:[#allocation85_spill] sm:$0xff] %v9486_v63  ;;  %6464 = vmatprep.subr.bf16.mxu1 %v12996_v35  ;;  %v336_v12 = vld [vmem:[#allocation5 + $0x470] sm:$0xff]  ;;  %v12998_v6 = vld [vmem:[#allocation83_spill] sm:$0xff]  ;;  %v9499_v35 = vpack.c.bf16 %v4367_v47, %v4363_v18  ;;  %v3091_v33 = vand.u32 4294901760, %v334_v54  ;;  %v4371_v51 = vand.u32 4294901760, %v328_v31  ;;  %v9512_v56 = vsub.f32 %v335_v26, %v3089_v2 }
 0x213   : > { %6084 = vmatprep.subr.bf16.mxu0 %v12998_v6  ;;  %12999 = vst [vmem:[#allocation81_spill] sm:$0xff] %v9491_v50  ;;  %13000 = vst [vmem:[#allocation82_spill] sm:$0xff] %v9493_v34  ;;  %v343_v63 = vld [vmem:[#allocation5 + $0x4a8] sm:$0xff]  ;;  %v345_v28 = vld [vmem:[#allocation5 + $0x4b8] sm:$0xff]  ;;  %v4375_v29 = vand.u32 4294901760, %v336_v12  ;;  %v9510_v6 = vpack.c.bf16 %v3089_v2, %v3085_v19  ;;  %v9514_v18 = vpack.c.bf16 %v4373_v0, %v4369_v55 }
 0x214   : > { %13001 = vst [vmem:[#allocation86_spill] sm:$0xff] %v9495_v8  ;;  %13002 = vst [vmem:[#allocation88_spill] sm:$0xff] %v9497_v41  ;;  %v351_v15 = vld [vmem:[#allocation5 + $0x4e8] sm:$0xff]  ;;  %v353_v32 = vld [vmem:[#allocation5 + $0x4f8] sm:$0xff]  ;;  %v4377_v11 = vand.u32 4294901760, %v345_v28  ;;  %v9517_v50 = vsub.f32 %v329_v25, %v4369_v55  ;;  %v9521_v19 = vpack.c.bf16 %v3091_v33, %v3087_v46  ;;  %v9523_v26 = vsub.f32 %v326_v3, %v3087_v46 }
 0x215   : > { %13003 = vst [vmem:[#allocation90_spill] sm:$0xff] %v9499_v35  ;;  %13004 = vst [vmem:[#allocation91_spill] sm:$0xff] %v9501_v27  ;;  %v13005_v62 = vld [vmem:[#allocation80_spill] sm:$0xff]  ;;  %v13008_v22 = vld [vmem:[#allocation87_spill] sm:$0xff]  ;;  %v3097_v23 = vand.u32 4294901760, %v351_v15  ;;  %v4381_v47 = vand.u32 4294901760, %v353_v32 }
 0x216   : > { %6466 = vmatpush1.bf16.msra.mxu1 %v13005_v62  ;;  %13006 = vst [vmem:[#allocation97_spill] sm:$0xff] %v9504_v44  ;;  %13007 = vst [vmem:[#allocation94_spill] sm:$0xff] %v9506_v49  ;;  %v13009_v13 = vld [vmem:[#allocation89_spill] sm:$0xff]  ;;  %v342_v27 = vld [vmem:[#allocation5 + $0x4a0] sm:$0xff]  ;;  %v3093_v62 = vand.u32 4294901760, %v343_v63 }
 0x217   : > { %6468 = vmatprep.subr.bf16.mxu1 %v13008_v22  ;;  %6086 = vmatpush1.bf16.msra.mxu0 %v13009_v13  ;;  %13010 = vst [vmem:[#allocation139_spill] sm:$0xff] %v9510_v6  ;;  %13011 = vst [vmem:[#allocation145_spill] sm:$0xff] %v9512_v56  ;;  %v350_v41 = vld [vmem:[#allocation5 + $0x4e0] sm:$0xff]  ;;  %v344_v49 = vld [vmem:[#allocation5 + $0x4b0] sm:$0xff]  ;;  %v9519_v22 = vsub.f32 %v337_v37, %v4373_v0  ;;  %v9526_v13 = vsub.f32 %v334_v54, %v3091_v33 }
 0x218   : > { %13012 = vst [vmem:[#allocation142_spill] sm:$0xff] %v9514_v18  ;;  %v13013_v8 = vld [vmem:[#allocation95_spill] sm:$0xff]  ;;  %v352_v44 = vld [vmem:[#allocation5 + $0x4f0] sm:$0xff]  ;;  %13014 = vst [vmem:[#allocation148_spill] sm:$0xff] %v9517_v50  ;;  %v9528_v56 = vpack.c.bf16 %v4375_v29, %v4371_v51  ;;  %v3099_v18 = vand.u32 4294901760, %v350_v41  ;;  %v9532_v0 = vsub.f32 %v328_v31, %v4371_v51  ;;  %v9534_v37 = vsub.f32 %v336_v12, %v4375_v29 }
 0x219   : > { %6088 = vmatprep.subr.bf16.mxu0 %v13013_v8  ;;  %13015 = vst [vmem:[#allocation160_spill] sm:$0xff] %v9519_v22  ;;  %13016 = vst [vmem:[#allocation165_spill] sm:$0xff] %v9521_v19  ;;  %v13018_v2 = vld [vmem:[#allocation92_spill] sm:$0xff]  ;;  %v3095_v8 = vand.u32 4294901760, %v342_v27  ;;  %v13021_v34 = vld [vmem:[#allocation99_spill] sm:$0xff]  ;;  %v4379_v55 = vand.u32 4294901760, %v344_v49  ;;  %v9537_v33 = vpack.c.bf16 %v3097_v23, %v3093_v62  ;;  %v9543_v22 = vpack.c.bf16 %v4381_v47, %v4377_v11 }
 0x21a   : > { %13017 = vst [vmem:[#allocation166_spill] sm:$0xff] %v9523_v26  ;;  %6470 = vmatpush1.bf16.msra.mxu1 %v13018_v2  ;;  %13019 = vst [vmem:[#allocation168_spill] sm:$0xff] %v9526_v13  ;;  %v359_v35 = vld [vmem:[#allocation5 + $0x528] sm:$0xff]  ;;  %v13022_v25 = vld [vmem:[#allocation101_spill] sm:$0xff]  ;;  %v4383_v46 = vand.u32 4294901760, %v352_v44  ;;  %v9539_v13 = vsub.f32 %v343_v63, %v3093_v62  ;;  %v9541_v26 = vsub.f32 %v351_v15, %v3097_v23 }
 0x21b   : > { %13020 = vst [vmem:[#allocation169_spill] sm:$0xff] %v9528_v56  ;;  %v367_v6 = vld [vmem:[#allocation5 + $0x568] sm:$0xff]  ;;  %6472 = vmatprep.subr.bf16.mxu1 %v13021_v34  ;;  %6090 = vmatpush1.bf16.msra.mxu0 %v13022_v25  ;;  %13023 = vst [vmem:[#allocation170_spill] sm:$0xff] %v9532_v0  ;;  %v361_v3 = vld [vmem:[#allocation5 + $0x538] sm:$0xff]  ;;  %v9545_v31 = vsub.f32 %v345_v28, %v4377_v11  ;;  %v9547_v12 = vsub.f32 %v353_v32, %v4381_v47  ;;  %v3101_v51 = vand.u32 4294901760, %v359_v35 }
 0x21c   : > { %13024 = vst [vmem:[#allocation172_spill] sm:$0xff] %v9534_v37  ;;  %v369_v2 = vld [vmem:[#allocation5 + $0x578] sm:$0xff]  ;;  %v13025_v54 = vld [vmem:[#allocation107_spill] sm:$0xff]  ;;  %13026 = vst [vmem:[#allocation174_spill] sm:$0xff] %v9537_v33  ;;  %v3105_v29 = vand.u32 4294901760, %v367_v6  ;;  %v9552_v63 = vsub.f32 %v342_v27, %v3095_v8  ;;  %v4385_v15 = vand.u32 4294901760, %v361_v3  ;;  %v9556_v32 = vsub.f32 %v350_v41, %v3099_v18 }
 0x21d   : > { %6092 = vmatprep.subr.bf16.mxu0 %v13025_v54  ;;  %13027 = vst [vmem:[#allocation175_spill] sm:$0xff] %v9539_v13  ;;  %13028 = vst [vmem:[#allocation177_spill] sm:$0xff] %v9541_v26  ;;  %v358_v34 = vld [vmem:[#allocation5 + $0x520] sm:$0xff]  ;;  %v360_v37 = vld [vmem:[#allocation5 + $0x530] sm:$0xff]  ;;  %v9550_v54 = vpack.c.bf16 %v3099_v18, %v3095_v8  ;;  %v4389_v62 = vand.u32 4294901760, %v369_v2  ;;  %v9558_v11 = vpack.c.bf16 %v4383_v46, %v4379_v55 }
 0x21e   : > { %13029 = vst [vmem:[#allocation178_spill] sm:$0xff] %v9543_v22  ;;  %v366_v25 = vld [vmem:[#allocation5 + $0x560] sm:$0xff]  ;;  %13030 = vst [vmem:[#allocation180_spill] sm:$0xff] %v9545_v31  ;;  %v368_v0 = vld [vmem:[#allocation5 + $0x570] sm:$0xff]  ;;  %v3103_v47 = vand.u32 4294901760, %v358_v34  ;;  %v9563_v27 = vsub.f32 %v352_v44, %v4383_v46  ;;  %v4387_v8 = vand.u32 4294901760, %v360_v37  ;;  %v9565_v56 = vpack.c.bf16 %v3105_v29, %v3101_v51 }
 0x21f   : > { %13031 = vst [vmem:[#allocation181_spill] sm:$0xff] %v9547_v12  ;;  %v13032_v50 = vld [vmem:[#allocation104_spill] sm:$0xff]  ;;  %13033 = vst [vmem:[#allocation182_spill] sm:$0xff] %v9550_v54  ;;  %v13035_v13 = vld [vmem:[#allocation111_spill] sm:$0xff]  ;;  %v3107_v12 = vand.u32 4294901760, %v366_v25  ;;  %v9576_v44 = vsub.f32 %v369_v2, %v4389_v62 }
 0x220   : > { %6474 = vmatpush1.bf16.msra.mxu1 %v13032_v50  ;;  %13034 = vst [vmem:[#allocation184_spill] sm:$0xff] %v9552_v63  ;;  %v375_v23 = vld [vmem:[#allocation5 + $0x5a8] sm:$0xff]  ;;  %v13036_v28 = vld [vmem:[#allocation113_spill] sm:$0xff]  ;;  %13037 = vst [vmem:[#allocation186_spill] sm:$0xff] %v9556_v32  ;;  %v9561_v50 = vsub.f32 %v344_v49, %v4379_v55  ;;  %v4391_v63 = vand.u32 4294901760, %v368_v0  ;;  %v9574_v49 = vsub.f32 %v361_v3, %v4385_v15 }
 0x221   : > { %v383_v26 = vld [vmem:[#allocation5 + $0x5e8] sm:$0xff]  ;;  %6476 = vmatprep.subr.bf16.mxu1 %v13035_v13  ;;  %6094 = vmatpush1.bf16.msra.mxu0 %v13036_v28  ;;  %13038 = vst [vmem:[#allocation187_spill] sm:$0xff] %v9558_v11  ;;  %v13039_v31 = vld [vmem:[#allocation119_spill] sm:$0xff]  ;;  %13041 = vst [vmem:[#allocation190_spill] sm:$0xff] %v9563_v27  ;;  %v9567_v13 = vsub.f32 %v359_v35, %v3101_v51  ;;  %v3109_v41 = vand.u32 4294901760, %v375_v23  ;;  %v9570_v11 = vsub.f32 %v367_v6, %v3105_v29 }
 0x222   : > { %6096 = vmatprep.subr.bf16.mxu0 %v13039_v31  ;;  %13040 = vst [vmem:[#allocation189_spill] sm:$0xff] %v9561_v50  ;;  %v377_v54 = vld [vmem:[#allocation5 + $0x5b8] sm:$0xff]  ;;  %13042 = vst [vmem:[#allocation192_spill] sm:$0xff] %v9565_v56  ;;  %v3113_v18 = vand.u32 4294901760, %v383_v26  ;;  %v374_v28 = vld [vmem:[#allocation5 + $0x5a0] sm:$0xff]  ;;  %v9572_v31 = vpack.c.bf16 %v4389_v62, %v4385_v15  ;;  %v9580_v35 = vpack.c.bf16 %v3107_v12, %v3103_v47 }
 0x223   : > { %v385_v22 = vld [vmem:[#allocation5 + $0x5f8] sm:$0xff]  ;;  %13043 = vst [vmem:[#allocation193_spill] sm:$0xff] %v9567_v13  ;;  %v13044_v32 = vld [vmem:[#allocation116_spill] sm:$0xff]  ;;  %13045 = vst [vmem:[#allocation194_spill] sm:$0xff] %v9570_v11  ;;  %v9582_v51 = vsub.f32 %v358_v34, %v3103_v47  ;;  %v4393_v13 = vand.u32 4294901760, %v377_v54  ;;  %v9585_v3 = vsub.f32 %v366_v25, %v3107_v12  ;;  %v9587_v2 = vpack.c.bf16 %v4391_v63, %v4387_v8 }
 0x224   : > { %6478 = vmatpush1.bf16.msra.mxu1 %v13044_v32  ;;  %13046 = vst [vmem:[#allocation197_spill] sm:$0xff] %v9572_v31  ;;  %13047 = vst [vmem:[#allocation199_spill] sm:$0xff] %v9574_v49  ;;  %v382_v55 = vld [vmem:[#allocation5 + $0x5e0] sm:$0xff]  ;;  %v376_v46 = vld [vmem:[#allocation5 + $0x5b0] sm:$0xff]  ;;  %v4397_v32 = vand.u32 4294901760, %v385_v22  ;;  %v9589_v15 = vsub.f32 %v360_v37, %v4387_v8  ;;  %v3111_v62 = vand.u32 4294901760, %v374_v28  ;;  %v9595_v34 = vsub.f32 %v375_v23, %v3109_v41 }
 0x225   : > { %13048 = vst [vmem:[#allocation200_spill] sm:$0xff] %v9576_v44  ;;  %v13049_v27 = vld [vmem:[#allocation123_spill] sm:$0xff]  ;;  %v13050_v50 = vld [vmem:[#allocation125_spill] sm:$0xff]  ;;  %13051 = vst [vmem:[#allocation202_spill] sm:$0xff] %v9580_v35  ;;  %v3115_v47 = vand.u32 4294901760, %v382_v55  ;;  %v4395_v35 = vand.u32 4294901760, %v376_v46  ;;  %v9604_v23 = vsub.f32 %v377_v54, %v4393_v13 }
 0x226   : > { %6480 = vmatprep.subr.bf16.mxu1 %v13049_v27  ;;  %6098 = vmatpush1.bf16.msra.mxu0 %v13050_v50  ;;  %13052 = vst [vmem:[#allocation203_spill] sm:$0xff] %v9582_v51  ;;  %v384_v6 = vld [vmem:[#allocation5 + $0x5f0] sm:$0xff]  ;;  %v391_v29 = vld [vmem:[#allocation5 + $0x628] sm:$0xff]  ;;  %v13053_v31 = vld [vmem:[#allocation131_spill] sm:$0xff]  ;;  %v9591_v27 = vsub.f32 %v368_v0, %v4391_v63  ;;  %v9593_v50 = vpack.c.bf16 %v3113_v18, %v3109_v41 }
 0x227   : > { %v399_v11 = vld [vmem:[#allocation5 + $0x668] sm:$0xff]  ;;  %6100 = vmatprep.subr.bf16.mxu0 %v13053_v31  ;;  %13054 = vst [vmem:[#allocation11_spill] sm:$0xff] %v9585_v3  ;;  %13055 = vst [vmem:[#allocation15_spill] sm:$0xff] %v9587_v2  ;;  %v393_v51 = vld [vmem:[#allocation5 + $0x638] sm:$0xff]  ;;  %v4399_v31 = vand.u32 4294901760, %v384_v6  ;;  %v3117_v25 = vand.u32 4294901760, %v391_v29  ;;  %v9600_v0 = vsub.f32 %v383_v26, %v3113_v18  ;;  %v9602_v63 = vpack.c.bf16 %v4397_v32, %v4393_v13 }
 0x228   : > { %13056 = vst [vmem:[#allocation17_spill] sm:$0xff] %v9589_v15  ;;  %13057 = vst [vmem:[#allocation24_spill] sm:$0xff] %v9591_v27  ;;  %v401_v44 = vld [vmem:[#allocation5 + $0x678] sm:$0xff]  ;;  %v13060_v49 = vld [vmem:[#allocation128_spill] sm:$0xff]  ;;  %v3121_v12 = vand.u32 4294901760, %v399_v11  ;;  %v4401_v27 = vand.u32 4294901760, %v393_v51  ;;  %v9611_v33 = vpack.c.bf16 %v3115_v47, %v3111_v62 }
 0x229   : > { %13058 = vst [vmem:[#allocation20_spill] sm:$0xff] %v9593_v50  ;;  %13059 = vst [vmem:[#allocation26_spill] sm:$0xff] %v9595_v34  ;;  %6482 = vmatpush1.bf16.msra.mxu1 %v13060_v49  ;;  %v390_v3 = vld [vmem:[#allocation5 + $0x620] sm:$0xff]  ;;  %v13062_v8 = vld [vmem:[#allocation137_spill] sm:$0xff]  ;;  %v9607_v34 = vsub.f32 %v385_v22, %v4397_v32  ;;  %v9609_v49 = vsub.f32 %v374_v28, %v3111_v62  ;;  %v4405_v15 = vand.u32 4294901760, %v401_v44 }
 0x22a   : > { %v398_v2 = vld [vmem:[#allocation5 + $0x660] sm:$0xff]  ;;  %6102 = vmatpush1.bf16.msra.mxu0 %v13062_v8  ;;  %13063 = vst [vmem:[#allocation30_spill] sm:$0xff] %v9600_v0  ;;  %13064 = vst [vmem:[#allocation35_spill] sm:$0xff] %v9602_v63  ;;  %v392_v50 = vld [vmem:[#allocation5 + $0x630] sm:$0xff]  ;;  %v3119_v26 = vand.u32 4294901760, %v390_v3  ;;  %v9616_v13 = vpack.c.bf16 %v4399_v31, %v4395_v35  ;;  %v9618_v22 = vsub.f32 %v376_v46, %v4395_v35 }
 0x22b   : > { %v13061_v37 = vld [vmem:[#allocation135_spill] sm:$0xff]  ;;  %13065 = vst [vmem:[#allocation33_spill] sm:$0xff] %v9604_v23  ;;  %13067 = vst [vmem:[#allocation38_spill] sm:$0xff] %v9607_v34  ;;  %v400_v56 = vld [vmem:[#allocation5 + $0x670] sm:$0xff]  ;;  %v3123_v18 = vand.u32 4294901760, %v398_v2  ;;  %v9620_v28 = vsub.f32 %v384_v6, %v4399_v31  ;;  %v9622_v32 = vpack.c.bf16 %v3121_v12, %v3117_v25  ;;  %v4403_v34 = vand.u32 4294901760, %v392_v50 }
 0x22c   : > { %6484 = vmatprep.subr.bf16.mxu1 %v13061_v37  ;;  %v13066_v41 = vld [vmem:[#allocation143_spill] sm:$0xff]  ;;  %13068 = vst [vmem:[#allocation41_spill] sm:$0xff] %v9609_v49  ;;  %13069 = vst [vmem:[#allocation47_spill] sm:$0xff] %v9611_v33  ;;  %v9613_v37 = vsub.f32 %v382_v55, %v3115_v47  ;;  %v407_v8 = vld [vmem:[#allocation5 + $0x6a8] sm:$0xff]  ;;  %v9626_v47 = vsub.f32 %v391_v29, %v3117_v25  ;;  %v9631_v35 = vpack.c.bf16 %v4405_v15, %v4401_v27 }
 0x22d   : > { %6104 = vmatprep.subr.bf16.mxu0 %v13066_v41  ;;  %v415_v0 = vld [vmem:[#allocation5 + $0x6e8] sm:$0xff]  ;;  %13072 = vst [vmem:[#allocation50_spill] sm:$0xff] %v9616_v13  ;;  %13073 = vst [vmem:[#allocation54_spill] sm:$0xff] %v9618_v22  ;;  %v409_v41 = vld [vmem:[#allocation5 + $0x6b8] sm:$0xff]  ;;  %v9633_v6 = vsub.f32 %v393_v51, %v4401_v27  ;;  %v3125_v31 = vand.u32 4294901760, %v407_v8  ;;  %v9637_v29 = vpack.c.bf16 %v3123_v18, %v3119_v26 }
 0x22e   : > { %13070 = vst [vmem:[#allocation44_spill] sm:$0xff] %v9613_v37  ;;  %v13071_v54 = vld [vmem:[#allocation140_spill] sm:$0xff]  ;;  %13074 = vst [vmem:[#allocation59_spill] sm:$0xff] %v9620_v28  ;;  %v417_v49 = vld [vmem:[#allocation5 + $0x6f8] sm:$0xff]  ;;  %v9628_v37 = vsub.f32 %v399_v11, %v3121_v12  ;;  %v3129_v28 = vand.u32 4294901760, %v415_v0  ;;  %v4409_v11 = vand.u32 4294901760, %v409_v41 }
 0x22f   : > { %6486 = vmatpush1.bf16.msra.mxu1 %v13071_v54  ;;  %13075 = vst [vmem:[#allocation56_spill] sm:$0xff] %v9622_v32  ;;  %v13076_v62 = vld [vmem:[#allocation147_spill] sm:$0xff]  ;;  %v13077_v55 = vld [vmem:[#allocation149_spill] sm:$0xff]  ;;  %13078 = vst [vmem:[#allocation63_spill] sm:$0xff] %v9626_v47  ;;  %v4407_v54 = vand.u32 4294901760, %v400_v56  ;;  %v9635_v32 = vsub.f32 %v401_v44, %v4405_v15  ;;  %v4413_v25 = vand.u32 4294901760, %v417_v49  ;;  %v9648_v15 = vsub.f32 %v392_v50, %v4403_v34 }
 0x230   : > { %6488 = vmatprep.subr.bf16.mxu1 %v13076_v62  ;;  %6106 = vmatpush1.bf16.msra.mxu0 %v13077_v55  ;;  %13079 = vst [vmem:[#allocation65_spill] sm:$0xff] %v9628_v37  ;;  %v406_v23 = vld [vmem:[#allocation5 + $0x6a0] sm:$0xff]  ;;  %13081 = vst [vmem:[#allocation71_spill] sm:$0xff] %v9631_v35  ;;  %v408_v22 = vld [vmem:[#allocation5 + $0x6b0] sm:$0xff]  ;;  %v9640_v55 = vsub.f32 %v390_v3, %v3119_v26  ;;  %v9642_v37 = vsub.f32 %v398_v2, %v3123_v18 }
 0x231   : > { %v414_v13 = vld [vmem:[#allocation5 + $0x6e0] sm:$0xff]  ;;  %13082 = vst [vmem:[#allocation68_spill] sm:$0xff] %v9633_v6  ;;  %v416_v62 = vld [vmem:[#allocation5 + $0x6f0] sm:$0xff]  ;;  %13083 = vst [vmem:[#allocation75_spill] sm:$0xff] %v9635_v32  ;;  %v9646_v44 = vpack.c.bf16 %v4407_v54, %v4403_v34  ;;  %v4411_v32 = vand.u32 4294901760, %v408_v22  ;;  %v9651_v2 = vsub.f32 %v400_v56, %v4407_v54  ;;  %v9653_v26 = vpack.c.bf16 %v3129_v28, %v3125_v31 }
 0x232   : > { %v13080_v46 = vld [vmem:[#allocation155_spill] sm:$0xff]  ;;  %13084 = vst [vmem:[#allocation77_spill] sm:$0xff] %v9637_v29  ;;  %v13085_v12 = vld [vmem:[#allocation152_spill] sm:$0xff]  ;;  %13086 = vst [vmem:[#allocation83_spill] sm:$0xff] %v9640_v55  ;;  %v3131_v47 = vand.u32 4294901760, %v414_v13  ;;  %v4415_v29 = vand.u32 4294901760, %v416_v62  ;;  %v9655_v18 = vsub.f32 %v407_v8, %v3125_v31  ;;  %v9664_v63 = vsub.f32 %v417_v49, %v4413_v25 }
 0x233   : > { %6108 = vmatprep.subr.bf16.mxu0 %v13080_v46  ;;  %6490 = vmatpush1.bf16.msra.mxu1 %v13085_v12  ;;  %13087 = vst [vmem:[#allocation80_spill] sm:$0xff] %v9642_v37  ;;  %v3127_v46 = vand.u32 4294901760, %v406_v23  ;;  %v423_v51 = vld [vmem:[#allocation5 + $0x728] sm:$0xff]  ;;  %v13088_v6 = vld [vmem:[#allocation159_spill] sm:$0xff]  ;;  %v13089_v35 = vld [vmem:[#allocation161_spill] sm:$0xff]  ;;  %v9657_v37 = vsub.f32 %v415_v0, %v3129_v28  ;;  %v9677_v49 = vsub.f32 %v408_v22, %v4411_v32 }
 0x234   : > { %v431_v27 = vld [vmem:[#allocation5 + $0x768] sm:$0xff]  ;;  %6492 = vmatprep.subr.bf16.mxu1 %v13088_v6  ;;  %6110 = vmatpush1.bf16.msra.mxu0 %v13089_v35  ;;  %13090 = vst [vmem:[#allocation87_spill] sm:$0xff] %v9646_v44  ;;  %13091 = vst [vmem:[#allocation89_spill] sm:$0xff] %v9648_v15  ;;  %v425_v33 = vld [vmem:[#allocation5 + $0x738] sm:$0xff]  ;;  %v9659_v6 = vpack.c.bf16 %v4413_v25, %v4409_v11  ;;  %v9661_v35 = vsub.f32 %v409_v41, %v4409_v11  ;;  %v3133_v50 = vand.u32 4294901760, %v423_v51 }
 0x235   : > { %v433_v12 = vld [vmem:[#allocation5 + $0x778] sm:$0xff]  ;;  %v13092_v3 = vld [vmem:[#allocation167_spill] sm:$0xff]  ;;  %13093 = vst [vmem:[#allocation95_spill] sm:$0xff] %v9651_v2  ;;  %13094 = vst [vmem:[#allocation92_spill] sm:$0xff] %v9653_v26  ;;  %v3137_v34 = vand.u32 4294901760, %v431_v27  ;;  %v9666_v56 = vpack.c.bf16 %v3131_v47, %v3127_v46  ;;  %v4417_v54 = vand.u32 4294901760, %v425_v33  ;;  %v9670_v41 = vsub.f32 %v406_v23, %v3127_v46 }
 0x236   : > { %6112 = vmatprep.subr.bf16.mxu0 %v13092_v3  ;;  %13095 = vst [vmem:[#allocation99_spill] sm:$0xff] %v9655_v18  ;;  %13096 = vst [vmem:[#allocation101_spill] sm:$0xff] %v9657_v37  ;;  %v422_v15 = vld [vmem:[#allocation5 + $0x720] sm:$0xff]  ;;  %v13099_v44 = vld [vmem:[#allocation164_spill] sm:$0xff]  ;;  %v4421_v3 = vand.u32 4294901760, %v433_v12  ;;  %v9672_v11 = vsub.f32 %v414_v13, %v3131_v47  ;;  %v9679_v25 = vsub.f32 %v416_v62, %v4415_v29 }
 0x237   : > { %13097 = vst [vmem:[#allocation107_spill] sm:$0xff] %v9659_v6  ;;  %13098 = vst [vmem:[#allocation104_spill] sm:$0xff] %v9661_v35  ;;  %v430_v55 = vld [vmem:[#allocation5 + $0x760] sm:$0xff]  ;;  %6494 = vmatpush1.bf16.msra.mxu1 %v13099_v44  ;;  %v424_v8 = vld [vmem:[#allocation5 + $0x730] sm:$0xff]  ;;  %v9674_v35 = vpack.c.bf16 %v4415_v29, %v4411_v32  ;;  %v9681_v6 = vpack.c.bf16 %v3137_v34, %v3133_v50  ;;  %v9683_v23 = vsub.f32 %v423_v51, %v3133_v50 }
 0x238   : > { %13100 = vst [vmem:[#allocation111_spill] sm:$0xff] %v9664_v63  ;;  %13101 = vst [vmem:[#allocation113_spill] sm:$0xff] %v9666_v56  ;;  %v432_v31 = vld [vmem:[#allocation5 + $0x770] sm:$0xff]  ;;  %v13102_v0 = vld [vmem:[#allocation171_spill] sm:$0xff]  ;;  %v3135_v63 = vand.u32 4294901760, %v422_v15  ;;  %v3139_v18 = vand.u32 4294901760, %v430_v55  ;;  %v9688_v22 = vpack.c.bf16 %v4421_v3, %v4417_v54  ;;  %v9690_v32 = vsub.f32 %v425_v33, %v4417_v54 }
 0x239   : > { %6496 = vmatprep.subr.bf16.mxu1 %v13102_v0  ;;  %v13103_v28 = vld [vmem:[#allocation173_spill] sm:$0xff]  ;;  %13104 = vst [vmem:[#allocation119_spill] sm:$0xff] %v9670_v41  ;;  %13105 = vst [vmem:[#allocation116_spill] sm:$0xff] %v9672_v11  ;;  %v439_v37 = vld [vmem:[#allocation5 + $0x7a8] sm:$0xff]  ;;  %v4419_v13 = vand.u32 4294901760, %v424_v8  ;;  %v4423_v47 = vand.u32 4294901760, %v432_v31  ;;  %v9692_v62 = vsub.f32 %v433_v12, %v4421_v3 }
 0x23a   : > { %6114 = vmatpush1.bf16.msra.mxu0 %v13103_v28  ;;  %13106 = vst [vmem:[#allocation123_spill] sm:$0xff] %v9674_v35  ;;  %v13107_v44 = vld [vmem:[#allocation179_spill] sm:$0xff]  ;;  %13108 = vst [vmem:[#allocation125_spill] sm:$0xff] %v9677_v49  ;;  %v447_v2 = vld [vmem:[#allocation5 + $0x7e8] sm:$0xff]  ;;  %v9703_v33 = vsub.f32 %v422_v15, %v3135_v63  ;;  %v9705_v3 = vsub.f32 %v430_v55, %v3139_v18 }
 0x23b   : > { %6116 = vmatprep.subr.bf16.mxu0 %v13107_v44  ;;  %13109 = vst [vmem:[#allocation131_spill] sm:$0xff] %v9679_v25  ;;  %v441_v56 = vld [vmem:[#allocation5 + $0x7b8] sm:$0xff]  ;;  %13110 = vst [vmem:[#allocation128_spill] sm:$0xff] %v9681_v6  ;;  %v438_v46 = vld [vmem:[#allocation5 + $0x7a0] sm:$0xff]  ;;  %v9686_v44 = vsub.f32 %v431_v27, %v3137_v34  ;;  %v3145_v49 = vand.u32 4294901760, %v447_v2  ;;  %v9701_v34 = vpack.c.bf16 %v3139_v18, %v3135_v63  ;;  %v11952_v63 = vand.u32 4294901760, %v9279_v48 }
 0x23c   : > { %v449_v0 = vld [vmem:[#allocation5 + $0x7f8] sm:$0xff]  ;;  %13111 = vst [vmem:[#allocation135_spill] sm:$0xff] %v9683_v23  ;;  %v446_v28 = vld [vmem:[#allocation5 + $0x7e0] sm:$0xff]  ;;  %v13112_v11 = vld [vmem:[#allocation176_spill] sm:$0xff]  ;;  %v3141_v23 = vand.u32 4294901760, %v439_v37  ;;  %v4425_v41 = vand.u32 4294901760, %v441_v56 }
 0x23d   : > { %6498 = vmatpush1.bf16.msra.mxu1 %v13112_v11  ;;  %13113 = vst [vmem:[#allocation137_spill] sm:$0xff] %v9686_v44  ;;  %13114 = vst [vmem:[#allocation143_spill] sm:$0xff] %v9688_v22  ;;  %v9694_v29 = vld [vmem:[#allocation5 + $0x7b0] sm:$0xff]  ;;  %v13117_v51 = vld [vmem:[#allocation183_spill] sm:$0xff]  ;;  %v4429_v11 = vand.u32 4294901760, %v449_v0  ;;  %v3143_v12 = vand.u32 4294901760, %v438_v46  ;;  %v9712_v44 = vsub.f32 %v424_v8, %v4419_v13  ;;  %v9714_v22 = vsub.f32 %v432_v31, %v4423_v47 }
 0x23e   : > { %13115 = vst [vmem:[#allocation140_spill] sm:$0xff] %v9690_v32  ;;  %13116 = vst [vmem:[#allocation147_spill] sm:$0xff] %v9692_v62  ;;  %v9696_v25 = vld [vmem:[#allocation5 + $0x7f0] sm:$0xff]  ;;  %6500 = vmatprep.subr.bf16.mxu1 %v13117_v51  ;;  %v13119_v27 = vld [vmem:[#allocation191_spill] sm:$0xff]  ;;  %v3147_v54 = vand.u32 4294901760, %v446_v28  ;;  %v9707_v62 = vpack.c.bf16 %v4423_v47, %v4419_v13  ;;  %v9721_v18 = vpack.c.bf16 %v3145_v49, %v3141_v23 }
 0x23f   : > { %v13118_v50 = vld [vmem:[#allocation185_spill] sm:$0xff]  ;;  %13120 = vst [vmem:[#allocation149_spill] sm:$0xff] %v9701_v34  ;;  %13121 = vst [vmem:[#allocation155_spill] sm:$0xff] %v9703_v33  ;;  %v13124_v32 = vld [vmem:[#allocation188_spill] sm:$0xff]  ;;  %v9725_v51 = vpack.c.bf16 %v4429_v11, %v4425_v41  ;;  %v9729_v8 = vsub.f32 %v441_v56, %v4425_v41  ;;  %v9735_v13 = vsub.f32 %v438_v46, %v3143_v12  ;;  %v11958_v46 = vand.u32 4294901760, %v9293_v7 }
 0x240   : > { %6118 = vmatpush1.bf16.msra.mxu0 %v13118_v50  ;;  %13122 = vst [vmem:[#allocation152_spill] sm:$0xff] %v9705_v3  ;;  %13123 = vst [vmem:[#allocation159_spill] sm:$0xff] %v9707_v62  ;;  %v11953_v50 = vand.u32 4294901760, %v9696_v25  ;;  %v13128_v15 = vld [vmem:[#allocation196_spill] sm:$0xff]  ;;  %v13129_v55 = vld [vmem:[#allocation198_spill] sm:$0xff]  ;;  %v9723_v3 = vsub.f32 %v447_v2, %v3145_v49  ;;  %v9733_v31 = vpack.c.bf16 %v3147_v54, %v3143_v12  ;;  %v11955_v49 = vand.u32 4294901760, %v9287_v10 }
 0x241   : > { %6120 = vmatprep.subr.bf16.mxu0 %v13119_v27  ;;  %6502 = vmatpush1.bf16.msra.mxu1 %v13124_v32  ;;  %13125 = vst [vmem:[#allocation161_spill] sm:$0xff] %v9712_v44  ;;  %13126 = vst [vmem:[#allocation167_spill] sm:$0xff] %v9714_v22  ;;  %v9716_v27 = vsub.f32 %v439_v37, %v3141_v23  ;;  %v11954_v32 = vand.u32 4294901760, %v9281_v20  ;;  %v9731_v37 = vsub.f32 %v449_v0, %v4429_v11  ;;  %v13140_v56 = vld [vmem:[#allocation201_spill] sm:$0xff] }
 0x242   : > { %6504 = vmatprep.subr.bf16.mxu1 %v13128_v15  ;;  %13130 = vst [vmem:[#allocation171_spill] sm:$0xff] %v9721_v18  ;;  %13131 = vst [vmem:[#allocation173_spill] sm:$0xff] %v9723_v3  ;;  %v9737_v47 = vsub.f32 %v446_v28, %v3147_v54  ;;  %v13138_v23 = vand.u32 4294901760, %v9694_v29  ;;  %v11956_v15 = vand.u32 4294901760, %v9289_v39  ;;  %v9752_v41 = vsub.f32 %v9279_v48, %v11952_v63  ;;  %v13210_v48 = vld [vmem:[#allocation78_spill] sm:$0xff]  ;;  %v13266_v3 = vld [vmem:[#allocation76_spill] sm:$0xff] }
 0x243   : > { %13127 = vst [vmem:[#allocation164_spill] sm:$0xff] %v9716_v27  ;;  %13132 = vst [vmem:[#allocation179_spill] sm:$0xff] %v9725_v51  ;;  %v11957_v0 = vand.u32 4294901760, %v9291_v58  ;;  %v9762_v11 = vsub.f32 %v9281_v20, %v11954_v32  ;;  %v11963_v12 = vand.u32 4294901760, %v9299_v52  ;;  %v4453_v32 = vsub.f32 %v9287_v10, %v11955_v49  ;;  %v13208_v20 = vld [vmem:[#allocation62_spill] sm:$0xff] }
 0x244   : > { %6122 = vmatpush1.bf16.msra.mxu0 %v13129_v55  ;;  %13133 = vst [vmem:[#allocation176_spill] sm:$0xff] %v9729_v8  ;;  %13134 = vst [vmem:[#allocation183_spill] sm:$0xff] %v9731_v37  ;;  %v9743_v2 = vpack.c.bf16 %v11953_v50, %v13138_v23  ;;  %v13141_v23 = vld [vmem:[#allocation210_spill] sm:$0xff]  ;;  %v4465_v55 = vsub.f32 %v9289_v39, %v11956_v15  ;;  %v3170_v50 = vand.u32 4294901760, %v9752_v41  ;;  %v13142_v15 = vand.u32 4294901760, %v9297_v1  ;;  %v13206_v39 = vld [vmem:[#allocation36_spill] sm:$0xff] }
 0x245   : > { %6508 = vmatprep.subr.bf16.mxu0 %v9277_v5  ;;  %13135 = vst [vmem:[#allocation185_spill] sm:$0xff] %v9733_v31  ;;  %13136 = vst [vmem:[#allocation191_spill] sm:$0xff] %v9735_v13  ;;  %6506 = vmatpush1.bf16.msra.mxu1 %v13140_v56  ;;  %v3175_v28 = vsub.f32 %v9291_v58, %v11957_v0  ;;  %v3187_v49 = vsub.f32 %v9293_v7, %v11958_v46  ;;  %v3182_v41 = vand.u32 4294901760, %v9762_v11  ;;  %v13203_v58 = vld [vmem:[#allocation53_spill] sm:$0xff]  ;;  %v13245_v13 = vld [vmem:[#allocation178_spill] sm:$0xff] }
 0x246   : > { %13137 = vst [vmem:[#allocation188_spill] sm:$0xff] %v9737_v47  ;;  %13139 = vst [vmem:[#allocation196_spill] sm:$0xff] %v9743_v2  ;;  %6892 = vmatprep.subr.bf16.mxu1 %v9283_v4  ;;  %v4459_v54 = vsub.f32 %v9297_v1, %v13142_v15  ;;  %v13143_v0 = vand.u32 4294901760, %v9301_v59  ;;  %v13144_v46 = vand.u32 4294901760, %v9305_v38  ;;  %v13145_v15 = vand.u32 4294901760, %v9309_v57  ;;  %v13262_v37 = vld [vmem:[#allocation197_spill] sm:$0xff] }
 0x247   : > { %1731 = vmatmul.mubr.f32.vlgmr.msra.gmra.mrb[0].mxu0 %v12926_v24  ;;  %v13146_v11 = vand.u32 4294901760, %v9311_v30  ;;  %v13150_v4 = vand.u32 4294901760, %v9326_v40 }
 0x248   : > { %6510 = vmatpush1.bf16.msra.mxu0 %v9285_v36  ;;  %3154 = vmatprep.mubr.f32.mxu0 %v13141_v23  ;;  %v3193_v56 = vsub.f32 %v9301_v59, %v13143_v0  ;;  %v3205_v63 = vsub.f32 %v9305_v38, %v13144_v46  ;;  %v13148_v0 = vand.u32 4294901760, %v9317_v9  ;;  %v4454_v36 = vand.u32 4294901760, %v4453_v32  ;;  %v13186_v38 = vld [vmem:[#allocation32_spill] sm:$0xff] }
 0x249   : > { %6512 = vmatprep.subr.bf16.mxu0 %v9303_v17  ;;  %3015 = vmatmul.mubr.f32.vlgmr.msra.gmra.mrb[0].mxu1 %v12926_v24  ;;  %v13149_v46 = vand.u32 4294901760, %v9322_v16  ;;  %v4460_v32 = vand.u32 4294901760, %v4459_v54  ;;  %v13157_v54 = vand.u32 4294901760, %v9694_v29  ;;  %v13185_v24 = vld [vmem:[#allocation21_spill] sm:$0xff]  ;;  %v13189_v59 = vld [vmem:[#allocation48_spill] sm:$0xff] }
 0x24a   : > { %6894 = vmatpush1.bf16.msra.mxu1 %v9295_v42  ;;  %4438 = vmatprep.mubr.f32.mxu1 %v13141_v23  ;;  %v4471_v23 = vsub.f32 %v9299_v52, %v11963_v12  ;;  %v13147_v12 = vand.u32 4294901760, %v9315_v43  ;;  %v3211_v17 = vsub.f32 %v9317_v9, %v13148_v0  ;;  %v13152_v52 = vld [vmem:[#allocation102_spill] sm:$0xff] }
 0x24b   : > { %6896 = vmatprep.subr.bf16.mxu1 %v9307_v45  ;;  %v4489_v45 = vsub.f32 %v9311_v30, %v13146_v11  ;;  %v4466_v11 = vand.u32 4294901760, %v4465_v55  ;;  %v3176_v30 = vand.u32 4294901760, %v3175_v28  ;;  %v13153_v9 = vld [vmem:[#allocation150_spill] sm:$0xff] }
 0x24c   : > { %6514 = vmatpush1.bf16.msra.mxu0 %v9313_v14  ;;  %v4477_v14 = vsub.f32 %v9309_v57, %v13145_v15  ;;  %v3199_v42 = vsub.f32 %v9315_v43, %v13147_v12  ;;  %v4495_v15 = vsub.f32 %v9326_v40, %v13150_v4  ;;  %v3188_v12 = vand.u32 4294901760, %v3187_v49  ;;  %v13151_v43 = vld [vmem:[#allocation100_spill] sm:$0xff]  ;;  %v13155_v57 = vld [vmem:[#allocation103_spill] sm:$0xff] }
 0x24d   : > { %6516 = vmatprep.subr.bf16.mxu0 %v9328_v53  ;;  %v4483_v53 = vsub.f32 %v9322_v16, %v13149_v46  ;;  %v4472_v0 = vand.u32 4294901760, %v4471_v23  ;;  %v3194_v46 = vand.u32 4294901760, %v3193_v56  ;;  %v3206_v16 = vand.u32 4294901760, %v3205_v63  ;;  %v13162_v23 = vld [vmem:[#allocation163_spill] sm:$0xff] }
 0x24e   : > { %6898 = vmatpush1.bf16.msra.mxu1 %v9320_v21  ;;  %v4478_v4 = vand.u32 4294901760, %v4477_v14  ;;  %v4490_v40 = vand.u32 4294901760, %v4489_v45  ;;  %v3200_v5 = vand.u32 4294901760, %v3199_v42  ;;  %v3212_v1 = vand.u32 4294901760, %v3211_v17  ;;  %v13160_v17 = vld [vmem:[#allocation108_spill] sm:$0xff] }
 0x24f   : > { %6900 = vmatprep.subr.bf16.mxu1 %v13152_v52  ;;  %v4484_v21 = vand.u32 4294901760, %v4483_v53  ;;  %v4496_v55 = vand.u32 4294901760, %v4495_v15  ;;  %v13154_v49 = vand.u32 4294901760, %v9330_v60  ;;  %v9841_v63 = vsub.f32 %v9694_v29, %v13157_v54  ;;  %v13161_v53 = vld [vmem:[#allocation105_spill] sm:$0xff] }
 0x250   : > { %6518 = vmatpush1.bf16.msra.mxu0 %v9342_v61  ;;  %v13156_v61 = vld [vmem:[#allocation112_spill] sm:$0xff]  ;;  %v13159_v45 = vand.u32 4294901760, %v13151_v43  ;;  %v13163_v15 = vld [vmem:[#allocation13_spill] sm:$0xff]  ;;  %v9857_v29 = vpack.c.bf16 %v3182_v41, %v3170_v50  ;;  %v9859_v54 = vpack.c.bf16 %v4466_v11, %v4454_v36  ;;  %v9863_v14 = vpack.c.bf16 %v3188_v12, %v3176_v30  ;;  %v13169_v11 = vld [vmem:[#allocation18_spill] sm:$0xff] }
 0x251   : > { %6520 = vmatprep.subr.bf16.mxu0 %v13153_v9  ;;  %v9834_v28 = vsub.f32 %v9330_v60, %v13154_v49  ;;  %13158 = vst [vmem:[#allocation198_spill] sm:$0xff] %v9841_v63  ;;  %v13164_v49 = vand.u32 4294901760, %v9696_v25  ;;  %v13167_v9 = vld [vmem:[#allocation25_spill] sm:$0xff]  ;;  %v9865_v56 = vpack.c.bf16 %v4472_v0, %v4460_v32  ;;  %v13168_v36 = vand.u32 4294901760, %v13155_v57  ;;  %v13173_v32 = vld [vmem:[#allocation27_spill] sm:$0xff]  ;;  %v13178_v50 = vld [vmem:[#allocation40_spill] sm:$0xff] }
 0x252   : > { %6902 = vmatpush1.bf16.msra.mxu1 %v13156_v61  ;;  %v9846_v42 = vsub.f32 %v13151_v43, %v13159_v45  ;;  %v13166_v61 = vld [vmem:[#allocation106_spill] sm:$0xff]  ;;  %v9871_v43 = vpack.c.bf16 %v3212_v1, %v3200_v5  ;;  %v13171_v5 = vand.u32 4294901760, %v13161_v53  ;;  %v13174_v0 = vld [vmem:[#allocation31_spill] sm:$0xff]  ;;  %v13180_v12 = vld [vmem:[#allocation12_spill] sm:$0xff] }
 0x253   : > { %6904 = vmatprep.subr.bf16.mxu1 %v13162_v23  ;;  %v9855_v52 = vsub.f32 %v9696_v25, %v13164_v49  ;;  %v12000_v45 = vand.u32 4294901760, %v13166_v61  ;;  %v9867_v23 = vpack.c.bf16 %v3206_v16, %v3194_v46  ;;  %v9873_v25 = vpack.c.bf16 %v4496_v55, %v4484_v21  ;;  %v13172_v21 = vld [vmem:[#allocation110_spill] sm:$0xff]  ;;  %v13184_v60 = vld [vmem:[#allocation23_spill] sm:$0xff] }
 0x254   : > { %6522 = vmatpush1.bf16.msra.mxu0 %v13163_v15  ;;  %v9869_v15 = vpack.c.bf16 %v4490_v40, %v4478_v4  ;;  %v9879_v41 = vsub.f32 %v13155_v57, %v13168_v36  ;;  %v13170_v16 = vand.u32 4294901760, %v13160_v17  ;;  %v9891_v1 = vsub.f32 %v13161_v53, %v13171_v5  ;;  %v13175_v4 = vld [vmem:[#allocation146_spill] sm:$0xff] }
 0x255   : > { %13165 = vst [vmem:[#allocation201_spill] sm:$0xff] %v9855_v52  ;;  %6524 = vmatprep.subr.bf16.mxu0 %v13167_v9  ;;  %v9899_v46 = vsub.f32 %v13166_v61, %v12000_v45  ;;  %v13176_v49 = vld [vmem:[#allocation154_spill] sm:$0xff]  ;;  %v13183_v45 = vld [vmem:[#allocation19_spill] sm:$0xff]  ;;  %v13187_v9 = vand.u32 4294901760, %v13172_v21  ;;  %v13191_v36 = vand.u32 4294901760, %v13175_v4 }
 0x256   : > { %6906 = vmatpush1.bf16.msra.mxu1 %v13169_v11  ;;  %v9886_v40 = vsub.f32 %v13160_v17, %v13170_v16  ;;  %v13177_v16 = vld [vmem:[#allocation153_spill] sm:$0xff]  ;;  %v13179_v5 = vld [vmem:[#allocation162_spill] sm:$0xff]  ;;  %v4502_v57 = vand.u32 4294901760, %v9879_v41  ;;  %v3224_v11 = vand.u32 4294901760, %v9891_v1 }
 0x257   : > { %6908 = vmatprep.subr.bf16.mxu1 %v13173_v32  ;;  %v13181_v32 = vld [vmem:[#allocation14_spill] sm:$0xff]  ;;  %v4507_v53 = vsub.f32 %v13172_v21, %v13187_v9  ;;  %v3236_v55 = vand.u32 4294901760, %v9899_v46  ;;  %v4519_v61 = vsub.f32 %v13175_v4, %v13191_v36  ;;  %v13194_v21 = vld [vmem:[#allocation61_spill] sm:$0xff]  ;;  %v13195_v17 = vand.u32 4294901760, %v13179_v5 }
 0x258   : > { %6526 = vmatpush1.bf16.msra.mxu0 %v13174_v0  ;;  %v13182_v0 = vld [vmem:[#allocation16_spill] sm:$0xff]  ;;  %v4514_v30 = vand.u32 4294901760, %v9886_v40  ;;  %v13190_v41 = vld [vmem:[#allocation46_spill] sm:$0xff]  ;;  %v13192_v40 = vand.u32 4294901760, %v13176_v49  ;;  %v13196_v46 = vand.u32 4294901760, %v13180_v12  ;;  %v13197_v36 = vand.u32 4294901760, %v13181_v32 }
 0x259   : > { %6528 = vmatprep.subr.bf16.mxu0 %v13178_v50  ;;  %v13188_v50 = vld [vmem:[#allocation22_spill] sm:$0xff] }
 0x25a   : > { %6910 = vmatpush1.bf16.msra.mxu1 %v13186_v38  ;;  %v3241_v1 = vsub.f32 %v13176_v49, %v13192_v40  ;;  %v13193_v38 = vand.u32 4294901760, %v13177_v16  ;;  %v3247_v4 = vsub.f32 %v13181_v32, %v13197_v36  ;;  %v13198_v40 = vand.u32 4294901760, %v13182_v0 }
 0x25b   : > { %6912 = vmatprep.subr.bf16.mxu1 %v13189_v59  ;;  %v4537_v59 = vsub.f32 %v13180_v12, %v13196_v46  ;;  %v13202_v12 = vld [vmem:[#allocation28_spill] sm:$0xff]  ;;  %v13204_v36 = vand.u32 4294901760, %v13188_v50 }
 0x25c   : > { %6530 = vmatpush1.bf16.msra.mxu0 %v13190_v41  ;;  %v3253_v9 = vsub.f32 %v13177_v16, %v13193_v38  ;;  %v4525_v41 = vsub.f32 %v13179_v5, %v13195_v17  ;;  %v3259_v49 = vsub.f32 %v13182_v0, %v13198_v40  ;;  %v13199_v38 = vand.u32 4294901760, %v13183_v45  ;;  %v13205_v0 = vld [vmem:[#allocation29_spill] sm:$0xff] }
 0x25d   : > { %6532 = vmatprep.subr.bf16.mxu0 %v13194_v21  ;;  %v13200_v16 = vand.u32 4294901760, %v13184_v60  ;;  %v13201_v5 = vand.u32 4294901760, %v13185_v24  ;;  %v3277_v40 = vsub.f32 %v13188_v50, %v13204_v36  ;;  %v4538_v52 = vand.u32 4294901760, %v4537_v59 }
 0x25e   : > { %v4531_v21 = vsub.f32 %v13183_v45, %v13199_v38  ;;  %6914 = vmatpush1.bf16.msra.mxu1 %v13203_v58  ;;  %v13207_v45 = vld [vmem:[#allocation37_spill] sm:$0xff]  ;;  %v3254_v7 = vand.u32 4294901760, %v3253_v9  ;;  %v4526_v58 = vand.u32 4294901760, %v4525_v41  ;;  %v3248_v63 = vand.u32 4294901760, %v3247_v4  ;;  %v13216_v41 = vld [vmem:[#allocation84_spill] sm:$0xff]  ;;  %v13217_v9 = vld [vmem:[#allocation82_spill] sm:$0xff] }
 0x25f   : > { %v4543_v17 = vsub.f32 %v13184_v60, %v13200_v16  ;;  %v3265_v46 = vsub.f32 %v13185_v24, %v13201_v5  ;;  %6916 = vmatprep.subr.bf16.mxu1 %v13208_v20  ;;  %v13209_v16 = vld [vmem:[#allocation67_spill] sm:$0xff]  ;;  %v4508_v60 = vand.u32 4294901760, %v4507_v53  ;;  %v4520_v5 = vand.u32 4294901760, %v4519_v61  ;;  %v13212_v20 = vld [vmem:[#allocation69_spill] sm:$0xff] }
 0x260   : > { %6534 = vmatpush1.bf16.msra.mxu0 %v13209_v16  ;;  %v3242_v24 = vand.u32 4294901760, %v3241_v1  ;;  %v3260_v36 = vand.u32 4294901760, %v3259_v49  ;;  %v4532_v50 = vand.u32 4294901760, %v4531_v21  ;;  %v13211_v38 = vand.u32 4294901760, %v13202_v12 }
 0x261   : > { %6536 = vmatprep.subr.bf16.mxu0 %v13210_v48  ;;  %v4544_v32 = vand.u32 4294901760, %v4543_v17  ;;  %v3266_v47 = vand.u32 4294901760, %v3265_v46  ;;  %v3278_v53 = vand.u32 4294901760, %v3277_v40  ;;  %v13213_v61 = vand.u32 4294901760, %v13205_v0  ;;  %v13222_v48 = vld [vmem:[#allocation42_spill] sm:$0xff] }
 0x262   : > { %v9968_v10 = vsub.f32 %v13202_v12, %v13211_v38  ;;  %6918 = vmatpush1.bf16.msra.mxu1 %v13212_v20  ;;  %v13214_v59 = vand.u32 4294901760, %v13206_v39  ;;  %v13215_v21 = vand.u32 4294901760, %v13207_v45  ;;  %v13218_v17 = vand.u32 4294901760, %v9834_v28  ;;  %v13220_v38 = vld [vmem:[#allocation34_spill] sm:$0xff]  ;;  %v13221_v20 = vld [vmem:[#allocation39_spill] sm:$0xff]  ;;  %v13244_v12 = vld [vmem:[#allocation73_spill] sm:$0xff] }
 0x263   : > { %v9974_v1 = vsub.f32 %v13205_v0, %v13213_v61  ;;  %6920 = vmatprep.subr.bf16.mxu1 %v13216_v41  ;;  %v13219_v46 = vand.u32 4294901760, %v9846_v42  ;;  %v12038_v61 = vand.u32 4294901760, %v13220_v38  ;;  %v10002_v41 = vpack.c.bf16 %v4520_v5, %v4508_v60  ;;  %v13243_v0 = vld [vmem:[#allocation72_spill] sm:$0xff] }
 0x264   : > { %v9979_v4 = vsub.f32 %v13206_v39, %v13214_v59  ;;  %v9984_v49 = vsub.f32 %v13207_v45, %v13215_v21  ;;  %6538 = vmatpush1.bf16.msra.mxu0 %v13217_v9  ;;  %v13223_v39 = vld [vmem:[#allocation139_spill] sm:$0xff]  ;;  %v9998_v21 = vpack.c.bf16 %v4514_v30, %v4502_v57  ;;  %v10000_v45 = vpack.c.bf16 %v3236_v55, %v3224_v11  ;;  %v13225_v59 = vld [vmem:[#allocation90_spill] sm:$0xff]  ;;  %v13232_v55 = vld [vmem:[#allocation49_spill] sm:$0xff] }
 0x265   : > { %v9992_v40 = vpack.c.bf16 %v13219_v46, %v13218_v17  ;;  %6540 = vmatprep.subr.bf16.mxu0 %v13223_v39  ;;  %v10004_v9 = vpack.c.bf16 %v3254_v7, %v3242_v24  ;;  %v10006_v28 = vpack.c.bf16 %v4538_v52, %v4526_v58  ;;  %v10008_v42 = vpack.c.bf16 %v3260_v36, %v3248_v63  ;;  %v13227_v7 = vld [vmem:[#allocation142_spill] sm:$0xff]  ;;  %v13233_v36 = vld [vmem:[#allocation45_spill] sm:$0xff]  ;;  %v13235_v11 = vld [vmem:[#allocation52_spill] sm:$0xff] }
 0x266   : > { %v10010_v17 = vpack.c.bf16 %v4544_v32, %v4532_v50  ;;  %6922 = vmatpush1.bf16.msra.mxu1 %v13225_v59  ;;  %v10014_v16 = vpack.c.bf16 %v3278_v53, %v3266_v47  ;;  %v10024_v58 = vsub.f32 %v13220_v38, %v12038_v61  ;;  %v13228_v52 = vand.u32 4294901760, %v13221_v20  ;;  %v13230_v50 = vld [vmem:[#allocation43_spill] sm:$0xff]  ;;  %v13231_v32 = vld [vmem:[#allocation174_spill] sm:$0xff]  ;;  %v13238_v59 = vld [vmem:[#allocation57_spill] sm:$0xff] }
 0x267   : > { %6924 = vmatprep.subr.bf16.mxu1 %v13227_v7  ;;  %v13229_v47 = vand.u32 4294901760, %v13222_v48  ;;  %v13234_v61 = vld [vmem:[#allocation51_spill] sm:$0xff]  ;;  %v13240_v38 = vld [vmem:[#allocation169_spill] sm:$0xff]  ;;  %v13241_v30 = vld [vmem:[#allocation64_spill] sm:$0xff]  ;;  %v13249_v53 = vand.u32 4294901760, %v13232_v55  ;;  %v13250_v5 = vand.u32 4294901760, %v13233_v36 }
 0x268   : > { %13224 = vst [vmem:[#allocation210_spill] sm:$0xff] %v10010_v17  ;;  %13226 = vst [vmem:[#allocation211_spill] sm:$0xff] %v10014_v16  ;;  %6542 = vmatpush1.bf16.msra.mxu0 %v9521_v19  ;;  %v10029_v24 = vsub.f32 %v13221_v20, %v13228_v52  ;;  %v13236_v46 = vld [vmem:[#allocation55_spill] sm:$0xff]  ;;  %v13237_v19 = vld [vmem:[#allocation60_spill] sm:$0xff]  ;;  %v4556_v7 = vand.u32 4294901760, %v10024_v58  ;;  %v13247_v52 = vand.u32 4294901760, %v13230_v50 }
 0x269   : > { %v10034_v63 = vsub.f32 %v13222_v48, %v13229_v47  ;;  %6544 = vmatprep.subr.bf16.mxu0 %v13231_v32  ;;  %v13239_v47 = vld [vmem:[#allocation58_spill] sm:$0xff]  ;;  %v4573_v60 = vsub.f32 %v13232_v55, %v13249_v53  ;;  %v13251_v58 = vand.u32 4294901760, %v13234_v61  ;;  %v13255_v55 = vand.u32 4294901760, %v13238_v59  ;;  %v13269_v16 = vld [vmem:[#allocation35_spill] sm:$0xff] }
 0x26a   : > { %6926 = vmatpush1.bf16.msra.mxu1 %v13240_v38  ;;  %v13242_v48 = vld [vmem:[#allocation66_spill] sm:$0xff]  ;;  %v4568_v39 = vand.u32 4294901760, %v10029_v24  ;;  %v3301_v32 = vsub.f32 %v13230_v50, %v13247_v52  ;;  %v13248_v38 = vld [vmem:[#allocation192_spill] sm:$0xff]  ;;  %v13253_v52 = vand.u32 4294901760, %v13236_v46  ;;  %v13254_v50 = vand.u32 4294901760, %v13237_v19 }
 0x26b   : > { %6928 = vmatprep.subr.bf16.mxu1 %v13245_v13  ;;  %v13246_v57 = vld [vmem:[#allocation182_spill] sm:$0xff]  ;;  %v3290_v20 = vand.u32 4294901760, %v10034_v63  ;;  %v3295_v24 = vsub.f32 %v13234_v61, %v13251_v58  ;;  %v13252_v63 = vand.u32 4294901760, %v13235_v11  ;;  %v13257_v61 = vld [vmem:[#allocation187_spill] sm:$0xff] }
 0x26c   : > { %6546 = vmatpush1.bf16.msra.mxu0 %v13246_v57  ;;  %v4585_v57 = vsub.f32 %v13233_v36, %v13250_v5  ;;  %v4591_v53 = vsub.f32 %v13237_v19, %v13254_v50  ;;  %v3313_v5 = vsub.f32 %v13238_v59, %v13255_v55  ;;  %v13256_v36 = vand.u32 4294901760, %v13239_v47 }
 0x26d   : > { %6548 = vmatprep.subr.bf16.mxu0 %v13248_v38  ;;  %v3307_v13 = vsub.f32 %v13235_v11, %v13252_v63  ;;  %v4579_v38 = vsub.f32 %v13236_v46, %v13253_v52  ;;  %v13258_v63 = vand.u32 4294901760, %v13241_v30  ;;  %v13259_v52 = vand.u32 4294901760, %v13242_v48 }
 0x26e   : > { %v3325_v58 = vsub.f32 %v13239_v47, %v13256_v36  ;;  %6930 = vmatpush1.bf16.msra.mxu1 %v13257_v61  ;;  %v13260_v50 = vand.u32 4294901760, %v13243_v0  ;;  %v13261_v55 = vand.u32 4294901760, %v13244_v12  ;;  %v13263_v36 = vld [vmem:[#allocation202_spill] sm:$0xff]  ;;  %v3302_v61 = vand.u32 4294901760, %v3301_v32 }
 0x26f   : > { %v4597_v11 = vsub.f32 %v13241_v30, %v13258_v63  ;;  %v4609_v46 = vsub.f32 %v13242_v48, %v13259_v52  ;;  %6932 = vmatprep.subr.bf16.mxu1 %v13262_v37  ;;  %v13264_v47 = vld [vmem:[#allocation70_spill] sm:$0xff]  ;;  %v13267_v52 = vld [vmem:[#allocation20_spill] sm:$0xff]  ;;  %v4574_v48 = vand.u32 4294901760, %v4573_v60  ;;  %v4586_v22 = vand.u32 4294901760, %v4585_v57  ;;  %v13268_v37 = vld [vmem:[#allocation15_spill] sm:$0xff] }
 0x270   : > { %v3319_v19 = vsub.f32 %v13243_v0, %v13260_v50  ;;  %v3331_v59 = vsub.f32 %v13244_v12, %v13261_v55  ;;  %6550 = vmatpush1.bf16.msra.mxu0 %v13263_v36  ;;  %v13265_v63 = vld [vmem:[#allocation74_spill] sm:$0xff]  ;;  %v3296_v50 = vand.u32 4294901760, %v3295_v24  ;;  %v3308_v0 = vand.u32 4294901760, %v3307_v13  ;;  %v13270_v30 = vld [vmem:[#allocation47_spill] sm:$0xff] }
 0x271   : > { %6552 = vmatprep.subr.bf16.mxu0 %v13267_v52  ;;  %v4580_v44 = vand.u32 4294901760, %v4579_v38  ;;  %v4592_v33 = vand.u32 4294901760, %v4591_v53  ;;  %v3314_v55 = vand.u32 4294901760, %v3313_v5  ;;  %v3326_v12 = vand.u32 4294901760, %v3325_v58  ;;  %v13297_v52 = vld [vmem:[#allocation168_spill] sm:$0xff] }
 0x272   : > { %6934 = vmatpush1.bf16.msra.mxu1 %v13268_v37  ;;  %v4598_v36 = vand.u32 4294901760, %v4597_v11  ;;  %v4610_v32 = vand.u32 4294901760, %v4609_v46  ;;  %v3320_v17 = vand.u32 4294901760, %v3319_v19  ;;  %v3332_v8 = vand.u32 4294901760, %v3331_v59  ;;  %v13274_v11 = vld [vmem:[#allocation79_spill] sm:$0xff]  ;;  %v13275_v19 = vld [vmem:[#allocation56_spill] sm:$0xff] }
 0x273   : > { %6936 = vmatprep.subr.bf16.mxu1 %v13269_v16  ;;  %v13271_v27 = vand.u32 4294901760, %v13264_v47  ;;  %v13272_v13 = vand.u32 4294901760, %v13265_v63  ;;  %v13273_v60 = vand.u32 4294901760, %v13266_v3  ;;  %v13276_v59 = vand.u32 4294901760, %v9968_v10  ;;  %v13280_v16 = vld [vmem:[#allocation85_spill] sm:$0xff] }
 0x274   : > { %6554 = vmatpush1.bf16.msra.mxu0 %v13270_v30  ;;  %v13277_v53 = vand.u32 4294901760, %v9974_v1  ;;  %v13279_v58 = vand.u32 4294901760, %v9984_v49  ;;  %v10132_v37 = vpack.c.bf16 %v3302_v61, %v3290_v20  ;;  %v10134_v46 = vpack.c.bf16 %v4586_v22, %v4574_v48  ;;  %v13281_v1 = vld [vmem:[#allocation50_spill] sm:$0xff]  ;;  %v13284_v20 = vld [vmem:[#allocation77_spill] sm:$0xff] }
 0x275   : > { %v4603_v57 = vsub.f32 %v13264_v47, %v13271_v27  ;;  %v4615_v38 = vsub.f32 %v13265_v63, %v13272_v13  ;;  %v3337_v24 = vsub.f32 %v13266_v3, %v13273_v60  ;;  %6556 = vmatprep.subr.bf16.mxu0 %v13275_v19  ;;  %v13278_v27 = vand.u32 4294901760, %v9979_v4 }
 0x276   : > { %v10121_v5 = vpack.c.bf16 %v13277_v53, %v13276_v59  ;;  %v10129_v13 = vpack.c.bf16 %v4568_v39, %v4556_v7  ;;  %v12069_v60 = vand.u32 4294901760, %v13280_v16  ;;  %v10136_v19 = vpack.c.bf16 %v3308_v0, %v3296_v50  ;;  %6938 = vmatpush1.bf16.msra.mxu1 %v13281_v1  ;;  %v13282_v39 = vld [vmem:[#allocation81_spill] sm:$0xff]  ;;  %v13283_v53 = vld [vmem:[#allocation71_spill] sm:$0xff]  ;;  %v13296_v1 = vld [vmem:[#allocation166_spill] sm:$0xff] }
 0x277   : > { %v10127_v30 = vpack.c.bf16 %v13279_v58, %v13278_v27  ;;  %v10138_v10 = vpack.c.bf16 %v4592_v33, %v4580_v44  ;;  %v10141_v59 = vpack.c.bf16 %v3326_v12, %v3314_v55  ;;  %v10143_v4 = vpack.c.bf16 %v4610_v32, %v4598_v36  ;;  %6940 = vmatprep.subr.bf16.mxu1 %v13283_v53  ;;  %v13286_v12 = vld [vmem:[#allocation86_spill] sm:$0xff]  ;;  %v13288_v50 = vld [vmem:[#allocation91_spill] sm:$0xff]  ;;  %v13289_v32 = vld [vmem:[#allocation97_spill] sm:$0xff] }
 0x278   : > { %v10145_v49 = vpack.c.bf16 %v3332_v8, %v3320_v17  ;;  %6558 = vmatpush1.bf16.msra.mxu0 %v13284_v20  ;;  %v4604_v48 = vand.u32 4294901760, %v4603_v57  ;;  %v4616_v22 = vand.u32 4294901760, %v4615_v38  ;;  %v3338_v0 = vand.u32 4294901760, %v3337_v24  ;;  %v13287_v17 = vld [vmem:[#allocation88_spill] sm:$0xff]  ;;  %v13290_v38 = vld [vmem:[#allocation94_spill] sm:$0xff]  ;;  %v13291_v27 = vld [vmem:[#allocation145_spill] sm:$0xff] }
 0x279   : > { %v13285_v44 = vand.u32 4294901760, %v13274_v11  ;;  %6560 = vmatprep.subr.bf16.mxu0 %v9653_v26  ;;  %v10157_v8 = vsub.f32 %v13280_v16, %v12069_v60  ;;  %v13293_v26 = vld [vmem:[#allocation87_spill] sm:$0xff]  ;;  %v13294_v20 = vand.u32 4294901760, %v13282_v39  ;;  %v13295_v53 = vld [vmem:[#allocation160_spill] sm:$0xff]  ;;  %v13299_v57 = vld [vmem:[#allocation113_spill] sm:$0xff]  ;;  %v13303_v61 = vand.u32 4294901760, %v13286_v12 }
 0x27a   : > { %6942 = vmatpush1.bf16.msra.mxu1 %v13293_v26  ;;  %v13298_v16 = vld [vmem:[#allocation107_spill] sm:$0xff]  ;;  %v10175_v24 = vpack.c.bf16 %v4616_v22, %v4604_v48  ;;  %v13301_v7 = vld [vmem:[#allocation170_spill] sm:$0xff]  ;;  %v13302_v26 = vld [vmem:[#allocation172_spill] sm:$0xff]  ;;  %v13304_v55 = vand.u32 4294901760, %v13287_v17  ;;  %v13305_v48 = vand.u32 4294901760, %v13288_v50  ;;  %v13307_v63 = vand.u32 4294901760, %v13290_v38 }
 0x27b   : > { %v3349_v33 = vsub.f32 %v13274_v11, %v13285_v44  ;;  %v13292_v44 = vld [vmem:[#allocation148_spill] sm:$0xff]  ;;  %v4633_v60 = vsub.f32 %v13282_v39, %v13294_v20  ;;  %6944 = vmatprep.subr.bf16.mxu1 %v13298_v16  ;;  %v4622_v20 = vand.u32 4294901760, %v10157_v8  ;;  %v3343_v36 = vsub.f32 %v13286_v12, %v13303_v61 }
 0x27c   : > { %6562 = vmatpush1.bf16.msra.mxu0 %v13299_v57  ;;  %13300 = vst [vmem:[#allocation212_spill] sm:$0xff] %v10175_v24  ;;  %v3355_v16 = vsub.f32 %v13287_v17, %v13304_v55  ;;  %v4627_v22 = vsub.f32 %v13288_v50, %v13305_v48  ;;  %v3361_v8 = vsub.f32 %v13290_v38, %v13307_v63  ;;  %v13309_v57 = vand.u32 4294901760, %v13292_v44  ;;  %v13313_v17 = vld [vmem:[#allocation175_spill] sm:$0xff] }
 0x27d   : > { %v3350_v58 = vand.u32 4294901760, %v3349_v33  ;;  %6564 = vmatprep.subr.bf16.mxu0 %v9681_v6  ;;  %v13306_v33 = vand.u32 4294901760, %v13289_v32  ;;  %v13308_v6 = vand.u32 4294901760, %v13291_v27  ;;  %v13310_v48 = vand.u32 4294901760, %v13295_v53 }
 0x27e   : > { %v4645_v55 = vsub.f32 %v13292_v44, %v13309_v57  ;;  %6946 = vmatpush1.bf16.msra.mxu1 %v9674_v35  ;;  %v13312_v63 = vand.u32 4294901760, %v13297_v52  ;;  %v4634_v35 = vand.u32 4294901760, %v4633_v60  ;;  %v13315_v44 = vand.u32 4294901760, %v13301_v7 }
 0x27f   : > { %v4639_v47 = vsub.f32 %v13289_v32, %v13306_v33  ;;  %v3373_v61 = vsub.f32 %v13291_v27, %v13308_v6  ;;  %v4657_v50 = vsub.f32 %v13295_v53, %v13310_v48  ;;  %v13311_v33 = vand.u32 4294901760, %v13296_v1  ;;  %v13314_v27 = vld [vmem:[#allocation143_spill] sm:$0xff] }
 0x280   : > { %v3379_v38 = vsub.f32 %v13297_v52, %v13312_v63  ;;  %6948 = vmatprep.subr.bf16.mxu1 %v13314_v27  ;;  %6566 = vmatpush1.bf16.msra.mxu0 %v9701_v34  ;;  %v10215_v57 = vpack.c.bf16 %v3350_v58, %v3338_v0  ;;  %v4651_v48 = vsub.f32 %v13301_v7, %v13315_v44  ;;  %v13316_v53 = vand.u32 4294901760, %v13302_v26 }
 0x281   : > { %v3367_v32 = vsub.f32 %v13296_v1, %v13311_v33  ;;  %6568 = vmatprep.subr.bf16.mxu0 %v9721_v18  ;;  %v3344_v63 = vand.u32 4294901760, %v3343_v36  ;;  %v3356_v52 = vand.u32 4294901760, %v3355_v16  ;;  %v4628_v6 = vand.u32 4294901760, %v4627_v22  ;;  %v13317_v1 = vld [vmem:[#allocation177_spill] sm:$0xff] }
 0x282   : > { %v4663_v33 = vsub.f32 %v13302_v26, %v13316_v53  ;;  %v12097_v27 = vand.u32 4294901760, %v13317_v1  ;;  %v4640_v12 = vand.u32 4294901760, %v4639_v47  ;;  %v3362_v34 = vand.u32 4294901760, %v3361_v8  ;;  %6950 = vmatpush1.bf16.msra.mxu1 %v9707_v62  ;;  %v13319_v47 = vld [vmem:[#allocation180_spill] sm:$0xff]  ;;  %v13320_v8 = vld [vmem:[#allocation181_spill] sm:$0xff]  ;;  %v13393_v26 = vld [vmem:[#allocation191_spill] sm:$0xff] }
 0x283   : > { %v3374_v0 = vand.u32 4294901760, %v3373_v61  ;;  %v4646_v58 = vand.u32 4294901760, %v4645_v55  ;;  %v4658_v60 = vand.u32 4294901760, %v4657_v50  ;;  %v3368_v39 = vand.u32 4294901760, %v3367_v32  ;;  %6952 = vmatprep.subr.bf16.mxu1 %v9725_v51  ;;  %v13321_v32 = vld [vmem:[#allocation184_spill] sm:$0xff]  ;;  %v13323_v51 = vld [vmem:[#allocation189_spill] sm:$0xff] }
 0x284   : > { %v3380_v44 = vand.u32 4294901760, %v3379_v38  ;;  %v13318_v11 = vand.u32 4294901760, %v13313_v17  ;;  %6570 = vmatpush1.bf16.msra.mxu0 %v9733_v31  ;;  %v4652_v16 = vand.u32 4294901760, %v4651_v48  ;;  %v4664_v36 = vand.u32 4294901760, %v4663_v33  ;;  %v13322_v38 = vld [vmem:[#allocation186_spill] sm:$0xff] }
 0x285   : > { %6572 = vmatprep.subr.bf16.mxu0 %v9857_v29  ;;  %v10239_v50 = vsub.f32 %v13317_v1, %v12097_v27  ;;  %v12101_v55 = vand.u32 4294901760, %v13322_v38  ;;  %v12100_v62 = vand.u32 4294901760, %v13323_v51  ;;  %v10244_v31 = vpack.c.bf16 %v4634_v35, %v4622_v20  ;;  %v13327_v61 = vld [vmem:[#allocation190_spill] sm:$0xff]  ;;  %v13328_v29 = vld [vmem:[#allocation209_spill] sm:$0xff] }
 0x286   : > { %v10229_v53 = vsub.f32 %v13313_v17, %v13318_v11  ;;  %v10246_v48 = vpack.c.bf16 %v3356_v52, %v3344_v63  ;;  %v10248_v33 = vpack.c.bf16 %v4640_v12, %v4628_v6  ;;  %v12105_v22 = vand.u32 4294901760, %v13327_v61  ;;  %6954 = vmatpush1.bf16.msra.mxu1 %v9743_v2  ;;  %v13342_v52 = vld [vmem:[#allocation11_spill] sm:$0xff]  ;;  %v13382_v1 = vld [vmem:[#allocation210_spill] sm:$0xff]  ;;  %v13391_v17 = vld [vmem:[#allocation176_spill] sm:$0xff] }
 0x287   : > { %13324 = vst [vmem:[#allocation213_spill] sm:$0xff] %v10244_v31  ;;  %3160 = vmatmul.mubr.f32.vlgmr.msra.gmra.mrb[2].mxu0 %v13328_v29  ;;  %v10253_v27 = vpack.c.bf16 %v3374_v0, %v3362_v34  ;;  %v10255_v18 = vpack.c.bf16 %v4658_v60, %v4646_v58  ;;  %v10257_v11 = vpack.c.bf16 %v3380_v44, %v3368_v39  ;;  %v13333_v12 = vand.u32 4294901760, %v13319_v47  ;;  %v13336_v58 = vld [vmem:[#allocation204_spill] sm:$0xff]  ;;  %v13337_v60 = vld [vmem:[#allocation193_spill] sm:$0xff]  ;;  %v13345_v44 = vld [vmem:[#allocation26_spill] sm:$0xff] }
 0x288   : > { %13325 = vst [vmem:[#allocation214_spill] sm:$0xff] %v10246_v48  ;;  %13326 = vst [vmem:[#allocation215_spill] sm:$0xff] %v10248_v33  ;;  %6956 = vmatprep.subr.bf16.mxu1 %v9859_v54  ;;  %6574 = vmatpush1.bf16.msra.mxu0 %v9863_v14  ;;  %v10261_v35 = vpack.c.bf16 %v4664_v36, %v4652_v16  ;;  %v13334_v34 = vand.u32 4294901760, %v13320_v8  ;;  %v13335_v14 = vand.u32 4294901760, %v13321_v32  ;;  %v13338_v16 = vld [vmem:[#allocation194_spill] sm:$0xff]  ;;  %v13344_v36 = vld [vmem:[#allocation24_spill] sm:$0xff] }
 0x289   : > { %13329 = vst [vmem:[#allocation209_spill] sm:$0xff] %v10253_v27  ;;  %13330 = vst [vmem:[#allocation216_spill] sm:$0xff] %v10255_v18  ;;  %v10267_v20 = vsub.f32 %v13319_v47, %v13333_v12  ;;  %6576 = vmatprep.subr.bf16.mxu0 %v9867_v23  ;;  %v10284_v63 = vsub.f32 %v13322_v38, %v12101_v55  ;;  %v10289_v0 = vsub.f32 %v13323_v51, %v12100_v62  ;;  %v13339_v12 = vld [vmem:[#allocation199_spill] sm:$0xff]  ;;  %v13357_v33 = vld [vmem:[#allocation38_spill] sm:$0xff] }
 0x28a   : > { %13331 = vst [vmem:[#allocation217_spill] sm:$0xff] %v10257_v11  ;;  %13332 = vst [vmem:[#allocation218_spill] sm:$0xff] %v10261_v35  ;;  %v10272_v6 = vsub.f32 %v13320_v8, %v13334_v34  ;;  %v10279_v39 = vsub.f32 %v13321_v32, %v13335_v14  ;;  %3551 = vmatprep.mubr.f32.mxu0 %v13336_v58  ;;  %4444 = vmatmul.mubr.f32.vlgmr.msra.gmra.mrb[2].mxu1 %v13328_v29  ;;  %v13340_v14 = vld [vmem:[#allocation200_spill] sm:$0xff]  ;;  %v13341_v55 = vld [vmem:[#allocation203_spill] sm:$0xff]  ;;  %v13401_v24 = vand.u32 4294901760, %v10229_v53 }
 0x28b   : > { %v10296_v23 = vsub.f32 %v13327_v61, %v12105_v22  ;;  %6958 = vmatpush1.bf16.msra.mxu1 %v9865_v56  ;;  %v13343_v29 = vld [vmem:[#allocation17_spill] sm:$0xff]  ;;  %4835 = vmatprep.mubr.f32.mxu1 %v13336_v58  ;;  %v13346_v58 = vld [vmem:[#allocation30_spill] sm:$0xff]  ;;  %v13347_v22 = vand.u32 4294901760, %v13337_v60  ;;  %v13348_v56 = vand.u32 4294901760, %v13338_v16  ;;  %v13350_v54 = vand.u32 4294901760, %v13340_v14  ;;  %v13366_v18 = vld [vmem:[#allocation68_spill] sm:$0xff] }
 0x28c   : > { %6960 = vmatprep.subr.bf16.mxu1 %v9869_v15  ;;  %6578 = vmatpush1.bf16.msra.mxu0 %v9871_v43  ;;  %v13359_v27 = vld [vmem:[#allocation41_spill] sm:$0xff]  ;;  %v13371_v51 = vld [vmem:[#allocation95_spill] sm:$0xff]  ;;  %v13377_v47 = vld [vmem:[#allocation116_spill] sm:$0xff] }
 0x28d   : > { %6580 = vmatprep.subr.bf16.mxu0 %v9992_v40  ;;  %v10322_v34 = vsub.f32 %v13337_v60, %v13347_v22  ;;  %v10327_v62 = vsub.f32 %v13338_v16, %v13348_v56  ;;  %v13349_v40 = vand.u32 4294901760, %v13339_v12  ;;  %v10338_v43 = vsub.f32 %v13340_v14, %v13350_v54  ;;  %v13376_v38 = vld [vmem:[#allocation119_spill] sm:$0xff]  ;;  %v13378_v8 = vld [vmem:[#allocation125_spill] sm:$0xff]  ;;  %v13389_v32 = vld [vmem:[#allocation164_spill] sm:$0xff] }
 0x28e   : > { %v13351_v22 = vand.u32 4294901760, %v13341_v55  ;;  %v13352_v56 = vand.u32 4294901760, %v13342_v52  ;;  %v13385_v31 = vld [vmem:[#allocation155_spill] sm:$0xff]  ;;  %v13387_v60 = vld [vmem:[#allocation161_spill] sm:$0xff]  ;;  %v13395_v14 = vld [vmem:[#allocation198_spill] sm:$0xff] }
 0x28f   : > { %v10332_v3 = vsub.f32 %v13339_v12, %v13349_v40  ;;  %6962 = vmatpush1.bf16.msra.mxu1 %v9873_v25  ;;  %v13353_v40 = vand.u32 4294901760, %v13343_v29  ;;  %v13354_v25 = vand.u32 4294901760, %v13344_v36  ;;  %v13361_v12 = vld [vmem:[#allocation54_spill] sm:$0xff]  ;;  %v13388_v61 = vld [vmem:[#allocation167_spill] sm:$0xff]  ;;  %v13390_v16 = vld [vmem:[#allocation173_spill] sm:$0xff] }
 0x290   : > { %v10343_v2 = vsub.f32 %v13341_v55, %v13351_v22  ;;  %v10348_v15 = vsub.f32 %v13342_v52, %v13352_v56  ;;  %6964 = vmatprep.subr.bf16.mxu1 %v9998_v21  ;;  %6582 = vmatpush1.bf16.msra.mxu0 %v10000_v45  ;;  %v13355_v22 = vand.u32 4294901760, %v13345_v44  ;;  %v13356_v56 = vld [vmem:[#allocation33_spill] sm:$0xff]  ;;  %v13358_v21 = vand.u32 4294901760, %v13346_v58  ;;  %v13363_v52 = vld [vmem:[#allocation63_spill] sm:$0xff] }
 0x291   : > { %v10353_v35 = vsub.f32 %v13343_v29, %v13353_v40  ;;  %v10360_v54 = vsub.f32 %v13344_v36, %v13354_v25  ;;  %6584 = vmatprep.subr.bf16.mxu0 %v10004_v9  ;;  %v13362_v40 = vld [vmem:[#allocation59_spill] sm:$0xff]  ;;  %v13396_v25 = vld [vmem:[#allocation201_spill] sm:$0xff]  ;;  %v3410_v55 = vand.u32 4294901760, %v10322_v34  ;;  %v3422_v29 = vand.u32 4294901760, %v10327_v62 }
 0x292   : > { %v10365_v11 = vsub.f32 %v13345_v44, %v13355_v22  ;;  %v10373_v45 = vsub.f32 %v13346_v58, %v13358_v21  ;;  %v13364_v22 = vld [vmem:[#allocation65_spill] sm:$0xff]  ;;  %v13365_v36 = vld [vmem:[#allocation211_spill] sm:$0xff]  ;;  %v13394_v21 = vld [vmem:[#allocation188_spill] sm:$0xff]  ;;  %v3416_v7 = vand.u32 4294901760, %v10343_v2  ;;  %v3428_v9 = vand.u32 4294901760, %v10348_v15 }
 0x293   : > { %6966 = vmatpush1.bf16.msra.mxu1 %v10002_v41  ;;  %v13360_v41 = vld [vmem:[#allocation44_spill] sm:$0xff]  ;;  %v13367_v44 = vld [vmem:[#allocation75_spill] sm:$0xff]  ;;  %v4712_v48 = vand.u32 4294901760, %v10360_v54  ;;  %v13398_v62 = vand.u32 4294901760, %v13357_v33  ;;  %v13399_v15 = vand.u32 4294901760, %v13359_v27 }
 0x294   : > { %6968 = vmatprep.subr.bf16.mxu1 %v10006_v28  ;;  %6586 = vmatpush1.bf16.msra.mxu0 %v10008_v42  ;;  %v13368_v58 = vld [vmem:[#allocation83_spill] sm:$0xff]  ;;  %v13369_v28 = vld [vmem:[#allocation80_spill] sm:$0xff]  ;;  %v13370_v42 = vld [vmem:[#allocation89_spill] sm:$0xff] }
 0x295   : > { %6588 = vmatprep.subr.bf16.mxu0 %v13365_v36  ;;  %v13379_v36 = vld [vmem:[#allocation131_spill] sm:$0xff]  ;;  %v3439_v54 = vsub.f32 %v13359_v27, %v13399_v15  ;;  %v13406_v15 = vand.u32 4294901760, %v10284_v63 }
 0x297   : > { %6970 = vmatpush1.bf16.msra.mxu1 %v13382_v1  ;;  %v4700_v1 = vand.u32 4294901760, %v10353_v35  ;;  %v3434_v35 = vand.u32 4294901760, %v10365_v11  ;;  %v13404_v11 = vand.u32 4294901760, %v10272_v6 }
 0x298   : > { %6972 = vmatprep.subr.bf16.mxu1 %v10121_v5  ;;  %6590 = vmatpush1.bf16.msra.mxu0 %v10127_v30  ;;  %v4694_v5 = vand.u32 4294901760, %v10332_v3  ;;  %v4706_v30 = vand.u32 4294901760, %v10338_v43  ;;  %v4729_v3 = vsub.f32 %v13357_v33, %v13398_v62  ;;  %v13405_v43 = vand.u32 4294901760, %v10279_v39 }
 0x299   : > { %6592 = vmatprep.subr.bf16.mxu0 %v10132_v37  ;;  %v13397_v37 = vand.u32 4294901760, %v13356_v56  ;;  %v10499_v6 = vpack.c.bf16 %v4712_v48, %v4700_v1  ;;  %v12128_v1 = vand.u32 4294901760, %v13367_v44 }
 0x29a   : > { %v10485_v27 = vpack.c.bf16 %v13406_v15, %v13405_v43  ;;  %v4730_v63 = vand.u32 4294901760, %v4729_v3  ;;  %v13409_v43 = vand.u32 4294901760, %v13361_v12  ;;  %v13415_v15 = vld [vmem:[#allocation214_spill] sm:$0xff]  ;;  %v13417_v3 = vld [vmem:[#allocation111_spill] sm:$0xff] }
 0x29b   : > { %6974 = vmatpush1.bf16.msra.mxu1 %v10129_v13  ;;  %v4717_v34 = vsub.f32 %v13356_v56, %v13397_v37  ;;  %v3446_v13 = vand.u32 4294901760, %v10373_v45  ;;  %v13400_v37 = vand.u32 4294901760, %v13360_v41 }
 0x29c   : > { %6976 = vmatprep.subr.bf16.mxu1 %v10134_v46  ;;  %6594 = vmatpush1.bf16.msra.mxu0 %v10136_v19  ;;  %v13402_v46 = vand.u32 4294901760, %v10239_v50  ;;  %v13403_v19 = vand.u32 4294901760, %v10267_v20  ;;  %v10493_v50 = vpack.c.bf16 %v3422_v29, %v3410_v55  ;;  %v10497_v20 = vpack.c.bf16 %v3428_v9, %v3416_v7 }
 0x29d   : > { %v3451_v62 = vsub.f32 %v13360_v41, %v13400_v37  ;;  %6596 = vmatprep.subr.bf16.mxu0 %v10141_v59  ;;  %v13407_v37 = vand.u32 4294901760, %v10289_v0  ;;  %v13408_v59 = vand.u32 4294901760, %v10296_v23  ;;  %v4718_v39 = vand.u32 4294901760, %v4717_v34  ;;  %v13411_v34 = vld [vmem:[#allocation99_spill] sm:$0xff] }
 0x29e   : > { %v6607_v2 = vpack.c.bf16 %v13402_v46, %v13401_v24  ;;  %v10479_v45 = vpack.c.bf16 %v13404_v11, %v13403_v19  ;;  %v10495_v24 = vpack.c.bf16 %v4706_v30, %v4694_v5  ;;  %v4723_v0 = vsub.f32 %v13361_v12, %v13409_v43  ;;  %v13414_v11 = vld [vmem:[#allocation213_spill] sm:$0xff]  ;;  %v13416_v43 = vld [vmem:[#allocation104_spill] sm:$0xff] }
 0x29f   : > { %v10491_v53 = vpack.c.bf16 %v13408_v59, %v13407_v37  ;;  %6978 = vmatpush1.bf16.msra.mxu1 %v10138_v10  ;;  %v13410_v23 = vand.u32 4294901760, %v13362_v40  ;;  %v10510_v7 = vpack.c.bf16 %v3446_v13, %v3434_v35  ;;  %v3440_v55 = vand.u32 4294901760, %v3439_v54  ;;  %v13412_v35 = vld [vmem:[#allocation212_spill] sm:$0xff] }
 0x2a0   : > { %6980 = vmatprep.subr.bf16.mxu1 %v10143_v4  ;;  %6598 = vmatpush1.bf16.msra.mxu0 %v10145_v49  ;;  %v3452_v48 = vand.u32 4294901760, %v3451_v62  ;;  %v12134_v10 = vand.u32 4294901760, %v13363_v52  ;;  %v12130_v29 = vand.u32 4294901760, %v13364_v22  ;;  %v12129_v9 = vand.u32 4294901760, %v13366_v18  ;;  %v13413_v62 = vld [vmem:[#allocation101_spill] sm:$0xff] }
 0x2a1   : > { %v4735_v46 = vsub.f32 %v13362_v40, %v13410_v23  ;;  %6600 = vmatprep.subr.bf16.mxu0 %v10215_v57  ;;  %v12132_v5 = vand.u32 4294901760, %v13368_v58  ;;  %v12131_v4 = vand.u32 4294901760, %v13369_v28  ;;  %v12133_v49 = vand.u32 4294901760, %v13370_v42 }
 0x2a2   : > { %v12135_v30 = vand.u32 4294901760, %v13371_v51  ;;  %v10523_v13 = vpack.c.bf16 %v4730_v63, %v4718_v39  ;;  %v4724_v57 = vand.u32 4294901760, %v4723_v0  ;;  %v12136_v19 = vand.u32 4294901760, %v13413_v62  ;;  %v13418_v39 = vld [vmem:[#allocation209_spill] sm:$0xff] }
 0x2a3   : > { %6982 = vmatpush1.bf16.msra.mxu1 %v13412_v35  ;;  %v4736_v54 = vand.u32 4294901760, %v4735_v46  ;;  %v10528_v37 = vpack.c.bf16 %v3452_v48, %v3440_v55  ;;  %v3457_v59 = vsub.f32 %v13363_v52, %v12134_v10  ;;  %v12141_v23 = vand.u32 4294901760, %v13416_v43  ;;  %v13421_v10 = vld [vmem:[#allocation216_spill] sm:$0xff]  ;;  %v13422_v35 = vld [vmem:[#allocation217_spill] sm:$0xff] }
 0x2a4   : > { %6984 = vmatprep.subr.bf16.mxu1 %v13414_v11  ;;  %6602 = vmatpush1.bf16.msra.mxu0 %v13415_v15  ;;  %v3469_v63 = vsub.f32 %v13364_v22, %v12130_v29  ;;  %v4741_v0 = vsub.f32 %v13366_v18, %v12129_v9  ;;  %v4753_v46 = vsub.f32 %v13367_v44, %v12128_v1  ;;  %v13420_v9 = vld [vmem:[#allocation215_spill] sm:$0xff] }
 0x2a5   : > { %6604 = vmatprep.subr.bf16.mxu0 %v13418_v39  ;;  %v3463_v55 = vsub.f32 %v13368_v58, %v12132_v5  ;;  %v3475_v48 = vsub.f32 %v13369_v28, %v12131_v4  ;;  %v4747_v11 = vsub.f32 %v13370_v42, %v12133_v49  ;;  %v4759_v15 = vsub.f32 %v13371_v51, %v12135_v30 }
 0x2a6   : > { %v13419_v39 = vand.u32 4294901760, %v13411_v34  ;;  %v10561_v29 = vpack.c.bf16 %v4736_v54, %v4724_v57  ;;  %v3493_v4 = vsub.f32 %v13413_v62, %v12136_v19  ;;  %v3458_v30 = vand.u32 4294901760, %v3457_v59  ;;  %v13424_v59 = vld [vmem:[#allocation218_spill] sm:$0xff] }
 0x2a7   : > { %6986 = vmatpush1.bf16.msra.mxu1 %v13420_v9  ;;  %v13423_v9 = vand.u32 4294901760, %v13417_v3  ;;  %v3470_v19 = vand.u32 4294901760, %v3469_v63  ;;  %v4742_v5 = vand.u32 4294901760, %v4741_v0  ;;  %v4754_v42 = vand.u32 4294901760, %v4753_v46  ;;  %v13428_v46 = vld [vmem:[#allocation135_spill] sm:$0xff] }
 0x2a8   : > { %v3481_v1 = vsub.f32 %v13411_v34, %v13419_v39  ;;  %6988 = vmatprep.subr.bf16.mxu1 %v13421_v10  ;;  %6606 = vmatpush1.bf16.msra.mxu0 %v13422_v35  ;;  %v4765_v39 = vsub.f32 %v13416_v43, %v12141_v23  ;;  %v3464_v49 = vand.u32 4294901760, %v3463_v55  ;;  %v3476_v51 = vand.u32 4294901760, %v3475_v48 }
 0x2a9   : > { %v4777_v57 = vsub.f32 %v13417_v3, %v13423_v9  ;;  %6608 = vmatprep.subr.bf16.mxu0 %v6607_v2  ;;  %v4748_v10 = vand.u32 4294901760, %v4747_v11  ;;  %v4760_v34 = vand.u32 4294901760, %v4759_v15  ;;  %v3494_v62 = vand.u32 4294901760, %v3493_v4  ;;  %v13429_v11 = vld [vmem:[#allocation137_spill] sm:$0xff]  ;;  %v13431_v2 = vld [vmem:[#allocation147_spill] sm:$0xff] }
 0x2aa   : > { %v3482_v35 = vand.u32 4294901760, %v3481_v1  ;;  %v13425_v23 = vand.u32 4294901760, %v13376_v38  ;;  %v13426_v9 = vand.u32 4294901760, %v13377_v47  ;;  %v4766_v63 = vand.u32 4294901760, %v4765_v39 }
 0x2ab   : > { %6990 = vmatpush1.bf16.msra.mxu1 %v13424_v59  ;;  %v4778_v0 = vand.u32 4294901760, %v4777_v57  ;;  %v13427_v1 = vand.u32 4294901760, %v13378_v8  ;;  %v7003_v48 = vpack.c.bf16 %v4754_v42, %v4742_v5  ;;  %v12159_v15 = vand.u32 4294901760, %v13429_v11  ;;  %v13430_v59 = vld [vmem:[#allocation140_spill] sm:$0xff] }
 0x2ac   : > { %v3487_v43 = vsub.f32 %v13376_v38, %v13425_v23  ;;  %v3499_v54 = vsub.f32 %v13377_v47, %v13426_v9  ;;  %6992 = vmatprep.subr.bf16.mxu1 %v10479_v45  ;;  %6610 = vmatpush1.bf16.msra.mxu0 %v10485_v27  ;;  %v6619_v23 = vpack.c.bf16 %v3470_v19, %v3458_v30  ;;  %v12153_v9 = vand.u32 4294901760, %v13430_v59  ;;  %v13432_v57 = vld [vmem:[#allocation152_spill] sm:$0xff] }
 0x2ad   : > { %v10590_v4 = vsub.f32 %v13378_v8, %v13427_v1  ;;  %6612 = vmatprep.subr.bf16.mxu0 %v10493_v50  ;;  %v6621_v45 = vpack.c.bf16 %v3476_v51, %v3464_v49  ;;  %v12147_v27 = vand.u32 4294901760, %v13431_v2  ;;  %v12145_v39 = vand.u32 4294901760, %v13385_v31 }
 0x2ae   : > { %v12146_v38 = vand.u32 4294901760, %v13432_v57  ;;  %v7005_v1 = vpack.c.bf16 %v4760_v34, %v4748_v10  ;;  %v3488_v8 = vand.u32 4294901760, %v3487_v43  ;;  %v3500_v55 = vand.u32 4294901760, %v3499_v54 }
 0x2af   : > { %6994 = vmatpush1.bf16.msra.mxu1 %v10491_v53  ;;  %v13433_v50 = vand.u32 4294901760, %v13379_v36  ;;  %v6623_v51 = vpack.c.bf16 %v3494_v62, %v3482_v35  ;;  %v7007_v5 = vpack.c.bf16 %v4778_v0, %v4766_v63  ;;  %v4772_v49 = vand.u32 4294901760, %v10590_v4 }
 0x2b0   : > { %6996 = vmatprep.subr.bf16.mxu1 %v10495_v24  ;;  %6614 = vmatpush1.bf16.msra.mxu0 %v10497_v20  ;;  %v13434_v30 = vand.u32 4294901760, %v13428_v46  ;;  %v3517_v53 = vsub.f32 %v13429_v11, %v12159_v15  ;;  %v4789_v24 = vsub.f32 %v13430_v59, %v12153_v9  ;;  %v12152_v20 = vand.u32 4294901760, %v13389_v32 }
 0x2b1   : > { %v4783_v42 = vsub.f32 %v13379_v36, %v13433_v50  ;;  %6616 = vmatprep.subr.bf16.mxu0 %v10510_v7  ;;  %v12151_v34 = vand.u32 4294901760, %v13390_v16  ;;  %v4801_v62 = vsub.f32 %v13431_v2, %v12147_v27  ;;  %v3511_v7 = vsub.f32 %v13385_v31, %v12145_v39  ;;  %v13435_v50 = vld [vmem:[#allocation183_spill] sm:$0xff] }
 0x2b2   : > { %v3505_v19 = vsub.f32 %v13428_v46, %v13434_v30  ;;  %v3523_v43 = vsub.f32 %v13432_v57, %v12146_v38  ;;  %v12150_v54 = vand.u32 4294901760, %v13387_v60  ;;  %v6625_v10 = vpack.c.bf16 %v3500_v55, %v3488_v8 }
 0x2b3   : > { %6998 = vmatpush1.bf16.msra.mxu1 %v10499_v6  ;;  %v4784_v35 = vand.u32 4294901760, %v4783_v42  ;;  %v12149_v63 = vand.u32 4294901760, %v13388_v61  ;;  %v12148_v0 = vand.u32 4294901760, %v13391_v17  ;;  %v12154_v30 = vand.u32 4294901760, %v13435_v50 }
 0x2b4   : > { %7000 = vmatprep.subr.bf16.mxu1 %v10523_v13  ;;  %6618 = vmatpush1.bf16.msra.mxu0 %v10528_v37  ;;  %v3506_v4 = vand.u32 4294901760, %v3505_v19  ;;  %v12155_v39 = vand.u32 4294901760, %v13393_v26  ;;  %v12158_v38 = vand.u32 4294901760, %v13394_v21  ;;  %v3518_v27 = vand.u32 4294901760, %v3517_v53 }
 0x2b5   : > { %6620 = vmatprep.subr.bf16.mxu0 %v6619_v23  ;;  %v4790_v6 = vand.u32 4294901760, %v4789_v24  ;;  %v3529_v8 = vsub.f32 %v13389_v32, %v12152_v20  ;;  %v3541_v13 = vsub.f32 %v13390_v16, %v12151_v34  ;;  %v4802_v55 = vand.u32 4294901760, %v4801_v62 }
 0x2b6   : > { %v3512_v37 = vand.u32 4294901760, %v3511_v7  ;;  %v3524_v42 = vand.u32 4294901760, %v3523_v43  ;;  %v4795_v19 = vsub.f32 %v13387_v60, %v12150_v54  ;;  %v4807_v23 = vsub.f32 %v13388_v61, %v12149_v63 }
 0x2b7   : > { %7002 = vmatpush1.bf16.msra.mxu1 %v10561_v29  ;;  %v4813_v53 = vsub.f32 %v13391_v17, %v12148_v0  ;;  %v12157_v24 = vand.u32 4294901760, %v13395_v14  ;;  %v12156_v62 = vand.u32 4294901760, %v13396_v25  ;;  %v4825_v7 = vsub.f32 %v13435_v50, %v12154_v30 }
 0x2b8   : > { %7004 = vmatprep.subr.bf16.mxu1 %v7003_v48  ;;  %6622 = vmatpush1.bf16.msra.mxu0 %v6621_v45  ;;  %v3535_v29 = vsub.f32 %v13393_v26, %v12155_v39  ;;  %v3547_v43 = vsub.f32 %v13394_v21, %v12158_v38  ;;  %v6627_v0 = vpack.c.bf16 %v3518_v27, %v3506_v4  ;;  %v3530_v63 = vand.u32 4294901760, %v3529_v8  ;;  %v13461_v38 = vld [vmem:[#allocation153_spill] sm:$0xff] }
 0x2b9   : > { %6624 = vmatprep.subr.bf16.mxu0 %v6623_v51  ;;  %v3542_v54 = vand.u32 4294901760, %v3541_v13  ;;  %v7009_v34 = vpack.c.bf16 %v4784_v35, %v4772_v49  ;;  %v7011_v20 = vpack.c.bf16 %v4802_v55, %v4790_v6  ;;  %v6629_v48 = vpack.c.bf16 %v3524_v42, %v3512_v37  ;;  %v13436_v37 = vld [vmem:[#allocation115_spill] sm:$0xff]  ;;  %v13437_v42 = vld [vmem:[#allocation117_spill] sm:$0xff] }
 0x2ba   : > { %v4796_v45 = vand.u32 4294901760, %v4795_v19  ;;  %v4808_v9 = vand.u32 4294901760, %v4807_v23  ;;  %v4819_v30 = vsub.f32 %v13395_v14, %v12157_v24  ;;  %v4831_v39 = vsub.f32 %v13396_v25, %v12156_v62  ;;  %v13439_v23 = vld [vmem:[#allocation122_spill] sm:$0xff] }
 0x2bb   : > { %7006 = vmatpush1.bf16.msra.mxu1 %v7005_v1  ;;  %v4814_v51 = vand.u32 4294901760, %v4813_v53  ;;  %v4826_v27 = vand.u32 4294901760, %v4825_v7  ;;  %v3536_v4 = vand.u32 4294901760, %v3535_v29  ;;  %v3548_v8 = vand.u32 4294901760, %v3547_v43  ;;  %v13445_v53 = vld [vmem:[#allocation129_spill] sm:$0xff]  ;;  %v13446_v7 = vld [vmem:[#allocation130_spill] sm:$0xff] }
 0x2bc   : > { %7008 = vmatprep.subr.bf16.mxu1 %v7007_v5  ;;  %6626 = vmatpush1.bf16.msra.mxu0 %v6625_v10  ;;  %v6631_v49 = vpack.c.bf16 %v3542_v54, %v3530_v63  ;;  %v7013_v1 = vpack.c.bf16 %v4808_v9, %v4796_v45  ;;  %v4820_v35 = vand.u32 4294901760, %v4819_v30  ;;  %v4832_v6 = vand.u32 4294901760, %v4831_v39  ;;  %v13438_v10 = vld [vmem:[#allocation121_spill] sm:$0xff]  ;;  %v13440_v54 = vld [vmem:[#allocation124_spill] sm:$0xff]  ;;  %v13444_v30 = vld [vmem:[#allocation195_spill] sm:$0xff] }
 0x2bd   : > { %6628 = vmatprep.subr.bf16.mxu0 %v6627_v0  ;;  %v7015_v13 = vpack.c.bf16 %v4826_v27, %v4814_v51  ;;  %v6633_v55 = vpack.c.bf16 %v3548_v8, %v3536_v4  ;;  %v6635_v19 = vpack.c.bf16 %v13437_v42, %v13436_v37  ;;  %v7019_v0 = vpack.c.bf16 %v13439_v23, %v13438_v10  ;;  %v13442_v39 = vld [vmem:[#allocation132_spill] sm:$0xff]  ;;  %v13447_v43 = vld [vmem:[#allocation138_spill] sm:$0xff]  ;;  %v13449_v51 = vld [vmem:[#allocation151_spill] sm:$0xff] }
 0x2be   : > { %v7017_v5 = vpack.c.bf16 %v4832_v6, %v4820_v35  ;;  %v7021_v29 = vpack.c.bf16 %v13446_v7, %v13445_v53  ;;  %v13450_v27 = vld [vmem:[#allocation156_spill] sm:$0xff]  ;;  %v13451_v8 = vld [vmem:[#allocation98_spill] sm:$0xff] }
 0x2bf   : > { %7010 = vmatpush1.bf16.msra.mxu1 %v7009_v34  ;;  %v13441_v34 = vld [vmem:[#allocation126_spill] sm:$0xff]  ;;  %v6641_v4 = vpack.c.bf16 %v13450_v27, %v13449_v51 }
 0x2c0   : > { %7012 = vmatprep.subr.bf16.mxu1 %v7011_v20  ;;  %6630 = vmatpush1.bf16.msra.mxu0 %v6629_v48  ;;  %v6637_v9 = vpack.c.bf16 %v13441_v34, %v13440_v54  ;;  %v13443_v20 = vld [vmem:[#allocation134_spill] sm:$0xff]  ;;  %v13448_v48 = vld [vmem:[#allocation141_spill] sm:$0xff] }
 0x2c1   : > { %6632 = vmatprep.subr.bf16.mxu0 %v6631_v49  ;;  %v6639_v63 = vpack.c.bf16 %v13443_v20, %v13442_v39  ;;  %v7023_v45 = vpack.c.bf16 %v13448_v48, %v13447_v43  ;;  %v13452_v49 = vld [vmem:[#allocation100_spill] sm:$0xff]  ;;  %v13453_v35 = vld [vmem:[#allocation206_spill] sm:$0xff] }
 0x2c2   : > { %v13454_v6 = vld [vmem:[#allocation158_spill] sm:$0xff] }
 0x2c3   : > { %7014 = vmatpush1.bf16.msra.mxu1 %v7013_v1  ;;  %v6643_v1 = vpack.c.bf16 %v13452_v49, %v13451_v8  ;;  %v13460_v24 = vld [vmem:[#allocation154_spill] sm:$0xff] }
 0x2c4   : > { %7016 = vmatprep.subr.bf16.mxu1 %v7015_v13  ;;  %6634 = vmatpush1.bf16.msra.mxu0 %v6633_v55  ;;  %v13455_v13 = vld [vmem:[#allocation96_spill] sm:$0xff]  ;;  %v6647_v15 = vpack.c.bf16 %v13461_v38, %v13460_v24 }
 0x2c5   : > { %6636 = vmatprep.subr.bf16.mxu0 %v6635_v19  ;;  %v7025_v55 = vpack.c.bf16 %v13455_v13, %v13454_v6  ;;  %v13456_v19 = vld [vmem:[#allocation103_spill] sm:$0xff]  ;;  %v13464_v13 = vld [vmem:[#allocation162_spill] sm:$0xff]  ;;  %v13467_v6 = vld [vmem:[#allocation16_spill] sm:$0xff] }
 0x2c7   : > { %7018 = vmatpush1.bf16.msra.mxu1 %v7017_v5  ;;  %3553 = vmatmul.mubr.f32.vlgmr.msra.gmra.mrb[2].mxu0 %v13444_v30  ;;  %v13457_v5 = vld [vmem:[#allocation108_spill] sm:$0xff] }
 0x2c8   : > { %7020 = vmatprep.subr.bf16.mxu1 %v7019_v0  ;;  %6638 = vmatpush1.bf16.msra.mxu0 %v6637_v9  ;;  %v7027_v0 = vpack.c.bf16 %v13457_v5, %v13456_v19  ;;  %v13458_v9 = vld [vmem:[#allocation105_spill] sm:$0xff]  ;;  %v13469_v19 = vld [vmem:[#allocation22_spill] sm:$0xff] }
 0x2c9   : > { %6640 = vmatprep.subr.bf16.mxu0 %v6639_v63  ;;  %3753 = vmatprep.mubr.f32.mxu0 %v13453_v35  ;;  %v13459_v63 = vld [vmem:[#allocation106_spill] sm:$0xff]  ;;  %v13468_v5 = vld [vmem:[#allocation21_spill] sm:$0xff] }
 0x2ca   : > { %4837 = vmatmul.mubr.f32.vlgmr.msra.gmra.mrb[2].mxu1 %v13444_v30  ;;  %v6645_v62 = vpack.c.bf16 %v13459_v63, %v13458_v9  ;;  %v13462_v30 = vld [vmem:[#allocation110_spill] sm:$0xff]  ;;  %v6651_v63 = vpack.c.bf16 %v13469_v19, %v13468_v5  ;;  %v13471_v9 = vld [vmem:[#allocation23_spill] sm:$0xff] }
 0x2cb   : > { %7022 = vmatpush1.bf16.msra.mxu1 %v7021_v29  ;;  %5037 = vmatprep.mubr.f32.mxu1 %v13453_v35  ;;  %v13463_v29 = vld [vmem:[#allocation146_spill] sm:$0xff]  ;;  %v13465_v35 = vld [vmem:[#allocation12_spill] sm:$0xff] }
 0x2cc   : > { %7024 = vmatprep.subr.bf16.mxu1 %v7023_v45  ;;  %6642 = vmatpush1.bf16.msra.mxu0 %v6641_v4  ;;  %v7029_v49 = vpack.c.bf16 %v13463_v29, %v13462_v30  ;;  %v7031_v45 = vpack.c.bf16 %v13465_v35, %v13464_v13  ;;  %v13466_v4 = vld [vmem:[#allocation14_spill] sm:$0xff]  ;;  %v13473_v29 = vld [vmem:[#allocation29_spill] sm:$0xff]  ;;  %v13477_v13 = vld [vmem:[#allocation43_spill] sm:$0xff] }
 0x2cd   : > { %6644 = vmatprep.subr.bf16.mxu0 %v6643_v1  ;;  %v6649_v8 = vpack.c.bf16 %v13467_v6, %v13466_v4  ;;  %v13470_v1 = vld [vmem:[#allocation19_spill] sm:$0xff]  ;;  %v13475_v30 = vld [vmem:[#allocation37_spill] sm:$0xff]  ;;  %v13476_v35 = vld [vmem:[#allocation42_spill] sm:$0xff] }
 0x2ce   : > { %v7033_v38 = vpack.c.bf16 %v13471_v9, %v13470_v1  ;;  %v6655_v6 = vpack.c.bf16 %v13477_v13, %v13476_v35  ;;  %v13479_v4 = vld [vmem:[#allocation39_spill] sm:$0xff]  ;;  %v13481_v9 = vld [vmem:[#allocation45_spill] sm:$0xff]  ;;  %v13483_v1 = vld [vmem:[#allocation52_spill] sm:$0xff] }
 0x2cf   : > { %7026 = vmatpush1.bf16.msra.mxu1 %v7025_v55  ;;  %v13472_v55 = vld [vmem:[#allocation28_spill] sm:$0xff] }
 0x2d0   : > { %7028 = vmatprep.subr.bf16.mxu1 %v7027_v0  ;;  %6646 = vmatpush1.bf16.msra.mxu0 %v6645_v62  ;;  %v7035_v0 = vpack.c.bf16 %v13473_v29, %v13472_v55  ;;  %v13474_v62 = vld [vmem:[#allocation36_spill] sm:$0xff]  ;;  %v13484_v29 = vld [vmem:[#allocation57_spill] sm:$0xff]  ;;  %v13485_v55 = vld [vmem:[#allocation58_spill] sm:$0xff] }
 0x2d1   : > { %6648 = vmatprep.subr.bf16.mxu0 %v6647_v15  ;;  %v6653_v24 = vpack.c.bf16 %v13475_v30, %v13474_v62  ;;  %v13478_v15 = vld [vmem:[#allocation34_spill] sm:$0xff]  ;;  %v6659_v30 = vpack.c.bf16 %v13485_v55, %v13484_v29  ;;  %v13487_v62 = vld [vmem:[#allocation60_spill] sm:$0xff] }
 0x2d2   : > { %v7037_v19 = vpack.c.bf16 %v13479_v4, %v13478_v15  ;;  %v13489_v4 = vld [vmem:[#allocation66_spill] sm:$0xff]  ;;  %v13491_v15 = vld [vmem:[#allocation73_spill] sm:$0xff] }
 0x2d3   : > { %7030 = vmatpush1.bf16.msra.mxu1 %v7029_v49  ;;  %v13480_v49 = vld [vmem:[#allocation49_spill] sm:$0xff] }
 0x2d4   : > { %7032 = vmatprep.subr.bf16.mxu1 %v7031_v45  ;;  %6650 = vmatpush1.bf16.msra.mxu0 %v6649_v8  ;;  %v7039_v45 = vpack.c.bf16 %v13481_v9, %v13480_v49  ;;  %v13482_v8 = vld [vmem:[#allocation51_spill] sm:$0xff]  ;;  %v13492_v9 = vld [vmem:[#allocation76_spill] sm:$0xff] }
 0x2d5   : > { %6652 = vmatprep.subr.bf16.mxu0 %v6651_v63  ;;  %v6657_v5 = vpack.c.bf16 %v13483_v1, %v13482_v8  ;;  %v13486_v63 = vld [vmem:[#allocation55_spill] sm:$0xff]  ;;  %v13495_v8 = vld [vmem:[#allocation74_spill] sm:$0xff] }
 0x2d6   : > { %v7041_v13 = vpack.c.bf16 %v13487_v62, %v13486_v63  ;;  %v13493_v49 = vld [vmem:[#allocation79_spill] sm:$0xff]  ;;  %v13497_v62 = vld [vmem:[#allocation81_spill] sm:$0xff]  ;;  %v13499_v63 = vld [vmem:[#allocation88_spill] sm:$0xff] }
 0x2d7   : > { %7034 = vmatpush1.bf16.msra.mxu1 %v7033_v38  ;;  %v13488_v38 = vld [vmem:[#allocation64_spill] sm:$0xff]  ;;  %v6663_v1 = vpack.c.bf16 %v13493_v49, %v13492_v9 }
 0x2d8   : > { %7036 = vmatprep.subr.bf16.mxu1 %v7035_v0  ;;  %6654 = vmatpush1.bf16.msra.mxu0 %v6653_v24  ;;  %v7043_v0 = vpack.c.bf16 %v13489_v4, %v13488_v38  ;;  %v13490_v24 = vld [vmem:[#allocation72_spill] sm:$0xff]  ;;  %v13500_v4 = vld [vmem:[#allocation94_spill] sm:$0xff]  ;;  %v13501_v38 = vld [vmem:[#allocation145_spill] sm:$0xff] }
 0x2d9   : > { %6656 = vmatprep.subr.bf16.mxu0 %v6655_v6  ;;  %v6661_v35 = vpack.c.bf16 %v13491_v15, %v13490_v24  ;;  %v13494_v6 = vld [vmem:[#allocation70_spill] sm:$0xff]  ;;  %v6667_v15 = vpack.c.bf16 %v13501_v38, %v13500_v4  ;;  %v13503_v24 = vld [vmem:[#allocation97_spill] sm:$0xff] }
 0x2da   : > { %v7045_v55 = vpack.c.bf16 %v13495_v8, %v13494_v6  ;;  %v13505_v8 = vld [vmem:[#allocation160_spill] sm:$0xff]  ;;  %v13512_v38 = vld [vmem:[#allocation170_spill] sm:$0xff] }
 0x2db   : > { %7038 = vmatpush1.bf16.msra.mxu1 %v7037_v19  ;;  %v13496_v19 = vld [vmem:[#allocation85_spill] sm:$0xff]  ;;  %v13507_v6 = vld [vmem:[#allocation168_spill] sm:$0xff] }
 0x2dc   : > { %7040 = vmatprep.subr.bf16.mxu1 %v7039_v45  ;;  %6658 = vmatpush1.bf16.msra.mxu0 %v6657_v5  ;;  %v7047_v45 = vpack.c.bf16 %v13497_v62, %v13496_v19  ;;  %v13498_v5 = vld [vmem:[#allocation86_spill] sm:$0xff] }
 0x2dd   : > { %6660 = vmatprep.subr.bf16.mxu0 %v6659_v30  ;;  %v6665_v29 = vpack.c.bf16 %v13499_v63, %v13498_v5  ;;  %v13502_v30 = vld [vmem:[#allocation91_spill] sm:$0xff] }
 0x2de   : > { %v7049_v49 = vpack.c.bf16 %v13503_v24, %v13502_v30  ;;  %v13509_v63 = vld [vmem:[#allocation175_spill] sm:$0xff] }
 0x2df   : > { %7042 = vmatpush1.bf16.msra.mxu1 %v7041_v13  ;;  %v13504_v13 = vld [vmem:[#allocation148_spill] sm:$0xff] }
 0x2e0   : > { %7044 = vmatprep.subr.bf16.mxu1 %v7043_v0  ;;  %6662 = vmatpush1.bf16.msra.mxu0 %v6661_v35  ;;  %v7051_v0 = vpack.c.bf16 %v13505_v8, %v13504_v13  ;;  %v13506_v35 = vld [vmem:[#allocation166_spill] sm:$0xff]  ;;  %v13518_v13 = vld [vmem:[#allocation184_spill] sm:$0xff] }
 0x2e1   : > { %6664 = vmatprep.subr.bf16.mxu0 %v6663_v1  ;;  %v6669_v9 = vpack.c.bf16 %v13507_v6, %v13506_v35  ;;  %v13508_v1 = vld [vmem:[#allocation177_spill] sm:$0xff]  ;;  %v13517_v8 = vld [vmem:[#allocation186_spill] sm:$0xff] }
 0x2e2   : > { %v13510_v5 = vpack.c.bf16 %v13508_v1, %v13509_v63  ;;  %v13519_v30 = vpack.c.bf16 %v13517_v8, %v13518_v13  ;;  %v13524_v6 = vld [vmem:[#allocation189_spill] sm:$0xff]  ;;  %v13527_v63 = vld [vmem:[#allocation199_spill] sm:$0xff] }
 0x2e3   : > { %7046 = vmatpush1.bf16.msra.mxu1 %v7045_v55  ;;  %v13511_v55 = vld [vmem:[#allocation172_spill] sm:$0xff]  ;;  %v13536_v13 = vld [vmem:[#allocation17_spill] sm:$0xff] }
 0x2e4   : > { %7048 = vmatprep.subr.bf16.mxu1 %v7047_v45  ;;  %6666 = vmatpush1.bf16.msra.mxu0 %v6665_v29  ;;  %v13513_v4 = vpack.c.bf16 %v13511_v55, %v13512_v38  ;;  %v13514_v45 = vld [vmem:[#allocation181_spill] sm:$0xff]  ;;  %v13515_v29 = vld [vmem:[#allocation180_spill] sm:$0xff]  ;;  %v13530_v38 = vld [vmem:[#allocation203_spill] sm:$0xff] }
 0x2e5   : > { %6668 = vmatprep.subr.bf16.mxu0 %v6667_v15  ;;  %v13516_v24 = vpack.c.bf16 %v13514_v45, %v13515_v29  ;;  %v13520_v15 = vld [vmem:[#allocation194_spill] sm:$0xff] }
 0x2e6   : > { %v13533_v29 = vld [vmem:[#allocation26_spill] sm:$0xff] }
 0x2e7   : > { %7050 = vmatpush1.bf16.msra.mxu1 %v7049_v49  ;;  %v13521_v49 = vld [vmem:[#allocation193_spill] sm:$0xff] }
 0x2e8   : > { %7052 = vmatprep.subr.bf16.mxu1 %v7051_v0  ;;  %6670 = vmatpush1.bf16.msra.mxu0 %v6669_v9  ;;  %v13522_v0 = vpack.c.bf16 %v13520_v15, %v13521_v49  ;;  %v13523_v9 = vld [vmem:[#allocation190_spill] sm:$0xff] }
 0x2e9   : > { %6672 = vmatprep.subr.bf16.mxu0 %v13510_v5  ;;  %v13525_v1 = vpack.c.bf16 %v13523_v9, %v13524_v6  ;;  %v13526_v5 = vld [vmem:[#allocation200_spill] sm:$0xff] }
 0x2ea   : > { %v13528_v55 = vpack.c.bf16 %v13526_v5, %v13527_v63 }
 0x2eb   : > { %7054 = vmatpush1.bf16.msra.mxu1 %v13513_v4  ;;  %v13529_v4 = vld [vmem:[#allocation11_spill] sm:$0xff] }
 0x2ec   : > { %7056 = vmatprep.subr.bf16.mxu1 %v13516_v24  ;;  %6674 = vmatpush1.bf16.msra.mxu0 %v13519_v30  ;;  %v13531_v45 = vpack.c.bf16 %v13529_v4, %v13530_v38  ;;  %v13532_v24 = vld [vmem:[#allocation30_spill] sm:$0xff]  ;;  %v13535_v30 = vld [vmem:[#allocation24_spill] sm:$0xff] }
 0x2ed   : > { %6676 = vmatprep.subr.bf16.mxu0 %v13522_v0  ;;  %v13534_v8 = vpack.c.bf16 %v13532_v24, %v13533_v29  ;;  %v13537_v15 = vpack.c.bf16 %v13535_v30, %v13536_v13  ;;  %v13538_v0 = vpack.c.bf16 %v13357_v33, %v13356_v56  ;;  %v13546_v33 = vld [vmem:[#allocation99_spill] sm:$0xff] }
 0x2ef   : > { %7058 = vmatpush1.bf16.msra.mxu1 %v13525_v1  ;;  %v13539_v1 = vld [vmem:[#allocation41_spill] sm:$0xff] }
 0x2f0   : > { %7060 = vmatprep.subr.bf16.mxu1 %v13528_v55  ;;  %6678 = vmatpush1.bf16.msra.mxu0 %v13531_v45  ;;  %v13540_v5 = vpack.c.bf16 %v13360_v41, %v13539_v1  ;;  %v13541_v55 = vpack.c.bf16 %v13364_v22, %v13363_v52  ;;  %v13542_v45 = vpack.c.bf16 %v13362_v40, %v13361_v12  ;;  %v13549_v1 = vld [vmem:[#allocation89_spill] sm:$0xff] }
 0x2f1   : > { %6680 = vmatprep.subr.bf16.mxu0 %v13534_v8  ;;  %v13543_v8 = vpack.c.bf16 %v13367_v44, %v13366_v18 }
 0x2f3   : > { %7062 = vmatpush1.bf16.msra.mxu1 %v13537_v15  ;;  %v13544_v15 = vpack.c.bf16 %v13369_v28, %v13368_v58 }
 0x2f4   : > { %7064 = vmatprep.subr.bf16.mxu1 %v13538_v0  ;;  %6682 = vmatpush1.bf16.msra.mxu0 %v13540_v5  ;;  %v13545_v0 = vld [vmem:[#allocation101_spill] sm:$0xff]  ;;  %v13548_v5 = vld [vmem:[#allocation95_spill] sm:$0xff] }
 0x2f5   : > { %6684 = vmatprep.subr.bf16.mxu0 %v13541_v55  ;;  %v13547_v41 = vpack.c.bf16 %v13545_v0, %v13546_v33  ;;  %v13550_v22 = vpack.c.bf16 %v13548_v5, %v13549_v1  ;;  %v13551_v55 = vld [vmem:[#allocation104_spill] sm:$0xff] }
 0x2f6   : > { %v13552_v40 = vpack.c.bf16 %v13417_v3, %v13551_v55 }
 0x2f7   : > { %7066 = vmatpush1.bf16.msra.mxu1 %v13542_v45  ;;  %v13553_v45 = vld [vmem:[#allocation119_spill] sm:$0xff] }
 0x2f8   : > { %7068 = vmatprep.subr.bf16.mxu1 %v13543_v8  ;;  %6686 = vmatpush1.bf16.msra.mxu0 %v13544_v15  ;;  %v13554_v44 = vpack.c.bf16 %v13377_v47, %v13553_v45  ;;  %v13555_v8 = vpack.c.bf16 %v13429_v11, %v13428_v46  ;;  %v13556_v15 = vld [vmem:[#allocation125_spill] sm:$0xff] }
 0x2f9   : > { %6688 = vmatprep.subr.bf16.mxu0 %v13547_v41  ;;  %v13557_v0 = vpack.c.bf16 %v13379_v36, %v13556_v15  ;;  %v13558_v41 = vpack.c.bf16 %v13431_v2, %v13430_v59 }
 0x2fb   : > { %7070 = vmatpush1.bf16.msra.mxu1 %v13550_v22  ;;  %v13559_v22 = vpack.c.bf16 %v13432_v57, %v13385_v31 }
 0x2fc   : > { %7072 = vmatprep.subr.bf16.mxu1 %v13552_v40  ;;  %6690 = vmatpush1.bf16.msra.mxu0 %v13554_v44  ;;  %v13560_v40 = vpack.c.bf16 %v13390_v16, %v13389_v32  ;;  %v13561_v44 = vpack.c.bf16 %v13388_v61, %v13387_v60  ;;  %v13566_v16 = vld [vmem:[#allocation205_spill] sm:$0xff]  ;;  %v13568_v61 = vld [vmem:[#allocation120_spill] sm:$0xff] }
 0x2fd   : > { %6692 = vmatprep.subr.bf16.mxu0 %v13555_v8  ;;  %v13562_v8 = vpack.c.bf16 %v13435_v50, %v13391_v17  ;;  %v13570_v50 = vld [vmem:[#allocation208_spill] sm:$0xff] }
 0x2ff   : > { %7074 = vmatpush1.bf16.msra.mxu1 %v13557_v0  ;;  %v13563_v0 = vpack.c.bf16 %v13394_v21, %v13393_v26  ;;  %v13588_v21 = vld [vmem:[#allocation48_spill] sm:$0xff] }
 0x300   : > { %7076 = vmatprep.subr.bf16.mxu1 %v13558_v41  ;;  %6694 = vmatpush1.bf16.msra.mxu0 %v13559_v22  ;;  %v13564_v41 = vld [vmem:[#allocation114_spill] sm:$0xff]  ;;  %v13565_v22 = vpack.c.bf16 %v13396_v25, %v13395_v14  ;;  %v13581_v14 = vld [vmem:[#allocation13_spill] sm:$0xff] }
 0x301   : > { %6696 = vmatprep.subr.bf16.mxu0 %v13560_v40  ;;  %v13567_v40 = vld [vmem:[#allocation118_spill] sm:$0xff] }
 0x302   : > { %v13578_v25 = vld [vmem:[#allocation150_spill] sm:$0xff] }
 0x303   : > { %7078 = vmatpush1.bf16.msra.mxu1 %v13561_v44  ;;  %v13569_v44 = vld [vmem:[#allocation133_spill] sm:$0xff] }
 0x304   : > { %7080 = vmatprep.subr.bf16.mxu1 %v13562_v8  ;;  %6698 = vmatpush1.bf16.msra.mxu0 %v13563_v0  ;;  %v13571_v8 = vld [vmem:[#allocation127_spill] sm:$0xff]  ;;  %v13572_v0 = vld [vmem:[#allocation136_spill] sm:$0xff] }
 0x305   : > { %6700 = vmatprep.subr.bf16.mxu0 %v13564_v41  ;;  %v13574_v41 = vld [vmem:[#allocation93_spill] sm:$0xff] }
 0x307   : > { %7082 = vmatpush1.bf16.msra.mxu1 %v13565_v22  ;;  %3756 = vmatmul.mubr.f32.vlgmr.msra.gmra.mrb[2].mxu0 %v13566_v16  ;;  %v13573_v22 = vld [vmem:[#allocation144_spill] sm:$0xff] }
 0x308   : > { %7084 = vmatprep.subr.bf16.mxu1 %v13567_v40  ;;  %6702 = vmatpush1.bf16.msra.mxu0 %v13568_v61  ;;  %v13575_v40 = vld [vmem:[#allocation157_spill] sm:$0xff]  ;;  %v13576_v61 = vld [vmem:[#allocation102_spill] sm:$0xff] }
 0x309   : > { %6704 = vmatprep.subr.bf16.mxu0 %v13569_v44  ;;  %3893 = vmatprep.mubr.f32.mxu0 %v13570_v50  ;;  %v13577_v44 = vld [vmem:[#allocation109_spill] sm:$0xff] }
 0x30a   : > { %5040 = vmatmul.mubr.f32.vlgmr.msra.gmra.mrb[2].mxu1 %v13566_v16  ;;  %v13579_v16 = vld [vmem:[#allocation112_spill] sm:$0xff] }
 0x30b   : > { %7086 = vmatpush1.bf16.msra.mxu1 %v13571_v8  ;;  %5177 = vmatprep.mubr.f32.mxu1 %v13570_v50  ;;  %v13580_v8 = vld [vmem:[#allocation163_spill] sm:$0xff]  ;;  %v13582_v50 = vld [vmem:[#allocation25_spill] sm:$0xff] }
 0x30c   : > { %7088 = vmatprep.subr.bf16.mxu1 %v13572_v0  ;;  %6706 = vmatpush1.bf16.msra.mxu0 %v13573_v22  ;;  %v13583_v0 = vld [vmem:[#allocation18_spill] sm:$0xff]  ;;  %v13584_v22 = vld [vmem:[#allocation27_spill] sm:$0xff] }
 0x30d   : > { %6708 = vmatprep.subr.bf16.mxu0 %v13574_v41  ;;  %v13585_v41 = vld [vmem:[#allocation31_spill] sm:$0xff] }
 0x30f   : > { %7090 = vmatpush1.bf16.msra.mxu1 %v13575_v40  ;;  %v13587_v40 = vld [vmem:[#allocation32_spill] sm:$0xff] }
 0x310   : > { %7092 = vmatprep.subr.bf16.mxu1 %v13576_v61  ;;  %6710 = vmatpush1.bf16.msra.mxu0 %v13577_v44  ;;  %v13586_v61 = vld [vmem:[#allocation40_spill] sm:$0xff] }
 0x311   : > { %6712 = vmatprep.subr.bf16.mxu0 %v13578_v25 }
 0x313   : > { %7094 = vmatpush1.bf16.msra.mxu1 %v13579_v16 }
 0x314   : > { %7096 = vmatprep.subr.bf16.mxu1 %v13580_v8  ;;  %6714 = vmatpush1.bf16.msra.mxu0 %v13581_v14  ;;  %v13589_v8 = vld [vmem:[#allocation46_spill] sm:$0xff] }
 0x315   : > { %6716 = vmatprep.subr.bf16.mxu0 %v13582_v50  ;;  %v13590_v50 = vld [vmem:[#allocation61_spill] sm:$0xff] }
 0x317   : > { %7098 = vmatpush1.bf16.msra.mxu1 %v13583_v0  ;;  %v13592_v0 = vld [vmem:[#allocation62_spill] sm:$0xff] }
 0x318   : > { %7100 = vmatprep.subr.bf16.mxu1 %v13584_v22  ;;  %6718 = vmatpush1.bf16.msra.mxu0 %v13585_v41 }
 0x319   : > { %6720 = vmatprep.subr.bf16.mxu0 %v13586_v61  ;;  %v13591_v61 = vld [vmem:[#allocation53_spill] sm:$0xff] }
 0x31a   : > { %v1732_v44 = vpop.f32.mrb[0].mxu0 }
 0x31b   : > { %7102 = vmatpush1.bf16.msra.mxu1 %v13587_v40  ;;  %v1734_v25 = vpop.f32.mrb[1].mxu0  ;;  %v13593_v40 = vld [vmem:[#allocation67_spill] sm:$0xff] }
 0x31c   : > { %v5597_v16 = vcombine.low %v1732_v44, %v1734_v25  ;;  %7104 = vmatprep.subr.bf16.mxu1 %v13588_v21  ;;  %6722 = vmatpush1.bf16.msra.mxu0 %v13589_v8  ;;  %v3016_v14 = vpop.f32.mrb[0].mxu1  ;;  %v13594_v25 = vld [vmem:[#allocation78_spill] sm:$0xff]  ;;  %v13595_v44 = vld [vmem:[#allocation69_spill] sm:$0xff]  ;;  %v13596_v8 = vld [vmem:[#allocation84_spill] sm:$0xff] }
 0x31d   : > { %6724 = vmatprep.subr.bf16.mxu0 %v13590_v50  ;;  %v3018_v41 = vpop.f32.mrb[1].mxu1  ;;  %v13597_v50 = vld [vmem:[#allocation82_spill] sm:$0xff]  ;;  %v13598_v21 = vld [vmem:[#allocation139_spill] sm:$0xff] }
 0x31e   : > { %5605 = vst [vmem:[%s10859_s19] sm:$0xff] %v5597_v16  ;;  %v5598_v22 = vcombine.low %v3016_v14, %v3018_v41  ;;  %v13599_v16 = vld [vmem:[#allocation90_spill] sm:$0xff]  ;;  %v13601_v41 = vld [vmem:[#allocation165_spill] sm:$0xff] }
 0x31f   : > { %7106 = vmatpush1.bf16.msra.mxu1 %v13591_v61  ;;  %v13600_v14 = vld [vmem:[#allocation142_spill] sm:$0xff] }
 0x320   : > { %7108 = vmatprep.subr.bf16.mxu1 %v13592_v0  ;;  %6726 = vmatpush1.bf16.msra.mxu0 %v13593_v40  ;;  %5606 = vst [vmem:[%s10859_s19 + $0x8] sm:$0xff] %v5598_v22  ;;  %v13602_v0 = vld [vmem:[#allocation174_spill] sm:$0xff]  ;;  %v13603_v40 = vld [vmem:[#allocation169_spill] sm:$0xff] }
 0x321   : > { %6728 = vmatprep.subr.bf16.mxu0 %v13594_v25  ;;  %v13604_v22 = vld [vmem:[#allocation178_spill] sm:$0xff] }
 0x322   : > { %v13605_v25 = vld [vmem:[#allocation182_spill] sm:$0xff] }
 0x323   : > { %7110 = vmatpush1.bf16.msra.mxu1 %v13595_v44  ;;  %v13606_v44 = vld [vmem:[#allocation192_spill] sm:$0xff] }
 0x324   : > { %7112 = vmatprep.subr.bf16.mxu1 %v13596_v8  ;;  %6730 = vmatpush1.bf16.msra.mxu0 %v13597_v50  ;;  %v13607_v8 = vld [vmem:[#allocation187_spill] sm:$0xff]  ;;  %v13608_v50 = vld [vmem:[#allocation197_spill] sm:$0xff] }
 0x325   : > { %6732 = vmatprep.subr.bf16.mxu0 %v13598_v21  ;;  %v13609_v21 = vld [vmem:[#allocation202_spill] sm:$0xff] }
 0x327   : > { %7114 = vmatpush1.bf16.msra.mxu1 %v13599_v16  ;;  %v13610_v16 = vld [vmem:[#allocation20_spill] sm:$0xff] }
 0x328   : > { %7116 = vmatprep.subr.bf16.mxu1 %v13600_v14  ;;  %6734 = vmatpush1.bf16.msra.mxu0 %v13601_v41  ;;  %v13611_v14 = vld [vmem:[#allocation15_spill] sm:$0xff] }
 0x329   : > { %6736 = vmatprep.subr.bf16.mxu0 %v13602_v0  ;;  %v13612_v41 = vld [vmem:[#allocation35_spill] sm:$0xff] }
 0x32a   : > { %v13613_v0 = vld [vmem:[#allocation47_spill] sm:$0xff] }
 0x32b   : > { %7118 = vmatpush1.bf16.msra.mxu1 %v13603_v40  ;;  %v13614_v40 = vld [vmem:[#allocation56_spill] sm:$0xff] }
 0x32c   : > { %7120 = vmatprep.subr.bf16.mxu1 %v13604_v22  ;;  %6738 = vmatpush1.bf16.msra.mxu0 %v13605_v25  ;;  %v13615_v22 = vld [vmem:[#allocation50_spill] sm:$0xff]  ;;  %v13616_v25 = vld [vmem:[#allocation71_spill] sm:$0xff] }
 0x32d   : > { %6740 = vmatprep.subr.bf16.mxu0 %v13606_v44  ;;  %v13617_v44 = vld [vmem:[#allocation77_spill] sm:$0xff] }
 0x32f   : > { %7122 = vmatpush1.bf16.msra.mxu1 %v13607_v8  ;;  %v13618_v8 = vld [vmem:[#allocation92_spill] sm:$0xff] }
 0x330   : > { %7124 = vmatprep.subr.bf16.mxu1 %v13608_v50  ;;  %6742 = vmatpush1.bf16.msra.mxu0 %v13609_v21  ;;  %v13619_v50 = vld [vmem:[#allocation87_spill] sm:$0xff] }
 0x331   : > { %6744 = vmatprep.subr.bf16.mxu0 %v13610_v16  ;;  %v13620_v21 = vld [vmem:[#allocation107_spill] sm:$0xff]  ;;  %v13621_v16 = vld [vmem:[#allocation113_spill] sm:$0xff] }
 0x333   : > { %7126 = vmatpush1.bf16.msra.mxu1 %v13611_v14  ;;  %v13622_v14 = vld [vmem:[#allocation128_spill] sm:$0xff] }
 0x334   : > { %7128 = vmatprep.subr.bf16.mxu1 %v13612_v41  ;;  %6746 = vmatpush1.bf16.msra.mxu0 %v13613_v0  ;;  %v13623_v41 = vld [vmem:[#allocation123_spill] sm:$0xff] }
 0x335   : > { %6748 = vmatprep.subr.bf16.mxu0 %v13614_v40  ;;  %v13624_v0 = vld [vmem:[#allocation143_spill] sm:$0xff]  ;;  %v13625_v40 = vld [vmem:[#allocation149_spill] sm:$0xff] }
 0x337   : > { %7130 = vmatpush1.bf16.msra.mxu1 %v13615_v22  ;;  %v13626_v22 = vld [vmem:[#allocation171_spill] sm:$0xff] }
 0x338   : > { %7132 = vmatprep.subr.bf16.mxu1 %v13616_v25  ;;  %6750 = vmatpush1.bf16.msra.mxu0 %v13617_v44  ;;  %v13627_v44 = vand.u32 4294901760, %v13436_v37  ;;  %v13636_v37 = vand.u32 4294901760, %v13442_v39  ;;  %v13644_v39 = vand.u32 4294901760, %v13449_v51  ;;  %v13655_v51 = vld [vmem:[#allocation103_spill] sm:$0xff] }
 0x339   : > { %6752 = vmatprep.subr.bf16.mxu0 %v13618_v8  ;;  %v13628_v8 = vand.u32 4294901760, %v13437_v42  ;;  %v13637_v42 = vand.u32 4294901760, %v13443_v20  ;;  %v13645_v20 = vand.u32 4294901760, %v13450_v27  ;;  %v13656_v27 = vand.u32 4294901760, %v13655_v51  ;;  %v13671_v51 = vld [vmem:[#allocation162_spill] sm:$0xff] }
 0x33b   : > { %7134 = vmatpush1.bf16.msra.mxu1 %v13619_v50  ;;  %v6763_v25 = vpack.c.bf16 %v13628_v8, %v13627_v44  ;;  %v13629_v50 = vld [vmem:[#allocation159_spill] sm:$0xff]  ;;  %v6767_v8 = vpack.c.bf16 %v13637_v42, %v13636_v37  ;;  %v13638_v44 = vld [vmem:[#allocation196_spill] sm:$0xff] }
 0x33c   : > { %7136 = vmatprep.subr.bf16.mxu1 %v13620_v21  ;;  %6754 = vmatpush1.bf16.msra.mxu0 %v13621_v16  ;;  %v13630_v21 = vld [vmem:[#allocation179_spill] sm:$0xff]  ;;  %v13631_v16 = vld [vmem:[#allocation185_spill] sm:$0xff]  ;;  %v13648_v37 = vld [vmem:[#allocation100_spill] sm:$0xff] }
 0x33d   : > { %6756 = vmatprep.subr.bf16.mxu0 %v13622_v14  ;;  %v13632_v14 = vand.u32 4294901760, %v13438_v10  ;;  %v13640_v10 = vand.u32 4294901760, %v13445_v53  ;;  %v13649_v53 = vand.u32 4294901760, %v13648_v37  ;;  %v13665_v37 = vld [vmem:[#allocation153_spill] sm:$0xff] }
 0x33f   : > { %7138 = vmatpush1.bf16.msra.mxu1 %v13623_v41  ;;  %v13633_v41 = vand.u32 4294901760, %v13439_v23  ;;  %v13641_v23 = vand.u32 4294901760, %v13446_v7  ;;  %v13650_v7 = vld [vmem:[#allocation204_spill] sm:$0xff] }
 0x340   : > { %7140 = vmatprep.subr.bf16.mxu1 %v13624_v0  ;;  %6758 = vmatpush1.bf16.msra.mxu0 %v13625_v40  ;;  %v13634_v40 = vand.u32 4294901760, %v13440_v54  ;;  %v13642_v54 = vand.u32 4294901760, %v13447_v43 }
 0x341   : > { %6760 = vmatprep.subr.bf16.mxu0 %v13626_v22  ;;  %v7147_v0 = vpack.c.bf16 %v13633_v41, %v13632_v14  ;;  %v13635_v22 = vand.u32 4294901760, %v13441_v34  ;;  %v7149_v14 = vpack.c.bf16 %v13641_v23, %v13640_v10  ;;  %v13643_v34 = vand.u32 4294901760, %v13448_v48  ;;  %v13646_v41 = vld [vmem:[#allocation98_spill] sm:$0xff]  ;;  %v13653_v48 = vld [vmem:[#allocation96_spill] sm:$0xff] }
 0x343   : > { %7142 = vmatpush1.bf16.msra.mxu1 %v13629_v50  ;;  %v6765_v61 = vpack.c.bf16 %v13635_v22, %v13634_v40  ;;  %v7151_v40 = vpack.c.bf16 %v13643_v34, %v13642_v54  ;;  %v13647_v22 = vand.u32 4294901760, %v13646_v41  ;;  %v13659_v34 = vld [vmem:[#allocation105_spill] sm:$0xff] }
 0x344   : > { %7144 = vmatprep.subr.bf16.mxu1 %v13630_v21  ;;  %6762 = vmatpush1.bf16.msra.mxu0 %v13631_v16  ;;  %v13639_v21 = vld [vmem:[#allocation207_spill] sm:$0xff] }
 0x345   : > { %6764 = vmatprep.subr.bf16.mxu0 %v6763_v25  ;;  %v6769_v25 = vpack.c.bf16 %v13645_v20, %v13644_v39  ;;  %v6771_v42 = vpack.c.bf16 %v13649_v53, %v13647_v22  ;;  %v13660_v39 = vand.u32 4294901760, %v13659_v34  ;;  %v13661_v20 = vld [vmem:[#allocation106_spill] sm:$0xff]  ;;  %v13666_v53 = vand.u32 4294901760, %v13665_v37 }
 0x346   : > { %v13662_v41 = vand.u32 4294901760, %v13661_v20  ;;  %v13677_v20 = vld [vmem:[#allocation16_spill] sm:$0xff]  ;;  %v13681_v37 = vld [vmem:[#allocation22_spill] sm:$0xff] }
 0x347   : > { %7146 = vmatpush1.bf16.msra.mxu1 %v13638_v44  ;;  %3897 = vmatmul.mubr.f32.vlgmr.msra.gmra.mrb[2].mxu0 %v13639_v21 }
 0x348   : > { %7148 = vmatprep.subr.bf16.mxu1 %v7147_v0  ;;  %6766 = vmatpush1.bf16.msra.mxu0 %v6765_v61  ;;  %v13651_v61 = vld [vmem:[#allocation158_spill] sm:$0xff]  ;;  %v13654_v0 = vand.u32 4294901760, %v13653_v48 }
 0x349   : > { %6768 = vmatprep.subr.bf16.mxu0 %v6767_v8  ;;  %4160 = vmatprep.mubr.f32.mxu0 %v13650_v7  ;;  %v13652_v43 = vand.u32 4294901760, %v13651_v61  ;;  %v13657_v8 = vld [vmem:[#allocation108_spill] sm:$0xff] }
 0x34a   : > { %5181 = vmatmul.mubr.f32.vlgmr.msra.gmra.mrb[2].mxu1 %v13639_v21  ;;  %v13658_v23 = vand.u32 4294901760, %v13657_v8  ;;  %v6773_v21 = vpack.c.bf16 %v13662_v41, %v13660_v39  ;;  %v13673_v8 = vld [vmem:[#allocation12_spill] sm:$0xff]  ;;  %v13675_v39 = vld [vmem:[#allocation14_spill] sm:$0xff]  ;;  %v13678_v41 = vand.u32 4294901760, %v13677_v20  ;;  %v13693_v20 = vld [vmem:[#allocation37_spill] sm:$0xff] }
 0x34b   : > { %7150 = vmatpush1.bf16.msra.mxu1 %v7149_v14  ;;  %v7153_v10 = vpack.c.bf16 %v13654_v0, %v13652_v43  ;;  %5444 = vmatprep.mubr.f32.mxu1 %v13650_v7  ;;  %v13663_v14 = vld [vmem:[#allocation154_spill] sm:$0xff] }
 0x34c   : > { %7152 = vmatprep.subr.bf16.mxu1 %v7151_v40  ;;  %6770 = vmatpush1.bf16.msra.mxu0 %v6769_v25  ;;  %v7155_v54 = vpack.c.bf16 %v13658_v23, %v13656_v27  ;;  %v13664_v22 = vand.u32 4294901760, %v13663_v14  ;;  %v13667_v43 = vld [vmem:[#allocation110_spill] sm:$0xff]  ;;  %v13672_v27 = vand.u32 4294901760, %v13671_v51  ;;  %v13674_v23 = vand.u32 4294901760, %v13673_v8  ;;  %v13687_v51 = vld [vmem:[#allocation28_spill] sm:$0xff]  ;;  %v13689_v8 = vld [vmem:[#allocation29_spill] sm:$0xff] }
 0x34d   : > { %6772 = vmatprep.subr.bf16.mxu0 %v6771_v42  ;;  %v13668_v40 = vand.u32 4294901760, %v13667_v43  ;;  %v13669_v25 = vld [vmem:[#allocation146_spill] sm:$0xff]  ;;  %v13676_v42 = vand.u32 4294901760, %v13675_v39 }
 0x34e   : > { %v6775_v61 = vpack.c.bf16 %v13666_v53, %v13664_v22  ;;  %v13670_v48 = vand.u32 4294901760, %v13669_v25  ;;  %v7159_v34 = vpack.c.bf16 %v13674_v23, %v13672_v27  ;;  %v13679_v22 = vld [vmem:[#allocation21_spill] sm:$0xff]  ;;  %v13682_v53 = vand.u32 4294901760, %v13681_v37  ;;  %v13697_v37 = vld [vmem:[#allocation43_spill] sm:$0xff] }
 0x34f   : > { %7154 = vmatpush1.bf16.msra.mxu1 %v7153_v10  ;;  %v6777_v14 = vpack.c.bf16 %v13678_v41, %v13676_v42  ;;  %v13680_v10 = vand.u32 4294901760, %v13679_v22  ;;  %v13688_v27 = vand.u32 4294901760, %v13687_v51  ;;  %v13690_v23 = vand.u32 4294901760, %v13689_v8  ;;  %v13691_v42 = vld [vmem:[#allocation36_spill] sm:$0xff]  ;;  %v13703_v51 = vld [vmem:[#allocation49_spill] sm:$0xff] }
 0x350   : > { %v7157_v0 = vpack.c.bf16 %v13670_v48, %v13668_v40  ;;  %7156 = vmatprep.subr.bf16.mxu1 %v7155_v54  ;;  %6774 = vmatpush1.bf16.msra.mxu0 %v6773_v21  ;;  %v13683_v40 = vld [vmem:[#allocation19_spill] sm:$0xff]  ;;  %v13694_v41 = vand.u32 4294901760, %v13693_v20  ;;  %v13705_v8 = vld [vmem:[#allocation45_spill] sm:$0xff]  ;;  %v13709_v20 = vld [vmem:[#allocation52_spill] sm:$0xff] }
 0x351   : > { %6776 = vmatprep.subr.bf16.mxu0 %v6775_v61  ;;  %v6779_v43 = vpack.c.bf16 %v13682_v53, %v13680_v10  ;;  %v13684_v54 = vand.u32 4294901760, %v13683_v40  ;;  %v13685_v21 = vld [vmem:[#allocation23_spill] sm:$0xff]  ;;  %v7163_v39 = vpack.c.bf16 %v13690_v23, %v13688_v27  ;;  %v13692_v61 = vand.u32 4294901760, %v13691_v42  ;;  %v13695_v10 = vld [vmem:[#allocation42_spill] sm:$0xff] }
 0x352   : > { %v13686_v25 = vand.u32 4294901760, %v13685_v21  ;;  %v13698_v53 = vand.u32 4294901760, %v13697_v37  ;;  %v13704_v27 = vand.u32 4294901760, %v13703_v51  ;;  %v13706_v23 = vand.u32 4294901760, %v13705_v8  ;;  %v13713_v37 = vld [vmem:[#allocation58_spill] sm:$0xff]  ;;  %v13719_v51 = vld [vmem:[#allocation64_spill] sm:$0xff] }
 0x353   : > { %7158 = vmatpush1.bf16.msra.mxu1 %v7157_v0  ;;  %v6781_v22 = vpack.c.bf16 %v13694_v41, %v13692_v61  ;;  %v13696_v0 = vand.u32 4294901760, %v13695_v10  ;;  %v13707_v61 = vld [vmem:[#allocation51_spill] sm:$0xff]  ;;  %v13710_v41 = vand.u32 4294901760, %v13709_v20  ;;  %v13721_v8 = vld [vmem:[#allocation66_spill] sm:$0xff]  ;;  %v13725_v20 = vld [vmem:[#allocation73_spill] sm:$0xff] }
 0x354   : > { %v7161_v48 = vpack.c.bf16 %v13686_v25, %v13684_v54  ;;  %7160 = vmatprep.subr.bf16.mxu1 %v7159_v34  ;;  %6778 = vmatpush1.bf16.msra.mxu0 %v6777_v14  ;;  %v13699_v54 = vld [vmem:[#allocation34_spill] sm:$0xff]  ;;  %v13701_v14 = vld [vmem:[#allocation39_spill] sm:$0xff]  ;;  %v7167_v42 = vpack.c.bf16 %v13706_v23, %v13704_v27  ;;  %v13720_v27 = vand.u32 4294901760, %v13719_v51  ;;  %v13722_v23 = vand.u32 4294901760, %v13721_v8 }
 0x355   : > { %6780 = vmatprep.subr.bf16.mxu0 %v6779_v43  ;;  %v6783_v40 = vpack.c.bf16 %v13698_v53, %v13696_v0  ;;  %v13700_v34 = vand.u32 4294901760, %v13699_v54  ;;  %v13702_v21 = vand.u32 4294901760, %v13701_v14  ;;  %v13708_v43 = vand.u32 4294901760, %v13707_v61  ;;  %v13711_v0 = vld [vmem:[#allocation57_spill] sm:$0xff] }
 0x356   : > { %v13714_v53 = vand.u32 4294901760, %v13713_v37  ;;  %v7171_v61 = vpack.c.bf16 %v13722_v23, %v13720_v27  ;;  %v13729_v37 = vld [vmem:[#allocation79_spill] sm:$0xff]  ;;  %v13735_v51 = vand.u32 4294901760, %v13496_v19  ;;  %v13736_v27 = vand.u32 4294901760, %v13497_v62  ;;  %v13737_v23 = vld [vmem:[#allocation86_spill] sm:$0xff]  ;;  %v13749_v62 = vld [vmem:[#allocation148_spill] sm:$0xff] }
 0x357   : > { %7162 = vmatpush1.bf16.msra.mxu1 %v7161_v48  ;;  %v7165_v25 = vpack.c.bf16 %v13702_v21, %v13700_v34  ;;  %v6785_v10 = vpack.c.bf16 %v13710_v41, %v13708_v43  ;;  %v13712_v48 = vand.u32 4294901760, %v13711_v0  ;;  %v13715_v34 = vld [vmem:[#allocation55_spill] sm:$0xff]  ;;  %v13723_v43 = vld [vmem:[#allocation72_spill] sm:$0xff]  ;;  %v13726_v41 = vand.u32 4294901760, %v13725_v20 }
 0x358   : > { %7164 = vmatprep.subr.bf16.mxu1 %v7163_v39  ;;  %6782 = vmatpush1.bf16.msra.mxu0 %v6781_v22  ;;  %v13716_v39 = vand.u32 4294901760, %v13715_v34  ;;  %v13717_v22 = vld [vmem:[#allocation60_spill] sm:$0xff]  ;;  %v7175_v8 = vpack.c.bf16 %v13736_v27, %v13735_v51 }
 0x359   : > { %6784 = vmatprep.subr.bf16.mxu0 %v6783_v40  ;;  %v6787_v54 = vpack.c.bf16 %v13714_v53, %v13712_v48  ;;  %v13718_v14 = vand.u32 4294901760, %v13717_v22  ;;  %v13724_v40 = vand.u32 4294901760, %v13723_v43  ;;  %v13727_v48 = vld [vmem:[#allocation76_spill] sm:$0xff]  ;;  %v13730_v53 = vand.u32 4294901760, %v13729_v37 }
 0x35a   : > { %v13739_v43 = vld [vmem:[#allocation88_spill] sm:$0xff] }
 0x35b   : > { %7166 = vmatpush1.bf16.msra.mxu1 %v7165_v25  ;;  %v7169_v21 = vpack.c.bf16 %v13718_v14, %v13716_v39  ;;  %v6789_v0 = vpack.c.bf16 %v13726_v41, %v13724_v40  ;;  %v13728_v25 = vand.u32 4294901760, %v13727_v48  ;;  %v13731_v39 = vld [vmem:[#allocation70_spill] sm:$0xff]  ;;  %v13740_v40 = vand.u32 4294901760, %v13739_v43  ;;  %v13743_v48 = vld [vmem:[#allocation145_spill] sm:$0xff]  ;;  %v13754_v27 = vld [vmem:[#allocation168_spill] sm:$0xff] }
 0x35c   : > { %7168 = vmatprep.subr.bf16.mxu1 %v7167_v42  ;;  %6786 = vmatpush1.bf16.msra.mxu0 %v6785_v10  ;;  %v13732_v42 = vand.u32 4294901760, %v13731_v39  ;;  %v13733_v10 = vld [vmem:[#allocation74_spill] sm:$0xff]  ;;  %v13756_v43 = vld [vmem:[#allocation175_spill] sm:$0xff] }
 0x35d   : > { %6788 = vmatprep.subr.bf16.mxu0 %v6787_v54  ;;  %v6791_v34 = vpack.c.bf16 %v13730_v53, %v13728_v25  ;;  %v13734_v22 = vand.u32 4294901760, %v13733_v10  ;;  %v13738_v54 = vand.u32 4294901760, %v13737_v23  ;;  %v13741_v41 = vld [vmem:[#allocation94_spill] sm:$0xff]  ;;  %v13744_v25 = vand.u32 4294901760, %v13743_v48  ;;  %v13745_v53 = vld [vmem:[#allocation91_spill] sm:$0xff]  ;;  %v13751_v10 = vld [vmem:[#allocation160_spill] sm:$0xff] }
 0x35e   : > { %v13755_v23 = vand.u32 4294901760, %v13754_v27  ;;  %v13760_v48 = vld [vmem:[#allocation170_spill] sm:$0xff] }
 0x35f   : > { %7170 = vmatpush1.bf16.msra.mxu1 %v7169_v21  ;;  %v7173_v14 = vpack.c.bf16 %v13734_v22, %v13732_v42  ;;  %v6793_v20 = vpack.c.bf16 %v13740_v40, %v13738_v54  ;;  %v13742_v21 = vand.u32 4294901760, %v13741_v41  ;;  %v13750_v42 = vand.u32 4294901760, %v13749_v62  ;;  %v13758_v40 = vld [vmem:[#allocation177_spill] sm:$0xff]  ;;  %v13773_v27 = vld [vmem:[#allocation194_spill] sm:$0xff] }
 0x360   : > { %7172 = vmatprep.subr.bf16.mxu1 %v7171_v61  ;;  %6790 = vmatpush1.bf16.msra.mxu0 %v6789_v0  ;;  %v13746_v61 = vand.u32 4294901760, %v13745_v53  ;;  %v13747_v0 = vld [vmem:[#allocation97_spill] sm:$0xff]  ;;  %v13752_v22 = vand.u32 4294901760, %v13751_v10  ;;  %v13759_v41 = vand.u32 4294901760, %v13758_v40  ;;  %v13770_v10 = vld [vmem:[#allocation186_spill] sm:$0xff]  ;;  %v13777_v40 = vand.u32 4294901760, %v13527_v63 }
 0x361   : > { %6792 = vmatprep.subr.bf16.mxu0 %v6791_v34  ;;  %v6795_v37 = vpack.c.bf16 %v13744_v25, %v13742_v21  ;;  %v13748_v39 = vand.u32 4294901760, %v13747_v0  ;;  %v13753_v34 = vand.u32 4294901760, %v13506_v35  ;;  %v13766_v35 = vld [vmem:[#allocation181_spill] sm:$0xff] }
 0x362   : > { %v7179_v51 = vpack.c.bf16 %v13752_v22, %v13750_v42  ;;  %v13768_v42 = vld [vmem:[#allocation184_spill] sm:$0xff]  ;;  %v13771_v22 = vand.u32 4294901760, %v13770_v10  ;;  %v13794_v10 = vld [vmem:[#allocation65_spill] sm:$0xff] }
 0x363   : > { %7174 = vmatpush1.bf16.msra.mxu1 %v7173_v14  ;;  %v7177_v19 = vpack.c.bf16 %v13748_v39, %v13746_v61  ;;  %v6797_v54 = vpack.c.bf16 %v13755_v23, %v13753_v34  ;;  %v13757_v14 = vand.u32 4294901760, %v13756_v43  ;;  %v13764_v61 = vld [vmem:[#allocation180_spill] sm:$0xff]  ;;  %v13767_v39 = vand.u32 4294901760, %v13766_v35 }
 0x364   : > { %7176 = vmatprep.subr.bf16.mxu1 %v7175_v8  ;;  %6794 = vmatpush1.bf16.msra.mxu0 %v6793_v20  ;;  %v13761_v8 = vand.u32 4294901760, %v13760_v48  ;;  %v13762_v20 = vld [vmem:[#allocation172_spill] sm:$0xff]  ;;  %v13765_v0 = vand.u32 4294901760, %v13764_v61  ;;  %v13774_v23 = vand.u32 4294901760, %v13773_v27  ;;  %v13785_v61 = vand.u32 4294901760, %v13535_v30 }
 0x365   : > { %6796 = vmatprep.subr.bf16.mxu0 %v6795_v37  ;;  %v6799_v21 = vpack.c.bf16 %v13759_v41, %v13757_v14  ;;  %v13763_v25 = vand.u32 4294901760, %v13762_v20  ;;  %v13769_v37 = vand.u32 4294901760, %v13768_v42  ;;  %v13778_v41 = vld [vmem:[#allocation200_spill] sm:$0xff]  ;;  %v13796_v30 = vand.u32 4294901760, %v13361_v12 }
 0x366   : > { %v7183_v62 = vpack.c.bf16 %v13767_v39, %v13765_v0  ;;  %v13779_v48 = vand.u32 4294901760, %v13778_v41  ;;  %v13786_v0 = vand.u32 4294901760, %v13356_v56  ;;  %v13789_v39 = vld [vmem:[#allocation41_spill] sm:$0xff]  ;;  %v13791_v42 = vld [vmem:[#allocation44_spill] sm:$0xff]  ;;  %v13799_v27 = vand.u32 4294901760, %v13366_v18 }
 0x367   : > { %7178 = vmatpush1.bf16.msra.mxu1 %v7177_v19  ;;  %v7181_v53 = vpack.c.bf16 %v13763_v25, %v13761_v8  ;;  %v6801_v34 = vpack.c.bf16 %v13771_v22, %v13769_v37  ;;  %v13772_v19 = vand.u32 4294901760, %v13521_v49  ;;  %v13781_v49 = vand.u32 4294901760, %v13529_v4  ;;  %v13805_v41 = vld [vmem:[#allocation101_spill] sm:$0xff] }
 0x368   : > { %7180 = vmatprep.subr.bf16.mxu1 %v7179_v51  ;;  %6798 = vmatpush1.bf16.msra.mxu0 %v6797_v54  ;;  %v13775_v51 = vand.u32 4294901760, %v13524_v6  ;;  %v13776_v54 = vand.u32 4294901760, %v13523_v9  ;;  %v7187_v8 = vpack.c.bf16 %v13779_v48, %v13777_v40  ;;  %v13782_v25 = vand.u32 4294901760, %v13533_v29 }
 0x369   : > { %6800 = vmatprep.subr.bf16.mxu0 %v6799_v21  ;;  %v6803_v43 = vpack.c.bf16 %v13774_v23, %v13772_v19  ;;  %v13780_v21 = vand.u32 4294901760, %v13530_v38  ;;  %v13783_v6 = vand.u32 4294901760, %v13532_v24  ;;  %v13784_v9 = vand.u32 4294901760, %v13536_v13  ;;  %v13787_v38 = vld [vmem:[#allocation38_spill] sm:$0xff]  ;;  %v13800_v23 = vld [vmem:[#allocation75_spill] sm:$0xff] }
 0x36a   : > { %v7185_v14 = vpack.c.bf16 %v13776_v54, %v13775_v51  ;;  %v13788_v35 = vand.u32 4294901760, %v13787_v38  ;;  %v13792_v29 = vand.u32 4294901760, %v13791_v42  ;;  %v13793_v24 = vand.u32 4294901760, %v13363_v52  ;;  %v13831_v42 = vld [vmem:[#allocation188_spill] sm:$0xff] }
 0x36b   : > { %7182 = vmatpush1.bf16.msra.mxu1 %v7181_v53  ;;  %v6805_v20 = vpack.c.bf16 %v13781_v49, %v13780_v21  ;;  %v6807_v53 = vpack.c.bf16 %v13783_v6, %v13782_v25  ;;  %v7189_v63 = vpack.c.bf16 %v13785_v61, %v13784_v9  ;;  %v13795_v13 = vand.u32 4294901760, %v13794_v10 }
 0x36c   : > { %7184 = vmatprep.subr.bf16.mxu1 %v7183_v62  ;;  %6802 = vmatpush1.bf16.msra.mxu0 %v6801_v34  ;;  %v7191_v4 = vpack.c.bf16 %v13788_v35, %v13786_v0  ;;  %v13790_v62 = vand.u32 4294901760, %v13789_v39  ;;  %v13797_v34 = vld [vmem:[#allocation59_spill] sm:$0xff]  ;;  %v13802_v54 = vand.u32 4294901760, %v13368_v58  ;;  %v13803_v52 = vand.u32 4294901760, %v13369_v28  ;;  %v13822_v0 = vld [vmem:[#allocation173_spill] sm:$0xff] }
 0x36d   : > { %6804 = vmatprep.subr.bf16.mxu0 %v6803_v43  ;;  %v6811_v22 = vpack.c.bf16 %v13795_v13, %v13793_v24  ;;  %v13798_v19 = vand.u32 4294901760, %v13797_v34  ;;  %v13801_v43 = vand.u32 4294901760, %v13800_v23  ;;  %v13804_v40 = vand.u32 4294901760, %v13546_v33  ;;  %v13825_v35 = vld [vmem:[#allocation167_spill] sm:$0xff]  ;;  %v13841_v34 = vld [vmem:[#allocation133_spill] sm:$0xff] }
 0x36e   : > { %v6809_v37 = vpack.c.bf16 %v13792_v29, %v13790_v62  ;;  %v13806_v12 = vand.u32 4294901760, %v13805_v41  ;;  %v13808_v21 = vand.u32 4294901760, %v13548_v5  ;;  %v13809_v49 = vand.u32 4294901760, %v13551_v55  ;;  %v13845_v23 = vld [vmem:[#allocation93_spill] sm:$0xff] }
 0x36f   : > { %7186 = vmatpush1.bf16.msra.mxu1 %v7185_v14  ;;  %v7193_v56 = vpack.c.bf16 %v13798_v19, %v13796_v30  ;;  %v7195_v51 = vpack.c.bf16 %v13801_v43, %v13799_v27  ;;  %v6813_v14 = vpack.c.bf16 %v13803_v52, %v13802_v54  ;;  %v13810_v58 = vand.u32 4294901760, %v13417_v3  ;;  %v13839_v30 = vld [vmem:[#allocation118_spill] sm:$0xff]  ;;  %v13842_v19 = vld [vmem:[#allocation127_spill] sm:$0xff]  ;;  %v13844_v27 = vld [vmem:[#allocation144_spill] sm:$0xff] }
 0x370   : > { %7188 = vmatprep.subr.bf16.mxu1 %v7187_v8  ;;  %6806 = vmatpush1.bf16.msra.mxu0 %v6805_v20  ;;  %v6815_v48 = vpack.c.bf16 %v13806_v12, %v13804_v40  ;;  %v13807_v8 = vand.u32 4294901760, %v13549_v1  ;;  %v13811_v20 = vand.u32 4294901760, %v13553_v45  ;;  %v13812_v33 = vand.u32 4294901760, %v13377_v47  ;;  %v13846_v43 = vld [vmem:[#allocation157_spill] sm:$0xff]  ;;  %v13849_v52 = vld [vmem:[#allocation150_spill] sm:$0xff]  ;;  %v13851_v40 = vld [vmem:[#allocation163_spill] sm:$0xff] }
 0x371   : > { %6808 = vmatprep.subr.bf16.mxu0 %v6807_v53  ;;  %v7199_v28 = vpack.c.bf16 %v13810_v58, %v13809_v49  ;;  %v13813_v6 = vand.u32 4294901760, %v13428_v46  ;;  %v13814_v1 = vand.u32 4294901760, %v13429_v11  ;;  %v13815_v5 = vand.u32 4294901760, %v13556_v15  ;;  %v13848_v54 = vld [vmem:[#allocation109_spill] sm:$0xff]  ;;  %v13854_v12 = vld [vmem:[#allocation18_spill] sm:$0xff]  ;;  %v13859_v49 = vld [vmem:[#allocation48_spill] sm:$0xff] }
 0x372   : > { %v7197_v18 = vpack.c.bf16 %v13808_v21, %v13807_v8  ;;  %v6817_v25 = vpack.c.bf16 %v13812_v33, %v13811_v20  ;;  %v13816_v9 = vand.u32 4294901760, %v13379_v36  ;;  %v13817_v3 = vand.u32 4294901760, %v13430_v59  ;;  %v13852_v41 = vld [vmem:[#allocation13_spill] sm:$0xff]  ;;  %v13856_v8 = vld [vmem:[#allocation31_spill] sm:$0xff]  ;;  %v13857_v21 = vld [vmem:[#allocation40_spill] sm:$0xff] }
 0x373   : > { %7190 = vmatpush1.bf16.msra.mxu1 %v7189_v63  ;;  %v6819_v53 = vpack.c.bf16 %v13814_v1, %v13813_v6  ;;  %v13818_v45 = vand.u32 4294901760, %v13431_v2  ;;  %v13819_v61 = vand.u32 4294901760, %v13385_v31  ;;  %v13820_v46 = vand.u32 4294901760, %v13432_v57  ;;  %v13828_v31 = vld [vmem:[#allocation183_spill] sm:$0xff]  ;;  %v13860_v58 = vld [vmem:[#allocation46_spill] sm:$0xff]  ;;  %v13862_v20 = vld [vmem:[#allocation53_spill] sm:$0xff] }
 0x374   : > { %7192 = vmatprep.subr.bf16.mxu1 %v7191_v4  ;;  %6810 = vmatpush1.bf16.msra.mxu0 %v6809_v37  ;;  %v7201_v55 = vpack.c.bf16 %v13816_v9, %v13815_v5  ;;  %v13821_v11 = vand.u32 4294901760, %v13389_v32  ;;  %v13823_v15 = vand.u32 4294901760, %v13822_v0  ;;  %v13824_v36 = vand.u32 4294901760, %v13387_v60  ;;  %v13833_v37 = vld [vmem:[#allocation198_spill] sm:$0xff]  ;;  %v13835_v60 = vld [vmem:[#allocation201_spill] sm:$0xff]  ;;  %v13869_v9 = vld [vmem:[#allocation139_spill] sm:$0xff] }
 0x375   : > { %6812 = vmatprep.subr.bf16.mxu0 %v6811_v22  ;;  %v7203_v47 = vpack.c.bf16 %v13818_v45, %v13817_v3  ;;  %v6821_v63 = vpack.c.bf16 %v13820_v46, %v13819_v61  ;;  %v13826_v4 = vand.u32 4294901760, %v13825_v35  ;;  %v13827_v2 = vand.u32 4294901760, %v13391_v17  ;;  %v13837_v22 = vld [vmem:[#allocation114_spill] sm:$0xff]  ;;  %v13838_v17 = vld [vmem:[#allocation195_spill] sm:$0xff]  ;;  %v13866_v1 = vld [vmem:[#allocation69_spill] sm:$0xff] }
 0x376   : > { %v6823_v38 = vpack.c.bf16 %v13823_v15, %v13821_v11  ;;  %v13829_v39 = vand.u32 4294901760, %v13828_v31  ;;  %v13830_v62 = vand.u32 4294901760, %v13393_v26  ;;  %v13832_v32 = vand.u32 4294901760, %v13831_v42  ;;  %v13840_v26 = vld [vmem:[#allocation120_spill] sm:$0xff]  ;;  %v13863_v33 = vld [vmem:[#allocation62_spill] sm:$0xff]  ;;  %v13872_v45 = vld [vmem:[#allocation165_spill] sm:$0xff] }
 0x377   : > { %7194 = vmatpush1.bf16.msra.mxu1 %v7193_v56  ;;  %v7205_v59 = vpack.c.bf16 %v13826_v4, %v13824_v36  ;;  %v13834_v24 = vand.u32 4294901760, %v13833_v37  ;;  %v13836_v10 = vand.u32 4294901760, %v13835_v60  ;;  %v13843_v56 = vld [vmem:[#allocation136_spill] sm:$0xff]  ;;  %v13865_v6 = vld [vmem:[#allocation78_spill] sm:$0xff]  ;;  %v13874_v61 = vld [vmem:[#allocation169_spill] sm:$0xff] }
 0x378   : > { %7196 = vmatprep.subr.bf16.mxu1 %v7195_v51  ;;  %6814 = vmatpush1.bf16.msra.mxu0 %v6813_v14  ;;  %v7207_v57 = vpack.c.bf16 %v13829_v39, %v13827_v2  ;;  %v6825_v29 = vpack.c.bf16 %v13832_v32, %v13830_v62  ;;  %v13847_v51 = vld [vmem:[#allocation102_spill] sm:$0xff]  ;;  %v13850_v14 = vld [vmem:[#allocation112_spill] sm:$0xff]  ;;  %v13878_v0 = vld [vmem:[#allocation187_spill] sm:$0xff] }
 0x379   : > { %6816 = vmatprep.subr.bf16.mxu0 %v6815_v48  ;;  %v7209_v13 = vpack.c.bf16 %v13836_v10, %v13834_v24  ;;  %v13855_v48 = vld [vmem:[#allocation27_spill] sm:$0xff]  ;;  %v13868_v5 = vld [vmem:[#allocation82_spill] sm:$0xff]  ;;  %v13877_v11 = vld [vmem:[#allocation192_spill] sm:$0xff] }
 0x37a   : > { %v13871_v3 = vld [vmem:[#allocation142_spill] sm:$0xff]  ;;  %v13879_v15 = vld [vmem:[#allocation197_spill] sm:$0xff]  ;;  %v13881_v36 = vld [vmem:[#allocation20_spill] sm:$0xff] }
 0x37b   : > { %7198 = vmatpush1.bf16.msra.mxu1 %v7197_v18  ;;  %v13858_v18 = vld [vmem:[#allocation32_spill] sm:$0xff]  ;;  %v13875_v46 = vld [vmem:[#allocation178_spill] sm:$0xff]  ;;  %v13882_v35 = vld [vmem:[#allocation15_spill] sm:$0xff] }
 0x37c   : > { %7200 = vmatprep.subr.bf16.mxu1 %v7199_v28  ;;  %6818 = vmatpush1.bf16.msra.mxu0 %v6817_v25  ;;  %v13861_v28 = vld [vmem:[#allocation61_spill] sm:$0xff]  ;;  %v13864_v25 = vld [vmem:[#allocation67_spill] sm:$0xff]  ;;  %v13885_v2 = vld [vmem:[#allocation56_spill] sm:$0xff] }
 0x37d   : > { %6820 = vmatprep.subr.bf16.mxu0 %v6819_v53  ;;  %v13867_v53 = vld [vmem:[#allocation84_spill] sm:$0xff]  ;;  %v13883_v4 = vld [vmem:[#allocation35_spill] sm:$0xff]  ;;  %v13886_v31 = vld [vmem:[#allocation50_spill] sm:$0xff] }
 0x37e   : > { %v13887_v39 = vld [vmem:[#allocation71_spill] sm:$0xff]  ;;  %v13889_v62 = vld [vmem:[#allocation92_spill] sm:$0xff]  ;;  %v13896_v10 = vld [vmem:[#allocation149_spill] sm:$0xff] }
 0x37f   : > { %7202 = vmatpush1.bf16.msra.mxu1 %v7201_v55  ;;  %v13870_v55 = vld [vmem:[#allocation90_spill] sm:$0xff]  ;;  %v13890_v42 = vld [vmem:[#allocation87_spill] sm:$0xff]  ;;  %v13893_v37 = vld [vmem:[#allocation128_spill] sm:$0xff] }
 0x380   : > { %7204 = vmatprep.subr.bf16.mxu1 %v7203_v47  ;;  %6822 = vmatpush1.bf16.msra.mxu0 %v6821_v63  ;;  %v13873_v47 = vld [vmem:[#allocation174_spill] sm:$0xff]  ;;  %v13891_v32 = vld [vmem:[#allocation107_spill] sm:$0xff] }
 0x381   : > { %6824 = vmatprep.subr.bf16.mxu0 %v6823_v38  ;;  %v13876_v63 = vld [vmem:[#allocation182_spill] sm:$0xff]  ;;  %v13894_v24 = vld [vmem:[#allocation123_spill] sm:$0xff] }
 0x382   : > { %v13880_v38 = vld [vmem:[#allocation202_spill] sm:$0xff]  ;;  %v13895_v60 = vld [vmem:[#allocation143_spill] sm:$0xff] }
 0x383   : > { %7206 = vmatpush1.bf16.msra.mxu1 %v7205_v59  ;;  %v13884_v59 = vld [vmem:[#allocation47_spill] sm:$0xff] }
 0x384   : > { %7208 = vmatprep.subr.bf16.mxu1 %v7207_v57  ;;  %6826 = vmatpush1.bf16.msra.mxu0 %v6825_v29  ;;  %v13888_v57 = vld [vmem:[#allocation77_spill] sm:$0xff] }
 0x385   : > { %6828 = vmatprep.subr.bf16.mxu0 %v13837_v22  ;;  %v13892_v29 = vld [vmem:[#allocation113_spill] sm:$0xff]  ;;  %v13898_v22 = vld [vmem:[#allocation179_spill] sm:$0xff] }
 0x387   : > { %7210 = vmatpush1.bf16.msra.mxu1 %v7209_v13  ;;  %4162 = vmatmul.mubr.f32.vlgmr.msra.gmra.mrb[2].mxu0 %v13838_v17  ;;  %v13897_v13 = vld [vmem:[#allocation171_spill] sm:$0xff] }
 0x388   : > { %7212 = vmatprep.subr.bf16.mxu1 %v13839_v30  ;;  %6830 = vmatpush1.bf16.msra.mxu0 %v13840_v26 }
 0x389   : > { %6832 = vmatprep.subr.bf16.mxu0 %v13841_v34  ;;  %4297 = vmatprep.mubr.f32.mxu0 %v13650_v7 }
 0x38a   : > { %5446 = vmatmul.mubr.f32.vlgmr.msra.gmra.mrb[2].mxu1 %v13838_v17 }
 0x38b   : > { %7214 = vmatpush1.bf16.msra.mxu1 %v13842_v19  ;;  %5581 = vmatprep.mubr.f32.mxu1 %v13650_v7  ;;  %v13853_v7 = vld [vmem:[#allocation25_spill] sm:$0xff] }
 0x38c   : > { %7216 = vmatprep.subr.bf16.mxu1 %v13843_v56  ;;  %6834 = vmatpush1.bf16.msra.mxu0 %v13844_v27 }
 0x38d   : > { %6836 = vmatprep.subr.bf16.mxu0 %v13845_v23 }
 0x38f   : > { %7218 = vmatpush1.bf16.msra.mxu1 %v13846_v43 }
 0x390   : > { %7220 = vmatprep.subr.bf16.mxu1 %v13847_v51  ;;  %6838 = vmatpush1.bf16.msra.mxu0 %v13848_v54 }
 0x391   : > { %6840 = vmatprep.subr.bf16.mxu0 %v13849_v52 }
 0x393   : > { %7222 = vmatpush1.bf16.msra.mxu1 %v13850_v14 }
 0x394   : > { %7224 = vmatprep.subr.bf16.mxu1 %v13851_v40  ;;  %6842 = vmatpush1.bf16.msra.mxu0 %v13852_v41 }
 0x395   : > { %6844 = vmatprep.subr.bf16.mxu0 %v13853_v7 }
 0x397   : > { %7226 = vmatpush1.bf16.msra.mxu1 %v13854_v12 }
 0x398   : > { %7228 = vmatprep.subr.bf16.mxu1 %v13855_v48  ;;  %6846 = vmatpush1.bf16.msra.mxu0 %v13856_v8 }
 0x399   : > { %6848 = vmatprep.subr.bf16.mxu0 %v13857_v21 }
 0x39b   : > { %7230 = vmatpush1.bf16.msra.mxu1 %v13858_v18 }
 0x39c   : > { %7232 = vmatprep.subr.bf16.mxu1 %v13859_v49  ;;  %6850 = vmatpush1.bf16.msra.mxu0 %v13860_v58 }
 0x39d   : > { %6852 = vmatprep.subr.bf16.mxu0 %v13861_v28 }
 0x39f   : > { %7234 = vmatpush1.bf16.msra.mxu1 %v13862_v20 }
 0x3a0   : > { %7236 = vmatprep.subr.bf16.mxu1 %v13863_v33  ;;  %6854 = vmatpush1.bf16.msra.mxu0 %v13864_v25 }
 0x3a1   : > { %6856 = vmatprep.subr.bf16.mxu0 %v13865_v6 }
 0x3a3   : > { %7238 = vmatpush1.bf16.msra.mxu1 %v13866_v1 }
 0x3a4   : > { %7240 = vmatprep.subr.bf16.mxu1 %v13867_v53  ;;  %6858 = vmatpush1.bf16.msra.mxu0 %v13868_v5 }
 0x3a5   : > { %6860 = vmatprep.subr.bf16.mxu0 %v13869_v9 }
 0x3a7   : > { %7242 = vmatpush1.bf16.msra.mxu1 %v13870_v55 }
 0x3a8   : > { %7244 = vmatprep.subr.bf16.mxu1 %v13871_v3  ;;  %6862 = vmatpush1.bf16.msra.mxu0 %v13872_v45 }
 0x3a9   : > { %6864 = vmatprep.subr.bf16.mxu0 %v13873_v47 }
 0x3ab   : > { %7246 = vmatpush1.bf16.msra.mxu1 %v13874_v61 }
 0x3ac   : > { %7248 = vmatprep.subr.bf16.mxu1 %v13875_v46  ;;  %6866 = vmatpush1.bf16.msra.mxu0 %v13876_v63 }
 0x3ad   : > { %6868 = vmatprep.subr.bf16.mxu0 %v13877_v11 }
 0x3af   : > { %7250 = vmatpush1.bf16.msra.mxu1 %v13878_v0 }
 0x3b0   : > { %7252 = vmatprep.subr.bf16.mxu1 %v13879_v15  ;;  %6870 = vmatpush1.bf16.msra.mxu0 %v13880_v38 }
 0x3b1   : > { %6872 = vmatprep.subr.bf16.mxu0 %v13881_v36 }
 0x3b3   : > { %7254 = vmatpush1.bf16.msra.mxu1 %v13882_v35 }
 0x3b4   : > { %7256 = vmatprep.subr.bf16.mxu1 %v13883_v4  ;;  %6874 = vmatpush1.bf16.msra.mxu0 %v13884_v59 }
 0x3b5   : > { %6876 = vmatprep.subr.bf16.mxu0 %v13885_v2 }
 0x3b7   : > { %7258 = vmatpush1.bf16.msra.mxu1 %v13886_v31 }
 0x3b8   : > { %7260 = vmatprep.subr.bf16.mxu1 %v13887_v39  ;;  %6878 = vmatpush1.bf16.msra.mxu0 %v13888_v57 }
 0x3b9   : > { %6880 = vmatprep.subr.bf16.mxu0 %v13889_v62 }
 0x3bb   : > { %7262 = vmatpush1.bf16.msra.mxu1 %v13890_v42 }
 0x3bc   : > { %7264 = vmatprep.subr.bf16.mxu1 %v13891_v32  ;;  %6882 = vmatpush1.bf16.msra.mxu0 %v13892_v29 }
 0x3bd   : > { %6884 = vmatprep.subr.bf16.mxu0 %v13893_v37 }
 0x3bf   : > { %7266 = vmatpush1.bf16.msra.mxu1 %v13894_v24 }
 0x3c0   : > { %7268 = vmatprep.subr.bf16.mxu1 %v13895_v60  ;;  %6886 = vmatpush1.bf16.msra.mxu0 %v13896_v10 }
 0x3c1   : > { %6888 = vmatprep.subr.bf16.mxu0 %v13897_v13 }
 0x3c3   : > { %7270 = vmatpush1.bf16.msra.mxu1 %v13629_v50 }
 0x3c4   : > { %7272 = vmatprep.subr.bf16.mxu1 %v13898_v22  ;;  %6890 = vmatpush1.bf16.msra.mxu0 %v13631_v16 }
 0x3c7   : > { %7274 = vmatpush1.bf16.msra.mxu1 %v13638_v44  ;;  %4299 = vmatmul.mubr.f32.vlgmr.msra.gmra.mrb[2].mxu0 %v13838_v17 }
 0x3ca   : > { %5583 = vmatmul.mubr.f32.vlgmr.msra.gmra.mrb[2].mxu1 %v13838_v17 }
 0x49a   : > { %v4300_v30 = vpop.f32.mrb[2].mxu0 }
 0x49b   : > { %v4302_v26 = vpop.f32.mrb[3].mxu0 }
 0x49c   : > { %v5599_v34 = vcombine.low %v4300_v30, %v4302_v26 }
 0x49d   : > { %v5584_v19 = vpop.f32.mrb[2].mxu1 }
 0x49e   : > { %5607 = vst [vmem:[%s10859_s19 + $0x10] sm:$0xff] %v5599_v34  ;;  %v5586_v50 = vpop.f32.mrb[3].mxu1 }
 0x49f   : > { %v5600_v56 = vcombine.low %v5584_v19, %v5586_v50 }
 0x4a1   : > { %5608 = vst [vmem:[%s10859_s19 + $0x18] sm:$0xff] %v5600_v56 }
 0x4a2   : > { %7462 = shalt.err (!%p7459_p5)
}
 0x4a3   : > { %s7463_s29 = scalar_lea.hbm %s11239_s7, 512  ;;  %s7467_s18 = scalar_lea.hbm %s11291_s2, 1024 }
 0x4a4   : > { %p7464_p9 = scmp.ne.s32.totalorder %s11239_s7, %s7463_s29  ;;  %p7468_p7 = scmp.lt.u32.totalorder %s11239_s7, %s11291_s2 }
 0x4a5   : > { %p7469_p3 = scmp.lt.u32.totalorder %s7467_s18, %s7463_s29  ;;  %p7471_p4 = scmp.lt.u32.totalorder %s7463_s29, %s11239_s7 }
 0x4a6   : > { %p7465_p1 = pnand %p7464_p9, %p7653_p10 }
 0x4a7   : > { %p7470_p13 = por %p7469_p3, %p7468_p7 }
 0x4a8   : > { %p7466_p2 = pneg %p7465_p1 }
 0x4a9   : > { %p7472_p6 = por %p7471_p4, %p7470_p13 }
 0x4ab   : > { %p7473_p8 = pnand %p7472_p6, %p7466_p2 }
 0x4ad   : > { %7476 = shalt.err (!%p7473_p8)
}
 0x4ae   : > { %7321 = dma.vmem_to_hbm [thread:$0]  (%p7653_p10), %s11241_s4, 512, %s11239_s7, %s5610_s24  }
 0x4af PF: > { %s5638_s16 = sand.u32 1, %s7515_s9   ;;  %p13899_p12 = scmp.ne.s32.totalorder %s12175_s20, 0 }
 0x4b0   : > { %p13900_p11 = scmp.ge.s32.totalorder %s7535_s14, 2  ;;  %s5639_s17 = scalar_lea.sflag [#allocation4], %s5638_s16 }
 0x4b2   : > { %p7332_p0 = pnand %p13900_p11, %p13899_p12 }
 0x4b4   : > { %7510 = dma.done.wait (!%p7332_p0), %s5639_s17, 512  }
 0x4b5   : > { %7512 = vsyncadd (!%p7332_p0), %s5639_s17, 4294966784  ;;  %s19_s14 = sadd.s32 1, %s7535_s14   ;;  %s13901_s9 = smov %s7519_s10 }
 0x4b6   : > { %p16_p5 = scmp.ge.s32.totalorder %s19_s14, 4   ;;  %s13902_s10 = smov %s7523_s11 }
 0x4b7   : > { %s13903_s11 = smov %s7662_s28  ;;  %s13904_s12 = smov %s7531_s13 }
 0x4b8   : > { %s13905_s13 = smov %s13907_s25  ;;  %18 = sbr.rel (!%p16_p5) target bundleno = 7 (0x7), region = 77 }
 0x4bf   :  { %5644 = vsyncpa [#allocation3], 1 }
 0x4c0   :  { %5646 = vsyncpa [#allocation3 + $0x1], 1 }
 0x4c1   :  { %5647 = vsyncpa [#allocation6], 1 }
 0x4c2   :  { %5648 = vsyncpa [#allocation4], 1 }
 0x4c3   :  { %5650 = vsyncpa [#allocation4 + $0x1], 1 }

</bundles_post_ra>
